<compile_context>
chip_gen: v5e
topology: v5e:2x2
jax: 0.10.0
libtpu: 0.0.40
codegen_flags: <defaults>
</compile_context>

<pallas_src>
import math
from functools import partial

import jax
import jax.numpy as jnp
from jax.experimental import pallas as pl
from jax.experimental.pallas import tpu as pltpu

# Matmul operand dtype (f32 accumulate always). Set to jnp.float32 for exact-parity tests.
MM_DTYPE = jnp.bfloat16


# ----------------------------- fused Pallas kernel -----------------------------

def _fused_forward_kernel(x_ref, consts_ref, w_ep_ref, w_in_ref, w_down_ref, o_ref,
                          *, n_heads, activation, eps):
    f32 = jnp.float32

    BB, L, F = x_ref.shape                      # batch-block, seq len, unfold+mark feats
    E = w_in_ref.shape[0]                       # encoder layers
    d_model = w_down_ref.shape[2]
    d_ff = w_down_ref.shape[1] - d_model
    Dh = d_model // n_heads
    P = o_ref.shape[1]                          # pred_len
    c_out = o_ref.shape[2]
    scale = 1.0 / math.sqrt(Dh)

    def mm(a, b):
        return jnp.dot(a.astype(MM_DTYPE), b.astype(MM_DTYPE),
                       preferred_element_type=f32)

    def mm_nt(a, b):                            # a (m,k) @ b (n,k)^T -> (m,n)
        return jax.lax.dot_general(a.astype(MM_DTYPE), b.astype(MM_DTYPE),
                                   (((1,), (1,)), ((), ())),
                                   preferred_element_type=f32)

    def layernorm(z, g, b):
        mean = jnp.mean(z, axis=-1, keepdims=True)
        var = jnp.mean((z - mean) ** 2, axis=-1, keepdims=True)
        return (z - mean) * jax.lax.rsqrt(var + eps) * g + b

    def crow(r, w):                             # one (1, w) row of packed f32 constants
        return consts_ref[r:r + 1, :w]

    # --- DataEmbedding: [token-unfold | time-marks] @ [w_token ; w_temporal] + PE ---
    x = jnp.concatenate([x_ref[b].astype(f32) for b in range(BB)], axis=0)   # (BB*L, F)
    h = mm(x, w_ep_ref[:F, :])                                               # (BB*L, dm)
    pe = consts_ref[:L, :d_model]
    h = h + jnp.concatenate([pe] * BB, axis=0)

    # shared-QK self mask: a token never attends to itself (reformer semantics)
    row = jax.lax.broadcasted_iota(jnp.int32, (L, L), 0)
    col = jax.lax.broadcasted_iota(jnp.int32, (L, L), 1)
    self_mask = row == col

    cbase = L
    for l in range(E):
        r0 = cbase + 7 * l
        b_out = crow(r0 + 0, d_model)
        n1_g = crow(r0 + 1, d_model)
        n1_b = crow(r0 + 2, d_model)
        b_ff1 = crow(r0 + 3, d_ff)
        b_ff2 = crow(r0 + 4, d_model)
        n2_g = crow(r0 + 5, d_model)
        n2_b = crow(r0 + 6, d_model)

        # fused shared-QK | V projection, batch folded into M
        qkv = mm(h, w_in_ref[l, :d_model, :2 * d_model])        # (BB*L, 2*d_model)

        attn_rows = []
        for b in range(BB):                                     # tiny static loop
            qk_b = qkv[b * L:(b + 1) * L, :d_model]
            v_b = qkv[b * L:(b + 1) * L, d_model:]
            acc = None
            for hh in range(n_heads):
                q_h = qk_b[:, hh * Dh:(hh + 1) * Dh]            # (L, Dh)
                v_h = v_b[:, hh * Dh:(hh + 1) * Dh]
                # reformer shared-QK: keys are l2-normalized queries
                k_h = q_h * jax.lax.rsqrt(
                    jnp.sum(q_h * q_h, axis=-1, keepdims=True) + 1e-12)
                s = mm_nt(q_h, k_h) * scale
                s = jnp.where(self_mask, jnp.float32(-5e4), s)
                p = jnp.exp(s - jnp.max(s, axis=-1, keepdims=True))
                denom = jnp.sum(p, axis=-1, keepdims=True)
                # normalize AFTER the PV matmul; exact reciprocal for parity
                o_h = mm(p, v_h) * pl.reciprocal(denom, approx=False)
                # concat-of-heads folded into the output projection (per-head slice of W_out)
                contrib = mm(o_h, w_down_ref[l, hh * Dh:(hh + 1) * Dh, :])
                acc = contrib if acc is None else acc + contrib
            attn_rows.append(acc)
        attn = (attn_rows[0] if BB == 1
                else jnp.concatenate(attn_rows, axis=0)) + b_out

        x1 = layernorm(h + attn, n1_g, n1_b)

        ff = mm(x1, w_in_ref[l, d_model:, :d_ff]) + b_ff1        # Conv1d(k=1) == matmul
        if activation == "relu":
            ff = jnp.maximum(ff, 0.0)
        else:
            ff = jax.nn.gelu(ff)
        ff = mm(ff, w_down_ref[l, d_model:, :]) + b_ff2
        h = layernorm(x1 + ff, n2_g, n2_b)

    # final LayerNorm + projection only on the rows the caller keeps (last pred_len each)
    r0 = cbase + 7 * E
    enc_g = crow(r0 + 0, d_model)
    enc_b = crow(r0 + 1, d_model)
    b_proj = crow(r0 + 2, c_out)

    tails = [h[b * L + (L - P):(b + 1) * L, :] for b in range(BB)]
    h_tail = tails[0] if BB == 1 else jnp.concatenate(tails, axis=0)   # (BB*P, d_model)
    h_tail = layernorm(h_tail, enc_g, enc_b)
    out = mm(h_tail, w_ep_ref[F:F + d_model, :])[:, :c_out] + b_proj
    for b in range(BB):
        o_ref[b] = out[b * P:(b + 1) * P, :].astype(o_ref.dtype)


# ----------------------------- model glue -----------------------------

def positional_encoding(L, d_model):
    pos = jnp.arange(L, dtype=jnp.float32)[:, None]
    div = jnp.exp(jnp.arange(0, d_model, 2, dtype=jnp.float32)
                  * (-math.log(10000.0) / d_model))
    pe_sin = jnp.sin(pos * div)
    pe_cos = jnp.cos(pos * div)
    return jnp.stack([pe_sin, pe_cos], axis=-1).reshape(L, d_model)  # interleave sin/cos


def init_params(key, cfg):
    d_model, d_ff = cfg["d_model"], cfg["d_ff"]
    c_in, c_out, n_mark = cfg["enc_in"], cfg["c_out"], cfg["n_mark"]
    E = cfg["e_layers"]

    def nrm(k, shape, scale=0.05):
        return (scale * jax.random.normal(k, shape)).astype(jnp.float32)

    ks = iter(jax.random.split(key, 16))
    return {
        # TokenEmbedding: Conv1d(c_in, d_model, k=3, circular, bias=False) flattened
        # tap-major in order [t-1, t, t+1] to match the roll/concat unfold below.
        "w_token": nrm(next(ks), (3 * c_in, d_model)),
        # TimeFeatureEmbedding ('timeF', freq='h' -> 4 marks): Linear(n_mark, d_model, no bias)
        "w_temporal": nrm(next(ks), (n_mark, d_model)),
        "w_qkv": nrm(next(ks), (E, d_model, 2 * d_model)),  # [shared-QK | V], no bias
        "w_out": nrm(next(ks), (E, d_model, d_model)),
        "b_out": jnp.zeros((E, d_model), jnp.float32),
        "norm1_g": jnp.ones((E, d_model), jnp.float32),
        "norm1_b": jnp.zeros((E, d_model), jnp.float32),
        "w_ff1": nrm(next(ks), (E, d_model, d_ff)),          # Conv1d(d_model, d_ff, k=1)
        "b_ff1": jnp.zeros((E, d_ff), jnp.float32),
        "w_ff2": nrm(next(ks), (E, d_ff, d_model)),          # Conv1d(d_ff, d_model, k=1)
        "b_ff2": jnp.zeros((E, d_model), jnp.float32),
        "norm2_g": jnp.ones((E, d_model), jnp.float32),
        "norm2_b": jnp.zeros((E, d_model), jnp.float32),
        "enc_norm_g": jnp.ones((d_model,), jnp.float32),
        "enc_norm_b": jnp.zeros((d_model,), jnp.float32),
        "w_proj": nrm(next(ks), (d_model, c_out)),
        "b_proj": jnp.zeros((c_out,), jnp.float32),
    }


def _num_grid_steps(B):
    """2 grid steps on v7x (one batch half per TensorCore), 1 on single-TC v5e/v6e."""
    steps = 1
    try:
        kind = jax.devices()[0].device_kind.lower().replace(" ", "")
        if "v7" in kind or "tpu7" in kind:
            steps = 2
    except Exception:
        pass
    if steps > B or B % steps != 0:
        steps = 1
    return steps


def reformer_forward(params, x_enc, x_mark_enc, x_dec, x_mark_dec, cfg):
    pred_len = cfg["pred_len"]
    d_model, n_heads, c_out = cfg["d_model"], cfg["n_heads"], cfg["c_out"]
    d_ff, E = cfg["d_ff"], cfg["e_layers"]

    # BERT-style concat of encoder input with the decoder's prediction window
    x = jnp.concatenate([x_enc, x_dec[:, -pred_len:, :]], axis=1)        # (B, L, c_in)
    xm = jnp.concatenate([x_mark_enc, x_mark_dec[:, -pred_len:, :]], axis=1)
    B, L, Cin = x.shape
    n_mark = xm.shape[-1]
    F = 3 * Cin + n_mark

    # circular k=3 unfold (taps [t-1, t, t+1]) fused with time marks -> single embed matmul
    x_cat = jnp.concatenate(
        [jnp.roll(x, 1, axis=1), x, jnp.roll(x, -1, axis=1), xm], axis=-1)  # (B, L, F)

    # ---- pack all tiny f32 constants (PE + every bias / LayerNorm vector) into ONE input ----
    Wc = max(d_ff, d_model, c_out)
    pad = lambda a: jnp.pad(a, ((0, 0), (0, Wc - a.shape[1])))
    rows = [pad(positional_encoding(L, d_model))]
    for l in range(E):
        rows += [pad(params[k][l:l + 1]) for k in
                 ("b_out", "norm1_g", "norm1_b", "b_ff1", "b_ff2", "norm2_g", "norm2_b")]
    rows += [pad(params["enc_norm_g"][None, :]), pad(params["enc_norm_b"][None, :]),
             pad(params["b_proj"][None, :])]
    consts = jnp.concatenate(rows, axis=0).astype(jnp.float32)   # (L + 7E + 3, Wc)

    # ---- pack + pre-cast (bf16) matmul weights into three inputs ----
    w_ep = jnp.concatenate(
        [jnp.concatenate([params["w_token"], params["w_temporal"]], axis=0),
         jnp.pad(params["w_proj"], ((0, 0), (0, d_model - c_out)))],
        axis=0).astype(MM_DTYPE)                                  # (F + d_model, d_model)
    W_up = max(2 * d_model, d_ff)
    pad3 = lambda a: jnp.pad(a, ((0, 0), (0, 0), (0, W_up - a.shape[2])))
    w_in = jnp.concatenate([pad3(params["w_qkv"]), pad3(params["w_ff1"])],
                           axis=1).astype(MM_DTYPE)               # (E, 2*d_model, W_up)
    w_down = jnp.concatenate([params["w_out"], params["w_ff2"]],
                             axis=1).astype(MM_DTYPE)             # (E, d_model+d_ff, d_model)

    G = _num_grid_steps(B)
    BB = B // G

    kernel = partial(_fused_forward_kernel, n_heads=n_heads,
                     activation=cfg["activation"], eps=1e-5)

    cmap2 = lambda g: (0, 0)
    cmap3 = lambda g: (0, 0, 0)

    out = pl.pallas_call(
        kernel,
        out_shape=jax.ShapeDtypeStruct((B, pred_len, c_out), x.dtype),
        grid=(G,),
        in_specs=[
            pl.BlockSpec((BB, L, F), lambda g: (g, 0, 0)),
            pl.BlockSpec(consts.shape, cmap2),
            pl.BlockSpec(w_ep.shape, cmap2),
            pl.BlockSpec(w_in.shape, cmap3),
            pl.BlockSpec(w_down.shape, cmap3),
        ],
        out_specs=pl.BlockSpec((BB, pred_len, c_out), lambda g: (g, 0, 0)),
        compiler_params=pltpu.CompilerParams(
            dimension_semantics=("parallel",)),
    )(x_cat, consts, w_ep, w_in, w_down)

    return out


# ----------------------------- main -----------------------------

if __name__ == "__main__":
    cfg = dict(
        enc_in=4, c_out=4, n_mark=4,            # freq='h' -> 4 time features (embed='timeF')
        d_model=32, n_heads=4, e_layers=2, d_ff=64,
        seq_len=16, label_len=8, pred_len=8,
        activation="relu",
        bucket_size=4, n_hashes=4,              # unused: LSH replaced by dense attention
    )
    B = 2
    key = jax.random.PRNGKey(0)
    k1, k2, k3, k4, kp = jax.random.split(key, 5)
    dec_len = cfg["label_len"] + cfg["pred_len"]

    x_enc = jax.random.normal(k1, (B, cfg["seq_len"], cfg["enc_in"]), jnp.float32)
    x_mark_enc = jax.random.normal(k2, (B, cfg["seq_len"], cfg["n_mark"]), jnp.float32)
    x_dec = jax.random.normal(k3, (B, dec_len, cfg["enc_in"]), jnp.float32)
    x_mark_dec = jax.random.normal(k4, (B, dec_len, cfg["n_mark"]), jnp.float32)

    params = init_params(kp, cfg)
    fwd = jax.jit(partial(reformer_forward, cfg=cfg))
    out = fwd(params, x_enc, x_mark_enc, x_dec, x_mark_dec)
    out = jax.block_until_ready(out)
    assert out.shape == (B, cfg["pred_len"], cfg["c_out"]), out.shape
    assert bool(jnp.all(jnp.isfinite(out)))
    print("KERNEL_OK")
</pallas_src>

<mosaic_0001>
module attributes {stable_mosaic.version = 11 : i64} {
  func.func @_fused_forward_kernel(%arg0: i32, %arg1: memref<2x24x16xf32, #tpu.memory_space<vmem>>, %arg2: memref<41x64xf32, #tpu.memory_space<vmem>>, %arg3: memref<48x32xbf16, #tpu.memory_space<vmem>>, %arg4: memref<2x64x64xbf16, #tpu.memory_space<vmem>>, %arg5: memref<2x96x32xbf16, #tpu.memory_space<vmem>>, %arg6: memref<2x8x4xf32, #tpu.memory_space<vmem>>) attributes {dimension_semantics = [#tpu.dimension_semantics<parallel>], iteration_bounds = array<i64: 1>, scalar_prefetch = 0 : i64, scratch_operands = 0 : i64, tpu.core_type = #tpu.core_type<tc>, window_params = [{transform_indices = @transform_0, window_bounds = array<i64: 2, 24, 16>}, {pipeline_mode = #tpu.pipeline_mode<synchronous>, transform_indices = @transform_1, window_bounds = array<i64: 41, 64>}, {pipeline_mode = #tpu.pipeline_mode<synchronous>, transform_indices = @transform_2, window_bounds = array<i64: 48, 32>}, {pipeline_mode = #tpu.pipeline_mode<synchronous>, transform_indices = @transform_3, window_bounds = array<i64: 2, 64, 64>}, {pipeline_mode = #tpu.pipeline_mode<synchronous>, transform_indices = @transform_4, window_bounds = array<i64: 2, 96, 32>}, {transform_indices = @transform_5, window_bounds = array<i64: 2, 8, 4>}]} {
    %c0 = arith.constant 0 : index
    %c0_0 = arith.constant 0 : index
    %c0_1 = arith.constant 0 : index
    %0 = vector.load %arg1[%c0, %c0_0, %c0_1] : memref<2x24x16xf32, #tpu.memory_space<vmem>>, vector<1x24x16xf32>
    %1 = vector.shape_cast %0 : vector<1x24x16xf32> to vector<24x16xf32>
    %c1 = arith.constant 1 : index
    %c0_2 = arith.constant 0 : index
    %c0_3 = arith.constant 0 : index
    %2 = vector.load %arg1[%c1, %c0_2, %c0_3] : memref<2x24x16xf32, #tpu.memory_space<vmem>>, vector<1x24x16xf32>
    %3 = vector.shape_cast %2 : vector<1x24x16xf32> to vector<24x16xf32>
    %4 = tpu.concatenate %1, %3 in 0 : vector<24x16xf32>, vector<24x16xf32> -> vector<48x16xf32>
    %c0_4 = arith.constant 0 : index
    %c0_5 = arith.constant 0 : index
    %5 = vector.load %arg3[%c0_4, %c0_5] : memref<48x32xbf16, #tpu.memory_space<vmem>>, vector<16x32xbf16>
    %6 = arith.truncf %4 : vector<48x16xf32> to vector<48x16xbf16>
    %cst = arith.constant dense<0.000000e+00> : vector<48x32xf32>
    %7 = tpu.matmul %6, %5, %cst {dimension_numbers = #tpu.dot_dimension_numbers<[1], [0], [0], [1], [0, 0, 1, 1], [], []>} : vector<48x16xbf16>, vector<16x32xbf16>, vector<48x32xf32> -> vector<48x32xf32>
    %c0_6 = arith.constant 0 : index
    %c0_7 = arith.constant 0 : index
    %8 = vector.load %arg2[%c0_6, %c0_7] : memref<41x64xf32, #tpu.memory_space<vmem>>, vector<24x32xf32>
    %9 = tpu.concatenate %8, %8 in 0 : vector<24x32xf32>, vector<24x32xf32> -> vector<48x32xf32>
    %10 = arith.addf %7, %9 : vector<48x32xf32>
    %11 = tpu.iota {dimensions = array<i32: 0>} : vector<24x24xi32>
    %12 = tpu.iota {dimensions = array<i32: 1>} : vector<24x24xi32>
    %13 = arith.cmpi eq, %11, %12 : vector<24x24xi32>
    %c24 = arith.constant 24 : index
    %c0_8 = arith.constant 0 : index
    %14 = vector.load %arg2[%c24, %c0_8] : memref<41x64xf32, #tpu.memory_space<vmem>>, vector<1x32xf32>
    %c25 = arith.constant 25 : index
    %c0_9 = arith.constant 0 : index
    %15 = vector.load %arg2[%c25, %c0_9] : memref<41x64xf32, #tpu.memory_space<vmem>>, vector<1x32xf32>
    %c26 = arith.constant 26 : index
    %c0_10 = arith.constant 0 : index
    %16 = vector.load %arg2[%c26, %c0_10] : memref<41x64xf32, #tpu.memory_space<vmem>>, vector<1x32xf32>
    %c27 = arith.constant 27 : index
    %c0_11 = arith.constant 0 : index
    %17 = vector.load %arg2[%c27, %c0_11] : memref<41x64xf32, #tpu.memory_space<vmem>>, vector<1x64xf32>
    %c28 = arith.constant 28 : index
    %c0_12 = arith.constant 0 : index
    %18 = vector.load %arg2[%c28, %c0_12] : memref<41x64xf32, #tpu.memory_space<vmem>>, vector<1x32xf32>
    %c29 = arith.constant 29 : index
    %c0_13 = arith.constant 0 : index
    %19 = vector.load %arg2[%c29, %c0_13] : memref<41x64xf32, #tpu.memory_space<vmem>>, vector<1x32xf32>
    %c30 = arith.constant 30 : index
    %c0_14 = arith.constant 0 : index
    %20 = vector.load %arg2[%c30, %c0_14] : memref<41x64xf32, #tpu.memory_space<vmem>>, vector<1x32xf32>
    %c0_15 = arith.constant 0 : index
    %c0_16 = arith.constant 0 : index
    %c0_17 = arith.constant 0 : index
    %21 = vector.load %arg4[%c0_15, %c0_16, %c0_17] : memref<2x64x64xbf16, #tpu.memory_space<vmem>>, vector<1x32x64xbf16>
    %22 = vector.shape_cast %21 : vector<1x32x64xbf16> to vector<32x64xbf16>
    %23 = arith.truncf %10 : vector<48x32xf32> to vector<48x32xbf16>
    %cst_18 = arith.constant dense<0.000000e+00> : vector<48x64xf32>
    %24 = tpu.matmul %23, %22, %cst_18 {dimension_numbers = #tpu.dot_dimension_numbers<[1], [0], [0], [1], [0, 0, 1, 1], [], []>} : vector<48x32xbf16>, vector<32x64xbf16>, vector<48x64xf32> -> vector<48x64xf32>
    %25 = vector.extract_strided_slice %24 {offsets = [0, 0], sizes = [24, 32], strides = [1, 1]} : vector<48x64xf32> to vector<24x32xf32>
    %26 = vector.extract_strided_slice %24 {offsets = [0, 32], sizes = [24, 32], strides = [1, 1]} : vector<48x64xf32> to vector<24x32xf32>
    %27 = vector.extract_strided_slice %25 {offsets = [0, 0], sizes = [24, 8], strides = [1, 1]} : vector<24x32xf32> to vector<24x8xf32>
    %28 = vector.extract_strided_slice %26 {offsets = [0, 0], sizes = [24, 8], strides = [1, 1]} : vector<24x32xf32> to vector<24x8xf32>
    %29 = arith.mulf %27, %27 : vector<24x8xf32>
    %cst_19 = arith.constant dense<0.000000e+00> : vector<24xf32>
    %30 = vector.multi_reduction <add>, %29, %cst_19 [1] : vector<24x8xf32> to vector<24xf32>
    %31 = vector.shape_cast %30 : vector<24xf32> to vector<24x1xf32>
    %cst_20 = arith.constant 9.99999996E-13 : f32
    %32 = vector.broadcast %cst_20 : f32 to vector<24x1xf32>
    %33 = arith.addf %31, %32 : vector<24x1xf32>
    %34 = math.rsqrt %33 : vector<24x1xf32>
    %35 = vector.broadcast %34 : vector<24x1xf32> to vector<24x8xf32>
    %36 = arith.mulf %27, %35 : vector<24x8xf32>
    %37 = arith.truncf %27 : vector<24x8xf32> to vector<24x8xbf16>
    %38 = arith.truncf %36 : vector<24x8xf32> to vector<24x8xbf16>
    %cst_21 = arith.constant dense<0.000000e+00> : vector<24x24xf32>
    %39 = tpu.matmul %37, %38, %cst_21 {dimension_numbers = #tpu.dot_dimension_numbers<[1], [1], [0], [0], [0, 0, 1, 0], [], []>} : vector<24x8xbf16>, vector<24x8xbf16>, vector<24x24xf32> -> vector<24x24xf32>
    %cst_22 = arith.constant 0.353553385 : f32
    %40 = vector.broadcast %cst_22 : f32 to vector<24x24xf32>
    %41 = arith.mulf %39, %40 : vector<24x24xf32>
    %cst_23 = arith.constant -5.000000e+04 : f32
    %42 = vector.broadcast %cst_23 : f32 to vector<24x24xf32>
    %43 = arith.select %13, %42, %41 : vector<24x24xi1>, vector<24x24xf32>
    %cst_24 = arith.constant dense<0xFF800000> : vector<24xf32>
    %44 = vector.multi_reduction <maximumf>, %43, %cst_24 [1] : vector<24x24xf32> to vector<24xf32>
    %45 = vector.shape_cast %44 : vector<24xf32> to vector<24x1xf32>
    %46 = vector.broadcast %45 : vector<24x1xf32> to vector<24x24xf32>
    %47 = arith.subf %43, %46 : vector<24x24xf32>
    %48 = math.exp %47 : vector<24x24xf32>
    %cst_25 = arith.constant dense<0.000000e+00> : vector<24xf32>
    %49 = vector.multi_reduction <add>, %48, %cst_25 [1] : vector<24x24xf32> to vector<24xf32>
    %50 = vector.shape_cast %49 : vector<24xf32> to vector<24x1xf32>
    %51 = arith.truncf %48 : vector<24x24xf32> to vector<24x24xbf16>
    %52 = arith.truncf %28 : vector<24x8xf32> to vector<24x8xbf16>
    %cst_26 = arith.constant dense<0.000000e+00> : vector<24x8xf32>
    %53 = tpu.matmul %51, %52, %cst_26 {dimension_numbers = #tpu.dot_dimension_numbers<[1], [0], [0], [1], [0, 0, 1, 1], [], []>} : vector<24x24xbf16>, vector<24x8xbf16>, vector<24x8xf32> -> vector<24x8xf32>
    %54 = tpu.reciprocal %50 : vector<24x1xf32> -> vector<24x1xf32>
    %55 = vector.broadcast %54 : vector<24x1xf32> to vector<24x8xf32>
    %56 = arith.mulf %53, %55 : vector<24x8xf32>
    %c0_27 = arith.constant 0 : index
    %c0_28 = arith.constant 0 : index
    %c0_29 = arith.constant 0 : index
    %57 = vector.load %arg5[%c0_27, %c0_28, %c0_29] : memref<2x96x32xbf16, #tpu.memory_space<vmem>>, vector<1x8x32xbf16>
    %58 = vector.shape_cast %57 : vector<1x8x32xbf16> to vector<8x32xbf16>
    %59 = arith.truncf %56 : vector<24x8xf32> to vector<24x8xbf16>
    %cst_30 = arith.constant dense<0.000000e+00> : vector<24x32xf32>
    %60 = tpu.matmul %59, %58, %cst_30 {dimension_numbers = #tpu.dot_dimension_numbers<[1], [0], [0], [1], [0, 0, 1, 1], [], []>} : vector<24x8xbf16>, vector<8x32xbf16>, vector<24x32xf32> -> vector<24x32xf32>
    %61 = vector.extract_strided_slice %25 {offsets = [0, 8], sizes = [24, 8], strides = [1, 1]} : vector<24x32xf32> to vector<24x8xf32>
    %62 = vector.extract_strided_slice %26 {offsets = [0, 8], sizes = [24, 8], strides = [1, 1]} : vector<24x32xf32> to vector<24x8xf32>
    %63 = arith.mulf %61, %61 : vector<24x8xf32>
    %cst_31 = arith.constant dense<0.000000e+00> : vector<24xf32>
    %64 = vector.multi_reduction <add>, %63, %cst_31 [1] : vector<24x8xf32> to vector<24xf32>
    %65 = vector.shape_cast %64 : vector<24xf32> to vector<24x1xf32>
    %cst_32 = arith.constant 9.99999996E-13 : f32
    %66 = vector.broadcast %cst_32 : f32 to vector<24x1xf32>
    %67 = arith.addf %65, %66 : vector<24x1xf32>
    %68 = math.rsqrt %67 : vector<24x1xf32>
    %69 = vector.broadcast %68 : vector<24x1xf32> to vector<24x8xf32>
    %70 = arith.mulf %61, %69 : vector<24x8xf32>
    %71 = arith.truncf %61 : vector<24x8xf32> to vector<24x8xbf16>
    %72 = arith.truncf %70 : vector<24x8xf32> to vector<24x8xbf16>
    %cst_33 = arith.constant dense<0.000000e+00> : vector<24x24xf32>
    %73 = tpu.matmul %71, %72, %cst_33 {dimension_numbers = #tpu.dot_dimension_numbers<[1], [1], [0], [0], [0, 0, 1, 0], [], []>} : vector<24x8xbf16>, vector<24x8xbf16>, vector<24x24xf32> -> vector<24x24xf32>
    %cst_34 = arith.constant 0.353553385 : f32
    %74 = vector.broadcast %cst_34 : f32 to vector<24x24xf32>
    %75 = arith.mulf %73, %74 : vector<24x24xf32>
    %cst_35 = arith.constant -5.000000e+04 : f32
    %76 = vector.broadcast %cst_35 : f32 to vector<24x24xf32>
    %77 = arith.select %13, %76, %75 : vector<24x24xi1>, vector<24x24xf32>
    %cst_36 = arith.constant dense<0xFF800000> : vector<24xf32>
    %78 = vector.multi_reduction <maximumf>, %77, %cst_36 [1] : vector<24x24xf32> to vector<24xf32>
    %79 = vector.shape_cast %78 : vector<24xf32> to vector<24x1xf32>
    %80 = vector.broadcast %79 : vector<24x1xf32> to vector<24x24xf32>
    %81 = arith.subf %77, %80 : vector<24x24xf32>
    %82 = math.exp %81 : vector<24x24xf32>
    %cst_37 = arith.constant dense<0.000000e+00> : vector<24xf32>
    %83 = vector.multi_reduction <add>, %82, %cst_37 [1] : vector<24x24xf32> to vector<24xf32>
    %84 = vector.shape_cast %83 : vector<24xf32> to vector<24x1xf32>
    %85 = arith.truncf %82 : vector<24x24xf32> to vector<24x24xbf16>
    %86 = arith.truncf %62 : vector<24x8xf32> to vector<24x8xbf16>
    %cst_38 = arith.constant dense<0.000000e+00> : vector<24x8xf32>
    %87 = tpu.matmul %85, %86, %cst_38 {dimension_numbers = #tpu.dot_dimension_numbers<[1], [0], [0], [1], [0, 0, 1, 1], [], []>} : vector<24x24xbf16>, vector<24x8xbf16>, vector<24x8xf32> -> vector<24x8xf32>
    %88 = tpu.reciprocal %84 : vector<24x1xf32> -> vector<24x1xf32>
    %89 = vector.broadcast %88 : vector<24x1xf32> to vector<24x8xf32>
    %90 = arith.mulf %87, %89 : vector<24x8xf32>
    %c0_39 = arith.constant 0 : index
    %c8 = arith.constant 8 : index
    %c0_40 = arith.constant 0 : index
    %91 = vector.load %arg5[%c0_39, %c8, %c0_40] : memref<2x96x32xbf16, #tpu.memory_space<vmem>>, vector<1x8x32xbf16>
    %92 = vector.shape_cast %91 : vector<1x8x32xbf16> to vector<8x32xbf16>
    %93 = arith.truncf %90 : vector<24x8xf32> to vector<24x8xbf16>
    %cst_41 = arith.constant dense<0.000000e+00> : vector<24x32xf32>
    %94 = tpu.matmul %93, %92, %cst_41 {dimension_numbers = #tpu.dot_dimension_numbers<[1], [0], [0], [1], [0, 0, 1, 1], [], []>} : vector<24x8xbf16>, vector<8x32xbf16>, vector<24x32xf32> -> vector<24x32xf32>
    %95 = arith.addf %60, %94 : vector<24x32xf32>
    %96 = vector.extract_strided_slice %25 {offsets = [0, 16], sizes = [24, 8], strides = [1, 1]} : vector<24x32xf32> to vector<24x8xf32>
    %97 = vector.extract_strided_slice %26 {offsets = [0, 16], sizes = [24, 8], strides = [1, 1]} : vector<24x32xf32> to vector<24x8xf32>
    %98 = arith.mulf %96, %96 : vector<24x8xf32>
    %cst_42 = arith.constant dense<0.000000e+00> : vector<24xf32>
    %99 = vector.multi_reduction <add>, %98, %cst_42 [1] : vector<24x8xf32> to vector<24xf32>
    %100 = vector.shape_cast %99 : vector<24xf32> to vector<24x1xf32>
    %cst_43 = arith.constant 9.99999996E-13 : f32
    %101 = vector.broadcast %cst_43 : f32 to vector<24x1xf32>
    %102 = arith.addf %100, %101 : vector<24x1xf32>
    %103 = math.rsqrt %102 : vector<24x1xf32>
    %104 = vector.broadcast %103 : vector<24x1xf32> to vector<24x8xf32>
    %105 = arith.mulf %96, %104 : vector<24x8xf32>
    %106 = arith.truncf %96 : vector<24x8xf32> to vector<24x8xbf16>
    %107 = arith.truncf %105 : vector<24x8xf32> to vector<24x8xbf16>
    %cst_44 = arith.constant dense<0.000000e+00> : vector<24x24xf32>
    %108 = tpu.matmul %106, %107, %cst_44 {dimension_numbers = #tpu.dot_dimension_numbers<[1], [1], [0], [0], [0, 0, 1, 0], [], []>} : vector<24x8xbf16>, vector<24x8xbf16>, vector<24x24xf32> -> vector<24x24xf32>
    %cst_45 = arith.constant 0.353553385 : f32
    %109 = vector.broadcast %cst_45 : f32 to vector<24x24xf32>
    %110 = arith.mulf %108, %109 : vector<24x24xf32>
    %cst_46 = arith.constant -5.000000e+04 : f32
    %111 = vector.broadcast %cst_46 : f32 to vector<24x24xf32>
    %112 = arith.select %13, %111, %110 : vector<24x24xi1>, vector<24x24xf32>
    %cst_47 = arith.constant dense<0xFF800000> : vector<24xf32>
    %113 = vector.multi_reduction <maximumf>, %112, %cst_47 [1] : vector<24x24xf32> to vector<24xf32>
    %114 = vector.shape_cast %113 : vector<24xf32> to vector<24x1xf32>
    %115 = vector.broadcast %114 : vector<24x1xf32> to vector<24x24xf32>
    %116 = arith.subf %112, %115 : vector<24x24xf32>
    %117 = math.exp %116 : vector<24x24xf32>
    %cst_48 = arith.constant dense<0.000000e+00> : vector<24xf32>
    %118 = vector.multi_reduction <add>, %117, %cst_48 [1] : vector<24x24xf32> to vector<24xf32>
    %119 = vector.shape_cast %118 : vector<24xf32> to vector<24x1xf32>
    %120 = arith.truncf %117 : vector<24x24xf32> to vector<24x24xbf16>
    %121 = arith.truncf %97 : vector<24x8xf32> to vector<24x8xbf16>
    %cst_49 = arith.constant dense<0.000000e+00> : vector<24x8xf32>
    %122 = tpu.matmul %120, %121, %cst_49 {dimension_numbers = #tpu.dot_dimension_numbers<[1], [0], [0], [1], [0, 0, 1, 1], [], []>} : vector<24x24xbf16>, vector<24x8xbf16>, vector<24x8xf32> -> vector<24x8xf32>
    %123 = tpu.reciprocal %119 : vector<24x1xf32> -> vector<24x1xf32>
    %124 = vector.broadcast %123 : vector<24x1xf32> to vector<24x8xf32>
    %125 = arith.mulf %122, %124 : vector<24x8xf32>
    %c0_50 = arith.constant 0 : index
    %c16 = arith.constant 16 : index
    %c0_51 = arith.constant 0 : index
    %126 = vector.load %arg5[%c0_50, %c16, %c0_51] : memref<2x96x32xbf16, #tpu.memory_space<vmem>>, vector<1x8x32xbf16>
    %127 = vector.shape_cast %126 : vector<1x8x32xbf16> to vector<8x32xbf16>
    %128 = arith.truncf %125 : vector<24x8xf32> to vector<24x8xbf16>
    %cst_52 = arith.constant dense<0.000000e+00> : vector<24x32xf32>
    %129 = tpu.matmul %128, %127, %cst_52 {dimension_numbers = #tpu.dot_dimension_numbers<[1], [0], [0], [1], [0, 0, 1, 1], [], []>} : vector<24x8xbf16>, vector<8x32xbf16>, vector<24x32xf32> -> vector<24x32xf32>
    %130 = arith.addf %95, %129 : vector<24x32xf32>
    %131 = vector.extract_strided_slice %25 {offsets = [0, 24], sizes = [24, 8], strides = [1, 1]} : vector<24x32xf32> to vector<24x8xf32>
    %132 = vector.extract_strided_slice %26 {offsets = [0, 24], sizes = [24, 8], strides = [1, 1]} : vector<24x32xf32> to vector<24x8xf32>
    %133 = arith.mulf %131, %131 : vector<24x8xf32>
    %cst_53 = arith.constant dense<0.000000e+00> : vector<24xf32>
    %134 = vector.multi_reduction <add>, %133, %cst_53 [1] : vector<24x8xf32> to vector<24xf32>
    %135 = vector.shape_cast %134 : vector<24xf32> to vector<24x1xf32>
    %cst_54 = arith.constant 9.99999996E-13 : f32
    %136 = vector.broadcast %cst_54 : f32 to vector<24x1xf32>
    %137 = arith.addf %135, %136 : vector<24x1xf32>
    %138 = math.rsqrt %137 : vector<24x1xf32>
    %139 = vector.broadcast %138 : vector<24x1xf32> to vector<24x8xf32>
    %140 = arith.mulf %131, %139 : vector<24x8xf32>
    %141 = arith.truncf %131 : vector<24x8xf32> to vector<24x8xbf16>
    %142 = arith.truncf %140 : vector<24x8xf32> to vector<24x8xbf16>
    %cst_55 = arith.constant dense<0.000000e+00> : vector<24x24xf32>
    %143 = tpu.matmul %141, %142, %cst_55 {dimension_numbers = #tpu.dot_dimension_numbers<[1], [1], [0], [0], [0, 0, 1, 0], [], []>} : vector<24x8xbf16>, vector<24x8xbf16>, vector<24x24xf32> -> vector<24x24xf32>
    %cst_56 = arith.constant 0.353553385 : f32
    %144 = vector.broadcast %cst_56 : f32 to vector<24x24xf32>
    %145 = arith.mulf %143, %144 : vector<24x24xf32>
    %cst_57 = arith.constant -5.000000e+04 : f32
    %146 = vector.broadcast %cst_57 : f32 to vector<24x24xf32>
    %147 = arith.select %13, %146, %145 : vector<24x24xi1>, vector<24x24xf32>
    %cst_58 = arith.constant dense<0xFF800000> : vector<24xf32>
    %148 = vector.multi_reduction <maximumf>, %147, %cst_58 [1] : vector<24x24xf32> to vector<24xf32>
    %149 = vector.shape_cast %148 : vector<24xf32> to vector<24x1xf32>
    %150 = vector.broadcast %149 : vector<24x1xf32> to vector<24x24xf32>
    %151 = arith.subf %147, %150 : vector<24x24xf32>
    %152 = math.exp %151 : vector<24x24xf32>
    %cst_59 = arith.constant dense<0.000000e+00> : vector<24xf32>
    %153 = vector.multi_reduction <add>, %152, %cst_59 [1] : vector<24x24xf32> to vector<24xf32>
    %154 = vector.shape_cast %153 : vector<24xf32> to vector<24x1xf32>
    %155 = arith.truncf %152 : vector<24x24xf32> to vector<24x24xbf16>
    %156 = arith.truncf %132 : vector<24x8xf32> to vector<24x8xbf16>
    %cst_60 = arith.constant dense<0.000000e+00> : vector<24x8xf32>
    %157 = tpu.matmul %155, %156, %cst_60 {dimension_numbers = #tpu.dot_dimension_numbers<[1], [0], [0], [1], [0, 0, 1, 1], [], []>} : vector<24x24xbf16>, vector<24x8xbf16>, vector<24x8xf32> -> vector<24x8xf32>
    %158 = tpu.reciprocal %154 : vector<24x1xf32> -> vector<24x1xf32>
    %159 = vector.broadcast %158 : vector<24x1xf32> to vector<24x8xf32>
    %160 = arith.mulf %157, %159 : vector<24x8xf32>
    %c0_61 = arith.constant 0 : index
    %c24_62 = arith.constant 24 : index
    %c0_63 = arith.constant 0 : index
    %161 = vector.load %arg5[%c0_61, %c24_62, %c0_63] : memref<2x96x32xbf16, #tpu.memory_space<vmem>>, vector<1x8x32xbf16>
    %162 = vector.shape_cast %161 : vector<1x8x32xbf16> to vector<8x32xbf16>
    %163 = arith.truncf %160 : vector<24x8xf32> to vector<24x8xbf16>
    %cst_64 = arith.constant dense<0.000000e+00> : vector<24x32xf32>
    %164 = tpu.matmul %163, %162, %cst_64 {dimension_numbers = #tpu.dot_dimension_numbers<[1], [0], [0], [1], [0, 0, 1, 1], [], []>} : vector<24x8xbf16>, vector<8x32xbf16>, vector<24x32xf32> -> vector<24x32xf32>
    %165 = arith.addf %130, %164 : vector<24x32xf32>
    %166 = vector.extract_strided_slice %24 {offsets = [24, 0], sizes = [24, 32], strides = [1, 1]} : vector<48x64xf32> to vector<24x32xf32>
    %167 = vector.extract_strided_slice %24 {offsets = [24, 32], sizes = [24, 32], strides = [1, 1]} : vector<48x64xf32> to vector<24x32xf32>
    %168 = vector.extract_strided_slice %166 {offsets = [0, 0], sizes = [24, 8], strides = [1, 1]} : vector<24x32xf32> to vector<24x8xf32>
    %169 = vector.extract_strided_slice %167 {offsets = [0, 0], sizes = [24, 8], strides = [1, 1]} : vector<24x32xf32> to vector<24x8xf32>
    %170 = arith.mulf %168, %168 : vector<24x8xf32>
    %cst_65 = arith.constant dense<0.000000e+00> : vector<24xf32>
    %171 = vector.multi_reduction <add>, %170, %cst_65 [1] : vector<24x8xf32> to vector<24xf32>
    %172 = vector.shape_cast %171 : vector<24xf32> to vector<24x1xf32>
    %cst_66 = arith.constant 9.99999996E-13 : f32
    %173 = vector.broadcast %cst_66 : f32 to vector<24x1xf32>
    %174 = arith.addf %172, %173 : vector<24x1xf32>
    %175 = math.rsqrt %174 : vector<24x1xf32>
    %176 = vector.broadcast %175 : vector<24x1xf32> to vector<24x8xf32>
    %177 = arith.mulf %168, %176 : vector<24x8xf32>
    %178 = arith.truncf %168 : vector<24x8xf32> to vector<24x8xbf16>
    %179 = arith.truncf %177 : vector<24x8xf32> to vector<24x8xbf16>
    %cst_67 = arith.constant dense<0.000000e+00> : vector<24x24xf32>
    %180 = tpu.matmul %178, %179, %cst_67 {dimension_numbers = #tpu.dot_dimension_numbers<[1], [1], [0], [0], [0, 0, 1, 0], [], []>} : vector<24x8xbf16>, vector<24x8xbf16>, vector<24x24xf32> -> vector<24x24xf32>
    %cst_68 = arith.constant 0.353553385 : f32
    %181 = vector.broadcast %cst_68 : f32 to vector<24x24xf32>
    %182 = arith.mulf %180, %181 : vector<24x24xf32>
    %cst_69 = arith.constant -5.000000e+04 : f32
    %183 = vector.broadcast %cst_69 : f32 to vector<24x24xf32>
    %184 = arith.select %13, %183, %182 : vector<24x24xi1>, vector<24x24xf32>
    %cst_70 = arith.constant dense<0xFF800000> : vector<24xf32>
    %185 = vector.multi_reduction <maximumf>, %184, %cst_70 [1] : vector<24x24xf32> to vector<24xf32>
    %186 = vector.shape_cast %185 : vector<24xf32> to vector<24x1xf32>
    %187 = vector.broadcast %186 : vector<24x1xf32> to vector<24x24xf32>
    %188 = arith.subf %184, %187 : vector<24x24xf32>
    %189 = math.exp %188 : vector<24x24xf32>
    %cst_71 = arith.constant dense<0.000000e+00> : vector<24xf32>
    %190 = vector.multi_reduction <add>, %189, %cst_71 [1] : vector<24x24xf32> to vector<24xf32>
    %191 = vector.shape_cast %190 : vector<24xf32> to vector<24x1xf32>
    %192 = arith.truncf %189 : vector<24x24xf32> to vector<24x24xbf16>
    %193 = arith.truncf %169 : vector<24x8xf32> to vector<24x8xbf16>
    %cst_72 = arith.constant dense<0.000000e+00> : vector<24x8xf32>
    %194 = tpu.matmul %192, %193, %cst_72 {dimension_numbers = #tpu.dot_dimension_numbers<[1], [0], [0], [1], [0, 0, 1, 1], [], []>} : vector<24x24xbf16>, vector<24x8xbf16>, vector<24x8xf32> -> vector<24x8xf32>
    %195 = tpu.reciprocal %191 : vector<24x1xf32> -> vector<24x1xf32>
    %196 = vector.broadcast %195 : vector<24x1xf32> to vector<24x8xf32>
    %197 = arith.mulf %194, %196 : vector<24x8xf32>
    %c0_73 = arith.constant 0 : index
    %c0_74 = arith.constant 0 : index
    %c0_75 = arith.constant 0 : index
    %198 = vector.load %arg5[%c0_73, %c0_74, %c0_75] : memref<2x96x32xbf16, #tpu.memory_space<vmem>>, vector<1x8x32xbf16>
    %199 = vector.shape_cast %198 : vector<1x8x32xbf16> to vector<8x32xbf16>
    %200 = arith.truncf %197 : vector<24x8xf32> to vector<24x8xbf16>
    %cst_76 = arith.constant dense<0.000000e+00> : vector<24x32xf32>
    %201 = tpu.matmul %200, %199, %cst_76 {dimension_numbers = #tpu.dot_dimension_numbers<[1], [0], [0], [1], [0, 0, 1, 1], [], []>} : vector<24x8xbf16>, vector<8x32xbf16>, vector<24x32xf32> -> vector<24x32xf32>
    %202 = vector.extract_strided_slice %166 {offsets = [0, 8], sizes = [24, 8], strides = [1, 1]} : vector<24x32xf32> to vector<24x8xf32>
    %203 = vector.extract_strided_slice %167 {offsets = [0, 8], sizes = [24, 8], strides = [1, 1]} : vector<24x32xf32> to vector<24x8xf32>
    %204 = arith.mulf %202, %202 : vector<24x8xf32>
    %cst_77 = arith.constant dense<0.000000e+00> : vector<24xf32>
    %205 = vector.multi_reduction <add>, %204, %cst_77 [1] : vector<24x8xf32> to vector<24xf32>
    %206 = vector.shape_cast %205 : vector<24xf32> to vector<24x1xf32>
    %cst_78 = arith.constant 9.99999996E-13 : f32
    %207 = vector.broadcast %cst_78 : f32 to vector<24x1xf32>
    %208 = arith.addf %206, %207 : vector<24x1xf32>
    %209 = math.rsqrt %208 : vector<24x1xf32>
    %210 = vector.broadcast %209 : vector<24x1xf32> to vector<24x8xf32>
    %211 = arith.mulf %202, %210 : vector<24x8xf32>
    %212 = arith.truncf %202 : vector<24x8xf32> to vector<24x8xbf16>
    %213 = arith.truncf %211 : vector<24x8xf32> to vector<24x8xbf16>
    %cst_79 = arith.constant dense<0.000000e+00> : vector<24x24xf32>
    %214 = tpu.matmul %212, %213, %cst_79 {dimension_numbers = #tpu.dot_dimension_numbers<[1], [1], [0], [0], [0, 0, 1, 0], [], []>} : vector<24x8xbf16>, vector<24x8xbf16>, vector<24x24xf32> -> vector<24x24xf32>
    %cst_80 = arith.constant 0.353553385 : f32
    %215 = vector.broadcast %cst_80 : f32 to vector<24x24xf32>
    %216 = arith.mulf %214, %215 : vector<24x24xf32>
    %cst_81 = arith.constant -5.000000e+04 : f32
    %217 = vector.broadcast %cst_81 : f32 to vector<24x24xf32>
    %218 = arith.select %13, %217, %216 : vector<24x24xi1>, vector<24x24xf32>
    %cst_82 = arith.constant dense<0xFF800000> : vector<24xf32>
    %219 = vector.multi_reduction <maximumf>, %218, %cst_82 [1] : vector<24x24xf32> to vector<24xf32>
    %220 = vector.shape_cast %219 : vector<24xf32> to vector<24x1xf32>
    %221 = vector.broadcast %220 : vector<24x1xf32> to vector<24x24xf32>
    %222 = arith.subf %218, %221 : vector<24x24xf32>
    %223 = math.exp %222 : vector<24x24xf32>
    %cst_83 = arith.constant dense<0.000000e+00> : vector<24xf32>
    %224 = vector.multi_reduction <add>, %223, %cst_83 [1] : vector<24x24xf32> to vector<24xf32>
    %225 = vector.shape_cast %224 : vector<24xf32> to vector<24x1xf32>
    %226 = arith.truncf %223 : vector<24x24xf32> to vector<24x24xbf16>
    %227 = arith.truncf %203 : vector<24x8xf32> to vector<24x8xbf16>
    %cst_84 = arith.constant dense<0.000000e+00> : vector<24x8xf32>
    %228 = tpu.matmul %226, %227, %cst_84 {dimension_numbers = #tpu.dot_dimension_numbers<[1], [0], [0], [1], [0, 0, 1, 1], [], []>} : vector<24x24xbf16>, vector<24x8xbf16>, vector<24x8xf32> -> vector<24x8xf32>
    %229 = tpu.reciprocal %225 : vector<24x1xf32> -> vector<24x1xf32>
    %230 = vector.broadcast %229 : vector<24x1xf32> to vector<24x8xf32>
    %231 = arith.mulf %228, %230 : vector<24x8xf32>
    %c0_85 = arith.constant 0 : index
    %c8_86 = arith.constant 8 : index
    %c0_87 = arith.constant 0 : index
    %232 = vector.load %arg5[%c0_85, %c8_86, %c0_87] : memref<2x96x32xbf16, #tpu.memory_space<vmem>>, vector<1x8x32xbf16>
    %233 = vector.shape_cast %232 : vector<1x8x32xbf16> to vector<8x32xbf16>
    %234 = arith.truncf %231 : vector<24x8xf32> to vector<24x8xbf16>
    %cst_88 = arith.constant dense<0.000000e+00> : vector<24x32xf32>
    %235 = tpu.matmul %234, %233, %cst_88 {dimension_numbers = #tpu.dot_dimension_numbers<[1], [0], [0], [1], [0, 0, 1, 1], [], []>} : vector<24x8xbf16>, vector<8x32xbf16>, vector<24x32xf32> -> vector<24x32xf32>
    %236 = arith.addf %201, %235 : vector<24x32xf32>
    %237 = vector.extract_strided_slice %166 {offsets = [0, 16], sizes = [24, 8], strides = [1, 1]} : vector<24x32xf32> to vector<24x8xf32>
    %238 = vector.extract_strided_slice %167 {offsets = [0, 16], sizes = [24, 8], strides = [1, 1]} : vector<24x32xf32> to vector<24x8xf32>
    %239 = arith.mulf %237, %237 : vector<24x8xf32>
    %cst_89 = arith.constant dense<0.000000e+00> : vector<24xf32>
    %240 = vector.multi_reduction <add>, %239, %cst_89 [1] : vector<24x8xf32> to vector<24xf32>
    %241 = vector.shape_cast %240 : vector<24xf32> to vector<24x1xf32>
    %cst_90 = arith.constant 9.99999996E-13 : f32
    %242 = vector.broadcast %cst_90 : f32 to vector<24x1xf32>
    %243 = arith.addf %241, %242 : vector<24x1xf32>
    %244 = math.rsqrt %243 : vector<24x1xf32>
    %245 = vector.broadcast %244 : vector<24x1xf32> to vector<24x8xf32>
    %246 = arith.mulf %237, %245 : vector<24x8xf32>
    %247 = arith.truncf %237 : vector<24x8xf32> to vector<24x8xbf16>
    %248 = arith.truncf %246 : vector<24x8xf32> to vector<24x8xbf16>
    %cst_91 = arith.constant dense<0.000000e+00> : vector<24x24xf32>
    %249 = tpu.matmul %247, %248, %cst_91 {dimension_numbers = #tpu.dot_dimension_numbers<[1], [1], [0], [0], [0, 0, 1, 0], [], []>} : vector<24x8xbf16>, vector<24x8xbf16>, vector<24x24xf32> -> vector<24x24xf32>
    %cst_92 = arith.constant 0.353553385 : f32
    %250 = vector.broadcast %cst_92 : f32 to vector<24x24xf32>
    %251 = arith.mulf %249, %250 : vector<24x24xf32>
    %cst_93 = arith.constant -5.000000e+04 : f32
    %252 = vector.broadcast %cst_93 : f32 to vector<24x24xf32>
    %253 = arith.select %13, %252, %251 : vector<24x24xi1>, vector<24x24xf32>
    %cst_94 = arith.constant dense<0xFF800000> : vector<24xf32>
    %254 = vector.multi_reduction <maximumf>, %253, %cst_94 [1] : vector<24x24xf32> to vector<24xf32>
    %255 = vector.shape_cast %254 : vector<24xf32> to vector<24x1xf32>
    %256 = vector.broadcast %255 : vector<24x1xf32> to vector<24x24xf32>
    %257 = arith.subf %253, %256 : vector<24x24xf32>
    %258 = math.exp %257 : vector<24x24xf32>
    %cst_95 = arith.constant dense<0.000000e+00> : vector<24xf32>
    %259 = vector.multi_reduction <add>, %258, %cst_95 [1] : vector<24x24xf32> to vector<24xf32>
    %260 = vector.shape_cast %259 : vector<24xf32> to vector<24x1xf32>
    %261 = arith.truncf %258 : vector<24x24xf32> to vector<24x24xbf16>
    %262 = arith.truncf %238 : vector<24x8xf32> to vector<24x8xbf16>
    %cst_96 = arith.constant dense<0.000000e+00> : vector<24x8xf32>
    %263 = tpu.matmul %261, %262, %cst_96 {dimension_numbers = #tpu.dot_dimension_numbers<[1], [0], [0], [1], [0, 0, 1, 1], [], []>} : vector<24x24xbf16>, vector<24x8xbf16>, vector<24x8xf32> -> vector<24x8xf32>
    %264 = tpu.reciprocal %260 : vector<24x1xf32> -> vector<24x1xf32>
    %265 = vector.broadcast %264 : vector<24x1xf32> to vector<24x8xf32>
    %266 = arith.mulf %263, %265 : vector<24x8xf32>
    %c0_97 = arith.constant 0 : index
    %c16_98 = arith.constant 16 : index
    %c0_99 = arith.constant 0 : index
    %267 = vector.load %arg5[%c0_97, %c16_98, %c0_99] : memref<2x96x32xbf16, #tpu.memory_space<vmem>>, vector<1x8x32xbf16>
    %268 = vector.shape_cast %267 : vector<1x8x32xbf16> to vector<8x32xbf16>
    %269 = arith.truncf %266 : vector<24x8xf32> to vector<24x8xbf16>
    %cst_100 = arith.constant dense<0.000000e+00> : vector<24x32xf32>
    %270 = tpu.matmul %269, %268, %cst_100 {dimension_numbers = #tpu.dot_dimension_numbers<[1], [0], [0], [1], [0, 0, 1, 1], [], []>} : vector<24x8xbf16>, vector<8x32xbf16>, vector<24x32xf32> -> vector<24x32xf32>
    %271 = arith.addf %236, %270 : vector<24x32xf32>
    %272 = vector.extract_strided_slice %166 {offsets = [0, 24], sizes = [24, 8], strides = [1, 1]} : vector<24x32xf32> to vector<24x8xf32>
    %273 = vector.extract_strided_slice %167 {offsets = [0, 24], sizes = [24, 8], strides = [1, 1]} : vector<24x32xf32> to vector<24x8xf32>
    %274 = arith.mulf %272, %272 : vector<24x8xf32>
    %cst_101 = arith.constant dense<0.000000e+00> : vector<24xf32>
    %275 = vector.multi_reduction <add>, %274, %cst_101 [1] : vector<24x8xf32> to vector<24xf32>
    %276 = vector.shape_cast %275 : vector<24xf32> to vector<24x1xf32>
    %cst_102 = arith.constant 9.99999996E-13 : f32
    %277 = vector.broadcast %cst_102 : f32 to vector<24x1xf32>
    %278 = arith.addf %276, %277 : vector<24x1xf32>
    %279 = math.rsqrt %278 : vector<24x1xf32>
    %280 = vector.broadcast %279 : vector<24x1xf32> to vector<24x8xf32>
    %281 = arith.mulf %272, %280 : vector<24x8xf32>
    %282 = arith.truncf %272 : vector<24x8xf32> to vector<24x8xbf16>
    %283 = arith.truncf %281 : vector<24x8xf32> to vector<24x8xbf16>
    %cst_103 = arith.constant dense<0.000000e+00> : vector<24x24xf32>
    %284 = tpu.matmul %282, %283, %cst_103 {dimension_numbers = #tpu.dot_dimension_numbers<[1], [1], [0], [0], [0, 0, 1, 0], [], []>} : vector<24x8xbf16>, vector<24x8xbf16>, vector<24x24xf32> -> vector<24x24xf32>
    %cst_104 = arith.constant 0.353553385 : f32
    %285 = vector.broadcast %cst_104 : f32 to vector<24x24xf32>
    %286 = arith.mulf %284, %285 : vector<24x24xf32>
    %cst_105 = arith.constant -5.000000e+04 : f32
    %287 = vector.broadcast %cst_105 : f32 to vector<24x24xf32>
    %288 = arith.select %13, %287, %286 : vector<24x24xi1>, vector<24x24xf32>
    %cst_106 = arith.constant dense<0xFF800000> : vector<24xf32>
    %289 = vector.multi_reduction <maximumf>, %288, %cst_106 [1] : vector<24x24xf32> to vector<24xf32>
    %290 = vector.shape_cast %289 : vector<24xf32> to vector<24x1xf32>
    %291 = vector.broadcast %290 : vector<24x1xf32> to vector<24x24xf32>
    %292 = arith.subf %288, %291 : vector<24x24xf32>
    %293 = math.exp %292 : vector<24x24xf32>
    %cst_107 = arith.constant dense<0.000000e+00> : vector<24xf32>
    %294 = vector.multi_reduction <add>, %293, %cst_107 [1] : vector<24x24xf32> to vector<24xf32>
    %295 = vector.shape_cast %294 : vector<24xf32> to vector<24x1xf32>
    %296 = arith.truncf %293 : vector<24x24xf32> to vector<24x24xbf16>
    %297 = arith.truncf %273 : vector<24x8xf32> to vector<24x8xbf16>
    %cst_108 = arith.constant dense<0.000000e+00> : vector<24x8xf32>
    %298 = tpu.matmul %296, %297, %cst_108 {dimension_numbers = #tpu.dot_dimension_numbers<[1], [0], [0], [1], [0, 0, 1, 1], [], []>} : vector<24x24xbf16>, vector<24x8xbf16>, vector<24x8xf32> -> vector<24x8xf32>
    %299 = tpu.reciprocal %295 : vector<24x1xf32> -> vector<24x1xf32>
    %300 = vector.broadcast %299 : vector<24x1xf32> to vector<24x8xf32>
    %301 = arith.mulf %298, %300 : vector<24x8xf32>
    %c0_109 = arith.constant 0 : index
    %c24_110 = arith.constant 24 : index
    %c0_111 = arith.constant 0 : index
    %302 = vector.load %arg5[%c0_109, %c24_110, %c0_111] : memref<2x96x32xbf16, #tpu.memory_space<vmem>>, vector<1x8x32xbf16>
    %303 = vector.shape_cast %302 : vector<1x8x32xbf16> to vector<8x32xbf16>
    %304 = arith.truncf %301 : vector<24x8xf32> to vector<24x8xbf16>
    %cst_112 = arith.constant dense<0.000000e+00> : vector<24x32xf32>
    %305 = tpu.matmul %304, %303, %cst_112 {dimension_numbers = #tpu.dot_dimension_numbers<[1], [0], [0], [1], [0, 0, 1, 1], [], []>} : vector<24x8xbf16>, vector<8x32xbf16>, vector<24x32xf32> -> vector<24x32xf32>
    %306 = arith.addf %271, %305 : vector<24x32xf32>
    %307 = tpu.concatenate %165, %306 in 0 : vector<24x32xf32>, vector<24x32xf32> -> vector<48x32xf32>
    %308 = vector.broadcast %14 : vector<1x32xf32> to vector<48x32xf32>
    %309 = arith.addf %307, %308 : vector<48x32xf32>
    %310 = arith.addf %10, %309 : vector<48x32xf32>
    %cst_113 = arith.constant dense<0.000000e+00> : vector<48xf32>
    %311 = vector.multi_reduction <add>, %310, %cst_113 [1] : vector<48x32xf32> to vector<48xf32>
    %312 = vector.shape_cast %311 : vector<48xf32> to vector<48x1xf32>
    %cst_114 = arith.constant 3.200000e+01 : f32
    %313 = vector.broadcast %cst_114 : f32 to vector<48x1xf32>
    %314 = arith.divf %312, %313 : vector<48x1xf32>
    %315 = vector.broadcast %314 : vector<48x1xf32> to vector<48x32xf32>
    %316 = arith.subf %310, %315 : vector<48x32xf32>
    %317 = arith.mulf %316, %316 : vector<48x32xf32>
    %cst_115 = arith.constant dense<0.000000e+00> : vector<48xf32>
    %318 = vector.multi_reduction <add>, %317, %cst_115 [1] : vector<48x32xf32> to vector<48xf32>
    %319 = vector.shape_cast %318 : vector<48xf32> to vector<48x1xf32>
    %cst_116 = arith.constant 3.200000e+01 : f32
    %320 = vector.broadcast %cst_116 : f32 to vector<48x1xf32>
    %321 = arith.divf %319, %320 : vector<48x1xf32>
    %322 = vector.broadcast %314 : vector<48x1xf32> to vector<48x32xf32>
    %323 = arith.subf %310, %322 : vector<48x32xf32>
    %cst_117 = arith.constant 9.99999974E-6 : f32
    %324 = vector.broadcast %cst_117 : f32 to vector<48x1xf32>
    %325 = arith.addf %321, %324 : vector<48x1xf32>
    %326 = math.rsqrt %325 : vector<48x1xf32>
    %327 = vector.broadcast %326 : vector<48x1xf32> to vector<48x32xf32>
    %328 = arith.mulf %323, %327 : vector<48x32xf32>
    %329 = vector.broadcast %15 : vector<1x32xf32> to vector<48x32xf32>
    %330 = arith.mulf %328, %329 : vector<48x32xf32>
    %331 = vector.broadcast %16 : vector<1x32xf32> to vector<48x32xf32>
    %332 = arith.addf %330, %331 : vector<48x32xf32>
    %c0_118 = arith.constant 0 : index
    %c32 = arith.constant 32 : index
    %c0_119 = arith.constant 0 : index
    %333 = vector.load %arg4[%c0_118, %c32, %c0_119] : memref<2x64x64xbf16, #tpu.memory_space<vmem>>, vector<1x32x64xbf16>
    %334 = vector.shape_cast %333 : vector<1x32x64xbf16> to vector<32x64xbf16>
    %335 = arith.truncf %332 : vector<48x32xf32> to vector<48x32xbf16>
    %cst_120 = arith.constant dense<0.000000e+00> : vector<48x64xf32>
    %336 = tpu.matmul %335, %334, %cst_120 {dimension_numbers = #tpu.dot_dimension_numbers<[1], [0], [0], [1], [0, 0, 1, 1], [], []>} : vector<48x32xbf16>, vector<32x64xbf16>, vector<48x64xf32> -> vector<48x64xf32>
    %337 = vector.broadcast %17 : vector<1x64xf32> to vector<48x64xf32>
    %338 = arith.addf %336, %337 : vector<48x64xf32>
    %cst_121 = arith.constant 0.000000e+00 : f32
    %339 = vector.broadcast %cst_121 : f32 to vector<48x64xf32>
    %340 = arith.maximumf %338, %339 : vector<48x64xf32>
    %c0_122 = arith.constant 0 : index
    %c32_123 = arith.constant 32 : index
    %c0_124 = arith.constant 0 : index
    %341 = vector.load %arg5[%c0_122, %c32_123, %c0_124] : memref<2x96x32xbf16, #tpu.memory_space<vmem>>, vector<1x64x32xbf16>
    %342 = vector.shape_cast %341 : vector<1x64x32xbf16> to vector<64x32xbf16>
    %343 = arith.truncf %340 : vector<48x64xf32> to vector<48x64xbf16>
    %cst_125 = arith.constant dense<0.000000e+00> : vector<48x32xf32>
    %344 = tpu.matmul %343, %342, %cst_125 {dimension_numbers = #tpu.dot_dimension_numbers<[1], [0], [0], [1], [0, 0, 1, 1], [], []>} : vector<48x64xbf16>, vector<64x32xbf16>, vector<48x32xf32> -> vector<48x32xf32>
    %345 = vector.broadcast %18 : vector<1x32xf32> to vector<48x32xf32>
    %346 = arith.addf %344, %345 : vector<48x32xf32>
    %347 = arith.addf %332, %346 : vector<48x32xf32>
    %cst_126 = arith.constant dense<0.000000e+00> : vector<48xf32>
    %348 = vector.multi_reduction <add>, %347, %cst_126 [1] : vector<48x32xf32> to vector<48xf32>
    %349 = vector.shape_cast %348 : vector<48xf32> to vector<48x1xf32>
    %cst_127 = arith.constant 3.200000e+01 : f32
    %350 = vector.broadcast %cst_127 : f32 to vector<48x1xf32>
    %351 = arith.divf %349, %350 : vector<48x1xf32>
    %352 = vector.broadcast %351 : vector<48x1xf32> to vector<48x32xf32>
    %353 = arith.subf %347, %352 : vector<48x32xf32>
    %354 = arith.mulf %353, %353 : vector<48x32xf32>
    %cst_128 = arith.constant dense<0.000000e+00> : vector<48xf32>
    %355 = vector.multi_reduction <add>, %354, %cst_128 [1] : vector<48x32xf32> to vector<48xf32>
    %356 = vector.shape_cast %355 : vector<48xf32> to vector<48x1xf32>
    %cst_129 = arith.constant 3.200000e+01 : f32
    %357 = vector.broadcast %cst_129 : f32 to vector<48x1xf32>
    %358 = arith.divf %356, %357 : vector<48x1xf32>
    %359 = vector.broadcast %351 : vector<48x1xf32> to vector<48x32xf32>
    %360 = arith.subf %347, %359 : vector<48x32xf32>
    %cst_130 = arith.constant 9.99999974E-6 : f32
    %361 = vector.broadcast %cst_130 : f32 to vector<48x1xf32>
    %362 = arith.addf %358, %361 : vector<48x1xf32>
    %363 = math.rsqrt %362 : vector<48x1xf32>
    %364 = vector.broadcast %363 : vector<48x1xf32> to vector<48x32xf32>
    %365 = arith.mulf %360, %364 : vector<48x32xf32>
    %366 = vector.broadcast %19 : vector<1x32xf32> to vector<48x32xf32>
    %367 = arith.mulf %365, %366 : vector<48x32xf32>
    %368 = vector.broadcast %20 : vector<1x32xf32> to vector<48x32xf32>
    %369 = arith.addf %367, %368 : vector<48x32xf32>
    %c31 = arith.constant 31 : index
    %c0_131 = arith.constant 0 : index
    %370 = vector.load %arg2[%c31, %c0_131] : memref<41x64xf32, #tpu.memory_space<vmem>>, vector<1x32xf32>
    %c32_132 = arith.constant 32 : index
    %c0_133 = arith.constant 0 : index
    %371 = vector.load %arg2[%c32_132, %c0_133] : memref<41x64xf32, #tpu.memory_space<vmem>>, vector<1x32xf32>
    %c33 = arith.constant 33 : index
    %c0_134 = arith.constant 0 : index
    %372 = vector.load %arg2[%c33, %c0_134] : memref<41x64xf32, #tpu.memory_space<vmem>>, vector<1x32xf32>
    %c34 = arith.constant 34 : index
    %c0_135 = arith.constant 0 : index
    %373 = vector.load %arg2[%c34, %c0_135] : memref<41x64xf32, #tpu.memory_space<vmem>>, vector<1x64xf32>
    %c35 = arith.constant 35 : index
    %c0_136 = arith.constant 0 : index
    %374 = vector.load %arg2[%c35, %c0_136] : memref<41x64xf32, #tpu.memory_space<vmem>>, vector<1x32xf32>
    %c36 = arith.constant 36 : index
    %c0_137 = arith.constant 0 : index
    %375 = vector.load %arg2[%c36, %c0_137] : memref<41x64xf32, #tpu.memory_space<vmem>>, vector<1x32xf32>
    %c37 = arith.constant 37 : index
    %c0_138 = arith.constant 0 : index
    %376 = vector.load %arg2[%c37, %c0_138] : memref<41x64xf32, #tpu.memory_space<vmem>>, vector<1x32xf32>
    %c1_139 = arith.constant 1 : index
    %c0_140 = arith.constant 0 : index
    %c0_141 = arith.constant 0 : index
    %377 = vector.load %arg4[%c1_139, %c0_140, %c0_141] : memref<2x64x64xbf16, #tpu.memory_space<vmem>>, vector<1x32x64xbf16>
    %378 = vector.shape_cast %377 : vector<1x32x64xbf16> to vector<32x64xbf16>
    %379 = arith.truncf %369 : vector<48x32xf32> to vector<48x32xbf16>
    %cst_142 = arith.constant dense<0.000000e+00> : vector<48x64xf32>
    %380 = tpu.matmul %379, %378, %cst_142 {dimension_numbers = #tpu.dot_dimension_numbers<[1], [0], [0], [1], [0, 0, 1, 1], [], []>} : vector<48x32xbf16>, vector<32x64xbf16>, vector<48x64xf32> -> vector<48x64xf32>
    %381 = vector.extract_strided_slice %380 {offsets = [0, 0], sizes = [24, 32], strides = [1, 1]} : vector<48x64xf32> to vector<24x32xf32>
    %382 = vector.extract_strided_slice %380 {offsets = [0, 32], sizes = [24, 32], strides = [1, 1]} : vector<48x64xf32> to vector<24x32xf32>
    %383 = vector.extract_strided_slice %381 {offsets = [0, 0], sizes = [24, 8], strides = [1, 1]} : vector<24x32xf32> to vector<24x8xf32>
    %384 = vector.extract_strided_slice %382 {offsets = [0, 0], sizes = [24, 8], strides = [1, 1]} : vector<24x32xf32> to vector<24x8xf32>
    %385 = arith.mulf %383, %383 : vector<24x8xf32>
    %cst_143 = arith.constant dense<0.000000e+00> : vector<24xf32>
    %386 = vector.multi_reduction <add>, %385, %cst_143 [1] : vector<24x8xf32> to vector<24xf32>
    %387 = vector.shape_cast %386 : vector<24xf32> to vector<24x1xf32>
    %cst_144 = arith.constant 9.99999996E-13 : f32
    %388 = vector.broadcast %cst_144 : f32 to vector<24x1xf32>
    %389 = arith.addf %387, %388 : vector<24x1xf32>
    %390 = math.rsqrt %389 : vector<24x1xf32>
    %391 = vector.broadcast %390 : vector<24x1xf32> to vector<24x8xf32>
    %392 = arith.mulf %383, %391 : vector<24x8xf32>
    %393 = arith.truncf %383 : vector<24x8xf32> to vector<24x8xbf16>
    %394 = arith.truncf %392 : vector<24x8xf32> to vector<24x8xbf16>
    %cst_145 = arith.constant dense<0.000000e+00> : vector<24x24xf32>
    %395 = tpu.matmul %393, %394, %cst_145 {dimension_numbers = #tpu.dot_dimension_numbers<[1], [1], [0], [0], [0, 0, 1, 0], [], []>} : vector<24x8xbf16>, vector<24x8xbf16>, vector<24x24xf32> -> vector<24x24xf32>
    %cst_146 = arith.constant 0.353553385 : f32
    %396 = vector.broadcast %cst_146 : f32 to vector<24x24xf32>
    %397 = arith.mulf %395, %396 : vector<24x24xf32>
    %cst_147 = arith.constant -5.000000e+04 : f32
    %398 = vector.broadcast %cst_147 : f32 to vector<24x24xf32>
    %399 = arith.select %13, %398, %397 : vector<24x24xi1>, vector<24x24xf32>
    %cst_148 = arith.constant dense<0xFF800000> : vector<24xf32>
    %400 = vector.multi_reduction <maximumf>, %399, %cst_148 [1] : vector<24x24xf32> to vector<24xf32>
    %401 = vector.shape_cast %400 : vector<24xf32> to vector<24x1xf32>
    %402 = vector.broadcast %401 : vector<24x1xf32> to vector<24x24xf32>
    %403 = arith.subf %399, %402 : vector<24x24xf32>
    %404 = math.exp %403 : vector<24x24xf32>
    %cst_149 = arith.constant dense<0.000000e+00> : vector<24xf32>
    %405 = vector.multi_reduction <add>, %404, %cst_149 [1] : vector<24x24xf32> to vector<24xf32>
    %406 = vector.shape_cast %405 : vector<24xf32> to vector<24x1xf32>
    %407 = arith.truncf %404 : vector<24x24xf32> to vector<24x24xbf16>
    %408 = arith.truncf %384 : vector<24x8xf32> to vector<24x8xbf16>
    %cst_150 = arith.constant dense<0.000000e+00> : vector<24x8xf32>
    %409 = tpu.matmul %407, %408, %cst_150 {dimension_numbers = #tpu.dot_dimension_numbers<[1], [0], [0], [1], [0, 0, 1, 1], [], []>} : vector<24x24xbf16>, vector<24x8xbf16>, vector<24x8xf32> -> vector<24x8xf32>
    %410 = tpu.reciprocal %406 : vector<24x1xf32> -> vector<24x1xf32>
    %411 = vector.broadcast %410 : vector<24x1xf32> to vector<24x8xf32>
    %412 = arith.mulf %409, %411 : vector<24x8xf32>
    %c1_151 = arith.constant 1 : index
    %c0_152 = arith.constant 0 : index
    %c0_153 = arith.constant 0 : index
    %413 = vector.load %arg5[%c1_151, %c0_152, %c0_153] : memref<2x96x32xbf16, #tpu.memory_space<vmem>>, vector<1x8x32xbf16>
    %414 = vector.shape_cast %413 : vector<1x8x32xbf16> to vector<8x32xbf16>
    %415 = arith.truncf %412 : vector<24x8xf32> to vector<24x8xbf16>
    %cst_154 = arith.constant dense<0.000000e+00> : vector<24x32xf32>
    %416 = tpu.matmul %415, %414, %cst_154 {dimension_numbers = #tpu.dot_dimension_numbers<[1], [0], [0], [1], [0, 0, 1, 1], [], []>} : vector<24x8xbf16>, vector<8x32xbf16>, vector<24x32xf32> -> vector<24x32xf32>
    %417 = vector.extract_strided_slice %381 {offsets = [0, 8], sizes = [24, 8], strides = [1, 1]} : vector<24x32xf32> to vector<24x8xf32>
    %418 = vector.extract_strided_slice %382 {offsets = [0, 8], sizes = [24, 8], strides = [1, 1]} : vector<24x32xf32> to vector<24x8xf32>
    %419 = arith.mulf %417, %417 : vector<24x8xf32>
    %cst_155 = arith.constant dense<0.000000e+00> : vector<24xf32>
    %420 = vector.multi_reduction <add>, %419, %cst_155 [1] : vector<24x8xf32> to vector<24xf32>
    %421 = vector.shape_cast %420 : vector<24xf32> to vector<24x1xf32>
    %cst_156 = arith.constant 9.99999996E-13 : f32
    %422 = vector.broadcast %cst_156 : f32 to vector<24x1xf32>
    %423 = arith.addf %421, %422 : vector<24x1xf32>
    %424 = math.rsqrt %423 : vector<24x1xf32>
    %425 = vector.broadcast %424 : vector<24x1xf32> to vector<24x8xf32>
    %426 = arith.mulf %417, %425 : vector<24x8xf32>
    %427 = arith.truncf %417 : vector<24x8xf32> to vector<24x8xbf16>
    %428 = arith.truncf %426 : vector<24x8xf32> to vector<24x8xbf16>
    %cst_157 = arith.constant dense<0.000000e+00> : vector<24x24xf32>
    %429 = tpu.matmul %427, %428, %cst_157 {dimension_numbers = #tpu.dot_dimension_numbers<[1], [1], [0], [0], [0, 0, 1, 0], [], []>} : vector<24x8xbf16>, vector<24x8xbf16>, vector<24x24xf32> -> vector<24x24xf32>
    %cst_158 = arith.constant 0.353553385 : f32
    %430 = vector.broadcast %cst_158 : f32 to vector<24x24xf32>
    %431 = arith.mulf %429, %430 : vector<24x24xf32>
    %cst_159 = arith.constant -5.000000e+04 : f32
    %432 = vector.broadcast %cst_159 : f32 to vector<24x24xf32>
    %433 = arith.select %13, %432, %431 : vector<24x24xi1>, vector<24x24xf32>
    %cst_160 = arith.constant dense<0xFF800000> : vector<24xf32>
    %434 = vector.multi_reduction <maximumf>, %433, %cst_160 [1] : vector<24x24xf32> to vector<24xf32>
    %435 = vector.shape_cast %434 : vector<24xf32> to vector<24x1xf32>
    %436 = vector.broadcast %435 : vector<24x1xf32> to vector<24x24xf32>
    %437 = arith.subf %433, %436 : vector<24x24xf32>
    %438 = math.exp %437 : vector<24x24xf32>
    %cst_161 = arith.constant dense<0.000000e+00> : vector<24xf32>
    %439 = vector.multi_reduction <add>, %438, %cst_161 [1] : vector<24x24xf32> to vector<24xf32>
    %440 = vector.shape_cast %439 : vector<24xf32> to vector<24x1xf32>
    %441 = arith.truncf %438 : vector<24x24xf32> to vector<24x24xbf16>
    %442 = arith.truncf %418 : vector<24x8xf32> to vector<24x8xbf16>
    %cst_162 = arith.constant dense<0.000000e+00> : vector<24x8xf32>
    %443 = tpu.matmul %441, %442, %cst_162 {dimension_numbers = #tpu.dot_dimension_numbers<[1], [0], [0], [1], [0, 0, 1, 1], [], []>} : vector<24x24xbf16>, vector<24x8xbf16>, vector<24x8xf32> -> vector<24x8xf32>
    %444 = tpu.reciprocal %440 : vector<24x1xf32> -> vector<24x1xf32>
    %445 = vector.broadcast %444 : vector<24x1xf32> to vector<24x8xf32>
    %446 = arith.mulf %443, %445 : vector<24x8xf32>
    %c1_163 = arith.constant 1 : index
    %c8_164 = arith.constant 8 : index
    %c0_165 = arith.constant 0 : index
    %447 = vector.load %arg5[%c1_163, %c8_164, %c0_165] : memref<2x96x32xbf16, #tpu.memory_space<vmem>>, vector<1x8x32xbf16>
    %448 = vector.shape_cast %447 : vector<1x8x32xbf16> to vector<8x32xbf16>
    %449 = arith.truncf %446 : vector<24x8xf32> to vector<24x8xbf16>
    %cst_166 = arith.constant dense<0.000000e+00> : vector<24x32xf32>
    %450 = tpu.matmul %449, %448, %cst_166 {dimension_numbers = #tpu.dot_dimension_numbers<[1], [0], [0], [1], [0, 0, 1, 1], [], []>} : vector<24x8xbf16>, vector<8x32xbf16>, vector<24x32xf32> -> vector<24x32xf32>
    %451 = arith.addf %416, %450 : vector<24x32xf32>
    %452 = vector.extract_strided_slice %381 {offsets = [0, 16], sizes = [24, 8], strides = [1, 1]} : vector<24x32xf32> to vector<24x8xf32>
    %453 = vector.extract_strided_slice %382 {offsets = [0, 16], sizes = [24, 8], strides = [1, 1]} : vector<24x32xf32> to vector<24x8xf32>
    %454 = arith.mulf %452, %452 : vector<24x8xf32>
    %cst_167 = arith.constant dense<0.000000e+00> : vector<24xf32>
    %455 = vector.multi_reduction <add>, %454, %cst_167 [1] : vector<24x8xf32> to vector<24xf32>
    %456 = vector.shape_cast %455 : vector<24xf32> to vector<24x1xf32>
    %cst_168 = arith.constant 9.99999996E-13 : f32
    %457 = vector.broadcast %cst_168 : f32 to vector<24x1xf32>
    %458 = arith.addf %456, %457 : vector<24x1xf32>
    %459 = math.rsqrt %458 : vector<24x1xf32>
    %460 = vector.broadcast %459 : vector<24x1xf32> to vector<24x8xf32>
    %461 = arith.mulf %452, %460 : vector<24x8xf32>
    %462 = arith.truncf %452 : vector<24x8xf32> to vector<24x8xbf16>
    %463 = arith.truncf %461 : vector<24x8xf32> to vector<24x8xbf16>
    %cst_169 = arith.constant dense<0.000000e+00> : vector<24x24xf32>
    %464 = tpu.matmul %462, %463, %cst_169 {dimension_numbers = #tpu.dot_dimension_numbers<[1], [1], [0], [0], [0, 0, 1, 0], [], []>} : vector<24x8xbf16>, vector<24x8xbf16>, vector<24x24xf32> -> vector<24x24xf32>
    %cst_170 = arith.constant 0.353553385 : f32
    %465 = vector.broadcast %cst_170 : f32 to vector<24x24xf32>
    %466 = arith.mulf %464, %465 : vector<24x24xf32>
    %cst_171 = arith.constant -5.000000e+04 : f32
    %467 = vector.broadcast %cst_171 : f32 to vector<24x24xf32>
    %468 = arith.select %13, %467, %466 : vector<24x24xi1>, vector<24x24xf32>
    %cst_172 = arith.constant dense<0xFF800000> : vector<24xf32>
    %469 = vector.multi_reduction <maximumf>, %468, %cst_172 [1] : vector<24x24xf32> to vector<24xf32>
    %470 = vector.shape_cast %469 : vector<24xf32> to vector<24x1xf32>
    %471 = vector.broadcast %470 : vector<24x1xf32> to vector<24x24xf32>
    %472 = arith.subf %468, %471 : vector<24x24xf32>
    %473 = math.exp %472 : vector<24x24xf32>
    %cst_173 = arith.constant dense<0.000000e+00> : vector<24xf32>
    %474 = vector.multi_reduction <add>, %473, %cst_173 [1] : vector<24x24xf32> to vector<24xf32>
    %475 = vector.shape_cast %474 : vector<24xf32> to vector<24x1xf32>
    %476 = arith.truncf %473 : vector<24x24xf32> to vector<24x24xbf16>
    %477 = arith.truncf %453 : vector<24x8xf32> to vector<24x8xbf16>
    %cst_174 = arith.constant dense<0.000000e+00> : vector<24x8xf32>
    %478 = tpu.matmul %476, %477, %cst_174 {dimension_numbers = #tpu.dot_dimension_numbers<[1], [0], [0], [1], [0, 0, 1, 1], [], []>} : vector<24x24xbf16>, vector<24x8xbf16>, vector<24x8xf32> -> vector<24x8xf32>
    %479 = tpu.reciprocal %475 : vector<24x1xf32> -> vector<24x1xf32>
    %480 = vector.broadcast %479 : vector<24x1xf32> to vector<24x8xf32>
    %481 = arith.mulf %478, %480 : vector<24x8xf32>
    %c1_175 = arith.constant 1 : index
    %c16_176 = arith.constant 16 : index
    %c0_177 = arith.constant 0 : index
    %482 = vector.load %arg5[%c1_175, %c16_176, %c0_177] : memref<2x96x32xbf16, #tpu.memory_space<vmem>>, vector<1x8x32xbf16>
    %483 = vector.shape_cast %482 : vector<1x8x32xbf16> to vector<8x32xbf16>
    %484 = arith.truncf %481 : vector<24x8xf32> to vector<24x8xbf16>
    %cst_178 = arith.constant dense<0.000000e+00> : vector<24x32xf32>
    %485 = tpu.matmul %484, %483, %cst_178 {dimension_numbers = #tpu.dot_dimension_numbers<[1], [0], [0], [1], [0, 0, 1, 1], [], []>} : vector<24x8xbf16>, vector<8x32xbf16>, vector<24x32xf32> -> vector<24x32xf32>
    %486 = arith.addf %451, %485 : vector<24x32xf32>
    %487 = vector.extract_strided_slice %381 {offsets = [0, 24], sizes = [24, 8], strides = [1, 1]} : vector<24x32xf32> to vector<24x8xf32>
    %488 = vector.extract_strided_slice %382 {offsets = [0, 24], sizes = [24, 8], strides = [1, 1]} : vector<24x32xf32> to vector<24x8xf32>
    %489 = arith.mulf %487, %487 : vector<24x8xf32>
    %cst_179 = arith.constant dense<0.000000e+00> : vector<24xf32>
    %490 = vector.multi_reduction <add>, %489, %cst_179 [1] : vector<24x8xf32> to vector<24xf32>
    %491 = vector.shape_cast %490 : vector<24xf32> to vector<24x1xf32>
    %cst_180 = arith.constant 9.99999996E-13 : f32
    %492 = vector.broadcast %cst_180 : f32 to vector<24x1xf32>
    %493 = arith.addf %491, %492 : vector<24x1xf32>
    %494 = math.rsqrt %493 : vector<24x1xf32>
    %495 = vector.broadcast %494 : vector<24x1xf32> to vector<24x8xf32>
    %496 = arith.mulf %487, %495 : vector<24x8xf32>
    %497 = arith.truncf %487 : vector<24x8xf32> to vector<24x8xbf16>
    %498 = arith.truncf %496 : vector<24x8xf32> to vector<24x8xbf16>
    %cst_181 = arith.constant dense<0.000000e+00> : vector<24x24xf32>
    %499 = tpu.matmul %497, %498, %cst_181 {dimension_numbers = #tpu.dot_dimension_numbers<[1], [1], [0], [0], [0, 0, 1, 0], [], []>} : vector<24x8xbf16>, vector<24x8xbf16>, vector<24x24xf32> -> vector<24x24xf32>
    %cst_182 = arith.constant 0.353553385 : f32
    %500 = vector.broadcast %cst_182 : f32 to vector<24x24xf32>
    %501 = arith.mulf %499, %500 : vector<24x24xf32>
    %cst_183 = arith.constant -5.000000e+04 : f32
    %502 = vector.broadcast %cst_183 : f32 to vector<24x24xf32>
    %503 = arith.select %13, %502, %501 : vector<24x24xi1>, vector<24x24xf32>
    %cst_184 = arith.constant dense<0xFF800000> : vector<24xf32>
    %504 = vector.multi_reduction <maximumf>, %503, %cst_184 [1] : vector<24x24xf32> to vector<24xf32>
    %505 = vector.shape_cast %504 : vector<24xf32> to vector<24x1xf32>
    %506 = vector.broadcast %505 : vector<24x1xf32> to vector<24x24xf32>
    %507 = arith.subf %503, %506 : vector<24x24xf32>
    %508 = math.exp %507 : vector<24x24xf32>
    %cst_185 = arith.constant dense<0.000000e+00> : vector<24xf32>
    %509 = vector.multi_reduction <add>, %508, %cst_185 [1] : vector<24x24xf32> to vector<24xf32>
    %510 = vector.shape_cast %509 : vector<24xf32> to vector<24x1xf32>
    %511 = arith.truncf %508 : vector<24x24xf32> to vector<24x24xbf16>
    %512 = arith.truncf %488 : vector<24x8xf32> to vector<24x8xbf16>
    %cst_186 = arith.constant dense<0.000000e+00> : vector<24x8xf32>
    %513 = tpu.matmul %511, %512, %cst_186 {dimension_numbers = #tpu.dot_dimension_numbers<[1], [0], [0], [1], [0, 0, 1, 1], [], []>} : vector<24x24xbf16>, vector<24x8xbf16>, vector<24x8xf32> -> vector<24x8xf32>
    %514 = tpu.reciprocal %510 : vector<24x1xf32> -> vector<24x1xf32>
    %515 = vector.broadcast %514 : vector<24x1xf32> to vector<24x8xf32>
    %516 = arith.mulf %513, %515 : vector<24x8xf32>
    %c1_187 = arith.constant 1 : index
    %c24_188 = arith.constant 24 : index
    %c0_189 = arith.constant 0 : index
    %517 = vector.load %arg5[%c1_187, %c24_188, %c0_189] : memref<2x96x32xbf16, #tpu.memory_space<vmem>>, vector<1x8x32xbf16>
    %518 = vector.shape_cast %517 : vector<1x8x32xbf16> to vector<8x32xbf16>
    %519 = arith.truncf %516 : vector<24x8xf32> to vector<24x8xbf16>
    %cst_190 = arith.constant dense<0.000000e+00> : vector<24x32xf32>
    %520 = tpu.matmul %519, %518, %cst_190 {dimension_numbers = #tpu.dot_dimension_numbers<[1], [0], [0], [1], [0, 0, 1, 1], [], []>} : vector<24x8xbf16>, vector<8x32xbf16>, vector<24x32xf32> -> vector<24x32xf32>
    %521 = arith.addf %486, %520 : vector<24x32xf32>
    %522 = vector.extract_strided_slice %380 {offsets = [24, 0], sizes = [24, 32], strides = [1, 1]} : vector<48x64xf32> to vector<24x32xf32>
    %523 = vector.extract_strided_slice %380 {offsets = [24, 32], sizes = [24, 32], strides = [1, 1]} : vector<48x64xf32> to vector<24x32xf32>
    %524 = vector.extract_strided_slice %522 {offsets = [0, 0], sizes = [24, 8], strides = [1, 1]} : vector<24x32xf32> to vector<24x8xf32>
    %525 = vector.extract_strided_slice %523 {offsets = [0, 0], sizes = [24, 8], strides = [1, 1]} : vector<24x32xf32> to vector<24x8xf32>
    %526 = arith.mulf %524, %524 : vector<24x8xf32>
    %cst_191 = arith.constant dense<0.000000e+00> : vector<24xf32>
    %527 = vector.multi_reduction <add>, %526, %cst_191 [1] : vector<24x8xf32> to vector<24xf32>
    %528 = vector.shape_cast %527 : vector<24xf32> to vector<24x1xf32>
    %cst_192 = arith.constant 9.99999996E-13 : f32
    %529 = vector.broadcast %cst_192 : f32 to vector<24x1xf32>
    %530 = arith.addf %528, %529 : vector<24x1xf32>
    %531 = math.rsqrt %530 : vector<24x1xf32>
    %532 = vector.broadcast %531 : vector<24x1xf32> to vector<24x8xf32>
    %533 = arith.mulf %524, %532 : vector<24x8xf32>
    %534 = arith.truncf %524 : vector<24x8xf32> to vector<24x8xbf16>
    %535 = arith.truncf %533 : vector<24x8xf32> to vector<24x8xbf16>
    %cst_193 = arith.constant dense<0.000000e+00> : vector<24x24xf32>
    %536 = tpu.matmul %534, %535, %cst_193 {dimension_numbers = #tpu.dot_dimension_numbers<[1], [1], [0], [0], [0, 0, 1, 0], [], []>} : vector<24x8xbf16>, vector<24x8xbf16>, vector<24x24xf32> -> vector<24x24xf32>
    %cst_194 = arith.constant 0.353553385 : f32
    %537 = vector.broadcast %cst_194 : f32 to vector<24x24xf32>
    %538 = arith.mulf %536, %537 : vector<24x24xf32>
    %cst_195 = arith.constant -5.000000e+04 : f32
    %539 = vector.broadcast %cst_195 : f32 to vector<24x24xf32>
    %540 = arith.select %13, %539, %538 : vector<24x24xi1>, vector<24x24xf32>
    %cst_196 = arith.constant dense<0xFF800000> : vector<24xf32>
    %541 = vector.multi_reduction <maximumf>, %540, %cst_196 [1] : vector<24x24xf32> to vector<24xf32>
    %542 = vector.shape_cast %541 : vector<24xf32> to vector<24x1xf32>
    %543 = vector.broadcast %542 : vector<24x1xf32> to vector<24x24xf32>
    %544 = arith.subf %540, %543 : vector<24x24xf32>
    %545 = math.exp %544 : vector<24x24xf32>
    %cst_197 = arith.constant dense<0.000000e+00> : vector<24xf32>
    %546 = vector.multi_reduction <add>, %545, %cst_197 [1] : vector<24x24xf32> to vector<24xf32>
    %547 = vector.shape_cast %546 : vector<24xf32> to vector<24x1xf32>
    %548 = arith.truncf %545 : vector<24x24xf32> to vector<24x24xbf16>
    %549 = arith.truncf %525 : vector<24x8xf32> to vector<24x8xbf16>
    %cst_198 = arith.constant dense<0.000000e+00> : vector<24x8xf32>
    %550 = tpu.matmul %548, %549, %cst_198 {dimension_numbers = #tpu.dot_dimension_numbers<[1], [0], [0], [1], [0, 0, 1, 1], [], []>} : vector<24x24xbf16>, vector<24x8xbf16>, vector<24x8xf32> -> vector<24x8xf32>
    %551 = tpu.reciprocal %547 : vector<24x1xf32> -> vector<24x1xf32>
    %552 = vector.broadcast %551 : vector<24x1xf32> to vector<24x8xf32>
    %553 = arith.mulf %550, %552 : vector<24x8xf32>
    %c1_199 = arith.constant 1 : index
    %c0_200 = arith.constant 0 : index
    %c0_201 = arith.constant 0 : index
    %554 = vector.load %arg5[%c1_199, %c0_200, %c0_201] : memref<2x96x32xbf16, #tpu.memory_space<vmem>>, vector<1x8x32xbf16>
    %555 = vector.shape_cast %554 : vector<1x8x32xbf16> to vector<8x32xbf16>
    %556 = arith.truncf %553 : vector<24x8xf32> to vector<24x8xbf16>
    %cst_202 = arith.constant dense<0.000000e+00> : vector<24x32xf32>
    %557 = tpu.matmul %556, %555, %cst_202 {dimension_numbers = #tpu.dot_dimension_numbers<[1], [0], [0], [1], [0, 0, 1, 1], [], []>} : vector<24x8xbf16>, vector<8x32xbf16>, vector<24x32xf32> -> vector<24x32xf32>
    %558 = vector.extract_strided_slice %522 {offsets = [0, 8], sizes = [24, 8], strides = [1, 1]} : vector<24x32xf32> to vector<24x8xf32>
    %559 = vector.extract_strided_slice %523 {offsets = [0, 8], sizes = [24, 8], strides = [1, 1]} : vector<24x32xf32> to vector<24x8xf32>
    %560 = arith.mulf %558, %558 : vector<24x8xf32>
    %cst_203 = arith.constant dense<0.000000e+00> : vector<24xf32>
    %561 = vector.multi_reduction <add>, %560, %cst_203 [1] : vector<24x8xf32> to vector<24xf32>
    %562 = vector.shape_cast %561 : vector<24xf32> to vector<24x1xf32>
    %cst_204 = arith.constant 9.99999996E-13 : f32
    %563 = vector.broadcast %cst_204 : f32 to vector<24x1xf32>
    %564 = arith.addf %562, %563 : vector<24x1xf32>
    %565 = math.rsqrt %564 : vector<24x1xf32>
    %566 = vector.broadcast %565 : vector<24x1xf32> to vector<24x8xf32>
    %567 = arith.mulf %558, %566 : vector<24x8xf32>
    %568 = arith.truncf %558 : vector<24x8xf32> to vector<24x8xbf16>
    %569 = arith.truncf %567 : vector<24x8xf32> to vector<24x8xbf16>
    %cst_205 = arith.constant dense<0.000000e+00> : vector<24x24xf32>
    %570 = tpu.matmul %568, %569, %cst_205 {dimension_numbers = #tpu.dot_dimension_numbers<[1], [1], [0], [0], [0, 0, 1, 0], [], []>} : vector<24x8xbf16>, vector<24x8xbf16>, vector<24x24xf32> -> vector<24x24xf32>
    %cst_206 = arith.constant 0.353553385 : f32
    %571 = vector.broadcast %cst_206 : f32 to vector<24x24xf32>
    %572 = arith.mulf %570, %571 : vector<24x24xf32>
    %cst_207 = arith.constant -5.000000e+04 : f32
    %573 = vector.broadcast %cst_207 : f32 to vector<24x24xf32>
    %574 = arith.select %13, %573, %572 : vector<24x24xi1>, vector<24x24xf32>
    %cst_208 = arith.constant dense<0xFF800000> : vector<24xf32>
    %575 = vector.multi_reduction <maximumf>, %574, %cst_208 [1] : vector<24x24xf32> to vector<24xf32>
    %576 = vector.shape_cast %575 : vector<24xf32> to vector<24x1xf32>
    %577 = vector.broadcast %576 : vector<24x1xf32> to vector<24x24xf32>
    %578 = arith.subf %574, %577 : vector<24x24xf32>
    %579 = math.exp %578 : vector<24x24xf32>
    %cst_209 = arith.constant dense<0.000000e+00> : vector<24xf32>
    %580 = vector.multi_reduction <add>, %579, %cst_209 [1] : vector<24x24xf32> to vector<24xf32>
    %581 = vector.shape_cast %580 : vector<24xf32> to vector<24x1xf32>
    %582 = arith.truncf %579 : vector<24x24xf32> to vector<24x24xbf16>
    %583 = arith.truncf %559 : vector<24x8xf32> to vector<24x8xbf16>
    %cst_210 = arith.constant dense<0.000000e+00> : vector<24x8xf32>
    %584 = tpu.matmul %582, %583, %cst_210 {dimension_numbers = #tpu.dot_dimension_numbers<[1], [0], [0], [1], [0, 0, 1, 1], [], []>} : vector<24x24xbf16>, vector<24x8xbf16>, vector<24x8xf32> -> vector<24x8xf32>
    %585 = tpu.reciprocal %581 : vector<24x1xf32> -> vector<24x1xf32>
    %586 = vector.broadcast %585 : vector<24x1xf32> to vector<24x8xf32>
    %587 = arith.mulf %584, %586 : vector<24x8xf32>
    %c1_211 = arith.constant 1 : index
    %c8_212 = arith.constant 8 : index
    %c0_213 = arith.constant 0 : index
    %588 = vector.load %arg5[%c1_211, %c8_212, %c0_213] : memref<2x96x32xbf16, #tpu.memory_space<vmem>>, vector<1x8x32xbf16>
    %589 = vector.shape_cast %588 : vector<1x8x32xbf16> to vector<8x32xbf16>
    %590 = arith.truncf %587 : vector<24x8xf32> to vector<24x8xbf16>
    %cst_214 = arith.constant dense<0.000000e+00> : vector<24x32xf32>
    %591 = tpu.matmul %590, %589, %cst_214 {dimension_numbers = #tpu.dot_dimension_numbers<[1], [0], [0], [1], [0, 0, 1, 1], [], []>} : vector<24x8xbf16>, vector<8x32xbf16>, vector<24x32xf32> -> vector<24x32xf32>
    %592 = arith.addf %557, %591 : vector<24x32xf32>
    %593 = vector.extract_strided_slice %522 {offsets = [0, 16], sizes = [24, 8], strides = [1, 1]} : vector<24x32xf32> to vector<24x8xf32>
    %594 = vector.extract_strided_slice %523 {offsets = [0, 16], sizes = [24, 8], strides = [1, 1]} : vector<24x32xf32> to vector<24x8xf32>
    %595 = arith.mulf %593, %593 : vector<24x8xf32>
    %cst_215 = arith.constant dense<0.000000e+00> : vector<24xf32>
    %596 = vector.multi_reduction <add>, %595, %cst_215 [1] : vector<24x8xf32> to vector<24xf32>
    %597 = vector.shape_cast %596 : vector<24xf32> to vector<24x1xf32>
    %cst_216 = arith.constant 9.99999996E-13 : f32
    %598 = vector.broadcast %cst_216 : f32 to vector<24x1xf32>
    %599 = arith.addf %597, %598 : vector<24x1xf32>
    %600 = math.rsqrt %599 : vector<24x1xf32>
    %601 = vector.broadcast %600 : vector<24x1xf32> to vector<24x8xf32>
    %602 = arith.mulf %593, %601 : vector<24x8xf32>
    %603 = arith.truncf %593 : vector<24x8xf32> to vector<24x8xbf16>
    %604 = arith.truncf %602 : vector<24x8xf32> to vector<24x8xbf16>
    %cst_217 = arith.constant dense<0.000000e+00> : vector<24x24xf32>
    %605 = tpu.matmul %603, %604, %cst_217 {dimension_numbers = #tpu.dot_dimension_numbers<[1], [1], [0], [0], [0, 0, 1, 0], [], []>} : vector<24x8xbf16>, vector<24x8xbf16>, vector<24x24xf32> -> vector<24x24xf32>
    %cst_218 = arith.constant 0.353553385 : f32
    %606 = vector.broadcast %cst_218 : f32 to vector<24x24xf32>
    %607 = arith.mulf %605, %606 : vector<24x24xf32>
    %cst_219 = arith.constant -5.000000e+04 : f32
    %608 = vector.broadcast %cst_219 : f32 to vector<24x24xf32>
    %609 = arith.select %13, %608, %607 : vector<24x24xi1>, vector<24x24xf32>
    %cst_220 = arith.constant dense<0xFF800000> : vector<24xf32>
    %610 = vector.multi_reduction <maximumf>, %609, %cst_220 [1] : vector<24x24xf32> to vector<24xf32>
    %611 = vector.shape_cast %610 : vector<24xf32> to vector<24x1xf32>
    %612 = vector.broadcast %611 : vector<24x1xf32> to vector<24x24xf32>
    %613 = arith.subf %609, %612 : vector<24x24xf32>
    %614 = math.exp %613 : vector<24x24xf32>
    %cst_221 = arith.constant dense<0.000000e+00> : vector<24xf32>
    %615 = vector.multi_reduction <add>, %614, %cst_221 [1] : vector<24x24xf32> to vector<24xf32>
    %616 = vector.shape_cast %615 : vector<24xf32> to vector<24x1xf32>
    %617 = arith.truncf %614 : vector<24x24xf32> to vector<24x24xbf16>
    %618 = arith.truncf %594 : vector<24x8xf32> to vector<24x8xbf16>
    %cst_222 = arith.constant dense<0.000000e+00> : vector<24x8xf32>
    %619 = tpu.matmul %617, %618, %cst_222 {dimension_numbers = #tpu.dot_dimension_numbers<[1], [0], [0], [1], [0, 0, 1, 1], [], []>} : vector<24x24xbf16>, vector<24x8xbf16>, vector<24x8xf32> -> vector<24x8xf32>
    %620 = tpu.reciprocal %616 : vector<24x1xf32> -> vector<24x1xf32>
    %621 = vector.broadcast %620 : vector<24x1xf32> to vector<24x8xf32>
    %622 = arith.mulf %619, %621 : vector<24x8xf32>
    %c1_223 = arith.constant 1 : index
    %c16_224 = arith.constant 16 : index
    %c0_225 = arith.constant 0 : index
    %623 = vector.load %arg5[%c1_223, %c16_224, %c0_225] : memref<2x96x32xbf16, #tpu.memory_space<vmem>>, vector<1x8x32xbf16>
    %624 = vector.shape_cast %623 : vector<1x8x32xbf16> to vector<8x32xbf16>
    %625 = arith.truncf %622 : vector<24x8xf32> to vector<24x8xbf16>
    %cst_226 = arith.constant dense<0.000000e+00> : vector<24x32xf32>
    %626 = tpu.matmul %625, %624, %cst_226 {dimension_numbers = #tpu.dot_dimension_numbers<[1], [0], [0], [1], [0, 0, 1, 1], [], []>} : vector<24x8xbf16>, vector<8x32xbf16>, vector<24x32xf32> -> vector<24x32xf32>
    %627 = arith.addf %592, %626 : vector<24x32xf32>
    %628 = vector.extract_strided_slice %522 {offsets = [0, 24], sizes = [24, 8], strides = [1, 1]} : vector<24x32xf32> to vector<24x8xf32>
    %629 = vector.extract_strided_slice %523 {offsets = [0, 24], sizes = [24, 8], strides = [1, 1]} : vector<24x32xf32> to vector<24x8xf32>
    %630 = arith.mulf %628, %628 : vector<24x8xf32>
    %cst_227 = arith.constant dense<0.000000e+00> : vector<24xf32>
    %631 = vector.multi_reduction <add>, %630, %cst_227 [1] : vector<24x8xf32> to vector<24xf32>
    %632 = vector.shape_cast %631 : vector<24xf32> to vector<24x1xf32>
    %cst_228 = arith.constant 9.99999996E-13 : f32
    %633 = vector.broadcast %cst_228 : f32 to vector<24x1xf32>
    %634 = arith.addf %632, %633 : vector<24x1xf32>
    %635 = math.rsqrt %634 : vector<24x1xf32>
    %636 = vector.broadcast %635 : vector<24x1xf32> to vector<24x8xf32>
    %637 = arith.mulf %628, %636 : vector<24x8xf32>
    %638 = arith.truncf %628 : vector<24x8xf32> to vector<24x8xbf16>
    %639 = arith.truncf %637 : vector<24x8xf32> to vector<24x8xbf16>
    %cst_229 = arith.constant dense<0.000000e+00> : vector<24x24xf32>
    %640 = tpu.matmul %638, %639, %cst_229 {dimension_numbers = #tpu.dot_dimension_numbers<[1], [1], [0], [0], [0, 0, 1, 0], [], []>} : vector<24x8xbf16>, vector<24x8xbf16>, vector<24x24xf32> -> vector<24x24xf32>
    %cst_230 = arith.constant 0.353553385 : f32
    %641 = vector.broadcast %cst_230 : f32 to vector<24x24xf32>
    %642 = arith.mulf %640, %641 : vector<24x24xf32>
    %cst_231 = arith.constant -5.000000e+04 : f32
    %643 = vector.broadcast %cst_231 : f32 to vector<24x24xf32>
    %644 = arith.select %13, %643, %642 : vector<24x24xi1>, vector<24x24xf32>
    %cst_232 = arith.constant dense<0xFF800000> : vector<24xf32>
    %645 = vector.multi_reduction <maximumf>, %644, %cst_232 [1] : vector<24x24xf32> to vector<24xf32>
    %646 = vector.shape_cast %645 : vector<24xf32> to vector<24x1xf32>
    %647 = vector.broadcast %646 : vector<24x1xf32> to vector<24x24xf32>
    %648 = arith.subf %644, %647 : vector<24x24xf32>
    %649 = math.exp %648 : vector<24x24xf32>
    %cst_233 = arith.constant dense<0.000000e+00> : vector<24xf32>
    %650 = vector.multi_reduction <add>, %649, %cst_233 [1] : vector<24x24xf32> to vector<24xf32>
    %651 = vector.shape_cast %650 : vector<24xf32> to vector<24x1xf32>
    %652 = arith.truncf %649 : vector<24x24xf32> to vector<24x24xbf16>
    %653 = arith.truncf %629 : vector<24x8xf32> to vector<24x8xbf16>
    %cst_234 = arith.constant dense<0.000000e+00> : vector<24x8xf32>
    %654 = tpu.matmul %652, %653, %cst_234 {dimension_numbers = #tpu.dot_dimension_numbers<[1], [0], [0], [1], [0, 0, 1, 1], [], []>} : vector<24x24xbf16>, vector<24x8xbf16>, vector<24x8xf32> -> vector<24x8xf32>
    %655 = tpu.reciprocal %651 : vector<24x1xf32> -> vector<24x1xf32>
    %656 = vector.broadcast %655 : vector<24x1xf32> to vector<24x8xf32>
    %657 = arith.mulf %654, %656 : vector<24x8xf32>
    %c1_235 = arith.constant 1 : index
    %c24_236 = arith.constant 24 : index
    %c0_237 = arith.constant 0 : index
    %658 = vector.load %arg5[%c1_235, %c24_236, %c0_237] : memref<2x96x32xbf16, #tpu.memory_space<vmem>>, vector<1x8x32xbf16>
    %659 = vector.shape_cast %658 : vector<1x8x32xbf16> to vector<8x32xbf16>
    %660 = arith.truncf %657 : vector<24x8xf32> to vector<24x8xbf16>
    %cst_238 = arith.constant dense<0.000000e+00> : vector<24x32xf32>
    %661 = tpu.matmul %660, %659, %cst_238 {dimension_numbers = #tpu.dot_dimension_numbers<[1], [0], [0], [1], [0, 0, 1, 1], [], []>} : vector<24x8xbf16>, vector<8x32xbf16>, vector<24x32xf32> -> vector<24x32xf32>
    %662 = arith.addf %627, %661 : vector<24x32xf32>
    %663 = tpu.concatenate %521, %662 in 0 : vector<24x32xf32>, vector<24x32xf32> -> vector<48x32xf32>
    %664 = vector.broadcast %370 : vector<1x32xf32> to vector<48x32xf32>
    %665 = arith.addf %663, %664 : vector<48x32xf32>
    %666 = arith.addf %369, %665 : vector<48x32xf32>
    %cst_239 = arith.constant dense<0.000000e+00> : vector<48xf32>
    %667 = vector.multi_reduction <add>, %666, %cst_239 [1] : vector<48x32xf32> to vector<48xf32>
    %668 = vector.shape_cast %667 : vector<48xf32> to vector<48x1xf32>
    %cst_240 = arith.constant 3.200000e+01 : f32
    %669 = vector.broadcast %cst_240 : f32 to vector<48x1xf32>
    %670 = arith.divf %668, %669 : vector<48x1xf32>
    %671 = vector.broadcast %670 : vector<48x1xf32> to vector<48x32xf32>
    %672 = arith.subf %666, %671 : vector<48x32xf32>
    %673 = arith.mulf %672, %672 : vector<48x32xf32>
    %cst_241 = arith.constant dense<0.000000e+00> : vector<48xf32>
    %674 = vector.multi_reduction <add>, %673, %cst_241 [1] : vector<48x32xf32> to vector<48xf32>
    %675 = vector.shape_cast %674 : vector<48xf32> to vector<48x1xf32>
    %cst_242 = arith.constant 3.200000e+01 : f32
    %676 = vector.broadcast %cst_242 : f32 to vector<48x1xf32>
    %677 = arith.divf %675, %676 : vector<48x1xf32>
    %678 = vector.broadcast %670 : vector<48x1xf32> to vector<48x32xf32>
    %679 = arith.subf %666, %678 : vector<48x32xf32>
    %cst_243 = arith.constant 9.99999974E-6 : f32
    %680 = vector.broadcast %cst_243 : f32 to vector<48x1xf32>
    %681 = arith.addf %677, %680 : vector<48x1xf32>
    %682 = math.rsqrt %681 : vector<48x1xf32>
    %683 = vector.broadcast %682 : vector<48x1xf32> to vector<48x32xf32>
    %684 = arith.mulf %679, %683 : vector<48x32xf32>
    %685 = vector.broadcast %371 : vector<1x32xf32> to vector<48x32xf32>
    %686 = arith.mulf %684, %685 : vector<48x32xf32>
    %687 = vector.broadcast %372 : vector<1x32xf32> to vector<48x32xf32>
    %688 = arith.addf %686, %687 : vector<48x32xf32>
    %c1_244 = arith.constant 1 : index
    %c32_245 = arith.constant 32 : index
    %c0_246 = arith.constant 0 : index
    %689 = vector.load %arg4[%c1_244, %c32_245, %c0_246] : memref<2x64x64xbf16, #tpu.memory_space<vmem>>, vector<1x32x64xbf16>
    %690 = vector.shape_cast %689 : vector<1x32x64xbf16> to vector<32x64xbf16>
    %691 = arith.truncf %688 : vector<48x32xf32> to vector<48x32xbf16>
    %cst_247 = arith.constant dense<0.000000e+00> : vector<48x64xf32>
    %692 = tpu.matmul %691, %690, %cst_247 {dimension_numbers = #tpu.dot_dimension_numbers<[1], [0], [0], [1], [0, 0, 1, 1], [], []>} : vector<48x32xbf16>, vector<32x64xbf16>, vector<48x64xf32> -> vector<48x64xf32>
    %693 = vector.broadcast %373 : vector<1x64xf32> to vector<48x64xf32>
    %694 = arith.addf %692, %693 : vector<48x64xf32>
    %cst_248 = arith.constant 0.000000e+00 : f32
    %695 = vector.broadcast %cst_248 : f32 to vector<48x64xf32>
    %696 = arith.maximumf %694, %695 : vector<48x64xf32>
    %c1_249 = arith.constant 1 : index
    %c32_250 = arith.constant 32 : index
    %c0_251 = arith.constant 0 : index
    %697 = vector.load %arg5[%c1_249, %c32_250, %c0_251] : memref<2x96x32xbf16, #tpu.memory_space<vmem>>, vector<1x64x32xbf16>
    %698 = vector.shape_cast %697 : vector<1x64x32xbf16> to vector<64x32xbf16>
    %699 = arith.truncf %696 : vector<48x64xf32> to vector<48x64xbf16>
    %cst_252 = arith.constant dense<0.000000e+00> : vector<48x32xf32>
    %700 = tpu.matmul %699, %698, %cst_252 {dimension_numbers = #tpu.dot_dimension_numbers<[1], [0], [0], [1], [0, 0, 1, 1], [], []>} : vector<48x64xbf16>, vector<64x32xbf16>, vector<48x32xf32> -> vector<48x32xf32>
    %701 = vector.broadcast %374 : vector<1x32xf32> to vector<48x32xf32>
    %702 = arith.addf %700, %701 : vector<48x32xf32>
    %703 = arith.addf %688, %702 : vector<48x32xf32>
    %cst_253 = arith.constant dense<0.000000e+00> : vector<48xf32>
    %704 = vector.multi_reduction <add>, %703, %cst_253 [1] : vector<48x32xf32> to vector<48xf32>
    %705 = vector.shape_cast %704 : vector<48xf32> to vector<48x1xf32>
    %cst_254 = arith.constant 3.200000e+01 : f32
    %706 = vector.broadcast %cst_254 : f32 to vector<48x1xf32>
    %707 = arith.divf %705, %706 : vector<48x1xf32>
    %708 = vector.broadcast %707 : vector<48x1xf32> to vector<48x32xf32>
    %709 = arith.subf %703, %708 : vector<48x32xf32>
    %710 = arith.mulf %709, %709 : vector<48x32xf32>
    %cst_255 = arith.constant dense<0.000000e+00> : vector<48xf32>
    %711 = vector.multi_reduction <add>, %710, %cst_255 [1] : vector<48x32xf32> to vector<48xf32>
    %712 = vector.shape_cast %711 : vector<48xf32> to vector<48x1xf32>
    %cst_256 = arith.constant 3.200000e+01 : f32
    %713 = vector.broadcast %cst_256 : f32 to vector<48x1xf32>
    %714 = arith.divf %712, %713 : vector<48x1xf32>
    %715 = vector.broadcast %707 : vector<48x1xf32> to vector<48x32xf32>
    %716 = arith.subf %703, %715 : vector<48x32xf32>
    %cst_257 = arith.constant 9.99999974E-6 : f32
    %717 = vector.broadcast %cst_257 : f32 to vector<48x1xf32>
    %718 = arith.addf %714, %717 : vector<48x1xf32>
    %719 = math.rsqrt %718 : vector<48x1xf32>
    %720 = vector.broadcast %719 : vector<48x1xf32> to vector<48x32xf32>
    %721 = arith.mulf %716, %720 : vector<48x32xf32>
    %722 = vector.broadcast %375 : vector<1x32xf32> to vector<48x32xf32>
    %723 = arith.mulf %721, %722 : vector<48x32xf32>
    %724 = vector.broadcast %376 : vector<1x32xf32> to vector<48x32xf32>
    %725 = arith.addf %723, %724 : vector<48x32xf32>
    %c38 = arith.constant 38 : index
    %c0_258 = arith.constant 0 : index
    %726 = vector.load %arg2[%c38, %c0_258] : memref<41x64xf32, #tpu.memory_space<vmem>>, vector<1x32xf32>
    %c39 = arith.constant 39 : index
    %c0_259 = arith.constant 0 : index
    %727 = vector.load %arg2[%c39, %c0_259] : memref<41x64xf32, #tpu.memory_space<vmem>>, vector<1x32xf32>
    %c40 = arith.constant 40 : index
    %c0_260 = arith.constant 0 : index
    %728 = vector.load %arg2[%c40, %c0_260] : memref<41x64xf32, #tpu.memory_space<vmem>>, vector<1x4xf32>
    %729 = vector.extract_strided_slice %725 {offsets = [16, 0], sizes = [8, 32], strides = [1, 1]} : vector<48x32xf32> to vector<8x32xf32>
    %730 = vector.extract_strided_slice %725 {offsets = [40, 0], sizes = [8, 32], strides = [1, 1]} : vector<48x32xf32> to vector<8x32xf32>
    %731 = tpu.concatenate %729, %730 in 0 : vector<8x32xf32>, vector<8x32xf32> -> vector<16x32xf32>
    %cst_261 = arith.constant dense<0.000000e+00> : vector<16xf32>
    %732 = vector.multi_reduction <add>, %731, %cst_261 [1] : vector<16x32xf32> to vector<16xf32>
    %733 = vector.shape_cast %732 : vector<16xf32> to vector<16x1xf32>
    %cst_262 = arith.constant 3.200000e+01 : f32
    %734 = vector.broadcast %cst_262 : f32 to vector<16x1xf32>
    %735 = arith.divf %733, %734 : vector<16x1xf32>
    %736 = vector.broadcast %735 : vector<16x1xf32> to vector<16x32xf32>
    %737 = arith.subf %731, %736 : vector<16x32xf32>
    %738 = arith.mulf %737, %737 : vector<16x32xf32>
    %cst_263 = arith.constant dense<0.000000e+00> : vector<16xf32>
    %739 = vector.multi_reduction <add>, %738, %cst_263 [1] : vector<16x32xf32> to vector<16xf32>
    %740 = vector.shape_cast %739 : vector<16xf32> to vector<16x1xf32>
    %cst_264 = arith.constant 3.200000e+01 : f32
    %741 = vector.broadcast %cst_264 : f32 to vector<16x1xf32>
    %742 = arith.divf %740, %741 : vector<16x1xf32>
    %743 = vector.broadcast %735 : vector<16x1xf32> to vector<16x32xf32>
    %744 = arith.subf %731, %743 : vector<16x32xf32>
    %cst_265 = arith.constant 9.99999974E-6 : f32
    %745 = vector.broadcast %cst_265 : f32 to vector<16x1xf32>
    %746 = arith.addf %742, %745 : vector<16x1xf32>
    %747 = math.rsqrt %746 : vector<16x1xf32>
    %748 = vector.broadcast %747 : vector<16x1xf32> to vector<16x32xf32>
    %749 = arith.mulf %744, %748 : vector<16x32xf32>
    %750 = vector.broadcast %726 : vector<1x32xf32> to vector<16x32xf32>
    %751 = arith.mulf %749, %750 : vector<16x32xf32>
    %752 = vector.broadcast %727 : vector<1x32xf32> to vector<16x32xf32>
    %753 = arith.addf %751, %752 : vector<16x32xf32>
    %c16_266 = arith.constant 16 : index
    %c0_267 = arith.constant 0 : index
    %754 = vector.load %arg3[%c16_266, %c0_267] : memref<48x32xbf16, #tpu.memory_space<vmem>>, vector<32x32xbf16>
    %755 = arith.truncf %753 : vector<16x32xf32> to vector<16x32xbf16>
    %cst_268 = arith.constant dense<0.000000e+00> : vector<16x32xf32>
    %756 = tpu.matmul %755, %754, %cst_268 {dimension_numbers = #tpu.dot_dimension_numbers<[1], [0], [0], [1], [0, 0, 1, 1], [], []>} : vector<16x32xbf16>, vector<32x32xbf16>, vector<16x32xf32> -> vector<16x32xf32>
    %757 = vector.extract_strided_slice %756 {offsets = [0, 0], sizes = [16, 4], strides = [1, 1]} : vector<16x32xf32> to vector<16x4xf32>
    %758 = vector.broadcast %728 : vector<1x4xf32> to vector<16x4xf32>
    %759 = arith.addf %757, %758 : vector<16x4xf32>
    %760 = vector.extract_strided_slice %759 {offsets = [0, 0], sizes = [8, 4], strides = [1, 1]} : vector<16x4xf32> to vector<8x4xf32>
    %c0_269 = arith.constant 0 : index
    %c0_270 = arith.constant 0 : index
    %c0_271 = arith.constant 0 : index
    %761 = vector.load %arg6[%c0_269, %c0_270, %c0_271] : memref<2x8x4xf32, #tpu.memory_space<vmem>>, vector<1x8x4xf32>
    %762 = vector.shape_cast %761 : vector<1x8x4xf32> to vector<8x4xf32>
    %763 = vector.shape_cast %760 : vector<8x4xf32> to vector<1x8x4xf32>
    tpu.vector_store %arg6[%c0_269, %c0_270, %c0_271], %763 {strides = array<i32>} : memref<2x8x4xf32, #tpu.memory_space<vmem>>, vector<1x8x4xf32>,
    %764 = vector.extract_strided_slice %759 {offsets = [8, 0], sizes = [8, 4], strides = [1, 1]} : vector<16x4xf32> to vector<8x4xf32>
    %c1_272 = arith.constant 1 : index
    %c0_273 = arith.constant 0 : index
    %c0_274 = arith.constant 0 : index
    %765 = vector.load %arg6[%c1_272, %c0_273, %c0_274] : memref<2x8x4xf32, #tpu.memory_space<vmem>>, vector<1x8x4xf32>
    %766 = vector.shape_cast %765 : vector<1x8x4xf32> to vector<8x4xf32>
    %767 = vector.shape_cast %764 : vector<8x4xf32> to vector<1x8x4xf32>
    tpu.vector_store %arg6[%c1_272, %c0_273, %c0_274], %767 {strides = array<i32>} : memref<2x8x4xf32, #tpu.memory_space<vmem>>, vector<1x8x4xf32>,
    return
  }
  func.func @transform_0(%arg0: i32) -> (i32, i32, i32) {
    %c0_i32 = arith.constant 0 : i32
    %c0_i32_0 = arith.constant 0 : i32
    %c0_i32_1 = arith.constant 0 : i32
    return %arg0, %c0_i32, %c0_i32_0 : i32, i32, i32
  }
  func.func @transform_1(%arg0: i32) -> (i32, i32) {
    %c0_i32 = arith.constant 0 : i32
    %c0_i32_0 = arith.constant 0 : i32
    %c0_i32_1 = arith.constant 0 : i32
    return %c0_i32, %c0_i32_0 : i32, i32
  }
  func.func @transform_2(%arg0: i32) -> (i32, i32) {
    %c0_i32 = arith.constant 0 : i32
    %c0_i32_0 = arith.constant 0 : i32
    %c0_i32_1 = arith.constant 0 : i32
    return %c0_i32, %c0_i32_0 : i32, i32
  }
  func.func @transform_3(%arg0: i32) -> (i32, i32, i32) {
    %c0_i32 = arith.constant 0 : i32
    %c0_i32_0 = arith.constant 0 : i32
    %c0_i32_1 = arith.constant 0 : i32
    %c0_i32_2 = arith.constant 0 : i32
    return %c0_i32, %c0_i32_0, %c0_i32_1 : i32, i32, i32
  }
  func.func @transform_4(%arg0: i32) -> (i32, i32, i32) {
    %c0_i32 = arith.constant 0 : i32
    %c0_i32_0 = arith.constant 0 : i32
    %c0_i32_1 = arith.constant 0 : i32
    %c0_i32_2 = arith.constant 0 : i32
    return %c0_i32, %c0_i32_0, %c0_i32_1 : i32, i32, i32
  }
  func.func @transform_5(%arg0: i32) -> (i32, i32, i32) {
    %c0_i32 = arith.constant 0 : i32
    %c0_i32_0 = arith.constant 0 : i32
    %c0_i32_1 = arith.constant 0 : i32
    return %arg0, %c0_i32, %c0_i32_0 : i32, i32, i32
  }
}

</mosaic_0001>

<bundles_post_ra>
// kernel: reformer_forward.1
= control target key start
LH: loop header
LB: loop body
LE: loop exit
PB: predicated region body
PF: predicated region fallthrough
CT: control target
= control target key end

     0   :  { %vm42_vm0 = vcmask 130048   ;;  %vm7398_vm1 = vcmask 261120   ;;  %s5452_s16 = smov 120   ;;  %vm148_vm2 = vcmask 64512   ;;  %s5453_s17 = smov 112   ;;  %vm277_vm13 = vcmask 1043456   ;;  %s7391_s2 = inlined_call_operand.vmem [shape: bf16[48,32], index: 2, kind: input, shape index: {}]   ;;  %s7392_s0 = inlined_call_operand.vmem [shape: f32[2,24,16], index: 0, kind: input, shape index: {}]   ;;  %s7393_s1 = inlined_call_operand.vmem [shape: f32[41,64], index: 1, kind: input, shape index: {}]   ;;  %s7394_s3 = inlined_call_operand.vmem [shape: bf16[2,64,64], index: 3, kind: input, shape index: {}]   ;;  %s7395_s4 = inlined_call_operand.vmem [shape: bf16[2,96,32], index: 4, kind: input, shape index: {}]   ;;  %s7396_s5 = inlined_call_operand.vmem [shape: f32[2,8,4], index: 5, kind: output, shape index: {}]  }
   0x1   :  { %v5071_v0 = vld [vmem:[%s7391_s2] sm:$0xff]  ;;  %v22_v2 = vld [vmem:[%s7392_s0 + $0x8] sm:$0xff]  ;;  %v23_v4 = vld [vmem:[%s7392_s0 + $0x10] sm:$0xff]  ;;  %s5454_s18 = smov 96   ;;  %s5455_s19 = smov 88  }
   0x2   :  { %v21_v1 = vld [vmem:[%s7392_s0] sm:$0xff]  ;;  %v4853_v5 = vld [vmem:[%s7392_s0 + $0x18] sm:$0xff]  ;;  %59 = vmatpush.bf16.msra.mxu0 %v5071_v0  ;;  %5090 = vmatpush.bf16.msra.mxu2 %v5071_v0  ;;  %v4855_v8 = vld [vmem:[%s7392_s0 + $0x28] sm:$0xff]  ;;  %s5456_s20 = smov 80   ;;  %s5457_s21 = smov 104  }
   0x3   :  { %v30_v3 = vpack.c.bf16 %v22_v2, %v21_v1  ;;  %v31_v6 = vpack.c.bf16 %v4853_v5, %v23_v4  ;;  %v4854_v7 = vld [vmem:[%s7392_s0 + $0x20] sm:$0xff]  ;;  %v5073_v10 = vld [vmem:[%s7394_s3 + $0x8] sm:$0xff]  ;;  %v35_v21 = vld [vmem:[%s7393_s1 + $0x10] sm:$0xff]  ;;  %s5458_s28 = smov 72  }
   0x4   :  { %v32_v9 = vpack.c.bf16 %v4855_v8, %v4854_v7  ;;  %127 = vmatpush.bf16.msra.mxu1 %v5073_v10  ;;  %v5072_v11 = vld [vmem:[%s7394_s3] sm:$0xff]  ;;  %v34_v14 = vld [vmem:[%s7393_s1 + $0x8] sm:$0xff] }
   0x5   :  { %4860 = vmatmul.msk.bf16.vlgmr.msra.gmra.mxu0 %vm42_vm0, %v30_v3  ;;  %4861 = vmatmul.msk.bf16.vlgmr.msra.gmra.mxu2 %vm42_vm0, %v31_v6  ;;  %v33_v13 = vld [vmem:[%s7393_s1] sm:$0xff] }
   0x8   :  { %128 = vmatpush.bf16.msra.mxu1 %v5072_v11 }
  0x15   :  { %4862 = vmatmul.msk.bf16.gmra.mxu2 %vm42_vm0, %v32_v9 }
  0x82   :  { %v61_v12 = vpop.f32.mrf.mxu0 }
  0x83   :  { %v5523_v17 = vadd.f32 %v61_v12, %v33_v13 }
  0x88   :  { %v66_v15 = vpop.f32.mrf.mxu2 }
  0x89   :  { %v5533_v22 = vadd.f32 %v66_v15, %v35_v21 }
  0x8a   :  { %v63_v16 = vpop.f32.mrf.mxu0 }
  0x8b   :  { %v5525_v18 = vadd.f32 %v63_v16, %v34_v14 }
  0x8d   :  { %v96_v19 = vpack.c.bf16 %v5525_v18, %v5523_v17 }
  0x8f   :  { %4871 = vmatmul.msk.bf16.vlgmr.msra.gmra.mxu1 %vm7398_vm1, %v96_v19 }
  0x90   :  { %v68_v20 = vpop.f32.mrf.mxu2 }
  0x91   :  { %v5535_v23 = vadd.f32 %v68_v20, %v33_v13 }
  0x93   :  { %v97_v25 = vpack.c.bf16 %v5535_v23, %v5533_v22 }
  0x98   :  { %v71_v24 = vpop.f32.mrf.mxu2 }
  0x99   :  { %v5540_v27 = vadd.f32 %v71_v24, %v34_v14 }
  0x9f   :  { %4872 = vmatmul.msk.bf16.gmra.mxu1 %vm7398_vm1, %v97_v25 }
  0xa0   :  { %v73_v26 = vpop.f32.mrf.mxu2 }
  0xa1   :  { %v5542_v28 = vadd.f32 %v73_v26, %v35_v21 }
  0xa3   :  { %v98_v29 = vpack.c.bf16 %v5542_v28, %v5540_v27 }
  0xaf   :  { %4873 = vmatmul.msk.bf16.gmra.mxu1 %vm7398_vm1, %v98_v29 }
 0x10c   :  { %v5547_v30 = vpop.f32.mrf.mxu1 }
 0x10d   :  { %v5551_v31 = vmul.f32 %v5547_v30, %v5547_v30 }
 0x10f   :  { %350 = vrot.lane.b32.xlu2 %v5551_v31, %s5452_s16  ;;  %v149_v38 = vsel %vm148_vm2, %v5551_v31, 0.0 }
 0x114   :  { %v5555_v32 = vpop.f32.mrf.mxu1 }
 0x115   :  { %v5559_v33 = vmul.f32 %v5555_v32, %v5555_v32  ;;  %v5593_v44 = vpack.c.bf16 %v5555_v32, %v5547_v30 }
 0x117   :  { %352 = vrot.lane.b32.xlu2 %v5559_v33, %s5452_s16  ;;  %v152_v34 = vsel %vm148_vm2, %v5559_v33, 0.0 }
 0x118   :  { %153 = vadd.xlane.f32.xlu1 %v152_v34 }
 0x11c   :  { %v5565_v35 = vpop.f32.mrf.mxu1 }
 0x11d   :  { %v5569_v36 = vmul.f32 %v5565_v35, %v5565_v35  ;;  %v5587_v43 = vpack.c.bf16 %v5565_v35, %v5565_v35 }
 0x11f   :  { %v155_v37 = vsel %vm148_vm2, %v5569_v36, 0.0 }
 0x120   :  { %156 = vadd.xlane.f32.xlu0 %v155_v37 }
 0x128   :  { %150 = vadd.xlane.f32.xlu0 %v149_v38 }
 0x131   :  { %354 = vrot.lane.b32.xlu1 %v5569_v36, %s5452_s16 }
 0x139   :  { %615 = vrot.lane.b32.xlu1 %v5551_v31, %s5453_s17 }
 0x13c   :  { %619 = vrot.lane.b32.xlu0 %v5569_v36, %s5453_s17 }
 0x144   :  { %617 = vrot.lane.b32.xlu0 %v5559_v33, %s5453_s17 }
 0x169   :  { %v351_v39 = vpop.permute.xlu2 %350 }
 0x16a   :  { %v359_v40 = vsel %vm148_vm2, %v351_v39, 0.0 }
 0x16b   :  { %360 = vadd.xlane.f32.xlu1 %v359_v40 }
 0x171   :  { %v353_v41 = vpop.permute.xlu2 %352 }
 0x172   :  { %v362_v42 = vsel %vm148_vm2, %v353_v41, 0.0 }
 0x173   :  { %363 = vadd.xlane.f32.xlu0 %v362_v42 }
 0x184   :  { %268 = vrot.lane.b32.xlu1 %v5587_v43, %s5454_s18 }
 0x187   :  { %266 = vrot.lane.b32.xlu0 %v5593_v44, %s5454_s18 }
 0x18b   :  { %v154_v45 = vpop.xlane.xlu1 %153 }
 0x18c   :  { %v159_v46 = vadd.f32 1e-12, %v154_v45  ;;  %406 = vrot.lane.b32.xlu1 %v5593_v44, %s5452_s16 }
 0x18e   :  { %5118 = vrsqrt.f32 %v159_v46  ;;  %vm177_vm7 = vweird.f32 %v159_v46 }
 0x193   :  { %v157_v47 = vpop.xlane.xlu0 %156 }
 0x194   :  { %v160_v48 = vadd.f32 1e-12, %v157_v47  ;;  %v5119_v49 = vpop.eup %5118 }
 0x195   :  { %v172_v50 = vmul.f32 %v5119_v49, %v159_v46  ;;  %vm178_vm6 = vweird.f32 %v5119_v49 }
 0x196   :  { %5120 = vrsqrt.f32 %v160_v48  ;;  %vm187_vm4 = vweird.f32 %v160_v48  ;;  %vm179_vm9 = vmor %vm177_vm7, %vm178_vm6 }
 0x197   :  { %v173_v54 = vmul.f32 %v5119_v49, %v172_v50 }
 0x199   :  { %v174_v57 = vmul.f32 0.5, %v173_v54 }
 0x19b   :  { %v151_v51 = vpop.xlane.xlu0 %150  ;;  %v175_v62 = vsub.f32 1.5, %v174_v57 }
 0x19c   :  { %v5121_v52 = vpop.eup %5120  ;;  %v158_v53 = vadd.f32 1e-12, %v151_v51 }
 0x19d   :  { %v182_v55 = vmul.f32 %v5121_v52, %v160_v48  ;;  %vm188_vm3 = vweird.f32 %v5121_v52  ;;  %v176_v5 = vmul.f32 %v5119_v49, %v175_v62 }
 0x19e   :  { %5122 = vrsqrt.f32 %v158_v53  ;;  %vm189_vm5 = vmor %vm187_vm4, %vm188_vm3  ;;  %vm167_vm10 = vweird.f32 %v158_v53 }
 0x19f   :  { %v183_v56 = vmul.f32 %v5121_v52, %v182_v55  ;;  %v180_v12 = vsel %vm179_vm9, %v5119_v49, %v176_v5 }
 0x1a0   :  { %v192_v16 = vmul.f32 %v180_v12, %v5555_v32 }
 0x1a1   :  { %v184_v58 = vmul.f32 0.5, %v183_v56 }
 0x1a3   :  { %v185_v59 = vsub.f32 1.5, %v184_v58  ;;  %v355_v60 = vpop.permute.xlu1 %354 }
 0x1a4   :  { %v5123_v61 = vpop.eup %5122  ;;  %v365_v20 = vsel %vm148_vm2, %v355_v60, 0.0 }
 0x1a5   :  { %v162_v63 = vmul.f32 %v5123_v61, %v158_v53  ;;  %v186_v0 = vmul.f32 %v5121_v52, %v185_v59  ;;  %vm168_vm8 = vweird.f32 %v5123_v61 }
 0x1a6   :  { %vm169_vm11 = vmor %vm167_vm10, %vm168_vm8 }
 0x1a7   :  { %v163_v1 = vmul.f32 %v5123_v61, %v162_v63  ;;  %v190_v2 = vsel %vm189_vm5, %v5121_v52, %v186_v0 }
 0x1a8   :  { %v193_v3 = vmul.f32 %v190_v2, %v5565_v35 }
 0x1a9   :  { %v164_v4 = vmul.f32 0.5, %v163_v1 }
 0x1aa   :  { %v197_v6 = vpack.c.bf16 %v193_v3, %v193_v3 }
 0x1ab   :  { %v165_v7 = vsub.f32 1.5, %v164_v4  ;;  %v616_v8 = vpop.permute.xlu1 %615 }
 0x1ac   :  { %v624_v9 = vsel %vm148_vm2, %v616_v8, 0.0  ;;  %v208_v10 = vsel %vm148_vm2, %v197_v6, 0 }
 0x1ad   :  { %625 = vadd.xlane.f32.xlu2 %v624_v9  ;;  %216 = vmatpush.bf16.xpose.msrb.mxu2 %v208_v10  ;;  %v166_v11 = vmul.f32 %v5123_v61, %v165_v7 }
 0x1ae   :  { %v620_v13 = vpop.permute.xlu0 %619 }
 0x1af   :  { %v170_v14 = vsel %vm169_vm11, %v5123_v61, %v166_v11  ;;  %v630_v26 = vsel %vm148_vm2, %v620_v13, 0.0  ;;  %v76_v61 = vlaneseq }
 0x1b0   :  { %v191_v15 = vmul.f32 %v170_v14, %v5547_v30 }
 0x1b1   :  { %v77_v62 = vshrl.u32 %v76_v61, 7  ;;  %v81_v63 = vand.u32 127, %v76_v61 }
 0x1b2   :  { %v196_v19 = vpack.c.bf16 %v192_v16, %v191_v15 }
 0x1b3   :  { %vm5616_vm5 = vcmp.eq.s32.totalorder %v77_v62, %v81_v63  ;;  %v78_v3 = vadd.s32 8, %v77_v62 }
 0x1b4   :  { %v205_v21 = vsel %vm148_vm2, %v196_v19, 0 }
 0x1b5   :  { %366 = vadd.xlane.f32.xlu2 %v365_v20  ;;  %217 = vmatpush.bf16.xpose.msrb.mxu2 %v205_v21  ;;  %vm5620_vm6 = vcmp.eq.s32.totalorder %v78_v3, %v81_v63 }
 0x1b6   :  { %v618_v24 = vpop.permute.xlu0 %617 }
 0x1b7   :  { %v627_v25 = vsel %vm148_vm2, %v618_v24, 0.0 }
 0x1bc   :  { %4874 = vmatmul.msk.bf16.vlgmr.msrb.gmra.mxu2 %vm148_vm2, %v5593_v44 }
 0x1bd   :  { %628 = vadd.xlane.f32.xlu2 %v627_v25 }
 0x1c5   :  { %631 = vadd.xlane.f32.xlu2 %v630_v26 }
 0x1cc   :  { %4875 = vmatmul.msk.bf16.gmra.mxu2 %vm148_vm2, %v5587_v43 }
 0x1de   :  { %v361_v29 = vpop.xlane.xlu1 %360 }
 0x1df   :  { %v368_v34 = vadd.f32 1e-12, %v361_v29 }
 0x1e1   :  { %5124 = vrsqrt.f32 %v368_v34  ;;  %vm377_vm14 = vweird.f32 %v368_v34 }
 0x1e6   :  { %v364_v37 = vpop.xlane.xlu0 %363 }
 0x1e7   :  { %v5125_v38 = vpop.eup %5124  ;;  %v369_v39 = vadd.f32 1e-12, %v364_v37 }
 0x1e8   :  { %v372_v40 = vmul.f32 %v5125_v38, %v368_v34  ;;  %vm378_vm12 = vweird.f32 %v5125_v38 }
 0x1e9   :  { %5126 = vrsqrt.f32 %v369_v39  ;;  %vm379_vm0 = vmor %vm377_vm14, %vm378_vm12  ;;  %vm387_vm3 = vweird.f32 %v369_v39 }
 0x1ea   :  { %v373_v41 = vmul.f32 %v5125_v38, %v372_v40 }
 0x1ec   :  { %v374_v42 = vmul.f32 0.5, %v373_v41 }
 0x1ee   :  { %v375_v46 = vsub.f32 1.5, %v374_v42 }
 0x1ef   :  { %v5127_v45 = vpop.eup %5126 }
 0x1f0   :  { %v382_v47 = vmul.f32 %v5127_v45, %v369_v39  ;;  %v376_v49 = vmul.f32 %v5125_v38, %v375_v46  ;;  %vm388_vm15 = vweird.f32 %v5127_v45 }
 0x1f1   :  { %vm389_vm4 = vmor %vm387_vm3, %vm388_vm15 }
 0x1f2   :  { %v383_v48 = vmul.f32 %v5127_v45, %v382_v47  ;;  %v380_v55 = vsel %vm379_vm0, %v5125_v38, %v376_v49 }
 0x1f3   :  { %v401_v58 = vmul.f32 %v380_v55, %v5547_v30 }
 0x1f4   :  { %v384_v50 = vmul.f32 0.5, %v383_v48 }
 0x1f6   :  { %v385_v51 = vsub.f32 1.5, %v384_v50  ;;  %v269_v52 = vpop.permute.xlu1 %268  ;;  %v79_v50 = vadd.s32 16, %v77_v62 }
 0x1f7   :  { %v279_v53 = vsel %vm277_vm13, %v269_v52, 0 }
 0x1f8   :  { %v386_v54 = vmul.f32 %v5127_v45, %v385_v51  ;;  %287 = vmatpush.bf16.msrb.mxu0 %v279_v53  ;;  %5091 = vmatpush.bf16.msra.mxu3 %v279_v53  ;;  %vm5632_vm3 = vcmp.eq.s32.totalorder %v79_v50, %v81_v63 }
 0x1f9   :  { %v267_v57 = vpop.permute.xlu0 %266 }
 0x1fa   :  { %v390_v56 = vsel %vm389_vm4, %v5127_v45, %v386_v54  ;;  %vm234_vm4 = vcmask 195584  }
 0x1fb   :  { %v402_v59 = vmul.f32 %v390_v56, %v5555_v32 }
 0x1fc   :  { %288 = vmatpush.bf16.msrb.mxu0 %v267_v57  ;;  %5092 = vmatpush.bf16.msra.mxu3 %v267_v57 }
 0x1fd   :  { %v404_v60 = vpack.c.bf16 %v402_v59, %v401_v58 }
 0x1ff   :  { %412 = vrot.lane.b32.xlu0 %v404_v60, %s5452_s16 }
 0x220   :  { %v626_v0 = vpop.xlane.xlu2 %625 }
 0x221   :  { %v633_v1 = vadd.f32 1e-12, %v626_v0 }
 0x223   :  { %5128 = vrsqrt.f32 %v633_v1  ;;  %vm642_vm8 = vweird.f32 %v633_v1 }
 0x228   :  { %v367_v4 = vpop.xlane.xlu2 %366 }
 0x229   :  { %v5129_v6 = vpop.eup %5128  ;;  %v370_v29 = vadd.f32 1e-12, %v367_v4 }
 0x22a   :  { %v637_v7 = vmul.f32 %v5129_v6, %v633_v1  ;;  %vm643_vm7 = vweird.f32 %v5129_v6 }
 0x22b   :  { %vm644_vm10 = vmor %vm642_vm8, %vm643_vm7  ;;  %vm397_vm8 = vweird.f32 %v370_v29 }
 0x22c   :  { %v638_v10 = vmul.f32 %v5129_v6, %v637_v7 }
 0x22e   :  { %v639_v11 = vmul.f32 0.5, %v638_v10 }
 0x230   :  { %v629_v8 = vpop.xlane.xlu2 %628  ;;  %v640_v15 = vsub.f32 1.5, %v639_v11 }
 0x231   :  { %v634_v9 = vadd.f32 1e-12, %v629_v8 }
 0x232   :  { %v641_v20 = vmul.f32 %v5129_v6, %v640_v15 }
 0x233   :  { %5130 = vrsqrt.f32 %v634_v9  ;;  %vm652_vm11 = vweird.f32 %v634_v9 }
 0x234   :  { %v645_v38 = vsel %vm644_vm10, %v5129_v6, %v641_v20 }
 0x235   :  { %v666_v41 = vmul.f32 %v645_v38, %v5547_v30 }
 0x238   :  { %v632_v12 = vpop.xlane.xlu2 %631 }
 0x239   :  { %v5131_v13 = vpop.eup %5130  ;;  %v635_v14 = vadd.f32 1e-12, %v632_v12 }
 0x23a   :  { %v647_v16 = vmul.f32 %v5131_v13, %v634_v9  ;;  %vm653_vm9 = vweird.f32 %v5131_v13 }
 0x23b   :  { %5132 = vrsqrt.f32 %v635_v14  ;;  %vm654_vm12 = vmor %vm652_vm11, %vm653_vm9  ;;  %vm662_vm15 = vweird.f32 %v635_v14 }
 0x23c   :  { %v648_v19 = vmul.f32 %v5131_v13, %v647_v16  ;;  %5134 = vrsqrt.f32 %v370_v29 }
 0x23e   :  { %v649_v21 = vmul.f32 0.5, %v648_v19 }
 0x23f   :  { %v5624_v24 = vpop.f32.mrf.mxu2 }
 0x240   :  { %v650_v25 = vsub.f32 1.5, %v649_v21  ;;  %v407_v21 = vpop.permute.xlu1 %406 }
 0x241   :  { %v5133_v26 = vpop.eup %5132 }
 0x242   :  { %v651_v34 = vmul.f32 %v5131_v13, %v650_v25  ;;  %v657_v37 = vmul.f32 %v5133_v26, %v635_v14  ;;  %vm663_vm14 = vweird.f32 %v5133_v26  ;;  %v5135_v51 = vpop.eup %5134 }
 0x243   :  { %vm664_vm0 = vmor %vm662_vm15, %vm663_vm14  ;;  %v392_v54 = vmul.f32 %v5135_v51, %v370_v29  ;;  %vm398_vm7 = vweird.f32 %v5135_v51 }
 0x244   :  { %v658_v39 = vmul.f32 %v5133_v26, %v657_v37  ;;  %v655_v40 = vsel %vm654_vm12, %v5131_v13, %v651_v34  ;;  %vm399_vm9 = vmor %vm397_vm8, %vm398_vm7 }
 0x245   :  { %v667_v42 = vmul.f32 %v655_v40, %v5555_v32  ;;  %v393_v60 = vmul.f32 %v5135_v51, %v392_v54 }
 0x246   :  { %v659_v45 = vmul.f32 0.5, %v658_v39 }
 0x247   :  { %v5628_v46 = vpop.f32.mrf.mxu2  ;;  %v669_v47 = vpack.c.bf16 %v667_v42, %v666_v41  ;;  %v394_v62 = vmul.f32 0.5, %v393_v60 }
 0x248   :  { %v660_v48 = vsub.f32 1.5, %v659_v45 }
 0x249   :  { %677 = vrot.lane.b32.xlu1 %v669_v47, %s5453_s17  ;;  %v395_v63 = vsub.f32 1.5, %v394_v62 }
 0x24a   :  { %v661_v49 = vmul.f32 %v5133_v26, %v660_v48 }
 0x24b   :  { %v396_v1 = vmul.f32 %v5135_v51, %v395_v63 }
 0x24c   :  { %v665_v52 = vsel %vm664_vm0, %v5133_v26, %v661_v49 }
 0x24d   :  { %v668_v53 = vmul.f32 %v665_v52, %v5565_v35  ;;  %v400_v3 = vsel %vm399_vm9, %v5135_v51, %v396_v1 }
 0x24e   :  { %v403_v4 = vmul.f32 %v400_v3, %v5565_v35 }
 0x24f   :  { %v224_v55 = vpop.f32.mrf.mxu2  ;;  %v670_v56 = vpack.c.bf16 %v668_v53, %v668_v53 }
 0x250   :  { %v230_v58 = vmul.f32 0.35355338, %v224_v55  ;;  %v405_v6 = vpack.c.bf16 %v403_v4, %v403_v4 }
 0x251   :  { %679 = vrot.lane.b32.xlu0 %v670_v56, %s5453_s17 }
 0x252   :  { %v233_v59 = vsel %vm5632_vm3, -50000.0, %v230_v58 }
 0x253   :  { %v241_v61 = vsel %vm234_vm4, %v233_v59, -inf }
 0x254   :  { %242 = vmax.xlane.f32.xlu2 %v241_v61 }
 0x257   :  { %v226_v0 = vpop.f32.mrf.mxu2 }
 0x259   :  { %673 = vrot.lane.b32.xlu0 %v5587_v43, %s5453_s17 }
 0x261   :  { %483 = vrot.lane.b32.xlu0 %v5587_v43, %s5455_s19 }
 0x269   :  { %481 = vrot.lane.b32.xlu0 %v5593_v44, %s5455_s19 }
 0x26c   :  { %414 = vrot.lane.b32.xlu2 %v405_v6, %s5452_s16 }
 0x271   :  { %v413_v7 = vpop.permute.xlu0 %412 }
 0x272   :  { %v423_v25 = vsel %vm148_vm2, %v413_v7, 0 }
 0x274   :  { %408 = vrot.lane.b32.xlu2 %v5587_v43, %s5452_s16 }
 0x27c   :  { %671 = vrot.lane.b32.xlu2 %v5593_v44, %s5453_s17 }
 0x2bb   :  { %v678_v34 = vpop.permute.xlu1 %677 }
 0x2bc   :  { %v688_v37 = vsel %vm148_vm2, %v678_v34, 0 }
 0x2c3   :  { %v680_v8 = vpop.permute.xlu0 %679 }
 0x2c4   :  { %v691_v26 = vsel %vm148_vm2, %v680_v8, 0 }
 0x2c7   :  { %v243_v9 = vpop.xlane.xlu2 %242 }
 0x2c8   :  { %v246_v10 = vsub.f32 %v233_v59, %v243_v9  ;;  %v228_v9 = vmul.f32 0.35355338, %v5624_v24 }
 0x2ca   :  { %v251_v11 = vmul.f32 1.442695, %v246_v10 }
 0x2cb   :  { %v674_v12 = vpop.permute.xlu0 %673 }
 0x2cc   :  { %5136 = vpow2.f32 %v251_v11  ;;  %v5692_v11 = vsel %vm5616_vm5, -50000.0, %v228_v9 }
 0x2cf   :  { %v415_v13 = vpop.permute.xlu2 %414 }
 0x2d0   :  { %v426_v14 = vsel %vm148_vm2, %v415_v13, 0  ;;  %v229_v13 = vmul.f32 0.35355338, %v5628_v46 }
 0x2d1   :  { %434 = vmatpush.bf16.xpose.msrb.mxu3 %v426_v14 }
 0x2d2   :  { %v5653_v15 = vpop.eup %5136  ;;  %v5703_v24 = vsel %vm5620_vm6, -50000.0, %v229_v13 }
 0x2d3   :  { %v484_v16 = vpop.permute.xlu0 %483  ;;  %v263_v19 = vpack.c.bf16 %v5653_v15, %v5653_v15  ;;  %v238_v14 = vsel %vm234_vm4, %v5703_v24, -inf }
 0x2d4   :  { %v493_v20 = vsel %vm277_vm13, %v484_v16, 0 }
 0x2d5   :  { %4877 = vmatmul.msk.bf16.vlgmr.msra.gmra.mxu3 %vm234_vm4, %v263_v19  ;;  %501 = vmatpush.bf16.msra.mxu2 %v493_v20  ;;  %v5707_v20 = vpop.f32.mrf.mxu1 }
 0x2d7   :  { %v409_v38 = vpop.permute.xlu2 %408 }
 0x2d9   :  { %435 = vmatpush.bf16.xpose.msrb.mxu3 %v423_v25 }
 0x2db   :  { %v482_v29 = vpop.permute.xlu0 %481 }
 0x2dc   :  { %502 = vmatpush.bf16.msra.mxu2 %v482_v29 }
 0x2df   :  { %v672_v39 = vpop.permute.xlu2 %671 }
 0x2e1   :  { %699 = vmatpush.bf16.xpose.msra.mxu3 %v691_v26 }
 0x2e5   :  { %4878 = vmatmul.msk.bf16.vlgmr.msrb.gmra.mxu3 %vm148_vm2, %v407_v21 }
 0x2e9   :  { %700 = vmatpush.bf16.xpose.msra.mxu3 %v688_v37  ;;  %v5710_v37 = vpop.f32.mrf.mxu1 }
 0x2f5   :  { %4879 = vmatmul.msk.bf16.gmra.mxu3 %vm148_vm2, %v409_v38 }
 0x305   :  { %4886 = vmatmul.msk.bf16.vlgmr.msra.gmra.mxu3 %vm148_vm2, %v672_v39  ;;  %v5714_v39 = vmul.f32 %v5707_v20, %v5707_v20 }
 0x315   :  { %4887 = vmatmul.msk.bf16.gmra.mxu3 %vm148_vm2, %v674_v12  ;;  %v235_v12 = vsel %vm234_vm4, %v5692_v11, -inf }
 0x358   :  { %v5666_v40 = vpop.f32.mrf.mxu3 }
 0x360   :  { %v297_v41 = vpop.f32.mrf.mxu3 }
 0x368   :  { %v437_v42 = vpop.f32.mrf.mxu3 }
 0x369   :  { %v446_v45 = vmul.f32 0.35355338, %v437_v42 }
 0x36b   :  { %v449_v47 = vsel %vm5616_vm5, -50000.0, %v446_v45 }
 0x36c   :  { %v452_v48 = vsel %vm234_vm4, %v449_v47, -inf }
 0x36d   :  { %453 = vmax.xlane.f32.xlu1 %v452_v48  ;;  %v1100_v48 = vsel %vm148_vm2, %v5714_v39, 0.0 }
 0x370   :  { %v439_v49 = vpop.f32.mrf.mxu3 }
 0x371   :  { %v447_v50 = vmul.f32 0.35355338, %v439_v49  ;;  %v5719_v49 = vpop.f32.mrf.mxu1 }
 0x373   :  { %v450_v51 = vsel %vm5620_vm6, -50000.0, %v447_v50 }
 0x374   :  { %v455_v52 = vsel %vm234_vm4, %v450_v51, -inf }
 0x375   :  { %456 = vmax.xlane.f32.xlu2 %v455_v52 }
 0x378   :  { %v442_v53 = vpop.f32.mrf.mxu3 }
 0x379   :  { %v448_v54 = vmul.f32 0.35355338, %v442_v53 }
 0x37b   :  { %v451_v55 = vsel %vm5632_vm3, -50000.0, %v448_v54 }
 0x37c   :  { %v458_v56 = vsel %vm234_vm4, %v451_v55, -inf }
 0x37d   :  { %459 = vmax.xlane.f32.xlu0 %v458_v56 }
 0x380   :  { %v444_v58 = vpop.f32.mrf.mxu3 }
 0x388   :  { %v702_v59 = vpop.f32.mrf.mxu3 }
 0x389   :  { %v711_v60 = vmul.f32 0.35355338, %v702_v59 }
 0x38b   :  { %v714_v61 = vsel %vm5616_vm5, -50000.0, %v711_v60 }
 0x38c   :  { %v717_v62 = vsel %vm234_vm4, %v714_v61, -inf }
 0x38d   :  { %718 = vmax.xlane.f32.xlu1 %v717_v62 }
 0x390   :  { %v704_v0 = vpop.f32.mrf.mxu3 }
 0x391   :  { %v712_v63 = vmul.f32 0.35355338, %v704_v0 }
 0x393   :  { %v715_v1 = vsel %vm5620_vm6, -50000.0, %v712_v63 }
 0x394   :  { %v720_v3 = vsel %vm234_vm4, %v715_v1, -inf }
 0x395   :  { %721 = vmax.xlane.f32.xlu2 %v720_v3 }
 0x398   :  { %v707_v4 = vpop.f32.mrf.mxu3 }
 0x399   :  { %v713_v6 = vmul.f32 0.35355338, %v707_v4 }
 0x39b   :  { %v5685_v7 = vsel %vm5632_vm3, -50000.0, %v713_v6 }
 0x39c   :  { %v723_v8 = vsel %vm234_vm4, %v5685_v7, -inf }
 0x39d   :  { %724 = vmax.xlane.f32.xlu0 %v723_v8 }
 0x3a0   :  { %v709_v10 = vpop.f32.mrf.mxu3 }
 0x3a1   :  { %v5737_v10 = vmul.f32 %v5710_v37, %v5710_v37 }
 0x3a5   :  { %236 = vmax.xlane.f32.xlu0 %v235_v12 }
 0x3a6   :  { %748 = vrot.lane.b32.xlu1 %v5587_v43, %s5456_s20 }
 0x3ad   :  { %746 = vrot.lane.b32.xlu2 %v5593_v44, %s5456_s20 }
 0x3d0   :  { %239 = vmax.xlane.f32.xlu1 %v238_v14 }
 0x3e0   :  { %v454_v16 = vpop.xlane.xlu1 %453 }
 0x3e1   :  { %v461_v19 = vsub.f32 %v449_v47, %v454_v16 }
 0x3e3   :  { %v464_v21 = vmul.f32 1.442695, %v461_v19 }
 0x3e5   :  { %5138 = vpow2.f32 %v464_v21 }
 0x3e8   :  { %v457_v25 = vpop.xlane.xlu2 %456 }
 0x3e9   :  { %v462_v26 = vsub.f32 %v450_v51, %v457_v25  ;;  %v5724_v51 = vmul.f32 %v5719_v49, %v5719_v49 }
 0x3eb   :  { %v5139_v29 = vpop.eup %5138  ;;  %v466_v34 = vmul.f32 1.442695, %v462_v26  ;;  %v1106_v52 = vsel %vm148_vm2, %v5724_v51, 0.0 }
 0x3ec   :  { %v470_v46 = vsel %vm234_vm4, %v5139_v29, 0.0 }
 0x3ed   :  { %5140 = vpow2.f32 %v466_v34  ;;  %471 = vadd.xlane.f32.xlu2 %v470_v46 }
 0x3f0   :  { %v460_v38 = vpop.xlane.xlu0 %459 }
 0x3f1   :  { %v463_v42 = vsub.f32 %v451_v55, %v460_v38 }
 0x3f3   :  { %v5141_v41 = vpop.eup %5140  ;;  %v468_v50 = vmul.f32 1.442695, %v463_v42 }
 0x3f4   :  { %v479_v45 = vpack.c.bf16 %v5141_v41, %v5139_v29  ;;  %v473_v47 = vsel %vm234_vm4, %v5141_v41, 0.0 }
 0x3f5   :  { %474 = vadd.xlane.f32.xlu0 %v473_v47  ;;  %1101 = vadd.xlane.f32.xlu2 %v1100_v48  ;;  %5142 = vpow2.f32 %v468_v50  ;;  %v823_v47 = vld [vmem:[%s7395_s4 + $0x8] sm:$0xf] }
 0x3f6   :  { %4880 = vmatmul.msk.bf16.vlgmr.msra.gmra.mxu2 %vm234_vm4, %v479_v45  ;;  %v5766_v48 = vsel %vm277_vm13, %v823_v47, 0 }
 0x3fb   :  { %v5143_v54 = vpop.eup %5142 }
 0x3fc   :  { %v476_v58 = vsel %vm234_vm4, %v5143_v54, 0.0  ;;  %v480_v59 = vpack.c.bf16 %v5143_v54, %v5143_v54 }
 0x3fd   :  { %1107 = vadd.xlane.f32.xlu0 %v1106_v52 }
 0x400   :  { %v719_v53 = vpop.xlane.xlu1 %718 }
 0x401   :  { %v726_v55 = vsub.f32 %v714_v61, %v719_v53 }
 0x403   :  { %v729_v56 = vmul.f32 1.442695, %v726_v55 }
 0x405   :  { %5144 = vpow2.f32 %v729_v56  ;;  %477 = vadd.xlane.f32.xlu0 %v476_v58 }
 0x406   :  { %4881 = vmatmul.msk.bf16.gmra.mxu2 %vm234_vm4, %v480_v59 }
 0x408   :  { %v722_v60 = vpop.xlane.xlu2 %721 }
 0x409   :  { %v727_v62 = vsub.f32 %v715_v1, %v722_v60 }
 0x40b   :  { %v5145_v0 = vpop.eup %5144  ;;  %v731_v63 = vmul.f32 1.442695, %v727_v62 }
 0x40c   :  { %v735_v3 = vsel %vm234_vm4, %v5145_v0, 0.0 }
 0x40d   :  { %5146 = vpow2.f32 %v731_v63  ;;  %856 = vrot.lane.b32.xlu2 %v5551_v31, %s5457_s21  ;;  %736 = vadd.xlane.f32.xlu0 %v735_v3 }
 0x410   :  { %v725_v61 = vpop.xlane.xlu0 %724  ;;  %v747_v14 = vpop.permute.xlu2 %746 }
 0x411   :  { %v728_v4 = vsub.f32 %v5685_v7, %v725_v61  ;;  %v1103_v7 = vsel %vm148_vm2, %v5737_v10, 0.0 }
 0x413   :  { %v5147_v6 = vpop.eup %5146  ;;  %v733_v8 = vmul.f32 1.442695, %v728_v4 }
 0x414   :  { %v738_v9 = vsel %vm234_vm4, %v5147_v6, 0.0  ;;  %v744_v16 = vpack.c.bf16 %v5147_v6, %v5145_v0 }
 0x415   :  { %5148 = vpow2.f32 %v733_v8  ;;  %739 = vadd.xlane.f32.xlu0 %v738_v9 }
 0x418   :  { %v749_v1 = vpop.permute.xlu1 %748  ;;  %v237_v21 = vpop.xlane.xlu0 %236 }
 0x419   :  { %v758_v12 = vsel %vm277_vm13, %v749_v1, 0  ;;  %v244_v25 = vsub.f32 %v5692_v11, %v237_v21 }
 0x41a   :  { %766 = vmatpush.bf16.msrb.mxu2 %v758_v12 }
 0x41b   :  { %v5149_v13 = vpop.eup %5148  ;;  %v247_v26 = vmul.f32 1.442695, %v244_v25 }
 0x41c   :  { %v741_v31 = vsel %vm234_vm4, %v5149_v13, 0.0  ;;  %v745_v19 = vpack.c.bf16 %v5149_v13, %v5149_v13 }
 0x41d   :  { %742 = vadd.xlane.f32.xlu1 %v741_v31  ;;  %1104 = vadd.xlane.f32.xlu0 %v1103_v7  ;;  %5150 = vpow2.f32 %v247_v26 }
 0x41e   :  { %767 = vmatpush.bf16.msrb.mxu2 %v747_v14 }
 0x421   :  { %4888 = vmatmul.msk.bf16.vlgmr.msrb.gmra.mxu2 %vm234_vm4, %v744_v16 }
 0x423   :  { %v5751_v38 = vpop.eup %5150 }
 0x431   :  { %4889 = vmatmul.msk.bf16.gmra.mxu2 %vm234_vm4, %v745_v19  ;;  %858 = vrot.lane.b32.xlu0 %v5559_v33, %s5457_s21 }
 0x436   :  { %860 = vrot.lane.b32.xlu1 %v5569_v36, %s5457_s21  ;;  %v558_v36 = vld [vmem:[%s7395_s4 + $0x4] sm:$0xf] }
 0x437   :  { %v5759_v11 = vsel %vm277_vm13, %v558_v36, 0 }
 0x438   :  { %577 = vmatpush.bf16.msra.mxu0 %v5759_v11 }
 0x443   :  { %v240_v29 = vpop.xlane.xlu1 %239 }
 0x444   :  { %v245_v34 = vsub.f32 %v5703_v24, %v240_v29 }
 0x446   :  { %v249_v46 = vmul.f32 1.442695, %v245_v34 }
 0x448   :  { %5152 = vpow2.f32 %v249_v46 }
 0x44e   :  { %v5153_v41 = vpop.eup %5152 }
 0x44f   :  { %v262_v42 = vpack.c.bf16 %v5153_v41, %v5751_v38  ;;  %v256_v6 = vsel %vm234_vm4, %v5153_v41, 0.0 }
 0x451   :  { %4876 = vmatmul.msk.bf16.vlgmr.msrb.gmra.mxu0 %vm234_vm4, %v262_v42 }
 0x452   :  { %842 = vmatpush.bf16.msrb.mxu0 %v5766_v48 }
 0x460   :  { %v472_v33 = vpop.xlane.xlu2 %471 }
 0x461   :  { %5154 = vrcp.f32 %v472_v33  ;;  %vm518_vm12 = vweird.f32 %v472_v33  ;;  %v522_v12 = vand.u32 2147483647, %v472_v33  ;;  %v524_v13 = vand.u32 2147483648, %v472_v33 }
 0x463   :  { %vm523_vm7 = vcmp.eq.f32.partialorder %v522_v12, 8.507059e+37  ;;  %v525_v46 = vor.u32 1.1754944e-38, %v524_v13 }
 0x467   :  { %v5155_v50 = vpop.eup %5154 }
 0x468   :  { %v475_v24 = vpop.xlane.xlu0 %474  ;;  %v1102_v45 = vpop.xlane.xlu2 %1101  ;;  %v514_v52 = vmul.f32 %v5155_v50, %v472_v33  ;;  %vm519_vm10 = vweird.f32 %v5155_v50 }
 0x469   :  { %5156 = vrcp.f32 %v475_v24  ;;  %v538_v31 = vand.u32 2147483648, %v475_v24  ;;  %vm5771_vm14 = vmor %vm518_vm12, %vm519_vm10  ;;  %vm532_vm15 = vweird.f32 %v475_v24  ;;  %v536_v16 = vand.u32 2147483647, %v475_v24 }
 0x46a   :  { %v515_v62 = vsub.f32 1.0, %v514_v52  ;;  %v5783_v34 = vadd.f32 1e-12, %v1102_v45 }
 0x46b   :  { %v539_v41 = vor.u32 1.1754944e-38, %v538_v31  ;;  %vm537_vm9 = vcmp.eq.f32.partialorder %v536_v16, 8.507059e+37 }
 0x46c   :  { %v516_v0 = vmul.f32 %v5155_v50, %v515_v62 }
 0x46e   :  { %v517_v9 = vadd.f32 %v5155_v50, %v516_v0 }
 0x46f   :  { %v5157_v53 = vpop.eup %5156 }
 0x470   :  { %v528_v54 = vmul.f32 %v5157_v53, %v475_v24  ;;  %v857_v55 = vpop.permute.xlu2 %856  ;;  %v1108_v56 = vpop.xlane.xlu0 %1107  ;;  %vm533_vm11 = vweird.f32 %v5157_v53  ;;  %v521_v25 = vsel %vm5771_vm14, %v5155_v50, %v517_v9 }
 0x471   :  { %v1111_v58 = vadd.f32 1e-12, %v1108_v56  ;;  %v865_v59 = vsel %vm148_vm2, %v857_v55, 0.0  ;;  %vm5775_vm0 = vmor %vm532_vm15, %vm533_vm11  ;;  %v526_v24 = vsel %vm523_vm7, %v525_v46, %v521_v25 }
 0x472   :  { %v529_v60 = vsub.f32 1.0, %v528_v54  ;;  %866 = vadd.xlane.f32.xlu1 %v865_v59 }
 0x473   :  { %5158 = vrsqrt.f32 %v1111_v58  ;;  %vm1138_vm10 = vweird.f32 %v1111_v58 }
 0x474   :  { %v530_v63 = vmul.f32 %v5157_v53, %v529_v60 }
 0x476   :  { %v531_v1 = vadd.f32 %v5157_v53, %v530_v63 }
 0x478   :  { %v478_v3 = vpop.xlane.xlu0 %477  ;;  %v535_v26 = vsel %vm5775_vm0, %v5157_v53, %v531_v1 }
 0x479   :  { %v5159_v61 = vpop.eup %5158  ;;  %5160 = vrcp.f32 %v478_v3  ;;  %v504_v4 = vpop.f32.mrf.mxu2  ;;  %v540_v52 = vsel %vm537_vm9, %v539_v41, %v535_v26  ;;  %vm546_vm14 = vweird.f32 %v478_v3 }
 0x47a   :  { %v1133_v8 = vmul.f32 %v5159_v61, %v1111_v58  ;;  %257 = vadd.xlane.f32.xlu1 %v256_v6  ;;  %vm1139_vm8 = vweird.f32 %v5159_v61  ;;  %v555_v54 = vmul.f32 %v526_v24, %v504_v4  ;;  %5162 = vrsqrt.f32 %v5783_v34 }
 0x47b   :  { %vm1140_vm11 = vmor %vm1138_vm10, %vm1139_vm8  ;;  %v552_v58 = vand.u32 2147483648, %v478_v3  ;;  %v550_v4 = vand.u32 2147483647, %v478_v3  ;;  %vm1118_vm8 = vweird.f32 %v5783_v34 }
 0x47c   :  { %v1134_v7 = vmul.f32 %v5159_v61, %v1133_v8 }
 0x47d   :  { %vm551_vm0 = vcmp.eq.f32.partialorder %v550_v4, 8.507059e+37 }
 0x47e   :  { %v1135_v21 = vmul.f32 0.5, %v1134_v7 }
 0x47f   :  { %v5161_v29 = vpop.eup %5160 }
 0x480   :  { %v1136_v42 = vsub.f32 1.5, %v1135_v21  ;;  %v542_v33 = vmul.f32 %v5161_v29, %v478_v3  ;;  %v5785_v36 = vpop.xlane.xlu0 %736  ;;  %vm547_vm12 = vweird.f32 %v5161_v29  ;;  %v5163_v9 = vpop.eup %5162 }
 0x481   :  { %v506_v47 = vpop.f32.mrf.mxu2  ;;  %vm548_vm15 = vmor %vm546_vm14, %vm547_vm12  ;;  %v1113_v12 = vmul.f32 %v5163_v9, %v5783_v34  ;;  %5164 = vrcp.f32 %v5785_v36  ;;  %vm1119_vm7 = vweird.f32 %v5163_v9 }
 0x482   :  { %v1137_v50 = vmul.f32 %v5159_v61, %v1136_v42  ;;  %v556_v55 = vmul.f32 %v540_v52, %v506_v47  ;;  %v543_v53 = vsub.f32 1.0, %v542_v33  ;;  %vm1120_vm9 = vmor %vm1118_vm8, %vm1119_vm7 }
 0x483   :  { %v1114_v14 = vmul.f32 %v5163_v9, %v1113_v12  ;;  %v789_v12 = vand.u32 2147483648, %v5785_v36 }
 0x484   :  { %v559_v45 = vpack.c.bf16 %v556_v55, %v555_v54  ;;  %v544_v56 = vmul.f32 %v5161_v29, %v543_v53  ;;  %v1141_v59 = vsel %vm1140_vm11, %v5159_v61, %v1137_v50  ;;  %v553_v61 = vor.u32 1.1754944e-38, %v552_v58 }
 0x485   :  { %v1144_v60 = vmul.f32 %v1141_v59, %v5719_v49  ;;  %v1115_v25 = vmul.f32 0.5, %v1114_v14 }
 0x486   :  { %4882 = vmatmul.msk.bf16.vlgmr.msra.gmra.mxu0 %vm148_vm2, %v559_v45  ;;  %v545_v62 = vadd.f32 %v5161_v29, %v544_v56 }
 0x487   :  { %v1148_v0 = vpack.c.bf16 %v1144_v60, %v1144_v60  ;;  %v5796_v21 = vpop.eup %5164  ;;  %v1116_v46 = vsub.f32 1.5, %v1115_v25 }
 0x488   :  { %v5790_v63 = vpop.xlane.xlu0 %739  ;;  %v549_v1 = vsel %vm548_vm15, %v5161_v29, %v545_v62  ;;  %v779_v41 = vmul.f32 %v5796_v21, %v5785_v36  ;;  %vm784_vm14 = vweird.f32 %v5796_v21 }
 0x489   :  { %v509_v6 = vpop.f32.mrf.mxu2  ;;  %v1159_v8 = vsel %vm148_vm2, %v1148_v0, 0  ;;  %v554_v13 = vsel %vm551_vm0, %v553_v61, %v549_v1  ;;  %5166 = vrcp.f32 %v5790_v63  ;;  %v1117_v54 = vmul.f32 %v5163_v9, %v1116_v46 }
 0x48a   :  { %1167 = vmatpush.bf16.xpose.msra.mxu0 %v1159_v8  ;;  %v557_v31 = vmul.f32 %v554_v13, %v509_v6  ;;  %v780_v50 = vsub.f32 1.0, %v779_v41  ;;  %vm783_vm0 = vweird.f32 %v5785_v36  ;;  %v787_v61 = vand.u32 2147483647, %v5785_v36 }
 0x48b   :  { %v1121_v56 = vsel %vm1120_vm9, %v5163_v9, %v1117_v54  ;;  %v803_v13 = vand.u32 2147483648, %v5790_v63  ;;  %vm5823_vm7 = vmor %vm783_vm0, %vm784_vm14  ;;  %vm797_vm8 = vweird.f32 %v5790_v63  ;;  %v790_v46 = vor.u32 1.1754944e-38, %v789_v12 }
 0x48c   :  { %v560_v19 = vpack.c.bf16 %v557_v31, %v557_v31  ;;  %v781_v45 = vmul.f32 %v5796_v21, %v780_v50  ;;  %v1142_v34 = vmul.f32 %v1121_v56, %v5707_v20 }
 0x48d   :  { %v804_v41 = vor.u32 1.1754944e-38, %v803_v13 }
 0x48e   :  { %v782_v8 = vadd.f32 %v5796_v21, %v781_v45 }
 0x48f   :  { %v5798_v26 = vpop.eup %5166 }
 0x490   :  { %v1105_v7 = vpop.xlane.xlu0 %1104  ;;  %v793_v42 = vmul.f32 %v5798_v26, %v5790_v63  ;;  %v5805_v24 = vpop.xlane.xlu1 %742  ;;  %vm798_vm15 = vweird.f32 %v5798_v26 }
 0x491   :  { %v1110_v3 = vadd.f32 1e-12, %v1105_v7  ;;  %v511_v16 = vpop.f32.mrf.mxu2  ;;  %vm799_vm9 = vmor %vm797_vm8, %vm798_vm15  ;;  %v817_v56 = vand.u32 2147483648, %v5805_v24  ;;  %vm811_vm14 = vweird.f32 %v5805_v24 }
 0x492   :  { %v794_v52 = vsub.f32 1.0, %v793_v42 }
 0x493   :  { %5168 = vrsqrt.f32 %v1110_v3  ;;  %vm1128_vm11 = vweird.f32 %v1110_v3 }
 0x494   :  { %5170 = vrcp.f32 %v5805_v24  ;;  %v795_v59 = vmul.f32 %v5798_v26, %v794_v52  ;;  %v259_v52 = vsel %vm234_vm4, %v5653_v15, 0.0  ;;  %v815_v15 = vand.u32 2147483647, %v5805_v24 }
 0x496   :  { %4883 = vmatmul.msk.bf16.gmra.mxu0 %vm148_vm2, %v560_v19  ;;  %v796_v1 = vadd.f32 %v5798_v26, %v795_v59  ;;  %v786_v19 = vsel %vm5823_vm7, %v5796_v21, %v782_v8  ;;  %vm816_vm0 = vcmp.eq.f32.partialorder %v815_v15, 8.507059e+37 }
 0x499   :  { %v5169_v29 = vpop.eup %5168 }
 0x49a   :  { %v1123_v33 = vmul.f32 %v5169_v29, %v1110_v3  ;;  %vm1129_vm10 = vweird.f32 %v5169_v29  ;;  %v5171_v58 = vpop.eup %5170  ;;  %v801_v3 = vand.u32 2147483647, %v5790_v63 }
 0x49b   :  { %vm1130_vm12 = vmor %vm1128_vm11, %vm1129_vm10  ;;  %v807_v31 = vmul.f32 %v5171_v58, %v5805_v24  ;;  %vm788_vm10 = vcmp.eq.f32.partialorder %v787_v61, 8.507059e+37  ;;  %v5858_v24 = vpack.c.bf16 %v5719_v49, %v5719_v49 }
 0x49c   :  { %v1124_v47 = vmul.f32 %v5169_v29, %v1123_v33  ;;  %vm802_vm11 = vcmp.eq.f32.partialorder %v801_v3, 8.507059e+37  ;;  %v791_v63 = vsel %vm788_vm10, %v790_v46, %v786_v19 }
 0x49d   :  { %v808_v42 = vsub.f32 1.0, %v807_v31  ;;  %v344_v31 = vld [vmem:[%s7395_s4] sm:$0xf] }
 0x49e   :  { %v1125_v55 = vmul.f32 0.5, %v1124_v47  ;;  %v5879_v7 = vsel %vm277_vm13, %v344_v31, 0 }
 0x49f   :  { %604 = vmatpush.bf16.msrb.mxu1 %v5879_v7 }
 0x4a0   :  { %v1126_v53 = vsub.f32 1.5, %v1125_v55  ;;  %v809_v55 = vmul.f32 %v5171_v58, %v808_v42 }
 0x4a2   :  { %v1127_v60 = vmul.f32 %v5169_v29, %v1126_v53  ;;  %v810_v53 = vadd.f32 %v5171_v58, %v809_v55 }
 0x4a3   :  { %v859_v62 = vpop.permute.xlu0 %858 }
 0x4a4   :  { %v769_v0 = vpop.f32.mrf.mxu2  ;;  %v868_v4 = vsel %vm148_vm2, %v859_v62, 0.0  ;;  %v1131_v6 = vsel %vm1130_vm12, %v5169_v29, %v1127_v60  ;;  %v800_v29 = vsel %vm799_vm9, %v5798_v26, %v796_v1  ;;  %v253_v26 = vsel %vm234_vm4, %v5751_v38, 0.0 }
 0x4a5   :  { %869 = vadd.xlane.f32.xlu2 %v868_v4  ;;  %v1143_v9 = vmul.f32 %v1131_v6, %v5710_v37  ;;  %v805_v47 = vsel %vm802_vm11, %v804_v41, %v800_v29  ;;  %v820_v21 = vmul.f32 %v791_v63, %v769_v0  ;;  %vm812_vm12 = vweird.f32 %v5171_v58 }
 0x4a6   :  { %vm813_vm15 = vmor %vm811_vm14, %vm812_vm12  ;;  %v818_v60 = vor.u32 1.1754944e-38, %v817_v56 }
 0x4a7   :  { %v1147_v14 = vpack.c.bf16 %v1143_v9, %v1142_v34  ;;  %v814_v59 = vsel %vm813_vm15, %v5171_v58, %v810_v53 }
 0x4a8   :  { %v861_v16 = vpop.permute.xlu1 %860  ;;  %v819_v62 = vsel %vm816_vm0, %v818_v60, %v814_v59 }
 0x4a9   :  { %v871_v36 = vsel %vm148_vm2, %v861_v16, 0.0  ;;  %v1156_v25 = vsel %vm148_vm2, %v1147_v14, 0 }
 0x4aa   :  { %872 = vadd.xlane.f32.xlu0 %v871_v36  ;;  %1168 = vmatpush.bf16.xpose.msra.mxu0 %v1156_v25 }
 0x4ac   :  { %v771_v33 = vpop.f32.mrf.mxu2 }
 0x4ad   :  { %v821_v50 = vmul.f32 %v805_v47, %v771_v33  ;;  %260 = vadd.xlane.f32.xlu2 %v259_v52 }
 0x4af   :  { %v824_v54 = vpack.c.bf16 %v821_v50, %v820_v21 }
 0x4b1   :  { %4890 = vmatmul.msk.bf16.vlgmr.msrb.gmra.mxu0 %vm148_vm2, %v824_v54 }
 0x4b2   :  { %254 = vadd.xlane.f32.xlu0 %v253_v26  ;;  %1521 = vmatpush.bf16.msrb.mxu0 %v5759_v11  ;;  %v5851_v11 = vpack.c.bf16 %v5710_v37, %v5707_v20 }
 0x4b4   :  { %v774_v45 = vpop.f32.mrf.mxu2 }
 0x4b5   :  { %v822_v0 = vmul.f32 %v819_v62, %v774_v45 }
 0x4b7   :  { %v825_v38 = vpack.c.bf16 %v822_v0, %v822_v0 }
 0x4bc   :  { %v776_v4 = vpop.f32.mrf.mxu2 }
 0x4c1   :  { %4891 = vmatmul.msk.bf16.gmra.mxu0 %vm148_vm2, %v825_v38 }
 0x4c5   :  { %912 = vrot.lane.b32.xlu2 %v5593_v44, %s5457_s21 }
 0x4cd   :  { %1302 = vrot.lane.b32.xlu2 %v5724_v51, %s5452_s16 }
 0x4ce   :  { %v5862_v58 = vpop.f32.mrf.mxu0 }
 0x4d1   :  { %4898 = vmatmul.msk.bf16.vlgmr.msra.gmra.mxu0 %vm148_vm2, %v5851_v11 }
 0x4d2   :  { %1779 = vmatpush.bf16.msra.mxu0 %v5766_v48 }
 0x4d6   :  { %v5864_v6 = vpop.f32.mrf.mxu0 }
 0x4e1   :  { %4899 = vmatmul.msk.bf16.gmra.mxu0 %vm148_vm2, %v5858_v24 }
 0x4e5   :  { %v867_v8 = vpop.xlane.xlu1 %866 }
 0x4e6   :  { %v874_v9 = vadd.f32 1e-12, %v867_v8 }
 0x4e8   :  { %5172 = vrsqrt.f32 %v874_v9  ;;  %vm883_vm8 = vweird.f32 %v874_v9 }
 0x4ed   :  { %v5872_v12 = vpop.xlane.xlu1 %257 }
 0x4ee   :  { %v5173_v61 = vpop.eup %5172  ;;  %5174 = vrcp.f32 %v5872_v12  ;;  %vm318_vm0 = vweird.f32 %v5872_v12 }
 0x4ef   :  { %v878_v13 = vmul.f32 %v5173_v61, %v874_v9  ;;  %vm884_vm7 = vweird.f32 %v5173_v61 }
 0x4f0   :  { %vm885_vm9 = vmor %vm883_vm8, %vm884_vm7 }
 0x4f1   :  { %v879_v3 = vmul.f32 %v5173_v61, %v878_v13 }
 0x4f3   :  { %v880_v25 = vmul.f32 0.5, %v879_v3  ;;  %v324_v3 = vand.u32 2147483648, %v5872_v12 }
 0x4f4   :  { %v5882_v36 = vpop.eup %5174 }
 0x4f5   :  { %v314_v41 = vmul.f32 %v5882_v36, %v5872_v12  ;;  %v881_v63 = vsub.f32 1.5, %v880_v25  ;;  %vm319_vm14 = vweird.f32 %v5882_v36 }
 0x4f6   :  { %vm5901_vm8 = vmor %vm318_vm0, %vm319_vm14 }
 0x4f7   :  { %v315_v52 = vsub.f32 1.0, %v314_v41  ;;  %v882_v50 = vmul.f32 %v5173_v61, %v881_v63 }
 0x4f9   :  { %v316_v45 = vmul.f32 %v5882_v36, %v315_v52  ;;  %v886_v59 = vsel %vm885_vm9, %v5173_v61, %v882_v50  ;;  %v322_v61 = vand.u32 2147483647, %v5872_v12 }
 0x4fa   :  { %v907_v9 = vmul.f32 %v886_v59, %v5547_v30 }
 0x4fb   :  { %v317_v38 = vadd.f32 %v5882_v36, %v316_v45 }
 0x503   :  { %v5866_v34 = vpop.f32.mrf.mxu0 }
 0x50b   :  { %v5868_v1 = vpop.f32.mrf.mxu0 }
 0x513   :  { %v5870_v48 = vpop.f32.mrf.mxu0 }
 0x518   :  { %v870_v14 = vpop.xlane.xlu2 %869 }
 0x519   :  { %v875_v16 = vadd.f32 1e-12, %v870_v14 }
 0x51b   :  { %5176 = vrsqrt.f32 %v875_v16  ;;  %v586_v19 = vpop.f32.mrf.mxu0  ;;  %vm893_vm11 = vweird.f32 %v875_v16 }
 0x51d   :  { %v873_v29 = vpop.xlane.xlu0 %872 }
 0x51e   :  { %v876_v46 = vadd.f32 1e-12, %v873_v29 }
 0x520   :  { %5178 = vrsqrt.f32 %v876_v46  ;;  %v5886_v47 = vpop.xlane.xlu2 %260  ;;  %vm903_vm7 = vweird.f32 %v876_v46 }
 0x521   :  { %v5177_v42 = vpop.eup %5176  ;;  %5180 = vrcp.f32 %v5886_v47 }
 0x522   :  { %v888_v33 = vmul.f32 %v5177_v42, %v875_v16  ;;  %vm894_vm10 = vweird.f32 %v5177_v42 }
 0x523   :  { %vm895_vm12 = vmor %vm893_vm11, %vm894_vm10  ;;  %vm323_vm11 = vcmp.eq.f32.partialorder %v322_v61, 8.507059e+37 }
 0x524   :  { %v889_v21 = vmul.f32 %v5177_v42, %v888_v33  ;;  %v325_v33 = vor.u32 1.1754944e-38, %v324_v3 }
 0x525   :  { %v255_v54 = vpop.xlane.xlu0 %254 }
 0x526   :  { %v5179_v55 = vpop.eup %5178  ;;  %v890_v26 = vmul.f32 0.5, %v889_v21  ;;  %5182 = vrcp.f32 %v255_v54 }
 0x527   :  { %v898_v53 = vmul.f32 %v5179_v55, %v876_v46  ;;  %v5890_v62 = vpop.eup %5180  ;;  %vm904_vm15 = vweird.f32 %v5179_v55  ;;  %v308_v46 = vand.u32 2147483647, %v255_v54 }
 0x528   :  { %v891_v56 = vsub.f32 1.5, %v890_v26  ;;  %v328_v30 = vmul.f32 %v5890_v62, %v5886_v47  ;;  %vm905_vm9 = vmor %vm903_vm7, %vm904_vm15  ;;  %vm333_vm0 = vweird.f32 %v5890_v62  ;;  %vm332_vm7 = vweird.f32 %v5886_v47 }
 0x529   :  { %v899_v15 = vmul.f32 %v5179_v55, %v898_v53  ;;  %vm309_vm15 = vcmp.eq.f32.partialorder %v308_v46, 8.507059e+37 }
 0x52a   :  { %v892_v60 = vmul.f32 %v5177_v42, %v891_v56  ;;  %v329_v21 = vsub.f32 1.0, %v328_v30 }
 0x52b   :  { %v900_v0 = vmul.f32 0.5, %v899_v15 }
 0x52c   :  { %v5183_v4 = vpop.eup %5182  ;;  %v896_v8 = vsel %vm895_vm12, %v5177_v42, %v892_v60  ;;  %v321_v42 = vsel %vm5901_vm8, %v5882_v36, %v317_v38  ;;  %vm304_vm12 = vweird.f32 %v255_v54  ;;  %vm334_vm8 = vmor %vm332_vm7, %vm333_vm0 }
 0x52d   :  { %v901_v13 = vsub.f32 1.5, %v900_v0  ;;  %v300_v31 = vmul.f32 %v5183_v4, %v255_v54  ;;  %v908_v14 = vmul.f32 %v896_v8, %v5555_v32  ;;  %v310_v32 = vand.u32 2147483648, %v255_v54 }
 0x52e   :  { %v5899_v16 = vpop.f32.mrf.mxu0  ;;  %vm305_vm10 = vweird.f32 %v5183_v4  ;;  %v326_v45 = vsel %vm323_vm11, %v325_v33, %v321_v42  ;;  %v338_v0 = vand.u32 2147483648, %v5886_v47  ;;  %v913_v42 = vpop.permute.xlu2 %912 }
 0x52f   :  { %v301_v25 = vsub.f32 1.0, %v300_v31  ;;  %v910_v29 = vpack.c.bf16 %v908_v14, %v907_v9  ;;  %v902_v41 = vmul.f32 %v5179_v55, %v901_v13  ;;  %vm306_vm14 = vmor %vm304_vm12, %vm305_vm10  ;;  %v311_v26 = vor.u32 1.1754944e-38, %v310_v32 }
 0x530   :  { %v342_v59 = vmul.f32 %v326_v45, %v5864_v6  ;;  %v339_v38 = vor.u32 1.1754944e-38, %v338_v0 }
 0x531   :  { %v302_v12 = vmul.f32 %v5183_v4, %v301_v25  ;;  %918 = vrot.lane.b32.xlu1 %v910_v29, %s5457_s21  ;;  %v906_v63 = vsel %vm905_vm9, %v5179_v55, %v902_v41 }
 0x532   :  { %v909_v52 = vmul.f32 %v906_v63, %v5565_v35  ;;  %v330_v35 = vmul.f32 %v5890_v62, %v329_v21 }
 0x533   :  { %v303_v50 = vadd.f32 %v5183_v4, %v302_v12 }
 0x534   :  { %v911_v53 = vpack.c.bf16 %v909_v52, %v909_v52  ;;  %v331_v60 = vadd.f32 %v5890_v62, %v330_v35 }
 0x535   :  { %v307_v56 = vsel %vm306_vm14, %v5183_v4, %v303_v50 }
 0x536   :  { %v5912_v36 = vpop.f32.mrf.mxu0  ;;  %920 = vrot.lane.b32.xlu0 %v911_v53, %s5457_s21  ;;  %v312_v15 = vsel %vm309_vm15, %v311_v26, %v307_v56  ;;  %v335_v6 = vsel %vm334_vm8, %v5890_v62, %v331_v60  ;;  %v1303_v46 = vpop.permute.xlu2 %1302 }
 0x537   :  { %v341_v55 = vmul.f32 %v312_v15, %v5862_v58  ;;  %v336_v58 = vand.u32 2147483647, %v5886_v47 }
 0x539   :  { %1298 = vrot.lane.b32.xlu1 %v5714_v39, %s5452_s16  ;;  %v345_v54 = vpack.c.bf16 %v342_v59, %v341_v55  ;;  %vm337_vm9 = vcmp.eq.f32.partialorder %v336_v58, 8.507059e+37 }
 0x53a   :  { %v340_v8 = vsel %vm337_vm9, %v339_v38, %v335_v6 }
 0x53b   :  { %4884 = vmatmul.msk.bf16.vlgmr.msrb.gmra.mxu1 %vm148_vm2, %v345_v54  ;;  %v343_v9 = vmul.f32 %v340_v8, %v5666_v40 }
 0x53d   :  { %v346_v47 = vpack.c.bf16 %v343_v9, %v343_v9 }
 0x53e   :  { %v5926_v4 = vpop.f32.mrf.mxu0  ;;  %914 = vrot.lane.b32.xlu0 %v5587_v43, %s5457_s21 }
 0x541   :  { %1797 = vrot.lane.b32.xlu1 %v5724_v51, %s5457_s21 }
 0x546   :  { %v851_v13 = vpop.f32.mrf.mxu0  ;;  %1218 = vrot.lane.b32.xlu0 %v5858_v24, %s5454_s18 }
 0x549   :  { %1556 = vrot.lane.b32.xlu1 %v5714_v39, %s5453_s17 }
 0x54b   :  { %4885 = vmatmul.msk.bf16.gmra.mxu1 %vm148_vm2, %v346_v47 }
 0x54e   :  { %v1170_v31 = vpop.f32.mrf.mxu0  ;;  %1216 = vrot.lane.b32.xlu0 %v5851_v11, %s5454_s18 }
 0x54f   :  { %v1179_v62 = vmul.f32 0.35355338, %v1170_v31 }
 0x551   :  { %v1182_v14 = vsel %vm5616_vm5, -50000.0, %v1179_v62 }
 0x552   :  { %v1185_v40 = vsel %vm234_vm4, %v1182_v14, -inf }
 0x553   :  { %1186 = vmax.xlane.f32.xlu2 %v1185_v40 }
 0x556   :  { %v1172_v61 = vpop.f32.mrf.mxu0  ;;  %1300 = vrot.lane.b32.xlu0 %v5737_v10, %s5452_s16 }
 0x557   :  { %v1180_v30 = vmul.f32 0.35355338, %v1172_v61 }
 0x559   :  { %v1183_v25 = vsel %vm5620_vm6, -50000.0, %v1180_v30 }
 0x55a   :  { %v1188_v29 = vsel %vm234_vm4, %v1183_v25, -inf }
 0x55e   :  { %v1175_v3 = vpop.f32.mrf.mxu0  ;;  %1558 = vrot.lane.b32.xlu0 %v5737_v10, %s5453_s17 }
 0x55f   :  { %v1181_v41 = vmul.f32 0.35355338, %v1175_v3 }
 0x561   :  { %v1184_v32 = vsel %vm5632_vm3, -50000.0, %v1181_v41 }
 0x562   :  { %v1191_v12 = vsel %vm234_vm4, %v1184_v32, -inf }
 0x566   :  { %v1177_v19 = vpop.f32.mrf.mxu0 }
 0x56b   :  { %1560 = vrot.lane.b32.xlu2 %v5724_v51, %s5453_s17  ;;  %v1313_v51 = vsel %vm148_vm2, %v1303_v46, 0.0 }
 0x573   :  { %1189 = vmax.xlane.f32.xlu1 %v1188_v29 }
 0x588   :  { %1192 = vmax.xlane.f32.xlu0 %v1191_v12 }
 0x58c   :  { %1793 = vrot.lane.b32.xlu1 %v5714_v39, %s5457_s21 }
 0x594   :  { %1314 = vadd.xlane.f32.xlu2 %v1313_v51 }
 0x59c   :  { %1795 = vrot.lane.b32.xlu0 %v5737_v10, %s5457_s21 }
 0x5a3   :  { %v919_v63 = vpop.permute.xlu1 %918 }
 0x5a4   :  { %v929_v26 = vsel %vm148_vm2, %v919_v63, 0 }
 0x5a8   :  { %v921_v33 = vpop.permute.xlu0 %920 }
 0x5a9   :  { %v932_v52 = vsel %vm148_vm2, %v921_v33, 0 }
 0x5aa   :  { %940 = vmatpush.bf16.xpose.msra.mxu1 %v932_v52 }
 0x5ab   :  { %v1299_v21 = vpop.permute.xlu1 %1298 }
 0x5ac   :  { %v1307_v53 = vsel %vm148_vm2, %v1299_v21, 0.0 }
 0x5b0   :  { %v915_v50 = vpop.permute.xlu0 %914 }
 0x5b2   :  { %941 = vmatpush.bf16.xpose.msra.mxu1 %v929_v26 }
 0x5b3   :  { %v1798_v10 = vpop.permute.xlu1 %1797 }
 0x5b4   :  { %v1808_v15 = vsel %vm148_vm2, %v1798_v10, 0.0 }
 0x5b6   :  { %1308 = vadd.xlane.f32.xlu1 %v1307_v53 }
 0x5b8   :  { %v5964_v39 = vpop.f32.mrf.mxu1  ;;  %v1219_v45 = vpop.permute.xlu0 %1218 }
 0x5b9   :  { %v1228_v56 = vsel %vm277_vm13, %v1219_v45, 0  ;;  %4892 = vmatmul.msk.bf16.vlgmr.msra.gmra.mxu1 %vm148_vm2, %v913_v42 }
 0x5ba   :  { %1236 = vmatpush.bf16.msrb.mxu1 %v1228_v56 }
 0x5bb   :  { %v1557_v13 = vpop.permute.xlu1 %1556 }
 0x5be   :  { %1809 = vadd.xlane.f32.xlu1 %v1808_v15 }
 0x5c0   :  { %v5969_v55 = vpop.f32.mrf.mxu1  ;;  %v1217_v59 = vpop.permute.xlu0 %1216 }
 0x5c1   :  { %1237 = vmatpush.bf16.msrb.mxu1 %v1217_v59 }
 0x5c5   :  { %1545 = vmatpush.bf16.msra.mxu1 %v5879_v7 }
 0x5c6   :  { %v1187_v35 = vpop.xlane.xlu2 %1186 }
 0x5c7   :  { %v1194_v7 = vsub.f32 %v1182_v14, %v1187_v35 }
 0x5c8   :  { %v5972_v54 = vpop.f32.mrf.mxu1  ;;  %v1301_v60 = vpop.permute.xlu0 %1300 }
 0x5c9   :  { %4893 = vmatmul.msk.bf16.gmra.mxu1 %vm148_vm2, %v915_v50  ;;  %v1310_v0 = vsel %vm148_vm2, %v1301_v60, 0.0  ;;  %v1197_v47 = vmul.f32 1.442695, %v1194_v7 }
 0x5ca   :  { %1311 = vadd.xlane.f32.xlu0 %v1310_v0 }
 0x5cb   :  { %5184 = vpow2.f32 %v1197_v47 }
 0x5ce   :  { %v1561_v58 = vpop.permute.xlu2 %1560 }
 0x5cf   :  { %v1571_v6 = vsel %vm148_vm2, %v1561_v58, 0.0 }
 0x5d0   :  { %1572 = vadd.xlane.f32.xlu2 %v1571_v6  ;;  %v613_v38 = vpop.f32.mrf.mxu1  ;;  %v1559_v8 = vpop.permute.xlu0 %1558 }
 0x5d1   :  { %v1568_v9 = vsel %vm148_vm2, %v1559_v8, 0.0  ;;  %v5980_v61 = vpop.eup %5184 }
 0x5d2   :  { %1569 = vadd.xlane.f32.xlu1 %v1568_v9 }
 0x5de   :  { %989 = vrot.lane.b32.xlu0 %v5587_v43, %s5458_s28 }
 0x5e6   :  { %v1190_v31 = vpop.xlane.xlu1 %1189 }
 0x5e7   :  { %v1195_v62 = vsub.f32 %v1183_v25, %v1190_v31 }
 0x5e9   :  { %v1199_v40 = vmul.f32 1.442695, %v1195_v62 }
 0x5eb   :  { %5186 = vpow2.f32 %v1199_v40  ;;  %v1565_v40 = vsel %vm148_vm2, %v1557_v13, 0.0 }
 0x5f1   :  { %v5982_v3 = vpop.eup %5186 }
 0x5f2   :  { %v1212_v19 = vpack.c.bf16 %v5982_v3, %v5980_v61 }
 0x5f4   :  { %4900 = vmatmul.msk.bf16.vlgmr.msrb.gmra.mxu1 %vm234_vm4, %v1212_v19 }
 0x5fb   :  { %v1193_v30 = vpop.xlane.xlu0 %1192 }
 0x5fc   :  { %v1196_v29 = vsub.f32 %v1184_v32, %v1193_v30 }
 0x5fe   :  { %v1201_v41 = vmul.f32 1.442695, %v1196_v29  ;;  %v1794_v60 = vpop.permute.xlu1 %1793 }
 0x600   :  { %5188 = vpow2.f32 %v1201_v41 }
 0x606   :  { %v5987_v43 = vpop.eup %5188 }
 0x607   :  { %v1315_v14 = vpop.xlane.xlu2 %1314  ;;  %v1213_v25 = vpack.c.bf16 %v5987_v43, %v5987_v43 }
 0x608   :  { %v1318_v42 = vadd.f32 1e-12, %v1315_v14 }
 0x609   :  { %4901 = vmatmul.msk.bf16.gmra.mxu1 %vm234_vm4, %v1213_v25 }
 0x60a   :  { %5190 = vrsqrt.f32 %v1318_v42  ;;  %vm1345_vm11 = vweird.f32 %v1318_v42 }
 0x60e   :  { %v1796_v12 = vpop.permute.xlu0 %1795 }
 0x60f   :  { %v1805_v46 = vsel %vm148_vm2, %v1796_v12, 0.0 }
 0x610   :  { %v5191_v51 = vpop.eup %5190  ;;  %1806 = vadd.xlane.f32.xlu1 %v1805_v46 }
 0x611   :  { %v1340_v63 = vmul.f32 %v5191_v51, %v1318_v42  ;;  %vm1346_vm10 = vweird.f32 %v5191_v51 }
 0x612   :  { %vm1347_vm12 = vmor %vm1345_vm11, %vm1346_vm10 }
 0x613   :  { %v1341_v33 = vmul.f32 %v5191_v51, %v1340_v63 }
 0x615   :  { %v1342_v32 = vmul.f32 0.5, %v1341_v33 }
 0x617   :  { %v1343_v52 = vsub.f32 1.5, %v1342_v32 }
 0x619   :  { %v1344_v21 = vmul.f32 %v5191_v51, %v1343_v52 }
 0x61b   :  { %v1348_v50 = vsel %vm1347_vm12, %v5191_v51, %v1344_v21  ;;  %v1802_v51 = vsel %vm148_vm2, %v1794_v60, 0.0 }
 0x61c   :  { %v1351_v26 = vmul.f32 %v1348_v50, %v5719_v49 }
 0x61e   :  { %v1353_v53 = vpack.c.bf16 %v1351_v26, %v1351_v26 }
 0x629   :  { %1362 = vrot.lane.b32.xlu1 %v1353_v53, %s5452_s16  ;;  %v1309_v47 = vpop.xlane.xlu1 %1308 }
 0x62a   :  { %v1316_v30 = vadd.f32 1e-12, %v1309_v47 }
 0x62c   :  { %vm1325_vm11 = vweird.f32 %v1316_v30 }
 0x631   :  { %1354 = vrot.lane.b32.xlu1 %v5851_v11, %s5452_s16 }
 0x636   :  { %v943_v45 = vpop.f32.mrf.mxu1 }
 0x637   :  { %v952_v56 = vmul.f32 0.35355338, %v943_v45 }
 0x639   :  { %v5999_v10 = vsel %vm5616_vm5, -50000.0, %v952_v56 }
 0x63a   :  { %v958_v15 = vsel %vm234_vm4, %v5999_v10, -inf }
 0x63b   :  { %959 = vmax.xlane.f32.xlu2 %v958_v15 }
 0x63d   :  { %v1312_v8 = vpop.xlane.xlu0 %1311 }
 0x63e   :  { %v945_v59 = vpop.f32.mrf.mxu1  ;;  %v1317_v31 = vadd.f32 1e-12, %v1312_v8 }
 0x63f   :  { %v953_v35 = vmul.f32 0.35355338, %v945_v59 }
 0x640   :  { %vm1335_vm9 = vweird.f32 %v1317_v31 }
 0x641   :  { %v6005_v0 = vsel %vm5620_vm6, -50000.0, %v953_v35 }
 0x642   :  { %v961_v58 = vsel %vm234_vm4, %v6005_v0, -inf }
 0x643   :  { %v1573_v6 = vpop.xlane.xlu2 %1572  ;;  %962 = vmax.xlane.f32.xlu2 %v961_v58 }
 0x644   :  { %v1576_v38 = vadd.f32 1e-12, %v1573_v6 }
 0x646   :  { %5192 = vrsqrt.f32 %v1576_v38  ;;  %v948_v9 = vpop.f32.mrf.mxu1  ;;  %vm1603_vm15 = vweird.f32 %v1576_v38 }
 0x647   :  { %v954_v7 = vmul.f32 0.35355338, %v948_v9  ;;  %5194 = vrsqrt.f32 %v1317_v31 }
 0x648   :  { %5196 = vrsqrt.f32 %v1316_v30 }
 0x649   :  { %v6011_v62 = vsel %vm5632_vm3, -50000.0, %v954_v7 }
 0x64a   :  { %v964_v19 = vsel %vm234_vm4, %v6011_v62, -inf }
 0x64b   :  { %1566 = vadd.xlane.f32.xlu2 %v1565_v40  ;;  %965 = vmax.xlane.f32.xlu0 %v964_v19  ;;  %v1810_v19 = vpop.xlane.xlu1 %1809 }
 0x64c   :  { %v5193_v29 = vpop.eup %5192 }
 0x64d   :  { %v1598_v41 = vmul.f32 %v5193_v29, %v1576_v38  ;;  %v5195_v13 = vpop.eup %5194  ;;  %vm1604_vm14 = vweird.f32 %v5193_v29 }
 0x64e   :  { %v950_v14 = vpop.f32.mrf.mxu1  ;;  %v5197_v33 = vpop.eup %5196  ;;  %v1330_v52 = vmul.f32 %v5195_v13, %v1317_v31  ;;  %vm1605_vm0 = vmor %vm1603_vm15, %vm1604_vm14  ;;  %vm1336_vm7 = vweird.f32 %v5195_v13 }
 0x64f   :  { %v1599_v25 = vmul.f32 %v5193_v29, %v1598_v41  ;;  %v1320_v50 = vmul.f32 %v5197_v33, %v1316_v30  ;;  %vm1326_vm8 = vweird.f32 %v5197_v33  ;;  %vm1337_vm10 = vmor %vm1335_vm9, %vm1336_vm7  ;;  %v1203_v30 = vsel %vm234_vm4, %v5980_v61, 0.0 }
 0x650   :  { %v990_v42 = vpop.permute.xlu0 %989  ;;  %v1331_v53 = vmul.f32 %v5195_v13, %v1330_v52  ;;  %vm1327_vm12 = vmor %vm1325_vm11, %vm1326_vm8 }
 0x651   :  { %v1600_v12 = vmul.f32 0.5, %v1599_v25  ;;  %v999_v46 = vsel %vm277_vm13, %v990_v42, 0  ;;  %v1321_v56 = vmul.f32 %v5197_v33, %v1320_v50  ;;  %v1206_v25 = vsel %vm234_vm4, %v5982_v3, 0.0 }
 0x652   :  { %1007 = vmatpush.bf16.msrb.mxu3 %v999_v46  ;;  %v1332_v15 = vmul.f32 0.5, %v1331_v53 }
 0x653   :  { %v1601_v63 = vsub.f32 1.5, %v1600_v12  ;;  %1803 = vadd.xlane.f32.xlu2 %v1802_v51  ;;  %v1322_v59 = vmul.f32 0.5, %v1321_v56  ;;  %v1570_v3 = vpop.xlane.xlu1 %1569 }
 0x654   :  { %v1333_v35 = vsub.f32 1.5, %v1332_v15  ;;  %v1575_v52 = vadd.f32 1e-12, %v1570_v3 }
 0x655   :  { %v1602_v32 = vmul.f32 %v5193_v29, %v1601_v63  ;;  %v1323_v60 = vsub.f32 1.5, %v1322_v59  ;;  %v1209_v63 = vsel %vm234_vm4, %v5987_v43, 0.0 }
 0x656   :  { %v1334_v58 = vmul.f32 %v5195_v13, %v1333_v35  ;;  %vm1593_vm8 = vweird.f32 %v1575_v52 }
 0x657   :  { %v1606_v21 = vsel %vm1605_vm0, %v5193_v29, %v1602_v32  ;;  %v1324_v6 = vmul.f32 %v5197_v33, %v1323_v60  ;;  %v1813_v29 = vadd.f32 1e-12, %v1810_v19 }
 0x658   :  { %v1609_v26 = vmul.f32 %v1606_v21, %v5719_v49  ;;  %v1338_v38 = vsel %vm1337_vm10, %v5195_v13, %v1334_v58 }
 0x659   :  { %v1328_v8 = vsel %vm1327_vm12, %v5197_v33, %v1324_v6  ;;  %v1350_v9 = vmul.f32 %v1338_v38, %v5710_v37  ;;  %5198 = vrsqrt.f32 %v1813_v29  ;;  %vm1840_vm15 = vweird.f32 %v1813_v29 }
 0x65a   :  { %v1611_v45 = vpack.c.bf16 %v1609_v26, %v1609_v26  ;;  %v1349_v7 = vmul.f32 %v1328_v8, %v5707_v20  ;;  %5200 = vrsqrt.f32 %v1575_v52 }
 0x65c   :  { %1620 = vrot.lane.b32.xlu1 %v1611_v45, %s5453_s17  ;;  %v1352_v47 = vpack.c.bf16 %v1350_v9, %v1349_v7 }
 0x65f   :  { %1356 = vrot.lane.b32.xlu0 %v5858_v24, %s5452_s16 }
 0x66b   :  { %987 = vrot.lane.b32.xlu2 %v5593_v44, %s5458_s28  ;;  %v5199_v44 = vpop.eup %5198 }
 0x66c   :  { %v1835_v14 = vmul.f32 %v5199_v44, %v1813_v29  ;;  %vm1841_vm14 = vweird.f32 %v5199_v44  ;;  %v5201_v53 = vpop.eup %5200 }
 0x66d   :  { %vm1842_vm0 = vmor %vm1840_vm15, %vm1841_vm14  ;;  %v1588_v45 = vmul.f32 %v5201_v53, %v1575_v52  ;;  %vm1594_vm7 = vweird.f32 %v5201_v53 }
 0x66e   :  { %v1836_v42 = vmul.f32 %v5199_v44, %v1835_v14  ;;  %vm6058_vm9 = vmor %vm1593_vm8, %vm1594_vm7 }
 0x670   :  { %v1837_v46 = vmul.f32 0.5, %v1836_v42 }
 0x671   :  { %v6027_v40 = vpop.f32.mrf.mxu1 }
 0x672   :  { %v1838_v51 = vsub.f32 1.5, %v1837_v46 }
 0x673   :  { %1360 = vrot.lane.b32.xlu2 %v1352_v47, %s5452_s16 }
 0x674   :  { %v1839_v13 = vmul.f32 %v5199_v44, %v1838_v51 }
 0x676   :  { %v1843_v61 = vsel %vm1842_vm0, %v5199_v44, %v1839_v13 }
 0x677   :  { %v1846_v33 = vmul.f32 %v1843_v61, %v5719_v49  ;;  %v1589_v49 = vmul.f32 %v5201_v53, %v1588_v45 }
 0x679   :  { %v6029_v31 = vpop.f32.mrf.mxu1  ;;  %v1848_v32 = vpack.c.bf16 %v1846_v33, %v1846_v33  ;;  %v1590_v58 = vmul.f32 0.5, %v1589_v49 }
 0x67b   :  { %v1591_v19 = vsub.f32 1.5, %v1590_v58 }
 0x67d   :  { %v1592_v14 = vmul.f32 %v5201_v53, %v1591_v19 }
 0x683   :  { %v1807_v50 = vpop.xlane.xlu1 %1806 }
 0x684   :  { %v6043_v26 = vadd.f32 1e-12, %v1807_v50 }
 0x686   :  { %v6033_v41 = vpop.f32.mrf.mxu1  ;;  %1204 = vadd.xlane.f32.xlu1 %v1203_v30  ;;  %5202 = vrsqrt.f32 %v6043_v26  ;;  %vm1830_vm15 = vweird.f32 %v6043_v26 }
 0x68c   :  { %v6047_v35 = vpop.eup %5202 }
 0x68d   :  { %v1825_v6 = vmul.f32 %v6047_v35, %v6043_v26  ;;  %vm1831_vm14 = vweird.f32 %v6047_v35 }
 0x68e   :  { %v1246_v12 = vpop.f32.mrf.mxu1  ;;  %1207 = vadd.xlane.f32.xlu1 %v1206_v25  ;;  %vm1832_vm7 = vmor %vm1830_vm15, %vm1831_vm14 }
 0x68f   :  { %v1826_v29 = vmul.f32 %v6047_v35, %v1825_v6 }
 0x691   :  { %v1827_v25 = vmul.f32 0.5, %v1826_v29 }
 0x693   :  { %v1828_v3 = vsub.f32 1.5, %v1827_v25 }
 0x695   :  { %v1829_v58 = vmul.f32 %v6047_v35, %v1828_v3 }
 0x697   :  { %v1833_v19 = vsel %vm1832_vm7, %v6047_v35, %v1829_v58 }
 0x69b   :  { %v1363_v38 = vpop.permute.xlu1 %1362 }
 0x69c   :  { %1210 = vadd.xlane.f32.xlu2 %v1209_v63 }
 0x6a3   :  { %v1355_v51 = vpop.permute.xlu1 %1354 }
 0x6a7   :  { %1857 = vrot.lane.b32.xlu1 %v1848_v32, %s5457_s21 }
 0x6ae   :  { %v960_v21 = vpop.xlane.xlu2 %959 }
 0x6af   :  { %v967_v60 = vsub.f32 %v5999_v10, %v960_v21  ;;  %v1374_v21 = vsel %vm148_vm2, %v1363_v38, 0 }
 0x6b1   :  { %v970_v9 = vmul.f32 1.442695, %v967_v60 }
 0x6b4   :  { %1612 = vrot.lane.b32.xlu2 %v5851_v11, %s5453_s17 }
 0x6b6   :  { %v963_v43 = vpop.xlane.xlu2 %962 }
 0x6b7   :  { %v968_v15 = vsub.f32 %v6005_v0, %v963_v43 }
 0x6b9   :  { %v972_v8 = vmul.f32 1.442695, %v968_v15 }
 0x6be   :  { %v1567_v56 = vpop.xlane.xlu2 %1566  ;;  %v966_v44 = vpop.xlane.xlu0 %965 }
 0x6bf   :  { %v1574_v59 = vadd.f32 1e-12, %v1567_v56  ;;  %v969_v42 = vsub.f32 %v6011_v62, %v966_v44  ;;  %v1596_v62 = vsel %vm6058_vm9, %v5201_v53, %v1592_v14  ;;  %v1845_v44 = vmul.f32 %v1833_v19, %v5710_v37 }
 0x6c0   :  { %v1608_v60 = vmul.f32 %v1596_v62, %v5710_v37 }
 0x6c1   :  { %5204 = vrsqrt.f32 %v1574_v59  ;;  %v974_v50 = vmul.f32 1.442695, %v969_v42  ;;  %vm1583_vm11 = vweird.f32 %v1574_v59 }
 0x6c2   :  { %5206 = vpow2.f32 %v972_v8 }
 0x6c3   :  { %5208 = vpow2.f32 %v970_v9 }
 0x6c6   :  { %v1804_v7 = vpop.xlane.xlu2 %1803 }
 0x6c7   :  { %v5205_v47 = vpop.eup %5204  ;;  %v1811_v0 = vadd.f32 1e-12, %v1804_v7 }
 0x6c8   :  { %v1578_v30 = vmul.f32 %v5205_v47, %v1574_v59  ;;  %v6054_v46 = vpop.eup %5206  ;;  %vm1584_vm10 = vweird.f32 %v5205_v47 }
 0x6c9   :  { %5210 = vrsqrt.f32 %v1811_v0  ;;  %v6056_v13 = vpop.eup %5208  ;;  %vm1585_vm12 = vmor %vm1583_vm11, %vm1584_vm10  ;;  %vm1820_vm8 = vweird.f32 %v1811_v0 }
 0x6ca   :  { %v1579_v10 = vmul.f32 %v5205_v47, %v1578_v30  ;;  %v985_v52 = vpack.c.bf16 %v6054_v46, %v6056_v13  ;;  %5212 = vpow2.f32 %v974_v50 }
 0x6cc   :  { %v1580_v12 = vmul.f32 0.5, %v1579_v10 }
 0x6ce   :  { %v1581_v61 = vsub.f32 1.5, %v1580_v12  ;;  %v988_v33 = vpop.permute.xlu2 %987  ;;  %v1621_v6 = vpop.permute.xlu1 %1620 }
 0x6cf   :  { %v5211_v32 = vpop.eup %5210  ;;  %1008 = vmatpush.bf16.msrb.mxu3 %v988_v33  ;;  %v979_v33 = vsel %vm234_vm4, %v6054_v46, 0.0 }
 0x6d0   :  { %v1582_v43 = vmul.f32 %v5205_v47, %v1581_v61  ;;  %v1815_v45 = vmul.f32 %v5211_v32, %v1811_v0  ;;  %vm1821_vm0 = vweird.f32 %v5211_v32  ;;  %v5213_v29 = vpop.eup %5212 }
 0x6d1   :  { %vm1822_vm9 = vmor %vm1820_vm8, %vm1821_vm0  ;;  %v982_v10 = vsel %vm234_vm4, %v5213_v29, 0.0  ;;  %v986_v0 = vpack.c.bf16 %v5213_v29, %v5213_v29  ;;  %v1357_v35 = vpop.permute.xlu0 %1356 }
 0x6d2   :  { %v1816_v56 = vmul.f32 %v5211_v32, %v1815_v45  ;;  %4894 = vmatmul.msk.bf16.vlgmr.msrb.gmra.mxu3 %vm234_vm4, %v985_v52  ;;  %v1586_v49 = vsel %vm1585_vm12, %v5205_v47, %v1582_v43  ;;  %v1632_v47 = vsel %vm148_vm2, %v1621_v6, 0 }
 0x6d3   :  { %1382 = vmatpush.bf16.xpose.msra.mxu3 %v1374_v21  ;;  %v1607_v15 = vmul.f32 %v1586_v49, %v5707_v20 }
 0x6d4   :  { %v1817_v53 = vmul.f32 0.5, %v1816_v56 }
 0x6d5   :  { %v1610_v38 = vpack.c.bf16 %v1608_v60, %v1607_v15 }
 0x6d6   :  { %v1818_v59 = vsub.f32 1.5, %v1817_v53  ;;  %v1361_v8 = vpop.permute.xlu2 %1360 }
 0x6d7   :  { %1618 = vrot.lane.b32.xlu0 %v1610_v38, %s5453_s17  ;;  %v1371_v9 = vsel %vm148_vm2, %v1361_v8, 0 }
 0x6d8   :  { %v1819_v7 = vmul.f32 %v5211_v32, %v1818_v59 }
 0x6da   :  { %v1823_v30 = vsel %vm1822_vm9, %v5211_v32, %v1819_v7 }
 0x6db   :  { %1383 = vmatpush.bf16.xpose.msra.mxu3 %v1371_v9  ;;  %v1844_v26 = vmul.f32 %v1823_v30, %v5707_v20 }
 0x6dd   :  { %983 = vadd.xlane.f32.xlu2 %v982_v10  ;;  %v1847_v14 = vpack.c.bf16 %v1845_v44, %v1844_v26 }
 0x6df   :  { %1849 = vrot.lane.b32.xlu0 %v5851_v11, %s5457_s21  ;;  %1855 = vrot.lane.b32.xlu1 %v1847_v14, %s5457_s21 }
 0x6e2   :  { %4895 = vmatmul.msk.bf16.gmra.mxu3 %vm234_vm4, %v986_v0 }
 0x6e3   :  { %1640 = vmatpush.bf16.xpose.msrb.mxu3 %v1632_v47 }
 0x6f2   :  { %4902 = vmatmul.msk.bf16.vlgmr.msra.gmra.mxu3 %vm148_vm2, %v1355_v51  ;;  %v976_v51 = vsel %vm234_vm4, %v6056_v13, 0.0 }
 0x6f5   :  { %1431 = vrot.lane.b32.xlu2 %v5858_v24, %s5455_s19 }
 0x6f9   :  { %v1205_v20 = vpop.xlane.xlu1 %1204 }
 0x6fa   :  { %5214 = vrcp.f32 %v1205_v20  ;;  %v1259_v21 = vand.u32 2147483648, %v1205_v20  ;;  %vm1253_vm11 = vweird.f32 %v1205_v20  ;;  %v1257_v50 = vand.u32 2147483647, %v1205_v20 }
 0x6fc   :  { %v1260_v49 = vor.u32 1.1754944e-38, %v1259_v21  ;;  %vm1258_vm15 = vcmp.eq.f32.partialorder %v1257_v50, 8.507059e+37 }
 0x700   :  { %v5215_v37 = vpop.eup %5214 }
 0x701   :  { %v1249_v25 = vmul.f32 %v5215_v37, %v1205_v20  ;;  %v1208_v42 = vpop.xlane.xlu1 %1207  ;;  %vm1254_vm10 = vweird.f32 %v5215_v37  ;;  %v1064_v20 = vld [vmem:[%s7395_s4 + $0xc] sm:$0xf] }
 0x702   :  { %5216 = vrcp.f32 %v1208_v42  ;;  %4903 = vmatmul.msk.bf16.gmra.mxu3 %vm148_vm2, %v1357_v35  ;;  %vm1255_vm12 = vmor %vm1253_vm11, %vm1254_vm10  ;;  %v1273_v52 = vand.u32 2147483648, %v1208_v42  ;;  %v1271_v56 = vand.u32 2147483647, %v1208_v42  ;;  %vm1267_vm0 = vweird.f32 %v1208_v42 }
 0x703   :  { %v1250_v12 = vsub.f32 1.0, %v1249_v25 }
 0x704   :  { %v1274_v60 = vor.u32 1.1754944e-38, %v1273_v52  ;;  %vm1272_vm8 = vcmp.eq.f32.partialorder %v1271_v56, 8.507059e+37 }
 0x705   :  { %v1251_v63 = vmul.f32 %v5215_v37, %v1250_v12 }
 0x707   :  { %v1252_v32 = vadd.f32 %v5215_v37, %v1251_v63 }
 0x708   :  { %v5217_v61 = vpop.eup %5216 }
 0x709   :  { %v1263_v3 = vmul.f32 %v5217_v61, %v1208_v42  ;;  %980 = vadd.xlane.f32.xlu0 %v979_v33  ;;  %977 = vadd.xlane.f32.xlu1 %v976_v51  ;;  %v1256_v43 = vsel %vm1255_vm12, %v5215_v37, %v1252_v32  ;;  %vm1268_vm14 = vweird.f32 %v5217_v61  ;;  %v6104_v37 = vsel %vm277_vm13, %v1064_v20, 0 }
 0x70a   :  { %v1261_v15 = vsel %vm1258_vm15, %v1260_v49, %v1256_v43  ;;  %vm1269_vm7 = vmor %vm1267_vm0, %vm1268_vm14  ;;  %1083 = vmatpush.bf16.msra.mxu2 %v6104_v37 }
 0x70b   :  { %v1264_v62 = vsub.f32 1.0, %v1263_v3  ;;  %v1290_v6 = vmul.f32 %v1261_v15, %v6027_v40 }
 0x70d   :  { %v1265_v45 = vmul.f32 %v5217_v61, %v1264_v62 }
 0x70f   :  { %v1266_v46 = vadd.f32 %v5217_v61, %v1265_v45  ;;  %v1211_v13 = vpop.xlane.xlu2 %1210 }
 0x710   :  { %5218 = vrcp.f32 %v1211_v13  ;;  %v1287_v29 = vand.u32 2147483648, %v1211_v13  ;;  %v1285_v26 = vand.u32 2147483647, %v1211_v13  ;;  %vm1281_vm10 = vweird.f32 %v1211_v13 }
 0x711   :  { %v1270_v58 = vsel %vm1269_vm7, %v5217_v61, %v1266_v46 }
 0x712   :  { %v1275_v53 = vsel %vm1272_vm8, %v1274_v60, %v1270_v58  ;;  %v1288_v40 = vor.u32 1.1754944e-38, %v1287_v29  ;;  %vm1286_vm12 = vcmp.eq.f32.partialorder %v1285_v26, 8.507059e+37 }
 0x713   :  { %v1291_v38 = vmul.f32 %v1275_v53, %v6029_v31 }
 0x715   :  { %v1293_v59 = vpack.c.bf16 %v1291_v38, %v1290_v6 }
 0x716   :  { %v5219_v8 = vpop.eup %5218 }
 0x717   :  { %v1277_v9 = vmul.f32 %v5219_v8, %v1211_v13  ;;  %4908 = vmatmul.msk.bf16.vlgmr.msra.gmra.mxu1 %vm148_vm2, %v1293_v59  ;;  %vm1282_vm9 = vweird.f32 %v5219_v8  ;;  %v1613_v35 = vpop.permute.xlu2 %1612 }
 0x718   :  { %vm1283_vm11 = vmor %vm1281_vm10, %vm1282_vm9 }
 0x719   :  { %v1278_v7 = vsub.f32 1.0, %v1277_v9  ;;  %v1858_v47 = vpop.permute.xlu1 %1857 }
 0x71a   :  { %v1869_v19 = vsel %vm148_vm2, %v1858_v47, 0 }
 0x71b   :  { %1877 = vmatpush.bf16.xpose.msrb.mxu1 %v1869_v19  ;;  %v1279_v30 = vmul.f32 %v5219_v8, %v1278_v7 }
 0x71d   :  { %v1280_v44 = vadd.f32 %v5219_v8, %v1279_v30 }
 0x71f   :  { %v1284_v10 = vsel %vm1283_vm11, %v5219_v8, %v1280_v44 }
 0x720   :  { %v1289_v31 = vsel %vm1286_vm12, %v1288_v40, %v1284_v10 }
 0x721   :  { %v1292_v14 = vmul.f32 %v1289_v31, %v6033_v41 }
 0x722   :  { %1614 = vrot.lane.b32.xlu1 %v5858_v24, %s5453_s17 }
 0x723   :  { %v1294_v0 = vpack.c.bf16 %v1292_v14, %v1292_v14 }
 0x727   :  { %4909 = vmatmul.msk.bf16.gmra.mxu1 %vm148_vm2, %v1294_v0 }
 0x749   :  { %v1619_v25 = vpop.permute.xlu0 %1618 }
 0x74a   :  { %v1629_v42 = vsel %vm148_vm2, %v1619_v25, 0 }
 0x74b   :  { %1641 = vmatpush.bf16.xpose.msrb.mxu3 %v1629_v42 }
 0x750   :  { %v6108_v41 = vpop.xlane.xlu2 %983 }
 0x751   :  { %v1856_v12 = vpop.permute.xlu1 %1855  ;;  %v1850_v51 = vpop.permute.xlu0 %1849  ;;  %5220 = vrcp.f32 %v6108_v41 }
 0x752   :  { %4910 = vmatmul.msk.bf16.vlgmr.msrb.gmra.mxu3 %vm148_vm2, %v1613_v35  ;;  %v1866_v63 = vsel %vm148_vm2, %v1856_v12, 0 }
 0x753   :  { %1878 = vmatpush.bf16.xpose.msrb.mxu1 %v1866_v63 }
 0x755   :  { %v1010_v61 = vpop.f32.mrf.mxu3 }
 0x757   :  { %v5221_v60 = vpop.eup %5220 }
 0x758   :  { %v1432_v33 = vpop.permute.xlu2 %1431  ;;  %v1048_v47 = vmul.f32 %v5221_v60, %v6108_v41  ;;  %vm1053_vm12 = vweird.f32 %v5221_v60 }
 0x759   :  { %v1441_v32 = vsel %vm277_vm13, %v1432_v33, 0 }
 0x75a   :  { %1449 = vmatpush.bf16.msrb.mxu2 %v1441_v32  ;;  %4916 = vmatmul.msk.bf16.vlgmr.msrb.gmra.mxu1 %vm148_vm2, %v1850_v51  ;;  %v1049_v12 = vsub.f32 1.0, %v1048_v47 }
 0x75d   :  { %v1012_v3 = vpop.f32.mrf.mxu3 }
 0x765   :  { %v6114_v21 = vpop.f32.mrf.mxu3 }
 0x76d   :  { %v1017_v50 = vpop.f32.mrf.mxu3 }
 0x775   :  { %v1385_v62 = vpop.f32.mrf.mxu3 }
 0x776   :  { %v1394_v52 = vmul.f32 0.35355338, %v1385_v62 }
 0x778   :  { %v6118_v43 = vsel %vm5616_vm5, -50000.0, %v1394_v52  ;;  %v1050_v52 = vmul.f32 %v5221_v60, %v1049_v12 }
 0x779   :  { %v1400_v45 = vsel %vm234_vm4, %v6118_v43, -inf }
 0x77a   :  { %1401 = vmax.xlane.f32.xlu0 %v1400_v45 }
 0x77c   :  { %v978_v56 = vpop.xlane.xlu1 %977  ;;  %v981_v49 = vpop.xlane.xlu0 %980 }
 0x77d   :  { %5222 = vrcp.f32 %v978_v56  ;;  %v1387_v46 = vpop.f32.mrf.mxu3  ;;  %v1028_v19 = vand.u32 2147483647, %v978_v56  ;;  %v1030_v29 = vand.u32 2147483648, %v978_v56  ;;  %v1044_v44 = vand.u32 2147483648, %v981_v49 }
 0x77e   :  { %5224 = vrcp.f32 %v981_v49  ;;  %v1395_v13 = vmul.f32 0.35355338, %v1387_v46  ;;  %v1042_v31 = vand.u32 2147483647, %v981_v49  ;;  %vm1024_vm0 = vweird.f32 %v978_v56 }
 0x77f   :  { %v1031_v20 = vor.u32 1.1754944e-38, %v1030_v29  ;;  %vm1038_vm8 = vweird.f32 %v981_v49  ;;  %vm1029_vm9 = vcmp.eq.f32.partialorder %v1028_v19, 8.507059e+37  ;;  %v1045_v42 = vor.u32 1.1754944e-38, %v1044_v44 }
 0x780   :  { %v6125_v15 = vsel %vm5620_vm6, -50000.0, %v1395_v13  ;;  %vm1043_vm11 = vcmp.eq.f32.partialorder %v1042_v31, 8.507059e+37  ;;  %v1058_v13 = vand.u32 2147483648, %v6108_v41 }
 0x781   :  { %v1403_v58 = vsel %vm234_vm4, %v6125_v15, -inf }
 0x782   :  { %1404 = vmax.xlane.f32.xlu0 %v1403_v58  ;;  %v1056_v58 = vand.u32 2147483647, %v6108_v41 }
 0x783   :  { %v5223_v53 = vpop.eup %5222 }
 0x784   :  { %v5225_v6 = vpop.eup %5224  ;;  %v1020_v38 = vmul.f32 %v5223_v53, %v978_v56  ;;  %vm1025_vm14 = vweird.f32 %v5223_v53 }
 0x785   :  { %v1034_v59 = vmul.f32 %v5225_v6, %v981_v49  ;;  %v1390_v8 = vpop.f32.mrf.mxu3  ;;  %vm1039_vm15 = vweird.f32 %v5225_v6  ;;  %vm1026_vm7 = vmor %vm1024_vm0, %vm1025_vm14  ;;  %v1051_v49 = vadd.f32 %v5221_v60, %v1050_v52  ;;  %vm1052_vm14 = vweird.f32 %v6108_v41 }
 0x786   :  { %v1021_v9 = vsub.f32 1.0, %v1020_v38  ;;  %v1396_v7 = vmul.f32 0.35355338, %v1390_v8  ;;  %vm1040_vm10 = vmor %vm1038_vm8, %vm1039_vm15  ;;  %vm1057_vm0 = vcmp.eq.f32.partialorder %v1056_v58, 8.507059e+37 }
 0x787   :  { %v1035_v30 = vsub.f32 1.0, %v1034_v59  ;;  %vm1054_vm15 = vmor %vm1052_vm14, %vm1053_vm12 }
 0x788   :  { %v1022_v26 = vmul.f32 %v5223_v53, %v1021_v9  ;;  %v6132_v40 = vsel %vm5632_vm3, -50000.0, %v1396_v7 }
 0x789   :  { %v1036_v10 = vmul.f32 %v5225_v6, %v1035_v30  ;;  %v1406_v14 = vsel %vm234_vm4, %v6132_v40, -inf }
 0x78a   :  { %v1023_v0 = vadd.f32 %v5223_v53, %v1022_v26  ;;  %1407 = vmax.xlane.f32.xlu1 %v1406_v14 }
 0x78b   :  { %v1037_v35 = vadd.f32 %v5225_v6, %v1036_v10 }
 0x78c   :  { %v1027_v25 = vsel %vm1026_vm7, %v5223_v53, %v1023_v0 }
 0x78d   :  { %v1032_v63 = vsel %vm1029_vm9, %v1031_v20, %v1027_v25  ;;  %v1041_v33 = vsel %vm1040_vm10, %v5225_v6, %v1037_v35  ;;  %v1392_v51 = vpop.f32.mrf.mxu3 }
 0x78e   :  { %v1046_v32 = vsel %vm1043_vm11, %v1045_v42, %v1041_v33  ;;  %v1061_v50 = vmul.f32 %v1032_v63, %v1010_v61  ;;  %v1055_v61 = vsel %vm1054_vm15, %v5221_v60, %v1051_v49 }
 0x78f   :  { %v1062_v62 = vmul.f32 %v1046_v32, %v1012_v3  ;;  %v1059_v3 = vor.u32 1.1754944e-38, %v1058_v13 }
 0x791   :  { %v1065_v45 = vpack.c.bf16 %v1062_v62, %v1061_v50  ;;  %v1060_v53 = vsel %vm1057_vm0, %v1059_v3, %v1055_v61 }
 0x792   :  { %v1063_v38 = vmul.f32 %v1060_v53, %v6114_v21 }
 0x793   :  { %4896 = vmatmul.msk.bf16.vlgmr.msra.gmra.mxu2 %vm148_vm2, %v1065_v45 }
 0x794   :  { %v6137_v56 = vpop.f32.mrf.mxu1  ;;  %v1615_v46 = vpop.permute.xlu1 %1614  ;;  %v1066_v59 = vpack.c.bf16 %v1063_v38, %v1063_v38 }
 0x795   :  { %4911 = vmatmul.msk.bf16.gmra.mxu3 %vm148_vm2, %v1615_v46 }
 0x796   :  { %1429 = vrot.lane.b32.xlu0 %v5851_v11, %s5455_s19 }
 0x79c   :  { %v6145_v6 = vpop.f32.mrf.mxu1 }
 0x79e   :  { %1926 = vrot.lane.b32.xlu0 %v5858_v24, %s5458_s28 }
 0x7a3   :  { %4897 = vmatmul.msk.bf16.gmra.mxu2 %vm148_vm2, %v1066_v59 }
 0x7a4   :  { %v6151_v8 = vpop.f32.mrf.mxu1 }
 0x7ac   :  { %v1554_v41 = vpop.f32.mrf.mxu1 }
 0x7d5   :  { %v1643_v9 = vpop.f32.mrf.mxu3 }
 0x7d6   :  { %v1652_v7 = vmul.f32 0.35355338, %v1643_v9 }
 0x7d7   :  { %v1880_v47 = vpop.f32.mrf.mxu1 }
 0x7d8   :  { %v1889_v60 = vmul.f32 0.35355338, %v1880_v47  ;;  %v6155_v19 = vsel %vm5616_vm5, -50000.0, %v1652_v7 }
 0x7d9   :  { %v1658_v21 = vsel %vm234_vm4, %v6155_v19, -inf }
 0x7da   :  { %1659 = vmax.xlane.f32.xlu1 %v1658_v21  ;;  %v6161_v29 = vsel %vm5616_vm5, -50000.0, %v1889_v60 }
 0x7db   :  { %v1895_v30 = vsel %vm234_vm4, %v6161_v29, -inf }
 0x7dc   :  { %1896 = vmax.xlane.f32.xlu0 %v1895_v30 }
 0x7dd   :  { %v1645_v26 = vpop.f32.mrf.mxu3 }
 0x7de   :  { %v1653_v44 = vmul.f32 0.35355338, %v1645_v26 }
 0x7df   :  { %v1882_v10 = vpop.f32.mrf.mxu1 }
 0x7e0   :  { %v1890_v31 = vmul.f32 0.35355338, %v1882_v10  ;;  %v6167_v14 = vsel %vm5620_vm6, -50000.0, %v1653_v44 }
 0x7e1   :  { %v1661_v0 = vsel %vm234_vm4, %v6167_v14, -inf }
 0x7e2   :  { %1662 = vmax.xlane.f32.xlu1 %v1661_v0  ;;  %v6173_v20 = vsel %vm5620_vm6, -50000.0, %v1890_v31  ;;  %v6206_v0 = vld [vmem:[%s7393_s1 + $0x18] ss:$0 sm:$0xff] }
 0x7e3   :  { %v1898_v35 = vsel %vm234_vm4, %v6173_v20, -inf }
 0x7e4   :  { %1899 = vmax.xlane.f32.xlu2 %v1898_v35 }
 0x7ed   :  { %v1402_v25 = vpop.xlane.xlu0 %1401 }
 0x7ee   :  { %v1409_v63 = vsub.f32 %v6118_v43, %v1402_v25  ;;  %v607_v43 = vadd.f32 %v5964_v39, %v5866_v34 }
 0x7f0   :  { %1687 = vrot.lane.b32.xlu0 %v5851_v11, %s5456_s20  ;;  %v1412_v51 = vmul.f32 1.442695, %v1409_v63  ;;  %v853_v13 = vadd.f32 %v5899_v16, %v607_v43 }
 0x7f5   :  { %v1405_v42 = vpop.xlane.xlu0 %1404 }
 0x7f6   :  { %v1410_v12 = vsub.f32 %v6125_v15, %v1405_v42  ;;  %v612_v42 = vadd.f32 %v5972_v54, %v5870_v48 }
 0x7f8   :  { %v1414_v33 = vmul.f32 1.442695, %v1410_v12 }
 0x7fa   :  { %5226 = vpow2.f32 %v1414_v33 }
 0x7fb   :  { %1689 = vrot.lane.b32.xlu1 %v5858_v24, %s5456_s20  ;;  %5228 = vpow2.f32 %v1412_v51 }
 0x7fc   :  { %1924 = vrot.lane.b32.xlu2 %v5851_v11, %s5458_s28 }
 0x7fd   :  { %v1408_v32 = vpop.xlane.xlu1 %1407 }
 0x7fe   :  { %v1411_v62 = vsub.f32 %v6132_v40, %v1408_v32 }
 0x800   :  { %v5227_v50 = vpop.eup %5226  ;;  %v1416_v46 = vmul.f32 1.442695, %v1411_v62 }
 0x801   :  { %v5229_v45 = vpop.eup %5228  ;;  %v1421_v39 = vsel %vm234_vm4, %v5227_v50, 0.0 }
 0x802   :  { %v1427_v15 = vpack.c.bf16 %v5227_v50, %v5229_v45  ;;  %5230 = vpow2.f32 %v1416_v46  ;;  %v1418_v34 = vsel %vm234_vm4, %v5229_v45, 0.0 }
 0x808   :  { %v1430_v52 = vpop.permute.xlu0 %1429  ;;  %v5231_v58 = vpop.eup %5230 }
 0x809   :  { %1450 = vmatpush.bf16.msrb.mxu2 %v1430_v52  ;;  %v1424_v53 = vsel %vm234_vm4, %v5231_v58, 0.0  ;;  %v1428_v38 = vpack.c.bf16 %v5231_v58, %v5231_v58 }
 0x80c   :  { %4904 = vmatmul.msk.bf16.vlgmr.msrb.gmra.mxu2 %vm234_vm4, %v1427_v15 }
 0x810   :  { %v1927_v11 = vpop.permute.xlu0 %1926 }
 0x811   :  { %v1936_v49 = vsel %vm277_vm13, %v1927_v11, 0 }
 0x812   :  { %1944 = vmatpush.bf16.msra.mxu3 %v1936_v49 }
 0x816   :  { %v1085_v61 = vpop.f32.mrf.mxu2 }
 0x817   :  { %v1094_v40 = vadd.f32 %v1085_v61, %v853_v13 }
 0x818   :  { %v1648_v3 = vpop.f32.mrf.mxu3 }
 0x819   :  { %v1654_v9 = vmul.f32 0.35355338, %v1648_v3  ;;  %v2031_v51 = vadd.f32 %v6206_v0, %v1094_v40 }
 0x81a   :  { %1425 = vadd.xlane.f32.xlu0 %v1424_v53 }
 0x81b   :  { %v6197_v7 = vsel %vm5632_vm3, -50000.0, %v1654_v9  ;;  %v6220_v52 = vadd.f32 %v2031_v51, %v5523_v17 }
 0x81c   :  { %4905 = vmatmul.msk.bf16.gmra.mxu2 %vm234_vm4, %v1428_v38  ;;  %v1664_v47 = vsel %vm234_vm4, %v6197_v7, -inf }
 0x81d   :  { %v2043_v46 = vsel %vm7398_vm1, %v6220_v52, 0.0 }
 0x81e   :  { %v1087_v59 = vpop.f32.mrf.mxu2 }
 0x820   :  { %v1650_v41 = vpop.f32.mrf.mxu3 }
 0x825   :  { %1419 = vadd.xlane.f32.xlu1 %v1418_v34  ;;  %1422 = vadd.xlane.f32.xlu2 %v1421_v39 }
 0x826   :  { %v1090_v16 = vpop.f32.mrf.mxu2 }
 0x82d   :  { %1665 = vmax.xlane.f32.xlu2 %v1664_v47 }
 0x82e   :  { %v1092_v60 = vpop.f32.mrf.mxu2 }
 0x84d   :  { %v1660_v21 = vpop.xlane.xlu1 %1659 }
 0x84e   :  { %v1667_v30 = vsub.f32 %v6155_v19, %v1660_v21 }
 0x84f   :  { %v1897_v26 = vpop.xlane.xlu0 %1896 }
 0x850   :  { %v1670_v44 = vmul.f32 1.442695, %v1667_v30  ;;  %v1904_v10 = vsub.f32 %v6161_v29, %v1897_v26  ;;  %v609_v29 = vadd.f32 %v5969_v55, %v5868_v1 }
 0x852   :  { %5232 = vpow2.f32 %v1670_v44  ;;  %v1907_v31 = vmul.f32 1.442695, %v1904_v10  ;;  %v854_v54 = vadd.f32 %v5912_v36, %v609_v29 }
 0x854   :  { %5234 = vpow2.f32 %v1907_v31  ;;  %v1095_v1 = vadd.f32 %v1087_v59, %v854_v54 }
 0x855   :  { %v1663_v35 = vpop.xlane.xlu1 %1662 }
 0x856   :  { %v1668_v25 = vsub.f32 %v6167_v14, %v1663_v35  ;;  %v855_v14 = vadd.f32 %v5926_v4, %v612_v42  ;;  %v2032_v43 = vadd.f32 %v6206_v0, %v1095_v1 }
 0x857   :  { %v1900_v12 = vpop.xlane.xlu2 %1899 }
 0x858   :  { %v5233_v19 = vpop.eup %5232  ;;  %v1672_v63 = vmul.f32 1.442695, %v1668_v25  ;;  %v1905_v33 = vsub.f32 %v6173_v20, %v1900_v12  ;;  %v1096_v20 = vadd.f32 %v1090_v16, %v855_v14  ;;  %v6233_v13 = vadd.f32 %v2032_v43, %v5525_v18 }
 0x859   :  { %v1676_v32 = vsel %vm234_vm4, %v5233_v19, 0.0 }
 0x85a   :  { %v5235_v50 = vpop.eup %5234  ;;  %5236 = vpow2.f32 %v1672_v63  ;;  %v1909_v62 = vmul.f32 1.442695, %v1905_v33  ;;  %1677 = vadd.xlane.f32.xlu2 %v1676_v32  ;;  %v2033_v15 = vadd.f32 %v6206_v0, %v1096_v20  ;;  %v2046_v61 = vsel %vm7398_vm1, %v6233_v13, 0.0 }
 0x85b   :  { %v1913_v48 = vsel %vm234_vm4, %v5235_v50, 0.0 }
 0x85c   :  { %5238 = vpow2.f32 %v1909_v62  ;;  %1914 = vadd.xlane.f32.xlu1 %v1913_v48  ;;  %v6230_v17 = vadd.f32 %v2033_v15, %v5533_v22 }
 0x85e   :  { %v2049_v58 = vsel %vm7398_vm1, %v6230_v17, 0.0 }
 0x85f   :  { %v1925_v55 = vpop.permute.xlu2 %1924 }
 0x860   :  { %v5237_v45 = vpop.eup %5236  ;;  %1945 = vmatpush.bf16.msra.mxu3 %v1925_v55 }
 0x861   :  { %v1679_v49 = vsel %vm234_vm4, %v5237_v45, 0.0  ;;  %v1685_v38 = vpack.c.bf16 %v5237_v45, %v5233_v19 }
 0x862   :  { %v5239_v4 = vpop.eup %5238  ;;  %2044 = vadd.xlane.f32.xlu2 %v2043_v46  ;;  %v1688_v53 = vpop.permute.xlu0 %1687 }
 0x863   :  { %v1922_v11 = vpack.c.bf16 %v5239_v4, %v5235_v50  ;;  %v1916_v36 = vsel %vm234_vm4, %v5239_v4, 0.0 }
 0x864   :  { %1917 = vadd.xlane.f32.xlu0 %v1916_v36  ;;  %1680 = vadd.xlane.f32.xlu1 %v1679_v49 }
 0x865   :  { %4918 = vmatmul.msk.bf16.vlgmr.msra.gmra.mxu3 %vm234_vm4, %v1922_v11 }
 0x86a   :  { %2050 = vadd.xlane.f32.xlu2 %v2049_v58 }
 0x86c   :  { %2047 = vadd.xlane.f32.xlu1 %v2046_v61 }
 0x86d   :  { %v1690_v40 = vpop.permute.xlu1 %1689 }
 0x86e   :  { %v1699_v3 = vsel %vm277_vm13, %v1690_v40, 0  ;;  %v5459_v40 = vmov 32.0  }
 0x86f   :  { %1707 = vmatpush.bf16.msra.mxu2 %v1699_v3 }
 0x873   :  { %1708 = vmatpush.bf16.msra.mxu2 %v1688_v53 }
 0x876   :  { %4912 = vmatmul.msk.bf16.vlgmr.msra.gmra.mxu2 %vm234_vm4, %v1685_v38 }
 0x877   :  { %2016 = vmatpush.bf16.msrb.mxu2 %v6104_v37 }
 0x878   :  { %1851 = vrot.lane.b32.xlu0 %v5858_v24, %s5457_s21 }
 0x88d   :  { %v1426_v22 = vpop.xlane.xlu0 %1425 }
 0x88e   :  { %5240 = vrcp.f32 %v1426_v22  ;;  %v1500_v43 = vand.u32 2147483648, %v1426_v22  ;;  %v1498_v11 = vand.u32 2147483647, %v1426_v22 }
 0x88f   :  { %v1452_v18 = vpop.f32.mrf.mxu2 }
 0x890   :  { %v1501_v49 = vor.u32 1.1754944e-38, %v1500_v43 }
 0x894   :  { %v5241_v39 = vpop.eup %5240 }
 0x895   :  { %v1490_v44 = vmul.f32 %v5241_v39, %v1426_v22  ;;  %vm1495_vm0 = vweird.f32 %v5241_v39 }
 0x897   :  { %v1454_v59 = vpop.f32.mrf.mxu2  ;;  %v1491_v51 = vsub.f32 1.0, %v1490_v44 }
 0x898   :  { %v1420_v41 = vpop.xlane.xlu1 %1419  ;;  %v1423_v34 = vpop.xlane.xlu2 %1422 }
 0x899   :  { %5242 = vrcp.f32 %v1420_v41  ;;  %v1470_v24 = vand.u32 2147483647, %v1420_v41  ;;  %v1472_v10 = vand.u32 2147483648, %v1420_v41  ;;  %v1486_v25 = vand.u32 2147483648, %v1423_v34 }
 0x89a   :  { %5244 = vrcp.f32 %v1423_v34  ;;  %v1484_v19 = vand.u32 2147483647, %v1423_v34  ;;  %vm1466_vm9 = vweird.f32 %v1420_v41  ;;  %vm1480_vm11 = vweird.f32 %v1423_v34 }
 0x89b   :  { %v1473_v33 = vor.u32 1.1754944e-38, %v1472_v10  ;;  %vm1471_vm12 = vcmp.eq.f32.partialorder %v1470_v24, 8.507059e+37  ;;  %v1487_v32 = vor.u32 1.1754944e-38, %v1486_v25  ;;  %v1492_v20 = vmul.f32 %v5241_v39, %v1491_v51 }
 0x89c   :  { %vm1485_vm15 = vcmp.eq.f32.partialorder %v1484_v19, 8.507059e+37 }
 0x89d   :  { %v1493_v4 = vadd.f32 %v5241_v39, %v1492_v20 }
 0x89f   :  { %v5243_v9 = vpop.eup %5242  ;;  %v1457_v60 = vpop.f32.mrf.mxu2 }
 0x8a0   :  { %v5245_v16 = vpop.eup %5244  ;;  %v1462_v47 = vmul.f32 %v5243_v9, %v1420_v41  ;;  %v1666_v37 = vpop.xlane.xlu2 %1665  ;;  %vm1467_vm7 = vweird.f32 %v5243_v9 }
 0x8a1   :  { %v1476_v21 = vmul.f32 %v5245_v16, %v1423_v34  ;;  %v1669_v26 = vsub.f32 %v6197_v7, %v1666_v37  ;;  %vm1481_vm8 = vweird.f32 %v5245_v16  ;;  %vm1468_vm10 = vmor %vm1466_vm9, %vm1467_vm7  ;;  %vm1494_vm7 = vweird.f32 %v1426_v22 }
 0x8a2   :  { %v1463_v30 = vsub.f32 1.0, %v1462_v47  ;;  %vm1482_vm14 = vmor %vm1480_vm11, %vm1481_vm8  ;;  %vm1499_vm9 = vcmp.eq.f32.partialorder %v1498_v11, 8.507059e+37 }
 0x8a3   :  { %v1477_v31 = vsub.f32 1.0, %v1476_v21  ;;  %v1674_v42 = vmul.f32 1.442695, %v1669_v26  ;;  %vm1496_vm8 = vmor %vm1494_vm7, %vm1495_vm0 }
 0x8a4   :  { %v1464_v35 = vmul.f32 %v5243_v9, %v1463_v30  ;;  %v1497_v36 = vsel %vm1496_vm8, %v5241_v39, %v1493_v4 }
 0x8a5   :  { %v1478_v12 = vmul.f32 %v5245_v16, %v1477_v31  ;;  %5246 = vpow2.f32 %v1674_v42  ;;  %v1502_v58 = vsel %vm1499_vm9, %v1501_v49, %v1497_v36 }
 0x8a6   :  { %v1465_v63 = vadd.f32 %v5243_v9, %v1464_v35  ;;  %v1505_v61 = vmul.f32 %v1502_v58, %v1457_v60  ;;  %5248 = vrcp.f32 %v5459_v40 }
 0x8a7   :  { %v1479_v29 = vadd.f32 %v5245_v16, %v1478_v12  ;;  %v1459_v50 = vpop.f32.mrf.mxu2 }
 0x8a8   :  { %v1469_v7 = vsel %vm1468_vm10, %v5243_v9, %v1465_v63  ;;  %v1507_v3 = vpack.c.bf16 %v1505_v61, %v1505_v61 }
 0x8a9   :  { %v1474_v62 = vsel %vm1471_vm12, %v1473_v33, %v1469_v7  ;;  %v1483_v14 = vsel %vm1482_vm14, %v5245_v16, %v1479_v29 }
 0x8aa   :  { %v1488_v48 = vsel %vm1485_vm15, %v1487_v32, %v1483_v14  ;;  %v1503_v54 = vmul.f32 %v1474_v62, %v1452_v18 }
 0x8ab   :  { %v1504_v1 = vmul.f32 %v1488_v48, %v1454_v59  ;;  %v5247_v55 = vpop.eup %5246 }
 0x8ac   :  { %v1682_v45 = vsel %vm234_vm4, %v5247_v55, 0.0  ;;  %v1686_v46 = vpack.c.bf16 %v5247_v55, %v5247_v55  ;;  %v5249_v53 = vpop.eup %5248 }
 0x8ad   :  { %v1506_v15 = vpack.c.bf16 %v1504_v1, %v1503_v54  ;;  %1683 = vadd.xlane.f32.xlu0 %v1682_v45  ;;  %v2062_v38 = vmul.f32 32.0, %v5249_v53  ;;  %vm2066_vm10 = vweird.f32 %v5249_v53 }
 0x8ae   :  { %4913 = vmatmul.msk.bf16.gmra.mxu2 %vm234_vm4, %v1686_v46 }
 0x8af   :  { %4906 = vmatmul.msk.bf16.vlgmr.msrb.gmra.mxu0 %vm148_vm2, %v1506_v15  ;;  %v2063_v18 = vsub.f32 1.0, %v2062_v38 }
 0x8b1   :  { %v2064_v59 = vmul.f32 %v5249_v53, %v2063_v18 }
 0x8b3   :  { %v2065_v34 = vadd.f32 %v5249_v53, %v2064_v59 }
 0x8b5   :  { %v6251_v9 = vsel %vm2066_vm10, %v5249_v53, %v2065_v34 }
 0x8bf   :  { %4907 = vmatmul.msk.bf16.gmra.mxu0 %vm148_vm2, %v1507_v3 }
 0x8cd   :  { %v6249_v41 = vpop.xlane.xlu2 %1677 }
 0x8ce   :  { %v1730_v34 = vand.u32 2147483648, %v6249_v41 }
 0x8cf   :  { %v1915_v22 = vpop.xlane.xlu1 %1914 }
 0x8d0   :  { %5250 = vrcp.f32 %v1915_v22  ;;  %vm1961_vm14 = vweird.f32 %v1915_v22  ;;  %v1967_v32 = vand.u32 2147483648, %v1915_v22  ;;  %v1965_v48 = vand.u32 2147483647, %v1915_v22 }
 0x8d2   :  { %v1968_v15 = vor.u32 1.1754944e-38, %v1967_v32  ;;  %vm1966_vm8 = vcmp.eq.f32.partialorder %v1965_v48, 8.507059e+37 }
 0x8d5   :  { %v2045_v39 = vpop.xlane.xlu2 %2044 }
 0x8d6   :  { %v2068_v16 = vmul.f32 %v6251_v9, %v2045_v39  ;;  %v5251_v21 = vpop.eup %5250  ;;  %v1728_v39 = vand.u32 2147483647, %v6249_v41 }
 0x8d7   :  { %v1918_v47 = vpop.xlane.xlu0 %1917  ;;  %v1957_v26 = vmul.f32 %v5251_v21, %v1915_v22  ;;  %vm1962_vm11 = vweird.f32 %v5251_v21 }
 0x8d8   :  { %v6255_v60 = vsub.f32 %v6220_v52, %v2068_v16  ;;  %5252 = vrcp.f32 %v1918_v47  ;;  %v6264_v52 = vpop.xlane.xlu1 %1680  ;;  %v1981_v62 = vand.u32 2147483648, %v1918_v47  ;;  %vm1963_vm15 = vmor %vm1961_vm14, %vm1962_vm11  ;;  %vm1975_vm0 = vweird.f32 %v1918_v47 }
 0x8d9   :  { %v1958_v25 = vsub.f32 1.0, %v1957_v26  ;;  %5254 = vrcp.f32 %v6249_v41  ;;  %v1979_v54 = vand.u32 2147483647, %v1918_v47  ;;  %v1744_v22 = vand.u32 2147483648, %v6264_v52 }
 0x8da   :  { %v2080_v37 = vmul.f32 %v6255_v60, %v6255_v60  ;;  %5256 = vrcp.f32 %v6264_v52  ;;  %v1982_v46 = vor.u32 1.1754944e-38, %v1981_v62  ;;  %v1742_v16 = vand.u32 2147483647, %v6264_v52 }
 0x8db   :  { %v1959_v63 = vmul.f32 %v5251_v21, %v1958_v25  ;;  %vm1980_vm9 = vcmp.eq.f32.partialorder %v1979_v54, 8.507059e+37 }
 0x8dc   :  { %v2086_v30 = vsel %vm7398_vm1, %v2080_v37, 0.0  ;;  %v1731_v37 = vor.u32 1.1754944e-38, %v1730_v34 }
 0x8dd   :  { %2087 = vadd.xlane.f32.xlu2 %v2086_v30  ;;  %v2051_v44 = vpop.xlane.xlu2 %2050  ;;  %v1745_v30 = vor.u32 1.1754944e-38, %v1744_v22 }
 0x8de   :  { %v2070_v24 = vmul.f32 %v6251_v9, %v2051_v44  ;;  %v5253_v10 = vpop.eup %5252 }
 0x8df   :  { %v1971_v31 = vmul.f32 %v5253_v10, %v1918_v47  ;;  %vm1976_vm12 = vweird.f32 %v5253_v10  ;;  %v5255_v7 = vpop.eup %5254 }
 0x8e0   :  { %v6262_v35 = vsub.f32 %v6230_v17, %v2070_v24  ;;  %v1960_v17 = vadd.f32 %v5251_v21, %v1959_v63  ;;  %v5257_v14 = vpop.eup %5256  ;;  %vm1977_vm7 = vmor %vm1975_vm0, %vm1976_vm12  ;;  %v1720_v55 = vmul.f32 %v5255_v7, %v6249_v41  ;;  %vm1725_vm10 = vweird.f32 %v5255_v7 }
 0x8e1   :  { %v1972_v42 = vsub.f32 1.0, %v1971_v31  ;;  %v1734_v45 = vmul.f32 %v5257_v14, %v6264_v52  ;;  %vm1739_vm11 = vweird.f32 %v5257_v14  ;;  %vm1724_vm12 = vweird.f32 %v6249_v41 }
 0x8e2   :  { %v2082_v12 = vmul.f32 %v6262_v35, %v6262_v35  ;;  %v1964_v20 = vsel %vm1963_vm15, %v5251_v21, %v1960_v17  ;;  %v1721_v61 = vsub.f32 1.0, %v1720_v55  ;;  %vm1726_vm14 = vmor %vm1724_vm12, %vm1725_vm10  ;;  %vm1738_vm15 = vweird.f32 %v6264_v52 }
 0x8e3   :  { %v1973_v33 = vmul.f32 %v5253_v10, %v1972_v42  ;;  %v1969_v4 = vsel %vm1966_vm8, %v1968_v15, %v1964_v20  ;;  %v1735_v58 = vsub.f32 1.0, %v1734_v45  ;;  %vm1740_vm0 = vmor %vm1738_vm15, %vm1739_vm11  ;;  %vm1743_vm8 = vcmp.eq.f32.partialorder %v1742_v16, 8.507059e+37 }
 0x8e4   :  { %v2092_v19 = vsel %vm7398_vm1, %v2082_v12, 0.0  ;;  %v1722_v3 = vmul.f32 %v5255_v7, %v1721_v61 }
 0x8e5   :  { %2093 = vadd.xlane.f32.xlu2 %v2092_v19  ;;  %v1974_v51 = vadd.f32 %v5253_v10, %v1973_v33  ;;  %v1736_v53 = vmul.f32 %v5257_v14, %v1735_v58 }
 0x8e6   :  { %v1723_v18 = vadd.f32 %v5255_v7, %v1722_v3 }
 0x8e7   :  { %v1978_v1 = vsel %vm1977_vm7, %v5253_v10, %v1974_v51  ;;  %v1737_v59 = vadd.f32 %v5257_v14, %v1736_v53  ;;  %vm1729_vm7 = vcmp.eq.f32.partialorder %v1728_v39, 8.507059e+37 }
 0x8e8   :  { %v1947_v29 = vpop.f32.mrf.mxu3  ;;  %v1983_v11 = vsel %vm1980_vm9, %v1982_v46, %v1978_v1  ;;  %v1727_v47 = vsel %vm1726_vm14, %v5255_v7, %v1723_v18 }
 0x8e9   :  { %v1998_v36 = vmul.f32 %v1969_v4, %v1947_v29  ;;  %v1741_v21 = vsel %vm1740_vm0, %v5257_v14, %v1737_v59  ;;  %v1732_v26 = vsel %vm1729_vm7, %v1731_v37, %v1727_v47 }
 0x8ea   :  { %v1852_v50 = vpop.permute.xlu0 %1851  ;;  %v1746_v24 = vsel %vm1743_vm8, %v1745_v30, %v1741_v21 }
 0x8eb   :  { %4917 = vmatmul.msk.bf16.gmra.mxu1 %vm148_vm2, %v1852_v50 }
 0x8f0   :  { %v1949_v43 = vpop.f32.mrf.mxu3 }
 0x8f1   :  { %v1999_v49 = vmul.f32 %v1983_v11, %v1949_v43 }
 0x8f3   :  { %v2001_v40 = vpack.c.bf16 %v1999_v49, %v1998_v36  ;;  %v2048_v49 = vpop.xlane.xlu1 %2047 }
 0x8f5   :  { %4920 = vmatmul.msk.bf16.vlgmr.msrb.gmra.mxu2 %vm148_vm2, %v2001_v40  ;;  %v2069_v40 = vmul.f32 %v6251_v9, %v2048_v49 }
 0x8f9   :  { %v1710_v38 = vpop.f32.mrf.mxu2 }
 0x8fa   :  { %v1761_v10 = vmul.f32 %v1732_v26, %v1710_v38  ;;  %v6293_v38 = vsub.f32 %v6233_v13, %v2069_v40 }
 0x901   :  { %v1712_v44 = vpop.f32.mrf.mxu2 }
 0x902   :  { %v1762_v31 = vmul.f32 %v1746_v24, %v1712_v44 }
 0x904   :  { %v1764_v25 = vpack.c.bf16 %v1762_v31, %v1761_v10 }
 0x906   :  { %4914 = vmatmul.msk.bf16.vlgmr.msra.gmra.mxu0 %vm148_vm2, %v1764_v25 }
 0x920   :  { %v1684_v41 = vpop.xlane.xlu0 %1683 }
 0x921   :  { %5258 = vrcp.f32 %v1684_v41  ;;  %v1758_v63 = vand.u32 2147483648, %v1684_v41  ;;  %v1756_v29 = vand.u32 2147483647, %v1684_v41  ;;  %vm1752_vm10 = vweird.f32 %v1684_v41 }
 0x923   :  { %v1759_v51 = vor.u32 1.1754944e-38, %v1758_v63  ;;  %vm1757_vm12 = vcmp.eq.f32.partialorder %v1756_v29, 8.507059e+37 }
 0x927   :  { %v5259_v42 = vpop.eup %5258 }
 0x928   :  { %v1748_v12 = vmul.f32 %v5259_v42, %v1684_v41  ;;  %vm1753_vm9 = vweird.f32 %v5259_v42  ;;  %v5075_v41 = vld [vmem:[%s7394_s3 + $0x18] sm:$0xff] }
 0x929   :  { %vm1754_vm11 = vmor %vm1752_vm10, %vm1753_vm9  ;;  %2231 = vmatpush.bf16.msrb.mxu0 %v5075_v41 }
 0x92a   :  { %v1749_v52 = vsub.f32 1.0, %v1748_v12 }
 0x92c   :  { %v1523_v19 = vpop.f32.mrf.mxu0  ;;  %v1750_v33 = vmul.f32 %v5259_v42, %v1749_v52 }
 0x92d   :  { %v1548_v43 = vadd.f32 %v6137_v56, %v1523_v19  ;;  %v2081_v56 = vmul.f32 %v6293_v38, %v6293_v38  ;;  %v5074_v19 = vld [vmem:[%s7394_s3 + $0x10] sm:$0xff] }
 0x92e   :  { %v1751_v17 = vadd.f32 %v5259_v42, %v1750_v33  ;;  %2232 = vmatpush.bf16.msrb.mxu0 %v5074_v19 }
 0x92f   :  { %v2089_v59 = vsel %vm7398_vm1, %v2081_v56, 0.0 }
 0x930   :  { %v1755_v7 = vsel %vm1754_vm11, %v5259_v42, %v1751_v17 }
 0x931   :  { %v1715_v32 = vpop.f32.mrf.mxu2  ;;  %v1760_v50 = vsel %vm1757_vm12, %v1759_v51, %v1755_v7 }
 0x932   :  { %v1763_v62 = vmul.f32 %v1760_v50, %v1715_v32 }
 0x934   :  { %v6282_v14 = vpop.f32.mrf.mxu0  ;;  %v1765_v48 = vpack.c.bf16 %v1763_v62, %v1763_v62 }
 0x936   :  { %4915 = vmatmul.msk.bf16.gmra.mxu0 %vm148_vm2, %v1765_v48 }
 0x939   :  { %v1717_v54 = vpop.f32.mrf.mxu2 }
 0x93c   :  { %v1528_v20 = vpop.f32.mrf.mxu0 }
 0x93d   :  { %v1553_v22 = vadd.f32 %v6151_v8, %v1528_v20 }
 0x944   :  { %v1530_v1 = vpop.f32.mrf.mxu0 }
 0x950   :  { %v2088_v47 = vpop.xlane.xlu2 %2087 }
 0x951   :  { %v2104_v24 = vmul.f32 %v2088_v47, %v6251_v9 }
 0x953   :  { %v2110_v10 = vadd.f32 1e-05, %v2104_v24 }
 0x955   :  { %vm2122_vm15 = vweird.f32 %v2110_v10 }
 0x958   :  { %v2094_v13 = vpop.xlane.xlu2 %2093 }
 0x968   :  { %v1885_v55 = vpop.f32.mrf.mxu1 }
 0x969   :  { %v1891_v45 = vmul.f32 0.35355338, %v1885_v55 }
 0x96b   :  { %v1894_v15 = vsel %vm5632_vm3, -50000.0, %v1891_v45 }
 0x96c   :  { %v1901_v46 = vsel %vm234_vm4, %v1894_v15, -inf }
 0x96d   :  { %1902 = vmax.xlane.f32.xlu2 %v1901_v46 }
 0x970   :  { %v1887_v4 = vpop.f32.mrf.mxu1 }
 0x978   :  { %v2018_v58 = vpop.f32.mrf.mxu2 }
 0x983   :  { %v1781_v11 = vpop.f32.mrf.mxu0 }
 0x984   :  { %v1790_v36 = vadd.f32 %v1781_v11, %v1548_v43  ;;  %v6329_v11 = vld [vmem:[%s7393_s1 + $0x1a] ss:$0 sm:$0xff] }
 0x986   :  { %v2027_v61 = vadd.f32 %v2018_v58, %v1790_v36 }
 0x988   :  { %v2034_v3 = vadd.f32 %v6206_v0, %v2027_v61 }
 0x98a   :  { %v2040_v53 = vadd.f32 %v2034_v3, %v5535_v23  ;;  %v2106_v3 = vmul.f32 %v2094_v13, %v6251_v9  ;;  %v5079_v13 = vld [vmem:[%s7395_s4 + $0x28] sm:$0xff] }
 0x98b   :  { %v6299_v34 = vpop.f32.mrf.mxu0  ;;  %2305 = vmatpush.bf16.msra.mxu1 %v5079_v13 }
 0x98c   :  { %v2052_v18 = vsel %vm7398_vm1, %v2040_v53, 0.0 }
 0x98d   :  { %2053 = vadd.xlane.f32.xlu1 %v2052_v18 }
 0x995   :  { %2090 = vadd.xlane.f32.xlu1 %v2089_v59 }
 0x9b3   :  { %v1786_v39 = vpop.f32.mrf.mxu0 }
 0x9b4   :  { %v6302_v16 = vadd.f32 %v1786_v39, %v1553_v22 }
 0x9bb   :  { %v1788_v23 = vpop.f32.mrf.mxu0 }
 0x9e0   :  { %v1903_v21 = vpop.xlane.xlu2 %1902 }
 0x9e1   :  { %v1906_v37 = vsub.f32 %v1894_v15, %v1903_v21  ;;  %v6323_v15 = vld [vmem:[%s7393_s1 + $0x19] ss:$0 sm:$0xff] }
 0x9e3   :  { %v1911_v30 = vmul.f32 1.442695, %v1906_v37 }
 0x9e5   :  { %5260 = vpow2.f32 %v1911_v30 }
 0x9e6   :  { %5262 = vrsqrt.f32 %v2110_v10 }
 0x9eb   :  { %v5261_v26 = vpop.eup %5260 }
 0x9ec   :  { %v1923_v44 = vpack.c.bf16 %v5261_v26, %v5261_v26  ;;  %v5263_v8 = vpop.eup %5262  ;;  %v1919_v32 = vsel %vm234_vm4, %v5261_v26, 0.0 }
 0x9ed   :  { %v2117_v12 = vmul.f32 %v5263_v8, %v2110_v10  ;;  %vm2123_vm14 = vweird.f32 %v5263_v8  ;;  %v5078_v10 = vld [vmem:[%s7395_s4 + $0x20] sm:$0xff] }
 0x9ee   :  { %4919 = vmatmul.msk.bf16.gmra.mxu3 %vm234_vm4, %v1923_v44  ;;  %vm2124_vm0 = vmor %vm2122_vm15, %vm2123_vm14  ;;  %2306 = vmatpush.bf16.msra.mxu1 %v5078_v10 }
 0x9ef   :  { %v2118_v33 = vmul.f32 %v5263_v8, %v2117_v12 }
 0x9f1   :  { %v2119_v7 = vmul.f32 0.5, %v2118_v33 }
 0x9f3   :  { %v2120_v50 = vsub.f32 1.5, %v2119_v7 }
 0x9f5   :  { %v2121_v48 = vmul.f32 %v5263_v8, %v2120_v50 }
 0x9f7   :  { %v2125_v1 = vsel %vm2124_vm0, %v5263_v8, %v2121_v48 }
 0x9f8   :  { %v2176_v46 = vmul.f32 %v2125_v1, %v6255_v60 }
 0x9fa   :  { %v2183_v36 = vmul.f32 %v6323_v15, %v2176_v46 }
 0x9fc   :  { %v6335_v61 = vadd.f32 %v6329_v11, %v2183_v36 }
 0xa00   :  { %v2054_v31 = vpop.xlane.xlu1 %2053 }
 0xa01   :  { %v2071_v25 = vmul.f32 %v6251_v9, %v2054_v31 }
 0xa03   :  { %v6310_v42 = vsub.f32 %v2040_v53, %v2071_v25  ;;  %v2112_v53 = vadd.f32 1e-05, %v2106_v3 }
 0xa05   :  { %v2083_v52 = vmul.f32 %v6310_v42, %v6310_v42  ;;  %vm2142_vm11 = vweird.f32 %v2112_v53 }
 0xa07   :  { %v2095_v63 = vsel %vm7398_vm1, %v2083_v52, 0.0 }
 0xa08   :  { %2096 = vadd.xlane.f32.xlu1 %v2095_v63  ;;  %v2091_v29 = vpop.xlane.xlu1 %2090  ;;  %v5077_v63 = vld [vmem:[%s7395_s4 + $0x18] sm:$0xff] }
 0xa09   :  { %v2105_v17 = vmul.f32 %v2091_v29, %v6251_v9  ;;  %2307 = vmatpush.bf16.msra.mxu1 %v5077_v63 }
 0xa0b   :  { %v2111_v51 = vadd.f32 1e-05, %v2105_v17 }
 0xa0d   :  { %5264 = vrsqrt.f32 %v2111_v51  ;;  %vm2132_vm8 = vweird.f32 %v2111_v51 }
 0xa0e   :  { %5266 = vrsqrt.f32 %v2112_v53 }
 0xa10   :  { %1920 = vadd.xlane.f32.xlu1 %v1919_v32 }
 0xa13   :  { %v5265_v62 = vpop.eup %5264 }
 0xa14   :  { %v2127_v54 = vmul.f32 %v5265_v62, %v2111_v51  ;;  %vm2133_vm7 = vweird.f32 %v5265_v62  ;;  %v5267_v56 = vpop.eup %5266 }
 0xa15   :  { %vm2134_vm9 = vmor %vm2132_vm8, %vm2133_vm7  ;;  %vm2143_vm10 = vweird.f32 %v5267_v56 }
 0xa16   :  { %v2128_v20 = vmul.f32 %v5265_v62, %v2127_v54  ;;  %vm2144_vm12 = vmor %vm2142_vm11, %vm2143_vm10  ;;  %vm7397_vm11 = vcmask 523264  }
 0xa18   :  { %v2129_v55 = vmul.f32 0.5, %v2128_v20 }
 0xa1a   :  { %v2130_v45 = vsub.f32 1.5, %v2129_v55 }
 0xa1c   :  { %v2131_v4 = vmul.f32 %v5265_v62, %v2130_v45 }
 0xa1e   :  { %v2135_v43 = vsel %vm2134_vm9, %v5265_v62, %v2131_v4  ;;  %v5076_v62 = vld [vmem:[%s7395_s4 + $0x10] sm:$0xff] }
 0xa1f   :  { %v2177_v49 = vmul.f32 %v2135_v43, %v6293_v38  ;;  %v2137_v38 = vmul.f32 %v5267_v56, %v2112_v53  ;;  %2308 = vmatpush.bf16.msra.mxu1 %v5076_v62 }
 0xa21   :  { %v2184_v58 = vmul.f32 %v6323_v15, %v2177_v49  ;;  %v2138_v22 = vmul.f32 %v5267_v56, %v2137_v38  ;;  %v6368_v49 = vld [vmem:[%s7393_s1 + $0x1b] ss:$0 sm:$0xff]  ;;  %v2020_v38 = vpop.f32.mrf.mxu2 }
 0xa23   :  { %v6338_v60 = vadd.f32 %v6329_v11, %v2184_v58  ;;  %v2139_v21 = vmul.f32 0.5, %v2138_v22 }
 0xa25   :  { %v2200_v40 = vpack.c.bf16 %v6338_v60, %v6335_v61  ;;  %v2140_v37 = vsub.f32 1.5, %v2139_v21 }
 0xa27   :  { %4930 = vmatmul.msk.bf16.vlgmr.msrb.gmra.mxu0 %vm7398_vm1, %v2200_v40  ;;  %v2141_v44 = vmul.f32 %v5267_v56, %v2140_v37 }
 0xa29   :  { %v2145_v25 = vsel %vm2144_vm12, %v5267_v56, %v2141_v44  ;;  %v6380_v44 = vld [vmem:[%s7393_s1 + $0x1c] ss:$0 sm:$0xff] }
 0xa2a   :  { %v2178_v33 = vmul.f32 %v2145_v25, %v6262_v35 }
 0xa2c   :  { %v2185_v35 = vmul.f32 %v6323_v15, %v2178_v33 }
 0xa2e   :  { %v2192_v46 = vadd.f32 %v6329_v11, %v2185_v35 }
 0xa71   :  { %v1952_v18 = vpop.f32.mrf.mxu3 }
 0xa79   :  { %v1954_v59 = vpop.f32.mrf.mxu3 }
 0xa7b   :  { %v2097_v39 = vpop.xlane.xlu1 %2096 }
 0xa7c   :  { %v2107_v23 = vmul.f32 %v2097_v39, %v6251_v9 }
 0xa7e   :  { %v2113_v47 = vadd.f32 1e-05, %v2107_v23 }
 0xa80   :  { %5268 = vrsqrt.f32 %v2113_v47  ;;  %vm2152_vm15 = vweird.f32 %v2113_v47 }
 0xa83   :  { %v1921_v30 = vpop.xlane.xlu1 %1920 }
 0xa84   :  { %5270 = vrcp.f32 %v1921_v30  ;;  %v1995_v29 = vand.u32 2147483648, %v1921_v30  ;;  %v1993_v7 = vand.u32 2147483647, %v1921_v30  ;;  %vm1989_vm8 = vweird.f32 %v1921_v30 }
 0xa86   :  { %v5269_v26 = vpop.eup %5268  ;;  %v1996_v54 = vor.u32 1.1754944e-38, %v1995_v29  ;;  %vm1994_vm10 = vcmp.eq.f32.partialorder %v1993_v7, 8.507059e+37 }
 0xa87   :  { %v2147_v24 = vmul.f32 %v5269_v26, %v2113_v47  ;;  %vm2153_vm14 = vweird.f32 %v5269_v26 }
 0xa88   :  { %vm2154_vm7 = vmor %vm2152_vm15, %vm2153_vm14 }
 0xa89   :  { %v2148_v31 = vmul.f32 %v5269_v26, %v2147_v24 }
 0xa8a   :  { %v5271_v8 = vpop.eup %5270 }
 0xa8b   :  { %v2149_v41 = vmul.f32 0.5, %v2148_v31  ;;  %v1985_v12 = vmul.f32 %v5271_v8, %v1921_v30  ;;  %vm1990_vm0 = vweird.f32 %v5271_v8 }
 0xa8c   :  { %vm1991_vm9 = vmor %vm1989_vm8, %vm1990_vm0 }
 0xa8d   :  { %v2150_v52 = vsub.f32 1.5, %v2149_v41  ;;  %v1986_v19 = vsub.f32 1.0, %v1985_v12 }
 0xa8f   :  { %v2151_v17 = vmul.f32 %v5269_v26, %v2150_v52  ;;  %v1987_v51 = vmul.f32 %v5271_v8, %v1986_v19 }
 0xa91   :  { %v2155_v32 = vsel %vm2154_vm7, %v5269_v26, %v2151_v17  ;;  %v1988_v50 = vadd.f32 %v5271_v8, %v1987_v51 }
 0xa92   :  { %v2179_v48 = vmul.f32 %v2155_v32, %v6310_v42 }
 0xa93   :  { %v1992_v20 = vsel %vm1991_vm9, %v5271_v8, %v1988_v50 }
 0xa94   :  { %v1997_v1 = vsel %vm1994_vm10, %v1996_v54, %v1992_v20  ;;  %v2186_v55 = vmul.f32 %v6323_v15, %v2179_v48 }
 0xa95   :  { %v2000_v45 = vmul.f32 %v1997_v1, %v1952_v18 }
 0xa96   :  { %v2193_v4 = vadd.f32 %v6329_v11, %v2186_v55 }
 0xa97   :  { %v2002_v43 = vpack.c.bf16 %v2000_v45, %v2000_v45 }
 0xa98   :  { %v2201_v36 = vpack.c.bf16 %v2193_v4, %v2192_v46 }
 0xa99   :  { %4921 = vmatmul.msk.bf16.gmra.mxu2 %vm148_vm2, %v2002_v43 }
 0xa9a   :  { %4931 = vmatmul.msk.bf16.gmra.mxu0 %vm7398_vm1, %v2201_v36 }
 0xaa4   :  { %v2234_v42 = vpop.f32.mrf.mxu0 }
 0xaa5   :  { %v2235_v58 = vadd.f32 %v6368_v49, %v2234_v42 }
 0xaa7   :  { %v2249_v53 = vmax.f32 %v2235_v58, 0.0 }
 0xaac   :  { %v2236_v40 = vpop.f32.mrf.mxu0 }
 0xaad   :  { %v2237_v3 = vadd.f32 %v6368_v49, %v2236_v40 }
 0xaaf   :  { %v2250_v18 = vmax.f32 %v2237_v3, 0.0 }
 0xab1   :  { %v2263_v56 = vpack.c.bf16 %v2250_v18, %v2249_v53 }
 0xab3   :  { %4949 = vmatmul.msk.bf16.vlgmr.msra.gmra.mxu1 %vm7397_vm11, %v2263_v56  ;;  %v5081_v56 = vld [vmem:[%s7394_s3 + $0x28] sm:$0xff] }
 0xab4   :  { %2519 = vmatpush.bf16.msrb.mxu3 %v5081_v56 }
 0xb17   :  { %v2239_v59 = vpop.f32.mrf.mxu0 }
 0xb18   :  { %v2240_v23 = vadd.f32 %v6368_v49, %v2239_v59 }
 0xb1a   :  { %v2251_v37 = vmax.f32 %v2240_v23, 0.0 }
 0xb1c   :  { %v2023_v22 = vpop.f32.mrf.mxu2 }
 0xb1d   :  { %v2029_v39 = vadd.f32 %v2023_v22, %v6302_v16 }
 0xb1f   :  { %v2241_v47 = vpop.f32.mrf.mxu0  ;;  %v2036_v58 = vadd.f32 %v6206_v0, %v2029_v39  ;;  %v5080_v39 = vld [vmem:[%s7394_s3 + $0x20] sm:$0xff] }
 0xb20   :  { %v2242_v21 = vadd.f32 %v6368_v49, %v2241_v47  ;;  %2520 = vmatpush.bf16.msrb.mxu3 %v5080_v39 }
 0xb21   :  { %v2042_v22 = vadd.f32 %v2036_v58, %v5542_v28 }
 0xb22   :  { %v2252_v30 = vmax.f32 %v2242_v21, 0.0 }
 0xb23   :  { %v2058_v47 = vsel %vm7398_vm1, %v2042_v22, 0.0 }
 0xb24   :  { %v2264_v13 = vpack.c.bf16 %v2252_v30, %v2251_v37  ;;  %v2025_v26 = vpop.f32.mrf.mxu2 }
 0xb26   :  { %4950 = vmatmul.msk.bf16.gmra.mxu1 %vm7397_vm11, %v2264_v13 }
 0xb30   :  { %v2310_v24 = vpop.f32.mrf.mxu1 }
 0xb31   :  { %v2311_v10 = vadd.f32 %v6380_v44, %v2310_v24 }
 0xb33   :  { %v2325_v16 = vadd.f32 %v2311_v10, %v6335_v61 }
 0xb35   :  { %v2331_v31 = vsel %vm7398_vm1, %v2325_v16, 0.0 }
 0xb36   :  { %2332 = vadd.xlane.f32.xlu2 %v2331_v31 }
 0xb38   :  { %v2312_v8 = vpop.f32.mrf.mxu1 }
 0xb39   :  { %v2313_v25 = vadd.f32 %v6380_v44, %v2312_v8 }
 0xb3b   :  { %v2326_v41 = vadd.f32 %v2313_v25, %v6338_v60  ;;  %v1550_v60 = vadd.f32 %v6145_v6, %v6282_v14 }
 0xb3d   :  { %v2334_v12 = vsel %vm7398_vm1, %v2326_v41, 0.0  ;;  %v1791_v62 = vadd.f32 %v6299_v34, %v1550_v60 }
 0xb3e   :  { %2335 = vadd.xlane.f32.xlu1 %v2334_v12 }
 0xb3f   :  { %v2028_v1 = vadd.f32 %v2020_v38, %v1791_v62 }
 0xb41   :  { %v2035_v45 = vadd.f32 %v6206_v0, %v2028_v1 }
 0xb43   :  { %v2041_v34 = vadd.f32 %v2035_v45, %v5540_v27 }
 0xba3   :  { %v2315_v52 = vpop.f32.mrf.mxu1 }
 0xba4   :  { %v2316_v19 = vadd.f32 %v6380_v44, %v2315_v52 }
 0xba6   :  { %v2327_v63 = vadd.f32 %v2316_v19, %v2192_v46  ;;  %v2055_v46 = vsel %vm7398_vm1, %v2041_v34, 0.0 }
 0xba8   :  { %v2337_v33 = vsel %vm7398_vm1, %v2327_v63, 0.0 }
 0xba9   :  { %2338 = vadd.xlane.f32.xlu2 %v2337_v33  ;;  %v2333_v29 = vpop.xlane.xlu2 %2332 }
 0xbaa   :  { %v2349_v61 = vmul.f32 %v2333_v29, %v6251_v9 }
 0xbab   :  { %v2317_v17 = vpop.f32.mrf.mxu1 }
 0xbac   :  { %v6391_v51 = vsub.f32 %v2325_v16, %v2349_v61  ;;  %v2318_v7 = vadd.f32 %v6380_v44, %v2317_v17  ;;  %v6442_v17 = vld [vmem:[%s7393_s1 + $0x1d] ss:$0 sm:$0xff] }
 0xbae   :  { %v2328_v32 = vadd.f32 %v2318_v7, %v2193_v4  ;;  %v2361_v50 = vmul.f32 %v6391_v51, %v6391_v51 }
 0xbb0   :  { %v2340_v48 = vsel %vm7398_vm1, %v2328_v32, 0.0  ;;  %v2367_v54 = vsel %vm7398_vm1, %v2361_v50, 0.0  ;;  %v6448_v50 = vld [vmem:[%s7393_s1 + $0x1e] ss:$0 sm:$0xff] }
 0xbb1   :  { %2341 = vadd.xlane.f32.xlu1 %v2340_v48  ;;  %v2336_v35 = vpop.xlane.xlu1 %2335  ;;  %2368 = vadd.xlane.f32.xlu2 %v2367_v54 }
 0xbb2   :  { %v2350_v20 = vmul.f32 %v2336_v35, %v6251_v9 }
 0xbb4   :  { %v6402_v55 = vsub.f32 %v2326_v41, %v2350_v20 }
 0xbb6   :  { %v2362_v6 = vmul.f32 %v6402_v55, %v6402_v55 }
 0xbb8   :  { %v2370_v14 = vsel %vm7398_vm1, %v2362_v6, 0.0 }
 0xbb9   :  { %2371 = vadd.xlane.f32.xlu1 %v2370_v14 }
 0xbc1   :  { %2056 = vadd.xlane.f32.xlu1 %v2055_v46 }
 0xc1c   :  { %v2339_v4 = vpop.xlane.xlu2 %2338 }
 0xc1d   :  { %v2351_v43 = vmul.f32 %v2339_v4, %v6251_v9 }
 0xc1f   :  { %v6411_v36 = vsub.f32 %v2327_v63, %v2351_v43 }
 0xc21   :  { %v2363_v42 = vmul.f32 %v6411_v36, %v6411_v36 }
 0xc23   :  { %v2373_v40 = vsel %vm7398_vm1, %v2363_v42, 0.0 }
 0xc24   :  { %v2342_v3 = vpop.xlane.xlu1 %2341  ;;  %2374 = vadd.xlane.f32.xlu0 %v2373_v40  ;;  %v2369_v53 = vpop.xlane.xlu2 %2368 }
 0xc25   :  { %v2352_v27 = vmul.f32 %v2342_v3, %v6251_v9  ;;  %v2385_v18 = vmul.f32 %v2369_v53, %v6251_v9 }
 0xc27   :  { %v6422_v38 = vsub.f32 %v2328_v32, %v2352_v27  ;;  %v2391_v59 = vadd.f32 1e-05, %v2385_v18 }
 0xc29   :  { %5272 = vrsqrt.f32 %v2391_v59  ;;  %v2364_v0 = vmul.f32 %v6422_v38, %v6422_v38  ;;  %vm2403_vm14 = vweird.f32 %v2391_v59 }
 0xc2b   :  { %v2376_v23 = vsel %vm7398_vm1, %v2364_v0, 0.0 }
 0xc2c   :  { %v2372_v21 = vpop.xlane.xlu1 %2371  ;;  %2377 = vadd.xlane.f32.xlu2 %v2376_v23  ;;  %2059 = vadd.xlane.f32.xlu0 %v2058_v47 }
 0xc2d   :  { %v2386_v37 = vmul.f32 %v2372_v21, %v6251_v9 }
 0xc2f   :  { %v5273_v28 = vpop.eup %5272  ;;  %v2392_v30 = vadd.f32 1e-05, %v2386_v37 }
 0xc30   :  { %v2398_v13 = vmul.f32 %v5273_v28, %v2391_v59  ;;  %vm2404_vm12 = vweird.f32 %v5273_v28 }
 0xc31   :  { %5274 = vrsqrt.f32 %v2392_v30  ;;  %vm2405_vm15 = vmor %vm2403_vm14, %vm2404_vm12  ;;  %vm2413_vm7 = vweird.f32 %v2392_v30 }
 0xc32   :  { %v2399_v26 = vmul.f32 %v5273_v28, %v2398_v13 }
 0xc34   :  { %v2400_v24 = vmul.f32 0.5, %v2399_v26  ;;  %v2057_v10 = vpop.xlane.xlu1 %2056 }
 0xc35   :  { %v2072_v16 = vmul.f32 %v6251_v9, %v2057_v10 }
 0xc36   :  { %v2401_v31 = vsub.f32 1.5, %v2400_v24 }
 0xc37   :  { %v5275_v8 = vpop.eup %5274  ;;  %v6434_v25 = vsub.f32 %v2041_v34, %v2072_v16 }
 0xc38   :  { %v2402_v41 = vmul.f32 %v5273_v28, %v2401_v31  ;;  %v2408_v12 = vmul.f32 %v5275_v8, %v2392_v30  ;;  %vm2414_vm0 = vweird.f32 %v5275_v8 }
 0xc39   :  { %v2084_v52 = vmul.f32 %v6434_v25, %v6434_v25  ;;  %vm2415_vm8 = vmor %vm2413_vm7, %vm2414_vm0 }
 0xc3a   :  { %v2409_v19 = vmul.f32 %v5275_v8, %v2408_v12  ;;  %v2406_v33 = vsel %vm2405_vm15, %v5273_v28, %v2402_v41 }
 0xc3b   :  { %v2098_v63 = vsel %vm7398_vm1, %v2084_v52, 0.0  ;;  %v2457_v7 = vmul.f32 %v2406_v33, %v6391_v51 }
 0xc3c   :  { %v2410_v29 = vmul.f32 0.5, %v2409_v19  ;;  %2099 = vadd.xlane.f32.xlu2 %v2098_v63 }
 0xc3d   :  { %v2464_v62 = vmul.f32 %v6442_v17, %v2457_v7 }
 0xc3e   :  { %v2411_v61 = vsub.f32 1.5, %v2410_v29 }
 0xc3f   :  { %v6454_v35 = vadd.f32 %v6448_v50, %v2464_v62 }
 0xc40   :  { %v2412_v60 = vmul.f32 %v5275_v8, %v2411_v61 }
 0xc42   :  { %v2416_v32 = vsel %vm2415_vm8, %v5275_v8, %v2412_v60 }
 0xc43   :  { %v2458_v48 = vmul.f32 %v2416_v32, %v6402_v55 }
 0xc45   :  { %v2465_v54 = vmul.f32 %v6442_v17, %v2458_v48 }
 0xc47   :  { %v6457_v51 = vadd.f32 %v6448_v50, %v2465_v54 }
 0xc49   :  { %v2489_v20 = vpack.c.bf16 %v6457_v51, %v6454_v35 }
 0xc4b   :  { %4964 = vmatmul.msk.bf16.vlgmr.msrb.gmra.mxu3 %vm7398_vm1, %v2489_v20 }
 0xc97   :  { %v2375_v1 = vpop.xlane.xlu0 %2374 }
 0xc98   :  { %v2387_v6 = vmul.f32 %v2375_v1, %v6251_v9 }
 0xc9a   :  { %v2393_v14 = vadd.f32 1e-05, %v2387_v6 }
 0xc9c   :  { %5276 = vrsqrt.f32 %v2393_v14  ;;  %vm2423_vm10 = vweird.f32 %v2393_v14 }
 0xc9f   :  { %v2060_v45 = vpop.xlane.xlu0 %2059  ;;  %v2378_v55 = vpop.xlane.xlu2 %2377 }
 0xca0   :  { %v2073_v34 = vmul.f32 %v6251_v9, %v2060_v45  ;;  %v2388_v46 = vmul.f32 %v2378_v55, %v6251_v9 }
 0xca2   :  { %v5277_v4 = vpop.eup %5276  ;;  %v6465_v43 = vsub.f32 %v2042_v22, %v2073_v34  ;;  %v2394_v42 = vadd.f32 1e-05, %v2388_v46 }
 0xca3   :  { %v2418_v58 = vmul.f32 %v5277_v4, %v2393_v14  ;;  %vm2424_vm9 = vweird.f32 %v5277_v4 }
 0xca4   :  { %5278 = vrsqrt.f32 %v2394_v42  ;;  %v2085_v40 = vmul.f32 %v6465_v43, %v6465_v43  ;;  %vm2425_vm12 = vmor %vm2423_vm10, %vm2424_vm9  ;;  %vm2433_vm15 = vweird.f32 %v2394_v42 }
 0xca5   :  { %v2419_v3 = vmul.f32 %v5277_v4, %v2418_v58 }
 0xca6   :  { %v2101_v53 = vsel %vm7398_vm1, %v2085_v40, 0.0 }
 0xca7   :  { %v2420_v27 = vmul.f32 0.5, %v2419_v3  ;;  %2102 = vadd.xlane.f32.xlu1 %v2101_v53 }
 0xca9   :  { %v2421_v18 = vsub.f32 1.5, %v2420_v27 }
 0xcaa   :  { %v5279_v56 = vpop.eup %5278 }
 0xcab   :  { %v2422_v59 = vmul.f32 %v5277_v4, %v2421_v18  ;;  %v2428_v0 = vmul.f32 %v5279_v56, %v2394_v42  ;;  %vm2434_vm14 = vweird.f32 %v5279_v56 }
 0xcac   :  { %vm2435_vm0 = vmor %vm2433_vm15, %vm2434_vm14 }
 0xcad   :  { %v2429_v39 = vmul.f32 %v5279_v56, %v2428_v0  ;;  %v2426_v22 = vsel %vm2425_vm12, %v5277_v4, %v2422_v59 }
 0xcae   :  { %v2459_v21 = vmul.f32 %v2426_v22, %v6411_v36 }
 0xcaf   :  { %v2430_v23 = vmul.f32 0.5, %v2429_v39  ;;  %v2100_v41 = vpop.xlane.xlu2 %2099 }
 0xcb0   :  { %v2466_v13 = vmul.f32 %v6442_v17, %v2459_v21  ;;  %v2108_v12 = vmul.f32 %v2100_v41, %v6251_v9 }
 0xcb1   :  { %v2431_v47 = vsub.f32 1.5, %v2430_v23 }
 0xcb2   :  { %v6475_v24 = vadd.f32 %v6448_v50, %v2466_v13  ;;  %v2114_v52 = vadd.f32 1e-05, %v2108_v12 }
 0xcb3   :  { %v2432_v37 = vmul.f32 %v5279_v56, %v2431_v47 }
 0xcb4   :  { %5280 = vrsqrt.f32 %v2114_v52  ;;  %vm2162_vm8 = vweird.f32 %v2114_v52 }
 0xcb5   :  { %v2436_v28 = vsel %vm2435_vm0, %v5279_v56, %v2432_v37 }
 0xcb6   :  { %v2460_v30 = vmul.f32 %v2436_v28, %v6422_v38 }
 0xcb8   :  { %v2467_v26 = vmul.f32 %v6442_v17, %v2460_v30 }
 0xcba   :  { %v6478_v10 = vadd.f32 %v6448_v50, %v2467_v26  ;;  %v5281_v19 = vpop.eup %5280 }
 0xcbb   :  { %v2157_v63 = vmul.f32 %v5281_v19, %v2114_v52  ;;  %vm2163_vm7 = vweird.f32 %v5281_v19 }
 0xcbc   :  { %v2490_v16 = vpack.c.bf16 %v6478_v10, %v6475_v24  ;;  %vm2164_vm9 = vmor %vm2162_vm8, %vm2163_vm7 }
 0xcbd   :  { %v2158_v33 = vmul.f32 %v5281_v19, %v2157_v63 }
 0xcbe   :  { %4965 = vmatmul.msk.bf16.gmra.mxu3 %vm7398_vm1, %v2490_v16 }
 0xcbf   :  { %v2159_v60 = vmul.f32 0.5, %v2158_v33 }
 0xcc1   :  { %v2160_v32 = vsub.f32 1.5, %v2159_v60 }
 0xcc3   :  { %v2161_v48 = vmul.f32 %v5281_v19, %v2160_v32 }
 0xcc5   :  { %v2165_v1 = vsel %vm2164_vm9, %v5281_v19, %v2161_v48 }
 0xcc6   :  { %v2180_v34 = vmul.f32 %v2165_v1, %v6434_v25 }
 0xcc8   :  { %v2187_v58 = vmul.f32 %v6323_v15, %v2180_v34 }
 0xcca   :  { %v6511_v3 = vadd.f32 %v6329_v11, %v2187_v58 }
 0xcce   :  { %v6483_v36 = vpop.f32.mrf.mxu3 }
 0xccf   :  { %v6487_v38 = vmul.f32 %v6483_v36, %v6483_v36 }
 0xcd1   :  { %2740 = vrot.lane.b32.xlu2 %v6487_v38, %s5452_s16 }
 0xcd6   :  { %v6491_v31 = vpop.f32.mrf.mxu3 }
 0xcd7   :  { %v6495_v8 = vmul.f32 %v6491_v31, %v6491_v31  ;;  %v6533_v59 = vpack.c.bf16 %v6491_v31, %v6483_v36 }
 0xcd9   :  { %3005 = vrot.lane.b32.xlu2 %v6487_v38, %s5453_s17  ;;  %2742 = vrot.lane.b32.xlu1 %v6495_v8, %s5452_s16 }
 0xce1   :  { %3007 = vrot.lane.b32.xlu1 %v6495_v8, %s5453_s17 }
 0xd1a   :  { %v2103_v29 = vpop.xlane.xlu1 %2102 }
 0xd1b   :  { %v2109_v61 = vmul.f32 %v2103_v29, %v6251_v9 }
 0xd1d   :  { %v2115_v7 = vadd.f32 1e-05, %v2109_v61 }
 0xd1f   :  { %5282 = vrsqrt.f32 %v2115_v7  ;;  %vm2172_vm12 = vweird.f32 %v2115_v7 }
 0xd25   :  { %v5283_v62 = vpop.eup %5282 }
 0xd26   :  { %v2167_v54 = vmul.f32 %v5283_v62, %v2115_v7  ;;  %vm2173_vm10 = vweird.f32 %v5283_v62 }
 0xd27   :  { %vm2174_vm14 = vmor %vm2172_vm12, %vm2173_vm10 }
 0xd28   :  { %v2168_v20 = vmul.f32 %v5283_v62, %v2167_v54 }
 0xd2a   :  { %v2169_v6 = vmul.f32 0.5, %v2168_v20 }
 0xd2b   :  { %v2741_v14 = vpop.permute.xlu2 %2740 }
 0xd2c   :  { %v2170_v45 = vsub.f32 1.5, %v2169_v6  ;;  %v2749_v55 = vsel %vm148_vm2, %v2741_v14, 0.0 }
 0xd2d   :  { %2750 = vadd.xlane.f32.xlu2 %v2749_v55 }
 0xd2e   :  { %v2171_v46 = vmul.f32 %v5283_v62, %v2170_v45 }
 0xd30   :  { %v2175_v4 = vsel %vm2174_vm14, %v5283_v62, %v2171_v46 }
 0xd31   :  { %v2181_v42 = vmul.f32 %v2175_v4, %v6465_v43 }
 0xd33   :  { %v2188_v40 = vmul.f32 %v6323_v15, %v2181_v42  ;;  %v3006_v0 = vpop.permute.xlu2 %3005 }
 0xd34   :  { %v3014_v26 = vsel %vm148_vm2, %v3006_v0, 0.0 }
 0xd35   :  { %v6514_v53 = vadd.f32 %v6329_v11, %v2188_v40 }
 0xd37   :  { %v2202_v25 = vpack.c.bf16 %v6514_v53, %v6511_v3 }
 0xd39   :  { %4932 = vmatmul.msk.bf16.gmra.mxu0 %vm7398_vm1, %v2202_v25 }
 0xd41   :  { %v6519_v27 = vpop.f32.mrf.mxu3 }
 0xd42   :  { %v6523_v43 = vmul.f32 %v6519_v27, %v6519_v27  ;;  %v6548_v46 = vpack.c.bf16 %v6519_v27, %v6519_v27 }
 0xd44   :  { %2744 = vrot.lane.b32.xlu0 %v6523_v43, %s5452_s16 }
 0xd4b   :  { %v2743_v15 = vpop.permute.xlu1 %2742 }
 0xd4c   :  { %3009 = vrot.lane.b32.xlu0 %v6523_v43, %s5453_s17  ;;  %v2752_v11 = vsel %vm148_vm2, %v2743_v15, 0.0 }
 0xd4d   :  { %2753 = vadd.xlane.f32.xlu1 %v2752_v11 }
 0xd53   :  { %v3008_v18 = vpop.permute.xlu1 %3007 }
 0xd54   :  { %v3017_v56 = vsel %vm148_vm2, %v3008_v18, 0.0 }
 0xd55   :  { %3018 = vadd.xlane.f32.xlu2 %v3017_v56 }
 0xd6d   :  { %2796 = vrot.lane.b32.xlu2 %v6533_v59, %s5452_s16 }
 0xda0   :  { %v2751_v39 = vpop.xlane.xlu2 %2750 }
 0xda1   :  { %v2758_v22 = vadd.f32 1e-12, %v2751_v39 }
 0xda3   :  { %5284 = vrsqrt.f32 %v2758_v22  ;;  %vm2767_vm8 = vweird.f32 %v2758_v22 }
 0xda9   :  { %v5285_v28 = vpop.eup %5284 }
 0xdaa   :  { %v2762_v41 = vmul.f32 %v5285_v28, %v2758_v22  ;;  %vm2768_vm0 = vweird.f32 %v5285_v28 }
 0xdab   :  { %vm2769_vm10 = vmor %vm2767_vm8, %vm2768_vm0 }
 0xdac   :  { %v2763_v29 = vmul.f32 %v5285_v28, %v2762_v41 }
 0xdae   :  { %v2764_v60 = vmul.f32 0.5, %v2763_v29 }
 0xdb0   :  { %v2765_v62 = vsub.f32 1.5, %v2764_v60 }
 0xdb2   :  { %v2766_v20 = vmul.f32 %v5285_v28, %v2765_v62 }
 0xdb4   :  { %v2770_v14 = vsel %vm2769_vm10, %v5285_v28, %v2766_v20 }
 0xdb5   :  { %v2791_v55 = vmul.f32 %v2770_v14, %v6483_v36 }
 0xdb6   :  { %v2745_v23 = vpop.permute.xlu0 %2744  ;;  %v2244_v47 = vpop.f32.mrf.mxu0 }
 0xdb7   :  { %v2755_v21 = vsel %vm148_vm2, %v2745_v23, 0.0  ;;  %v2245_v37 = vadd.f32 %v6368_v49, %v2244_v47 }
 0xdb8   :  { %2756 = vadd.xlane.f32.xlu0 %v2755_v21 }
 0xdb9   :  { %v2253_v12 = vmax.f32 %v2245_v37, 0.0 }
 0xdbe   :  { %v2246_v30 = vpop.f32.mrf.mxu0  ;;  %v3010_v33 = vpop.permute.xlu0 %3009 }
 0xdbf   :  { %v2247_v13 = vadd.f32 %v6368_v49, %v2246_v30  ;;  %v3020_v61 = vsel %vm148_vm2, %v3010_v33, 0.0 }
 0xdc0   :  { %v2754_v16 = vpop.xlane.xlu1 %2753  ;;  %3015 = vadd.xlane.f32.xlu0 %v3014_v26 }
 0xdc1   :  { %v2254_v52 = vmax.f32 %v2247_v13, 0.0  ;;  %v2759_v19 = vadd.f32 1e-12, %v2754_v16 }
 0xdc3   :  { %v2265_v63 = vpack.c.bf16 %v2254_v52, %v2253_v12  ;;  %5286 = vrsqrt.f32 %v2759_v19  ;;  %vm2777_vm7 = vweird.f32 %v2759_v19 }
 0xdc5   :  { %4951 = vmatmul.msk.bf16.gmra.mxu1 %vm7397_vm11, %v2265_v63 }
 0xdc8   :  { %3021 = vadd.xlane.f32.xlu0 %v3020_v61  ;;  %v3019_v4 = vpop.xlane.xlu2 %3018 }
 0xdc9   :  { %v5287_v7 = vpop.eup %5286  ;;  %v3024_v42 = vadd.f32 1e-12, %v3019_v4 }
 0xdca   :  { %v2772_v49 = vmul.f32 %v5287_v7, %v2759_v19  ;;  %vm2778_vm15 = vweird.f32 %v5287_v7 }
 0xdcb   :  { %vm2779_vm9 = vmor %vm2777_vm7, %vm2778_vm15  ;;  %5288 = vrsqrt.f32 %v3024_v42  ;;  %vm3042_vm7 = vweird.f32 %v3024_v42 }
 0xdcc   :  { %v2773_v32 = vmul.f32 %v5287_v7, %v2772_v49 }
 0xdce   :  { %v2774_v48 = vmul.f32 0.5, %v2773_v32 }
 0xdd0   :  { %v2775_v54 = vsub.f32 1.5, %v2774_v48 }
 0xdd1   :  { %v5289_v25 = vpop.eup %5288 }
 0xdd2   :  { %v2776_v1 = vmul.f32 %v5287_v7, %v2775_v54  ;;  %v3037_v15 = vmul.f32 %v5289_v25, %v3024_v42  ;;  %vm3043_vm0 = vweird.f32 %v5289_v25 }
 0xdd3   :  { %vm6555_vm8 = vmor %vm3042_vm7, %vm3043_vm0 }
 0xdd4   :  { %v2780_v6 = vsel %vm2779_vm9, %v5287_v7, %v2776_v1  ;;  %v3038_v56 = vmul.f32 %v5289_v25, %v3037_v15  ;;  %v2546_v15 = vsel %vm148_vm2, %v6523_v43, 0.0 }
 0xdd5   :  { %v2792_v45 = vmul.f32 %v2780_v6, %v6491_v31 }
 0xdd6   :  { %v3039_v23 = vmul.f32 0.5, %v3038_v56 }
 0xdd7   :  { %v2794_v34 = vpack.c.bf16 %v2792_v45, %v2791_v55 }
 0xdd8   :  { %v3040_v30 = vsub.f32 1.5, %v3039_v23 }
 0xdda   :  { %v3041_v52 = vmul.f32 %v5289_v25, %v3040_v30 }
 0xddc   :  { %2802 = vrot.lane.b32.xlu0 %v2794_v34, %s5452_s16  ;;  %v3045_v32 = vsel %vm6555_vm8, %v5289_v25, %v3041_v52 }
 0xddd   :  { %v3057_v45 = vmul.f32 %v3045_v32, %v6491_v31 }
 0xde4   :  { %2798 = vrot.lane.b32.xlu0 %v6548_v46, %s5452_s16 }
 0xdec   :  { %3061 = vrot.lane.b32.xlu0 %v6533_v59, %s5453_s17 }
 0xe2b   :  { %v2757_v58 = vpop.xlane.xlu0 %2756 }
 0xe2c   :  { %v2760_v40 = vadd.f32 1e-12, %v2757_v58  ;;  %v2543_v58 = vsel %vm148_vm2, %v6495_v8, 0.0 }
 0xe2e   :  { %5290 = vrsqrt.f32 %v2760_v40  ;;  %vm2787_vm14 = vweird.f32 %v2760_v40 }
 0xe33   :  { %v3016_v11 = vpop.xlane.xlu0 %3015 }
 0xe34   :  { %v5291_v18 = vpop.eup %5290  ;;  %v3023_v0 = vadd.f32 1e-12, %v3016_v11 }
 0xe35   :  { %v2782_v39 = vmul.f32 %v5291_v18, %v2760_v40  ;;  %vm2788_vm12 = vweird.f32 %v5291_v18 }
 0xe36   :  { %5292 = vrsqrt.f32 %v3023_v0  ;;  %vm2789_vm15 = vmor %vm2787_vm14, %vm2788_vm12  ;;  %vm3032_vm10 = vweird.f32 %v3023_v0 }
 0xe37   :  { %v2783_v22 = vmul.f32 %v5291_v18, %v2782_v39 }
 0xe39   :  { %v2784_v47 = vmul.f32 0.5, %v2783_v22 }
 0xe3b   :  { %v2785_v21 = vsub.f32 1.5, %v2784_v47  ;;  %v3022_v37 = vpop.xlane.xlu0 %3021 }
 0xe3c   :  { %v5293_v28 = vpop.eup %5292  ;;  %v3025_v13 = vadd.f32 1e-12, %v3022_v37 }
 0xe3d   :  { %v2786_v26 = vmul.f32 %v5291_v18, %v2785_v21  ;;  %v3027_v16 = vmul.f32 %v5293_v28, %v3023_v0  ;;  %vm3033_vm9 = vweird.f32 %v5293_v28 }
 0xe3e   :  { %5294 = vrsqrt.f32 %v3025_v13  ;;  %vm3034_vm12 = vmor %vm3032_vm10, %vm3033_vm9 }
 0xe3f   :  { %v2790_v41 = vsel %vm2789_vm15, %v5291_v18, %v2786_v26  ;;  %v3028_v12 = vmul.f32 %v5293_v28, %v3027_v16  ;;  %vm3052_vm15 = vweird.f32 %v3025_v13  ;;  %v2540_v18 = vsel %vm148_vm2, %v6487_v38, 0.0  ;;  %v2797_v16 = vpop.permute.xlu2 %2796 }
 0xe40   :  { %v2793_v19 = vmul.f32 %v2790_v41, %v6519_v27 }
 0xe41   :  { %v3029_v63 = vmul.f32 0.5, %v3028_v12 }
 0xe42   :  { %v2320_v33 = vpop.f32.mrf.mxu1  ;;  %v2795_v29 = vpack.c.bf16 %v2793_v19, %v2793_v19 }
 0xe43   :  { %v3030_v7 = vsub.f32 1.5, %v3029_v63  ;;  %v2321_v60 = vadd.f32 %v6380_v44, %v2320_v33 }
 0xe44   :  { %v5295_v49 = vpop.eup %5294  ;;  %2804 = vrot.lane.b32.xlu1 %v2795_v29, %s5452_s16 }
 0xe45   :  { %v3031_v62 = vmul.f32 %v5293_v28, %v3030_v7  ;;  %v3047_v48 = vmul.f32 %v5295_v49, %v3025_v13  ;;  %v2329_v54 = vadd.f32 %v2321_v60, %v6511_v3  ;;  %vm3053_vm14 = vweird.f32 %v5295_v49 }
 0xe46   :  { %vm3054_vm0 = vmor %vm3052_vm15, %vm3053_vm14 }
 0xe47   :  { %v3035_v20 = vsel %vm3034_vm12, %v5293_v28, %v3031_v62  ;;  %v3048_v1 = vmul.f32 %v5295_v49, %v3047_v48  ;;  %v2343_v6 = vsel %vm7398_vm1, %v2329_v54, 0.0 }
 0xe48   :  { %v3056_v14 = vmul.f32 %v3035_v20, %v6483_v36  ;;  %2344 = vadd.xlane.f32.xlu0 %v2343_v6 }
 0xe49   :  { %v3049_v55 = vmul.f32 0.5, %v3048_v1 }
 0xe4a   :  { %v3059_v34 = vpack.c.bf16 %v3057_v45, %v3056_v14  ;;  %v2322_v11 = vpop.f32.mrf.mxu1 }
 0xe4b   :  { %v3050_v4 = vsub.f32 1.5, %v3049_v55  ;;  %v2323_v56 = vadd.f32 %v6380_v44, %v2322_v11 }
 0xe4c   :  { %3067 = vrot.lane.b32.xlu2 %v3059_v34, %s5453_s17 }
 0xe4d   :  { %v3051_v42 = vmul.f32 %v5295_v49, %v3050_v4  ;;  %v2330_v0 = vadd.f32 %v2323_v56, %v6514_v53 }
 0xe4e   :  { %v2803_v22 = vpop.permute.xlu0 %2802 }
 0xe4f   :  { %v3055_v3 = vsel %vm3054_vm0, %v5295_v49, %v3051_v42  ;;  %v2346_v39 = vsel %vm7398_vm1, %v2330_v0, 0.0  ;;  %v2813_v44 = vsel %vm148_vm2, %v2803_v22, 0 }
 0xe50   :  { %2544 = vadd.xlane.f32.xlu0 %v2543_v58  ;;  %v3058_v40 = vmul.f32 %v3055_v3, %v6519_v27 }
 0xe52   :  { %v3060_v25 = vpack.c.bf16 %v3058_v40, %v3058_v40 }
 0xe54   :  { %3069 = vrot.lane.b32.xlu1 %v3060_v25, %s5453_s17 }
 0xe56   :  { %v2799_v23 = vpop.permute.xlu0 %2798 }
 0xe5c   :  { %3063 = vrot.lane.b32.xlu1 %v6548_v46, %s5453_s17 }
 0xe5e   :  { %v3062_v47 = vpop.permute.xlu0 %3061 }
 0xe75   :  { %2547 = vadd.xlane.f32.xlu2 %v2546_v15 }
 0xe7d   :  { %2541 = vadd.xlane.f32.xlu2 %v2540_v18 }
 0xe86   :  { %2347 = vadd.xlane.f32.xlu1 %v2346_v39 }
 0xea6   :  { %v3068_v52 = vpop.permute.xlu2 %3067 }
 0xea7   :  { %v3078_v19 = vsel %vm148_vm2, %v3068_v52, 0 }
 0xeb6   :  { %v2805_v21 = vpop.permute.xlu1 %2804 }
 0xeb7   :  { %v2816_v37 = vsel %vm148_vm2, %v2805_v21, 0 }
 0xeb8   :  { %2824 = vmatpush.bf16.xpose.msrb.mxu1 %v2816_v37 }
 0xebb   :  { %v2345_v28 = vpop.xlane.xlu0 %2344 }
 0xebc   :  { %v2353_v30 = vmul.f32 %v2345_v28, %v6251_v9 }
 0xebe   :  { %v6583_v13 = vsub.f32 %v2329_v54, %v2353_v30 }
 0xec0   :  { %2825 = vmatpush.bf16.xpose.msrb.mxu1 %v2813_v44  ;;  %v2365_v53 = vmul.f32 %v6583_v13, %v6583_v13 }
 0xec2   :  { %v2379_v26 = vsel %vm7398_vm1, %v2365_v53, 0.0 }
 0xec3   :  { %2380 = vadd.xlane.f32.xlu1 %v2379_v26  ;;  %v2545_v63 = vpop.xlane.xlu0 %2544 }
 0xec4   :  { %v2550_v33 = vadd.f32 1e-12, %v2545_v63 }
 0xec6   :  { %v3070_v41 = vpop.permute.xlu1 %3069  ;;  %5296 = vrsqrt.f32 %v2550_v33  ;;  %vm2568_vm12 = vweird.f32 %v2550_v33 }
 0xec7   :  { %v3081_v12 = vsel %vm148_vm2, %v3070_v41, 0  ;;  %4972 = vmatmul.msk.bf16.vlgmr.msrb.gmra.mxu1 %vm148_vm2, %v2797_v16  ;;  %v6614_v16 = vpop.f32.mrf.mxu3 }
 0xec8   :  { %3089 = vmatpush.bf16.xpose.msra.mxu1 %v3081_v12  ;;  %v6618_v52 = vmul.f32 %v6614_v16, %v6614_v16 }
 0xecc   :  { %v5297_v7 = vpop.eup %5296 }
 0xecd   :  { %v2563_v60 = vmul.f32 %v5297_v7, %v2550_v33  ;;  %vm2569_vm10 = vweird.f32 %v5297_v7  ;;  %v3490_v33 = vsel %vm148_vm2, %v6618_v52, 0.0 }
 0xece   :  { %v3064_v48 = vpop.permute.xlu1 %3063  ;;  %vm2570_vm15 = vmor %vm2568_vm12, %vm2569_vm10 }
 0xecf   :  { %v2564_v62 = vmul.f32 %v5297_v7, %v2563_v60 }
 0xed0   :  { %3090 = vmatpush.bf16.xpose.msra.mxu1 %v3078_v19 }
 0xed1   :  { %v2565_v6 = vmul.f32 0.5, %v2564_v62 }
 0xed3   :  { %v2566_v34 = vsub.f32 1.5, %v2565_v6 }
 0xed5   :  { %v2567_v18 = vmul.f32 %v5297_v7, %v2566_v34 }
 0xed7   :  { %4973 = vmatmul.msk.bf16.gmra.mxu1 %vm148_vm2, %v2799_v23  ;;  %v2571_v37 = vsel %vm2570_vm15, %v5297_v7, %v2567_v18 }
 0xed8   :  { %v2583_v44 = vmul.f32 %v2571_v37, %v6491_v31 }
 0xee7   :  { %4981 = vmatmul.msk.bf16.vlgmr.msra.gmra.mxu1 %vm148_vm2, %v3062_v47 }
 0xee8   :  { %v2548_v29 = vpop.xlane.xlu2 %2547 }
 0xee9   :  { %v2551_v61 = vadd.f32 1e-12, %v2548_v29 }
 0xeeb   :  { %5298 = vrsqrt.f32 %v2551_v61  ;;  %vm2578_vm8 = vweird.f32 %v2551_v61 }
 0xef0   :  { %v2542_v49 = vpop.xlane.xlu2 %2541 }
 0xef1   :  { %v5299_v32 = vpop.eup %5298  ;;  %v2549_v54 = vadd.f32 1e-12, %v2542_v49 }
 0xef2   :  { %v2573_v20 = vmul.f32 %v5299_v32, %v2551_v61  ;;  %vm2579_vm7 = vweird.f32 %v5299_v32 }
 0xef3   :  { %5300 = vrsqrt.f32 %v2549_v54  ;;  %vm2580_vm9 = vmor %vm2578_vm8, %vm2579_vm7  ;;  %vm2558_vm0 = vweird.f32 %v2549_v54 }
 0xef4   :  { %v2574_v1 = vmul.f32 %v5299_v32, %v2573_v20 }
 0xef6   :  { %v2575_v14 = vmul.f32 0.5, %v2574_v1 }
 0xef7   :  { %4982 = vmatmul.msk.bf16.gmra.mxu1 %vm148_vm2, %v3064_v48 }
 0xef8   :  { %v2576_v45 = vsub.f32 1.5, %v2575_v14 }
 0xef9   :  { %v5301_v55 = vpop.eup %5300  ;;  %v2348_v4 = vpop.xlane.xlu1 %2347 }
 0xefa   :  { %v2577_v42 = vmul.f32 %v5299_v32, %v2576_v45  ;;  %v2553_v3 = vmul.f32 %v5301_v55, %v2549_v54  ;;  %v2354_v58 = vmul.f32 %v2348_v4, %v6251_v9  ;;  %vm2559_vm14 = vweird.f32 %v5301_v55 }
 0xefb   :  { %vm2560_vm7 = vmor %vm2558_vm0, %vm2559_vm14 }
 0xefc   :  { %v2554_v40 = vmul.f32 %v5301_v55, %v2553_v3  ;;  %v6596_v25 = vsub.f32 %v2330_v0, %v2354_v58  ;;  %v2581_v15 = vsel %vm2580_vm9, %v5299_v32, %v2577_v42 }
 0xefd   :  { %v2584_v11 = vmul.f32 %v2581_v15, %v6519_v27 }
 0xefe   :  { %v2555_v56 = vmul.f32 0.5, %v2554_v40  ;;  %v2366_v39 = vmul.f32 %v6596_v25, %v6596_v25 }
 0xeff   :  { %v2588_v22 = vpack.c.bf16 %v2584_v11, %v2584_v11 }
 0xf00   :  { %v2556_v23 = vsub.f32 1.5, %v2555_v56  ;;  %v2382_v47 = vsel %vm7398_vm1, %v2366_v39, 0.0 }
 0xf01   :  { %2383 = vadd.xlane.f32.xlu2 %v2382_v47  ;;  %v2599_v0 = vsel %vm148_vm2, %v2588_v22, 0 }
 0xf02   :  { %2607 = vmatpush.bf16.xpose.msra.mxu2 %v2599_v0  ;;  %v2557_v21 = vmul.f32 %v5301_v55, %v2556_v23 }
 0xf04   :  { %v2561_v28 = vsel %vm2560_vm7, %v5301_v55, %v2557_v21 }
 0xf05   :  { %v2582_v30 = vmul.f32 %v2561_v28, %v6483_v36 }
 0xf07   :  { %v2587_v53 = vpack.c.bf16 %v2583_v44, %v2582_v30 }
 0xf09   :  { %v2596_v26 = vsel %vm148_vm2, %v2587_v53, 0 }
 0xf0a   :  { %2608 = vmatpush.bf16.xpose.msra.mxu2 %v2596_v26 }
 0xf11   :  { %4967 = vmatmul.msk.bf16.vlgmr.msra.gmra.mxu2 %vm148_vm2, %v6533_v59 }
 0xf19   :  { %2873 = vrot.lane.b32.xlu2 %v6548_v46, %s5455_s19 }
 0xf21   :  { %3136 = vrot.lane.b32.xlu2 %v6533_v59, %s5456_s20  ;;  %4968 = vmatmul.msk.bf16.gmra.mxu2 %vm148_vm2, %v6548_v46 }
 0xf36   :  { %v2381_v54 = vpop.xlane.xlu1 %2380 }
 0xf37   :  { %v2389_v1 = vmul.f32 %v2381_v54, %v6251_v9 }
 0xf39   :  { %v2395_v6 = vadd.f32 1e-05, %v2389_v1 }
 0xf3b   :  { %5302 = vrsqrt.f32 %v2395_v6  ;;  %vm2443_vm9 = vweird.f32 %v2395_v6 }
 0xf41   :  { %v5303_v42 = vpop.eup %5302 }
 0xf42   :  { %v2438_v40 = vmul.f32 %v5303_v42, %v2395_v6  ;;  %vm2444_vm8 = vweird.f32 %v5303_v42 }
 0xf43   :  { %vm2445_vm10 = vmor %vm2443_vm9, %vm2444_vm8 }
 0xf44   :  { %v2827_v41 = vpop.f32.mrf.mxu1  ;;  %v2439_v11 = vmul.f32 %v5303_v42, %v2438_v40 }
 0xf45   :  { %v2836_v12 = vmul.f32 0.35355338, %v2827_v41 }
 0xf46   :  { %v2440_v0 = vmul.f32 0.5, %v2439_v11 }
 0xf47   :  { %v6622_v19 = vsel %vm5616_vm5, -50000.0, %v2836_v12 }
 0xf48   :  { %v2842_v63 = vsel %vm234_vm4, %v6622_v19, -inf  ;;  %v2441_v37 = vsub.f32 1.5, %v2440_v0 }
 0xf49   :  { %2843 = vmax.xlane.f32.xlu0 %v2842_v63 }
 0xf4a   :  { %3491 = vadd.xlane.f32.xlu2 %v3490_v33  ;;  %v2442_v26 = vmul.f32 %v5303_v42, %v2441_v37 }
 0xf4c   :  { %v2829_v29 = vpop.f32.mrf.mxu1  ;;  %v2446_v63 = vsel %vm2445_vm10, %v5303_v42, %v2442_v26 }
 0xf4d   :  { %v2837_v61 = vmul.f32 0.35355338, %v2829_v29 }
 0xf4f   :  { %v6630_v7 = vsel %vm5620_vm6, -50000.0, %v2837_v61  ;;  %v2461_v61 = vmul.f32 %v2446_v63, %v6583_v13 }
 0xf50   :  { %v2845_v60 = vsel %vm234_vm4, %v6630_v7, -inf }
 0xf51   :  { %2846 = vmax.xlane.f32.xlu1 %v2845_v60 }
 0xf54   :  { %v2832_v49 = vpop.f32.mrf.mxu1 }
 0xf55   :  { %v2838_v32 = vmul.f32 0.35355338, %v2832_v49 }
 0xf57   :  { %v6636_v62 = vsel %vm5632_vm3, -50000.0, %v2838_v32 }
 0xf58   :  { %v2848_v48 = vsel %vm234_vm4, %v6636_v62, -inf }
 0xf59   :  { %2849 = vmax.xlane.f32.xlu1 %v2848_v48  ;;  %v2468_v48 = vmul.f32 %v6442_v17, %v2461_v61 }
 0xf5c   :  { %v2834_v20 = vpop.f32.mrf.mxu1 }
 0xf5d   :  { %2871 = vrot.lane.b32.xlu0 %v6533_v59, %s5455_s19  ;;  %v6670_v20 = vadd.f32 %v6448_v50, %v2468_v48 }
 0xf64   :  { %v3092_v14 = vpop.f32.mrf.mxu1 }
 0xf65   :  { %v3101_v45 = vmul.f32 0.35355338, %v3092_v14  ;;  %3138 = vrot.lane.b32.xlu0 %v6548_v46, %s5456_s20 }
 0xf67   :  { %v6647_v55 = vsel %vm5616_vm5, -50000.0, %v3101_v45 }
 0xf68   :  { %v3107_v34 = vsel %vm234_vm4, %v6647_v55, -inf }
 0xf69   :  { %3108 = vmax.xlane.f32.xlu1 %v3107_v34 }
 0xf6c   :  { %v3094_v4 = vpop.f32.mrf.mxu1 }
 0xf6d   :  { %v3102_v3 = vmul.f32 0.35355338, %v3094_v4 }
 0xf6f   :  { %v6653_v58 = vsel %vm5620_vm6, -50000.0, %v3102_v3 }
 0xf70   :  { %v3110_v15 = vsel %vm234_vm4, %v6653_v58, -inf }
 0xf71   :  { %3111 = vmax.xlane.f32.xlu1 %v3110_v15 }
 0xf74   :  { %v3097_v18 = vpop.f32.mrf.mxu1  ;;  %v2384_v56 = vpop.xlane.xlu2 %2383 }
 0xf75   :  { %v3103_v39 = vmul.f32 0.35355338, %v3097_v18  ;;  %v2390_v22 = vmul.f32 %v2384_v56, %v6251_v9 }
 0xf77   :  { %v6660_v23 = vsel %vm5632_vm3, -50000.0, %v3103_v39  ;;  %v2396_v47 = vadd.f32 1e-05, %v2390_v22 }
 0xf78   :  { %v3113_v21 = vsel %vm234_vm4, %v6660_v23, -inf }
 0xf79   :  { %5304 = vrsqrt.f32 %v2396_v47  ;;  %3114 = vmax.xlane.f32.xlu1 %v3113_v21  ;;  %vm2453_vm14 = vweird.f32 %v2396_v47 }
 0xf7c   :  { %v3099_v28 = vpop.f32.mrf.mxu1  ;;  %v2874_v30 = vpop.permute.xlu2 %2873 }
 0xf7d   :  { %v2883_v44 = vsel %vm277_vm13, %v2874_v30, 0 }
 0xf7e   :  { %2891 = vmatpush.bf16.msrb.mxu2 %v2883_v44 }
 0xf7f   :  { %v5305_v53 = vpop.eup %5304 }
 0xf80   :  { %v2448_v41 = vmul.f32 %v5305_v53, %v2396_v47  ;;  %vm2454_vm12 = vweird.f32 %v5305_v53 }
 0xf81   :  { %vm2455_vm15 = vmor %vm2453_vm14, %vm2454_vm12 }
 0xf82   :  { %v2449_v12 = vmul.f32 %v5305_v53, %v2448_v41 }
 0xf84   :  { %v2450_v33 = vmul.f32 0.5, %v2449_v12  ;;  %v3137_v26 = vpop.permute.xlu2 %3136 }
 0xf86   :  { %v2451_v29 = vsub.f32 1.5, %v2450_v33 }
 0xf88   :  { %v2452_v60 = vmul.f32 %v5305_v53, %v2451_v29 }
 0xf8a   :  { %v2456_v49 = vsel %vm2455_vm15, %v5305_v53, %v2452_v60 }
 0xf8b   :  { %v2462_v32 = vmul.f32 %v2456_v49, %v6596_v25 }
 0xf8d   :  { %v2469_v54 = vmul.f32 %v6442_v17, %v2462_v32 }
 0xf8f   :  { %v6673_v1 = vadd.f32 %v6448_v50, %v2469_v54 }
 0xf91   :  { %v2491_v6 = vpack.c.bf16 %v6673_v1, %v6670_v20 }
 0xf93   :  { %4966 = vmatmul.msk.bf16.gmra.mxu3 %vm7398_vm1, %v2491_v6 }
 0xf94   :  { %v2610_v13 = vpop.f32.mrf.mxu2 }
 0xf95   :  { %v2619_v14 = vmul.f32 0.35355338, %v2610_v13 }
 0xf97   :  { %v6680_v25 = vsel %vm5616_vm5, -50000.0, %v2619_v14 }
 0xf98   :  { %v2625_v17 = vsel %vm234_vm4, %v6680_v25, -inf }
 0xf99   :  { %2626 = vmax.xlane.f32.xlu1 %v2625_v17 }
 0xf9c   :  { %v2612_v45 = vpop.f32.mrf.mxu2 }
 0xf9d   :  { %v2620_v34 = vmul.f32 0.35355338, %v2612_v45 }
 0xf9f   :  { %v6686_v50 = vsel %vm5620_vm6, -50000.0, %v2620_v34 }
 0xfa0   :  { %v2628_v4 = vsel %vm234_vm4, %v6686_v50, -inf }
 0xfa1   :  { %2629 = vmax.xlane.f32.xlu1 %v2628_v4 }
 0xfa4   :  { %v2615_v42 = vpop.f32.mrf.mxu2 }
 0xfa5   :  { %v2621_v41 = vmul.f32 0.35355338, %v2615_v42 }
 0xfa7   :  { %v6703_v63 = vsel %vm5632_vm3, -50000.0, %v2621_v41 }
 0xfa8   :  { %v2631_v61 = vsel %vm234_vm4, %v6703_v63, -inf }
 0xfac   :  { %v2617_v3 = vpop.f32.mrf.mxu2 }
 0xfba   :  { %2658 = vrot.lane.b32.xlu1 %v6548_v46, %s5454_s18 }
 0xfbc   :  { %v2844_v40 = vpop.xlane.xlu0 %2843 }
 0xfbd   :  { %v2851_v15 = vsub.f32 %v6622_v19, %v2844_v40 }
 0xfbf   :  { %v2854_v11 = vmul.f32 1.442695, %v2851_v15 }
 0xfc1   :  { %5306 = vpow2.f32 %v2854_v11 }
 0xfc4   :  { %v2847_v18 = vpop.xlane.xlu1 %2846 }
 0xfc5   :  { %v2852_v56 = vsub.f32 %v6630_v7, %v2847_v18 }
 0xfc7   :  { %v5307_v39 = vpop.eup %5306  ;;  %v2856_v22 = vmul.f32 1.442695, %v2852_v56 }
 0xfc8   :  { %v2860_v47 = vsel %vm234_vm4, %v5307_v39, 0.0 }
 0xfc9   :  { %5308 = vpow2.f32 %v2856_v22  ;;  %2861 = vadd.xlane.f32.xlu0 %v2860_v47 }
 0xfcc   :  { %v2850_v0 = vpop.xlane.xlu1 %2849 }
 0xfcd   :  { %v2853_v30 = vsub.f32 %v6636_v62, %v2850_v0  ;;  %v6738_v0 = vpop.xlane.xlu2 %3491 }
 0xfcf   :  { %v5309_v21 = vpop.eup %5308  ;;  %v2872_v37 = vpop.permute.xlu0 %2871  ;;  %v2858_v44 = vmul.f32 1.442695, %v2853_v30 }
 0xfd0   :  { %v2869_v28 = vpack.c.bf16 %v5309_v21, %v5307_v39  ;;  %2892 = vmatpush.bf16.msrb.mxu2 %v2872_v37  ;;  %v2863_v19 = vsel %vm234_vm4, %v5309_v21, 0.0 }
 0xfd1   :  { %2864 = vadd.xlane.f32.xlu2 %v2863_v19  ;;  %5310 = vpow2.f32 %v2858_v44 }
 0xfd3   :  { %4974 = vmatmul.msk.bf16.vlgmr.msrb.gmra.mxu2 %vm234_vm4, %v2869_v28  ;;  %v4976_v28 = vld [vmem:[%s7395_s4 + $0x34] sm:$0xf] }
 0xfd4   :  { %v6746_v19 = vsel %vm277_vm13, %v4976_v28, 0 }
 0xfd5   :  { %2967 = vmatpush.bf16.msra.mxu3 %v6746_v19 }
 0xfd7   :  { %v3139_v7 = vpop.permute.xlu0 %3138  ;;  %v5311_v62 = vpop.eup %5310 }
 0xfd8   :  { %v3148_v53 = vsel %vm277_vm13, %v3139_v7, 0  ;;  %v2870_v29 = vpack.c.bf16 %v5311_v62, %v5311_v62  ;;  %v2866_v40 = vsel %vm234_vm4, %v5311_v62, 0.0 }
 0xfd9   :  { %3156 = vmatpush.bf16.msra.mxu2 %v3148_v53 }
 0xfdc   :  { %v3109_v12 = vpop.xlane.xlu1 %3108 }
 0xfdd   :  { %2656 = vrot.lane.b32.xlu0 %v6533_v59, %s5454_s18  ;;  %3157 = vmatpush.bf16.msra.mxu2 %v3137_v26  ;;  %v3116_v33 = vsub.f32 %v6647_v55, %v3109_v12 }
 0xfdf   :  { %v3119_v60 = vmul.f32 1.442695, %v3116_v33 }
 0xfe1   :  { %5312 = vpow2.f32 %v3119_v60 }
 0xfe3   :  { %4975 = vmatmul.msk.bf16.gmra.mxu2 %vm234_vm4, %v2870_v29 }
 0xfe4   :  { %v3112_v49 = vpop.xlane.xlu1 %3111  ;;  %2632 = vmax.xlane.f32.xlu1 %v2631_v61 }
 0xfe5   :  { %v3117_v32 = vsub.f32 %v6653_v58, %v3112_v49 }
 0xfe7   :  { %v3121_v48 = vmul.f32 1.442695, %v3117_v32  ;;  %v5313_v6 = vpop.eup %5312 }
 0xfe8   :  { %v3125_v18 = vsel %vm234_vm4, %v5313_v6, 0.0 }
 0xfe9   :  { %5314 = vpow2.f32 %v3121_v48 }
 0xfec   :  { %v3115_v54 = vpop.xlane.xlu1 %3114 }
 0xfed   :  { %v3118_v55 = vsub.f32 %v6660_v23, %v3115_v54 }
 0xfef   :  { %v5315_v13 = vpop.eup %5314  ;;  %v3123_v17 = vmul.f32 1.442695, %v3118_v55 }
 0xff0   :  { %v3134_v14 = vpack.c.bf16 %v5315_v13, %v5313_v6  ;;  %v3128_v22 = vsel %vm234_vm4, %v5315_v13, 0.0 }
 0xff1   :  { %5316 = vpow2.f32 %v3123_v17 }
 0xff3   :  { %4983 = vmatmul.msk.bf16.vlgmr.msra.gmra.mxu2 %vm234_vm4, %v3134_v14 }
 0xff7   :  { %v5317_v45 = vpop.eup %5316 }
 0xff8   :  { %v3135_v34 = vpack.c.bf16 %v5317_v45, %v5317_v45  ;;  %v3131_v47 = vsel %vm234_vm4, %v5317_v45, 0.0 }
 0xffd   :  { %3250 = vrot.lane.b32.xlu1 %v6523_v43, %s5457_s21 }
0x1003   :  { %4984 = vmatmul.msk.bf16.gmra.mxu2 %vm234_vm4, %v3135_v34 }
0x100c   :  { %v2627_v42 = vpop.xlane.xlu1 %2626 }
0x100d   :  { %v2634_v30 = vsub.f32 %v6680_v25, %v2627_v42 }
0x100f   :  { %v2637_v7 = vmul.f32 1.442695, %v2634_v30 }
0x1014   :  { %v2630_v11 = vpop.xlane.xlu1 %2629 }
0x1015   :  { %v2635_v37 = vsub.f32 %v6686_v50, %v2630_v11 }
0x1016   :  { %v6715_v58 = vpop.f32.mrf.mxu3 }
0x1017   :  { %v6719_v4 = vmul.f32 %v6715_v58, %v6715_v58 }
0x1019   :  { %v3493_v23 = vsel %vm148_vm2, %v6719_v4, 0.0 }
0x101a   :  { %3494 = vadd.xlane.f32.xlu2 %v3493_v23 }
0x101e   :  { %v6723_v3 = vpop.f32.mrf.mxu3 }
0x101f   :  { %v6727_v43 = vmul.f32 %v6723_v3, %v6723_v3 }
0x1021   :  { %v3496_v15 = vsel %vm148_vm2, %v6727_v43, 0.0 }
0x1022   :  { %2867 = vadd.xlane.f32.xlu2 %v2866_v40  ;;  %3497 = vadd.xlane.f32.xlu0 %v3496_v15 }
0x102a   :  { %3126 = vadd.xlane.f32.xlu2 %v3125_v18 }
0x102c   :  { %v2659_v56 = vpop.permute.xlu1 %2658 }
0x102d   :  { %v2668_v39 = vsel %vm277_vm13, %v2659_v56, 0 }
0x102e   :  { %2676 = vmatpush.bf16.msra.mxu0 %v2668_v39 }
0x1032   :  { %3129 = vadd.xlane.f32.xlu2 %v3128_v22 }
0x1036   :  { %3248 = vrot.lane.b32.xlu0 %v6495_v8, %s5457_s21  ;;  %v2639_v8 = vmul.f32 1.442695, %v2635_v37 }
0x103a   :  { %3132 = vadd.xlane.f32.xlu2 %v3131_v47 }
0x103c   :  { %v2862_v21 = vpop.xlane.xlu0 %2861 }
0x103d   :  { %5318 = vrcp.f32 %v2862_v21  ;;  %vm2908_vm8 = vweird.f32 %v2862_v21  ;;  %v2914_v13 = vand.u32 2147483648, %v2862_v21  ;;  %v2912_v17 = vand.u32 2147483647, %v2862_v21 }
0x103f   :  { %v2915_v42 = vor.u32 1.1754944e-38, %v2914_v13  ;;  %vm2913_vm14 = vcmp.eq.f32.partialorder %v2912_v17, 8.507059e+37 }
0x1043   :  { %v5319_v53 = vpop.eup %5318 }
0x1044   :  { %v2865_v44 = vpop.xlane.xlu2 %2864  ;;  %v2904_v26 = vmul.f32 %v5319_v53, %v2862_v21  ;;  %vm2909_vm0 = vweird.f32 %v5319_v53 }
0x1045   :  { %5320 = vrcp.f32 %v2865_v44  ;;  %v2928_v55 = vand.u32 2147483648, %v2865_v44  ;;  %vm2910_vm9 = vmor %vm2908_vm8, %vm2909_vm0  ;;  %vm2922_vm10 = vweird.f32 %v2865_v44  ;;  %v2926_v45 = vand.u32 2147483647, %v2865_v44 }
0x1046   :  { %5322 = vpow2.f32 %v2639_v8  ;;  %v2905_v62 = vsub.f32 1.0, %v2904_v26 }
0x1047   :  { %5324 = vpow2.f32 %v2637_v7  ;;  %v2929_v40 = vor.u32 1.1754944e-38, %v2928_v55  ;;  %vm2927_vm15 = vcmp.eq.f32.partialorder %v2926_v45, 8.507059e+37 }
0x1048   :  { %v2906_v60 = vmul.f32 %v5319_v53, %v2905_v62 }
0x104a   :  { %v2907_v48 = vadd.f32 %v5319_v53, %v2906_v60 }
0x104b   :  { %v5321_v50 = vpop.eup %5320 }
0x104c   :  { %v2918_v41 = vmul.f32 %v5321_v50, %v2865_v44  ;;  %v5323_v12 = vpop.eup %5322  ;;  %vm2923_vm7 = vweird.f32 %v5321_v50  ;;  %v2911_v34 = vsel %vm2910_vm9, %v5319_v53, %v2907_v48 }
0x104d   :  { %v6749_v29 = vpop.eup %5324  ;;  %vm2924_vm12 = vmor %vm2922_vm10, %vm2923_vm7  ;;  %v2916_v15 = vsel %vm2913_vm14, %v2915_v42, %v2911_v34  ;;  %v2646_v44 = vsel %vm234_vm4, %v5323_v12, 0.0 }
0x104e   :  { %v2919_v33 = vsub.f32 1.0, %v2918_v41  ;;  %v2652_v61 = vpack.c.bf16 %v5323_v12, %v6749_v29 }
0x104f   :  { %v2657_v25 = vpop.permute.xlu0 %2656 }
0x1050   :  { %2677 = vmatpush.bf16.msra.mxu0 %v2657_v25  ;;  %v2920_v49 = vmul.f32 %v5321_v50, %v2919_v33  ;;  %v4985_v33 = vld [vmem:[%s7395_s4 + $0x38] sm:$0xf] }
0x1051   :  { %v6783_v12 = vsel %vm277_vm13, %v4985_v33, 0 }
0x1052   :  { %3246 = vrot.lane.b32.xlu2 %v6487_v38, %s5457_s21  ;;  %v2921_v6 = vadd.f32 %v5321_v50, %v2920_v49  ;;  %3232 = vmatpush.bf16.msrb.mxu3 %v6783_v12 }
0x1053   :  { %4969 = vmatmul.msk.bf16.vlgmr.msra.gmra.mxu0 %vm234_vm4, %v2652_v61 }
0x1054   :  { %v2925_v23 = vsel %vm2924_vm12, %v5321_v50, %v2921_v6  ;;  %v6773_v50 = vadd.f32 1e-12, %v6738_v0 }
0x1055   :  { %v2930_v18 = vsel %vm2927_vm15, %v2929_v40, %v2925_v23 }
0x1056   :  { %v2894_v32 = vpop.f32.mrf.mxu2 }
0x1057   :  { %v2633_v54 = vpop.xlane.xlu1 %2632  ;;  %v2945_v56 = vmul.f32 %v2916_v15, %v2894_v32 }
0x1058   :  { %v2636_v14 = vsub.f32 %v6703_v63, %v2633_v54 }
0x105a   :  { %v2641_v38 = vmul.f32 1.442695, %v2636_v14 }
0x105c   :  { %5326 = vpow2.f32 %v2641_v38 }
0x105d   :  { %5328 = vrsqrt.f32 %v6773_v50 }
0x105e   :  { %v2896_v11 = vpop.f32.mrf.mxu2 }
0x105f   :  { %v2946_v39 = vmul.f32 %v2930_v18, %v2896_v11 }
0x1061   :  { %v2949_v63 = vpack.c.bf16 %v2946_v39, %v2945_v56 }
0x1062   :  { %v6756_v22 = vpop.eup %5326 }
0x1063   :  { %4977 = vmatmul.msk.bf16.vlgmr.msra.gmra.mxu3 %vm148_vm2, %v2949_v63  ;;  %v2653_v47 = vpack.c.bf16 %v6756_v22, %v6756_v22  ;;  %v6786_v25 = vpop.eup %5328 }
0x1064   :  { %v3503_v32 = vmul.f32 %v6786_v25, %v6773_v50  ;;  %vm3509_vm14 = vweird.f32 %v6786_v25 }
0x1065   :  { %4970 = vmatmul.msk.bf16.gmra.mxu0 %vm234_vm4, %v2653_v47 }
0x1066   :  { %v6762_v21 = vpop.f32.mrf.mxu2  ;;  %v3504_v6 = vmul.f32 %v6786_v25, %v3503_v32 }
0x1068   :  { %v3505_v34 = vmul.f32 0.5, %v3504_v6 }
0x106a   :  { %v3506_v63 = vsub.f32 1.5, %v3505_v34 }
0x106c   :  { %v3507_v6 = vmul.f32 %v6786_v25, %v3506_v63 }
0x106e   :  { %v2901_v37 = vpop.f32.mrf.mxu2 }
0x106f   :  { %v3251_v28 = vpop.permute.xlu1 %3250 }
0x1070   :  { %v3261_v30 = vsel %vm148_vm2, %v3251_v28, 0.0 }
0x1071   :  { %3262 = vadd.xlane.f32.xlu1 %v3261_v30 }
0x1076   :  { %v6765_v8 = vpop.f32.mrf.mxu2 }
0x1079   :  { %2647 = vadd.xlane.f32.xlu1 %v2646_v44 }
0x107e   :  { %v6768_v7 = vpop.f32.mrf.mxu2 }
0x1086   :  { %v6770_v53 = vpop.f32.mrf.mxu2 }
0x108d   :  { %v3495_v26 = vpop.xlane.xlu2 %3494 }
0x108e   :  { %v6775_v41 = vadd.f32 1e-12, %v3495_v26  ;;  %v3166_v62 = vpop.f32.mrf.mxu2 }
0x1090   :  { %5330 = vrsqrt.f32 %v6775_v41 }
0x1095   :  { %v3498_v0 = vpop.xlane.xlu0 %3497  ;;  %v2868_v61 = vpop.xlane.xlu2 %2867 }
0x1096   :  { %v6788_v60 = vpop.eup %5330  ;;  %v3501_v49 = vadd.f32 1e-12, %v3498_v0  ;;  %5332 = vrcp.f32 %v2868_v61  ;;  %v2942_v42 = vand.u32 2147483648, %v2868_v61  ;;  %v2940_v11 = vand.u32 2147483647, %v2868_v61 }
0x1097   :  { %v3513_v48 = vmul.f32 %v6788_v60, %v6775_v41  ;;  %vm2936_vm7 = vweird.f32 %v2868_v61  ;;  %vm3519_vm15 = vweird.f32 %v6788_v60 }
0x1098   :  { %5334 = vrsqrt.f32 %v3501_v49  ;;  %v2943_v37 = vor.u32 1.1754944e-38, %v2942_v42  ;;  %vm2941_vm10 = vcmp.eq.f32.partialorder %v2940_v11, 8.507059e+37  ;;  %vm3528_vm12 = vweird.f32 %v3501_v49 }
0x1099   :  { %v3514_v13 = vmul.f32 %v6788_v60, %v3513_v48 }
0x109b   :  { %v3515_v23 = vmul.f32 0.5, %v3514_v13 }
0x109c   :  { %v5333_v54 = vpop.eup %5332 }
0x109d   :  { %v2932_v14 = vmul.f32 %v5333_v54, %v2868_v61  ;;  %v6796_v55 = vpop.xlane.xlu2 %3126  ;;  %vm2937_vm0 = vweird.f32 %v5333_v54  ;;  %v3516_v47 = vsub.f32 1.5, %v3515_v23 }
0x109e   :  { %v5335_v17 = vpop.eup %5334  ;;  %5336 = vrcp.f32 %v6796_v55  ;;  %vm2938_vm8 = vmor %vm2936_vm7, %vm2937_vm0  ;;  %vm3518_vm7 = vweird.f32 %v6775_v41  ;;  %v3177_v11 = vand.u32 2147483647, %v6796_v55 }
0x109f   :  { %v3523_v45 = vmul.f32 %v5335_v17, %v3501_v49  ;;  %v2933_v38 = vsub.f32 1.0, %v2932_v14  ;;  %vm3529_vm9 = vweird.f32 %v5335_v17  ;;  %v3517_v61 = vmul.f32 %v6788_v60, %v3516_v47 }
0x10a0   :  { %vm3530_vm0 = vmor %vm3528_vm12, %vm3529_vm9 }
0x10a1   :  { %v3524_v40 = vmul.f32 %v5335_v17, %v3523_v45  ;;  %v2934_v15 = vmul.f32 %v5333_v54, %v2933_v38 }
0x10a3   :  { %v3525_v18 = vmul.f32 0.5, %v3524_v40  ;;  %v2935_v56 = vadd.f32 %v5333_v54, %v2934_v15  ;;  %v3179_v15 = vand.u32 2147483648, %v6796_v55 }
0x10a4   :  { %v6799_v39 = vpop.eup %5336 }
0x10a5   :  { %v3526_v28 = vsub.f32 1.5, %v3525_v18  ;;  %v3169_v30 = vmul.f32 %v6799_v39, %v6796_v55  ;;  %v3130_v44 = vpop.xlane.xlu2 %3129  ;;  %v2939_v26 = vsel %vm2938_vm8, %v5333_v54, %v2935_v56  ;;  %vm3508_vm8 = vweird.f32 %v6773_v50 }
0x10a6   :  { %5338 = vrcp.f32 %v3130_v44  ;;  %v2944_v0 = vsel %vm2941_vm10, %v2943_v37, %v2939_v26  ;;  %vm6813_vm10 = vmor %vm3518_vm7, %vm3519_vm15  ;;  %vm3174_vm12 = vweird.f32 %v6799_v39  ;;  %v3193_v63 = vand.u32 2147483648, %v3130_v44 }
0x10a7   :  { %v3527_v62 = vmul.f32 %v5335_v17, %v3526_v28  ;;  %v3170_v33 = vsub.f32 1.0, %v3169_v30  ;;  %v2947_v48 = vmul.f32 %v2944_v0, %v6762_v21  ;;  %vm6819_vm9 = vmor %vm3508_vm8, %vm3509_vm14  ;;  %vm3173_vm14 = vweird.f32 %v6796_v55 }
0x10a8   :  { %v3249_v32 = vpop.permute.xlu0 %3248  ;;  %v3511_v40 = vsel %vm6819_vm9, %v6786_v25, %v3507_v6  ;;  %vm3175_vm15 = vmor %vm3173_vm14, %vm3174_vm12  ;;  %v3191_v28 = vand.u32 2147483647, %v3130_v44  ;;  %v3180_v30 = vor.u32 1.1754944e-38, %v3179_v15  ;;  %vm3178_vm7 = vcmp.eq.f32.partialorder %v3177_v11, 8.507059e+37 }
0x10a9   :  { %v3171_v54 = vmul.f32 %v6799_v39, %v3170_v33  ;;  %v3258_v13 = vsel %vm148_vm2, %v3249_v32, 0.0  ;;  %v3531_v14 = vsel %vm3530_vm0, %v5335_v17, %v3527_v62  ;;  %v2950_v49 = vpack.c.bf16 %v2947_v48, %v2947_v48 }
0x10aa   :  { %3259 = vadd.xlane.f32.xlu0 %v3258_v13  ;;  %v3534_v45 = vmul.f32 %v3531_v14, %v6723_v3  ;;  %v3521_v17 = vsel %vm6813_vm10, %v6788_v60, %v3517_v61  ;;  %v3532_v47 = vmul.f32 %v3511_v40, %v6614_v16  ;;  %vm3187_vm8 = vweird.f32 %v3130_v44 }
0x10ab   :  { %4978 = vmatmul.msk.bf16.gmra.mxu3 %vm148_vm2, %v2950_v49  ;;  %v3172_v50 = vadd.f32 %v6799_v39, %v3171_v54  ;;  %v3533_v56 = vmul.f32 %v3521_v17, %v6715_v58  ;;  %v3194_v0 = vor.u32 1.1754944e-38, %v3193_v63  ;;  %vm3192_vm9 = vcmp.eq.f32.partialorder %v3191_v28, 8.507059e+37 }
0x10ac   :  { %v5339_v21 = vpop.eup %5338  ;;  %v3538_v41 = vpack.c.bf16 %v3534_v45, %v3534_v45  ;;  %v6868_v15 = vpack.c.bf16 %v6723_v3, %v6723_v3 }
0x10ad   :  { %v3183_v23 = vmul.f32 %v5339_v21, %v3130_v44  ;;  %v3133_v42 = vpop.xlane.xlu2 %3132  ;;  %v3176_v37 = vsel %vm3175_vm15, %v6799_v39, %v3172_v50  ;;  %vm3188_vm0 = vweird.f32 %v5339_v21  ;;  %v3537_v55 = vpack.c.bf16 %v3533_v56, %v3532_v47 }
0x10ae   :  { %5340 = vrcp.f32 %v3133_v42  ;;  %v3549_v60 = vsel %vm148_vm2, %v3538_v41, 0  ;;  %v3181_v33 = vsel %vm3178_vm7, %v3180_v30, %v3176_v37  ;;  %vm3189_vm10 = vmor %vm3187_vm8, %vm3188_vm0  ;;  %vm3201_vm14 = vweird.f32 %v3133_v42 }
0x10af   :  { %v3184_v18 = vsub.f32 1.0, %v3183_v23  ;;  %3557 = vmatpush.bf16.xpose.msra.mxu3 %v3549_v60  ;;  %v3210_v39 = vmul.f32 %v3181_v33, %v6765_v8  ;;  %v3546_v49 = vsel %vm148_vm2, %v3537_v55, 0  ;;  %v3205_v34 = vand.u32 2147483647, %v3133_v42 }
0x10b0   :  { %v2643_v8 = vsel %vm234_vm4, %v6749_v29, 0.0  ;;  %v2649_v50 = vsel %vm234_vm4, %v6756_v22, 0.0  ;;  %v6855_v29 = vpack.c.bf16 %v6715_v58, %v6614_v16 }
0x10b1   :  { %v3185_v25 = vmul.f32 %v5339_v21, %v3184_v18  ;;  %vm3206_vm0 = vcmp.eq.f32.partialorder %v3205_v34, 8.507059e+37 }
0x10b3   :  { %v3186_v26 = vadd.f32 %v5339_v21, %v3185_v25 }
0x10b4   :  { %v5341_v62 = vpop.eup %5340 }
0x10b5   :  { %v3190_v61 = vsel %vm3189_vm10, %v5339_v21, %v3186_v26  ;;  %v3197_v32 = vmul.f32 %v5341_v62, %v3133_v42  ;;  %v3247_v48 = vpop.permute.xlu2 %3246  ;;  %vm3202_vm12 = vweird.f32 %v5341_v62  ;;  %v3207_v21 = vand.u32 2147483648, %v3133_v42 }
0x10b6   :  { %v3195_v6 = vsel %vm3192_vm9, %v3194_v0, %v3190_v61  ;;  %v3255_v54 = vsel %vm148_vm2, %v3247_v48, 0.0  ;;  %vm3203_vm15 = vmor %vm3201_vm14, %vm3202_vm12  ;;  %v4971_v0 = vld [vmem:[%s7395_s4 + $0x30] sm:$0xf] }
0x10b7   :  { %v3211_v13 = vmul.f32 %v3195_v6, %v6768_v7  ;;  %v3198_v14 = vsub.f32 1.0, %v3197_v32  ;;  %3256 = vadd.xlane.f32.xlu2 %v3255_v54  ;;  %3558 = vmatpush.bf16.xpose.msra.mxu3 %v3546_v49  ;;  %v3208_v41 = vor.u32 1.1754944e-38, %v3207_v21  ;;  %v6894_v32 = vsel %vm277_vm13, %v4971_v0, 0 }
0x10b8   :  { %2994 = vmatpush.bf16.msrb.mxu0 %v6894_v32 }
0x10b9   :  { %v3214_v44 = vpack.c.bf16 %v3211_v13, %v3210_v39  ;;  %v3199_v45 = vmul.f32 %v5341_v62, %v3198_v14 }
0x10bb   :  { %v3200_v38 = vadd.f32 %v5341_v62, %v3199_v45  ;;  %4986 = vmatmul.msk.bf16.vlgmr.msrb.gmra.mxu3 %vm148_vm2, %v3214_v44 }
0x10bd   :  { %v3204_v7 = vsel %vm3203_vm15, %v5341_v62, %v3200_v38 }
0x10be   :  { %v3209_v17 = vsel %vm3206_vm0, %v3208_v41, %v3204_v7 }
0x10bf   :  { %3911 = vmatpush.bf16.msrb.mxu3 %v6746_v19  ;;  %2644 = vadd.xlane.f32.xlu2 %v2643_v8  ;;  %v3212_v23 = vmul.f32 %v3209_v17, %v6770_v53 }
0x10c1   :  { %v3215_v40 = vpack.c.bf16 %v3212_v23, %v3212_v23 }
0x10c7   :  { %2650 = vadd.xlane.f32.xlu2 %v2649_v50 }
0x10cb   :  { %4987 = vmatmul.msk.bf16.gmra.mxu3 %vm148_vm2, %v3215_v40 }
0x10d0   :  { %v6851_v19 = vpop.f32.mrf.mxu0 }
0x10d8   :  { %v6857_v42 = vpop.f32.mrf.mxu0 }
0x10db   :  { %4995 = vmatmul.msk.bf16.vlgmr.msra.gmra.mxu3 %vm148_vm2, %v6855_v29 }
0x10dc   :  { %4169 = vmatpush.bf16.msra.mxu3 %v6783_v12 }
0x10df   :  { %3302 = vrot.lane.b32.xlu2 %v6533_v59, %s5457_s21 }
0x10e2   :  { %v6864_v22 = vpop.f32.mrf.mxu0 }
0x10e4   :  { %v3263_v53 = vpop.xlane.xlu1 %3262 }
0x10e5   :  { %v3266_v11 = vadd.f32 1e-12, %v3263_v53 }
0x10e6   :  { %v6886_v26 = vpop.f32.mrf.mxu3 }
0x10e7   :  { %5342 = vrsqrt.f32 %v3266_v11  ;;  %3608 = vrot.lane.b32.xlu2 %v6868_v15, %s5454_s18  ;;  %vm3293_vm8 = vweird.f32 %v3266_v11 }
0x10ea   :  { %v2686_v18 = vpop.f32.mrf.mxu0 }
0x10eb   :  { %4996 = vmatmul.msk.bf16.gmra.mxu3 %vm148_vm2, %v6868_v15 }
0x10ec   :  { %v2648_v33 = vpop.xlane.xlu1 %2647 }
0x10ed   :  { %v5343_v12 = vpop.eup %5342  ;;  %vm2707_vm0 = vweird.f32 %v2648_v33 }
0x10ee   :  { %v3288_v60 = vmul.f32 %v5343_v12, %v3266_v11  ;;  %vm3294_vm7 = vweird.f32 %v5343_v12  ;;  %v6891_v61 = vpop.f32.mrf.mxu3 }
0x10ef   :  { %3606 = vrot.lane.b32.xlu2 %v6855_v29, %s5454_s18  ;;  %vm3295_vm10 = vmor %vm3293_vm8, %vm3294_vm7 }
0x10f0   :  { %v3289_v56 = vmul.f32 %v5343_v12, %v3288_v60  ;;  %v2713_v60 = vand.u32 2147483648, %v2648_v33 }
0x10f2   :  { %v3290_v63 = vmul.f32 0.5, %v3289_v56 }
0x10f4   :  { %v3291_v47 = vsub.f32 1.5, %v3290_v63 }
0x10f6   :  { %v3292_v37 = vmul.f32 %v5343_v12, %v3291_v47 }
0x10f7   :  { %3690 = vrot.lane.b32.xlu2 %v6719_v4, %s5452_s16 }
0x10f8   :  { %v3296_v25 = vsel %vm3295_vm10, %v5343_v12, %v3292_v37  ;;  %v2711_v12 = vand.u32 2147483647, %v2648_v33 }
0x10f9   :  { %v3299_v28 = vmul.f32 %v3296_v25, %v6519_v27 }
0x10fb   :  { %v3301_v30 = vpack.c.bf16 %v3299_v28, %v3299_v28 }
0x10fd   :  { %3310 = vrot.lane.b32.xlu1 %v3301_v30, %s5457_s21 }
0x10ff   :  { %4187 = vrot.lane.b32.xlu2 %v6727_v43, %s5457_s21 }
0x1105   :  { %3692 = vrot.lane.b32.xlu1 %v6727_v43, %s5452_s16 }
0x110d   :  { %3950 = vrot.lane.b32.xlu1 %v6727_v43, %s5453_s17 }
0x111d   :  { %v3260_v55 = vpop.xlane.xlu0 %3259 }
0x111e   :  { %v3265_v62 = vadd.f32 1e-12, %v3260_v55 }
0x1120   :  { %5344 = vrsqrt.f32 %v3265_v62  ;;  %vm3283_vm14 = vweird.f32 %v3265_v62 }
0x1121   :  { %5346 = vrcp.f32 %v2648_v33 }
0x1126   :  { %v5345_v27 = vpop.eup %5344 }
0x1127   :  { %v3278_v48 = vmul.f32 %v5345_v27, %v3265_v62  ;;  %v5347_v43 = vpop.eup %5346  ;;  %vm3284_vm9 = vweird.f32 %v5345_v27 }
0x1128   :  { %v2703_v13 = vmul.f32 %v5347_v43, %v2648_v33  ;;  %vm2708_vm12 = vweird.f32 %v5347_v43  ;;  %vm3285_vm7 = vmor %vm3283_vm14, %vm3284_vm9  ;;  %v2714_v33 = vor.u32 1.1754944e-38, %v2713_v60  ;;  %vm2712_vm9 = vcmp.eq.f32.partialorder %v2711_v12, 8.507059e+37 }
0x1129   :  { %v3279_v39 = vmul.f32 %v5345_v27, %v3278_v48  ;;  %vm6899_vm8 = vmor %vm2707_vm0, %vm2708_vm12 }
0x112a   :  { %v3257_v6 = vpop.xlane.xlu2 %3256  ;;  %v2704_v44 = vsub.f32 1.0, %v2703_v13 }
0x112b   :  { %v3264_v54 = vadd.f32 1e-12, %v3257_v6  ;;  %v3280_v49 = vmul.f32 0.5, %v3279_v39 }
0x112c   :  { %v2705_v8 = vmul.f32 %v5347_v43, %v2704_v44 }
0x112d   :  { %5348 = vrsqrt.f32 %v3264_v54  ;;  %v3281_v21 = vsub.f32 1.5, %v3280_v49  ;;  %vm3273_vm10 = vweird.f32 %v3264_v54 }
0x112e   :  { %v6897_v14 = vpop.f32.mrf.mxu3  ;;  %v2706_v40 = vadd.f32 %v5347_v43, %v2705_v8 }
0x112f   :  { %v3282_v17 = vmul.f32 %v5345_v27, %v3281_v21 }
0x1130   :  { %v2710_v25 = vsel %vm6899_vm8, %v5347_v43, %v2706_v40 }
0x1131   :  { %v3286_v63 = vsel %vm3285_vm7, %v5345_v27, %v3282_v17  ;;  %v2715_v39 = vsel %vm2712_vm9, %v2714_v33, %v2710_v25 }
0x1132   :  { %v2645_v45 = vpop.xlane.xlu2 %2644  ;;  %v3298_v0 = vmul.f32 %v3286_v63, %v6491_v31  ;;  %v2731_v31 = vmul.f32 %v2715_v39, %v6857_v42 }
0x1133   :  { %v5349_v38 = vpop.eup %5348  ;;  %5350 = vrcp.f32 %v2645_v45  ;;  %v2699_v28 = vand.u32 2147483648, %v2645_v45  ;;  %v2697_v62 = vand.u32 2147483647, %v2645_v45  ;;  %vm2693_vm12 = vweird.f32 %v2645_v45 }
0x1134   :  { %v3268_v34 = vmul.f32 %v5349_v38, %v3264_v54  ;;  %vm3274_vm15 = vweird.f32 %v5349_v38 }
0x1135   :  { %vm3275_vm11 = vmor %vm3273_vm10, %vm3274_vm15  ;;  %v2700_v43 = vor.u32 1.1754944e-38, %v2699_v28 }
0x1136   :  { %v3269_v7 = vmul.f32 %v5349_v38, %v3268_v34  ;;  %v2976_v41 = vpop.f32.mrf.mxu3 }
0x1138   :  { %v3270_v50 = vmul.f32 0.5, %v3269_v7 }
0x1139   :  { %v5351_v23 = vpop.eup %5350 }
0x113a   :  { %v3271_v53 = vsub.f32 1.5, %v3270_v50  ;;  %v2689_v11 = vmul.f32 %v5351_v23, %v2645_v45  ;;  %v2651_v18 = vpop.xlane.xlu2 %2650  ;;  %vm2694_vm1 = vweird.f32 %v5351_v23 }
0x113b   :  { %5352 = vrcp.f32 %v2651_v18  ;;  %vm2695_vm14 = vmor %vm2693_vm12, %vm2694_vm1  ;;  %v2727_v17 = vand.u32 2147483648, %v2651_v18  ;;  %vm2721_vm15 = vweird.f32 %v2651_v18  ;;  %v2725_v50 = vand.u32 2147483647, %v2651_v18 }
0x113c   :  { %v3272_v47 = vmul.f32 %v5349_v38, %v3271_v53  ;;  %v2690_v37 = vsub.f32 1.0, %v2689_v11 }
0x113d   :  { %v2728_v40 = vor.u32 1.1754944e-38, %v2727_v17  ;;  %vm2726_vm7 = vcmp.eq.f32.partialorder %v2725_v50, 8.507059e+37 }
0x113e   :  { %v3276_v30 = vsel %vm3275_vm11, %v5349_v38, %v3272_v47  ;;  %v2691_v55 = vmul.f32 %v5351_v23, %v2690_v37  ;;  %v6907_v6 = vpop.f32.mrf.mxu3  ;;  %vm2698_vm11 = vcmp.eq.f32.partialorder %v2697_v62, 8.507059e+37 }
0x113f   :  { %v3297_v48 = vmul.f32 %v3276_v30, %v6483_v36 }
0x1140   :  { %v2692_v27 = vadd.f32 %v5351_v23, %v2691_v55 }
0x1141   :  { %v5353_v54 = vpop.eup %5352  ;;  %v3300_v13 = vpack.c.bf16 %v3298_v0, %v3297_v48 }
0x1142   :  { %v2696_v49 = vsel %vm2695_vm14, %v5351_v23, %v2692_v27  ;;  %v2717_v44 = vmul.f32 %v5353_v54, %v2651_v18  ;;  %v3303_v38 = vpop.permute.xlu2 %3302  ;;  %vm2722_vm1 = vweird.f32 %v5353_v54 }
0x1143   :  { %v2701_v21 = vsel %vm2698_vm11, %v2700_v43, %v2696_v49  ;;  %3308 = vrot.lane.b32.xlu0 %v3300_v13, %s5457_s21  ;;  %vm2723_vm0 = vmor %vm2721_vm15, %vm2722_vm1 }
0x1144   :  { %v2730_v36 = vmul.f32 %v2701_v21, %v6851_v19  ;;  %v2718_v34 = vsub.f32 1.0, %v2717_v44 }
0x1146   :  { %v2735_v8 = vpack.c.bf16 %v2731_v31, %v2730_v36  ;;  %v2719_v7 = vmul.f32 %v5353_v54, %v2718_v34  ;;  %v6912_v45 = vpop.f32.mrf.mxu3 }
0x1148   :  { %v2720_v41 = vadd.f32 %v5353_v54, %v2719_v7  ;;  %4979 = vmatmul.msk.bf16.vlgmr.msrb.gmra.mxu0 %vm148_vm2, %v2735_v8 }
0x114a   :  { %v3609_v23 = vpop.permute.xlu2 %3608  ;;  %v2724_v42 = vsel %vm2723_vm0, %v5353_v54, %v2720_v41 }
0x114b   :  { %3304 = vrot.lane.b32.xlu0 %v6548_v46, %s5457_s21  ;;  %v2729_v53 = vsel %vm2726_vm7, %v2728_v40, %v2724_v42  ;;  %v3618_v49 = vsel %vm277_vm13, %v3609_v23, 0 }
0x114c   :  { %v2732_v12 = vmul.f32 %v2729_v53, %v6864_v22 }
0x114e   :  { %v6917_v19 = vpop.f32.mrf.mxu3  ;;  %v2736_v60 = vpack.c.bf16 %v2732_v12, %v2732_v12 }
0x1152   :  { %v3607_v11 = vpop.permute.xlu2 %3606 }
0x1153   :  { %3688 = vrot.lane.b32.xlu0 %v6618_v52, %s5452_s16 }
0x1156   :  { %v3241_v56 = vpop.f32.mrf.mxu3 }
0x1158   :  { %4980 = vmatmul.msk.bf16.gmra.mxu0 %vm148_vm2, %v2736_v60 }
0x115a   :  { %v3691_v18 = vpop.permute.xlu2 %3690 }
0x115b   :  { %v3700_v63 = vsel %vm148_vm2, %v3691_v18, 0.0 }
0x115c   :  { %3701 = vadd.xlane.f32.xlu2 %v3700_v63 }
0x115e   :  { %v3560_v47 = vpop.f32.mrf.mxu3 }
0x115f   :  { %v3569_v37 = vmul.f32 0.35355338, %v3560_v47 }
0x1161   :  { %v3572_v25 = vsel %vm5616_vm5, -50000.0, %v3569_v37 }
0x1162   :  { %v3575_v28 = vsel %vm234_vm4, %v3572_v25, -inf  ;;  %v4188_v56 = vpop.permute.xlu2 %4187 }
0x1163   :  { %3576 = vmax.xlane.f32.xlu1 %v3575_v28 }
0x1166   :  { %v3562_v22 = vpop.f32.mrf.mxu3 }
0x1167   :  { %v3570_v33 = vmul.f32 0.35355338, %v3562_v22 }
0x1169   :  { %v3573_v48 = vsel %vm5620_vm6, -50000.0, %v3570_v33 }
0x116a   :  { %v3578_v27 = vsel %vm234_vm4, %v3573_v48, -inf }
0x116e   :  { %v6927_v30 = vpop.f32.mrf.mxu3 }
0x116f   :  { %v3311_v55 = vpop.permute.xlu1 %3310 }
0x1170   :  { %v3322_v62 = vsel %vm148_vm2, %v3311_v55, 0 }
0x1171   :  { %3330 = vmatpush.bf16.xpose.msra.mxu0 %v3322_v62 }
0x1176   :  { %v3567_v0 = vpop.f32.mrf.mxu3 }
0x1177   :  { %v3693_v54 = vpop.permute.xlu1 %3692 }
0x1178   :  { %v3703_v39 = vsel %vm148_vm2, %v3693_v54, 0.0 }
0x117c   :  { %3946 = vrot.lane.b32.xlu1 %v6618_v52, %s5453_s17 }
0x117d   :  { %3579 = vmax.xlane.f32.xlu0 %v3578_v27 }
0x1184   :  { %3948 = vrot.lane.b32.xlu1 %v6719_v4, %s5453_s17 }
0x1185   :  { %3704 = vadd.xlane.f32.xlu0 %v3703_v39 }
0x1199   :  { %4183 = vrot.lane.b32.xlu0 %v6618_v52, %s5457_s21 }
0x11a1   :  { %4185 = vrot.lane.b32.xlu0 %v6719_v4, %s5457_s21  ;;  %v3951_v4 = vpop.permute.xlu1 %3950 }
0x11a2   :  { %v3961_v34 = vsel %vm148_vm2, %v3951_v4, 0.0 }
0x11b5   :  { %v3309_v43 = vpop.permute.xlu0 %3308 }
0x11b6   :  { %v3319_v13 = vsel %vm148_vm2, %v3309_v43, 0 }
0x11b7   :  { %3331 = vmatpush.bf16.xpose.msra.mxu0 %v3319_v13 }
0x11bd   :  { %v3305_v44 = vpop.permute.xlu0 %3304 }
0x11be   :  { %4988 = vmatmul.msk.bf16.vlgmr.msra.gmra.mxu0 %vm148_vm2, %v3303_v38 }
0x11bf   :  { %3626 = vmatpush.bf16.msrb.mxu0 %v3618_v49 }
0x11c3   :  { %3627 = vmatpush.bf16.msrb.mxu0 %v3607_v11 }
0x11c5   :  { %v3689_v21 = vpop.permute.xlu0 %3688  ;;  %v6946_v31 = vpop.f32.mrf.mxu0 }
0x11c6   :  { %v3697_v52 = vsel %vm148_vm2, %v3689_v21, 0.0 }
0x11c7   :  { %3935 = vmatpush.bf16.msra.mxu0 %v6894_v32  ;;  %3698 = vadd.xlane.f32.xlu1 %v3697_v52 }
0x11cd   :  { %v6949_v36 = vpop.f32.mrf.mxu0 }
0x11ce   :  { %4989 = vmatmul.msk.bf16.gmra.mxu0 %vm148_vm2, %v3305_v44 }
0x11cf   :  { %3962 = vadd.xlane.f32.xlu1 %v3961_v34  ;;  %v3702_v47 = vpop.xlane.xlu2 %3701 }
0x11d0   :  { %v3707_v55 = vadd.f32 1e-12, %v3702_v47 }
0x11d2   :  { %vm3725_vm15 = vweird.f32 %v3707_v55 }
0x11d5   :  { %v6953_v8 = vpop.f32.mrf.mxu0 }
0x11d6   :  { %v3577_v32 = vpop.xlane.xlu1 %3576 }
0x11d7   :  { %v3584_v38 = vsub.f32 %v3572_v25, %v3577_v32 }
0x11d9   :  { %v3587_v41 = vmul.f32 1.442695, %v3584_v38 }
0x11db   :  { %5354 = vpow2.f32 %v3587_v41 }
0x11dd   :  { %v3003_v7 = vpop.f32.mrf.mxu0 }
0x11e1   :  { %v6959_v42 = vpop.eup %5354 }
0x11e8   :  { %3379 = vrot.lane.b32.xlu1 %v6548_v46, %s5458_s28 }
0x11ee   :  { %v3947_v60 = vpop.permute.xlu1 %3946 }
0x11ef   :  { %v3955_v44 = vsel %vm148_vm2, %v3947_v60, 0.0 }
0x11f0   :  { %3377 = vrot.lane.b32.xlu1 %v6533_v59, %s5458_s28  ;;  %v3580_v17 = vpop.xlane.xlu0 %3579 }
0x11f1   :  { %v3585_v50 = vsub.f32 %v3573_v48, %v3580_v17 }
0x11f3   :  { %v3589_v23 = vmul.f32 1.442695, %v3585_v50 }
0x11f5   :  { %5356 = vpow2.f32 %v3589_v23 }
0x11f6   :  { %v3949_v18 = vpop.permute.xlu1 %3948 }
0x11f7   :  { %v3958_v17 = vsel %vm148_vm2, %v3949_v18, 0.0  ;;  %v3571_v18 = vmul.f32 0.35355338, %v6927_v30 }
0x11f8   :  { %v3705_v46 = vpop.xlane.xlu0 %3704 }
0x11f9   :  { %v3708_v63 = vadd.f32 1e-12, %v3705_v46 }
0x11fb   :  { %v6961_v40 = vpop.eup %5356  ;;  %5358 = vrsqrt.f32 %v3708_v63  ;;  %vm3735_vm10 = vweird.f32 %v3708_v63 }
0x11fc   :  { %v3602_v53 = vpack.c.bf16 %v6961_v40, %v6959_v42 }
0x11fe   :  { %4997 = vmatmul.msk.bf16.vlgmr.msrb.gmra.mxu0 %vm234_vm4, %v3602_v53 }
0x1201   :  { %v5359_v22 = vpop.eup %5358 }
0x1202   :  { %v3730_v0 = vmul.f32 %v5359_v22, %v3708_v63  ;;  %vm3736_vm8 = vweird.f32 %v5359_v22 }
0x1203   :  { %vm3737_vm9 = vmor %vm3735_vm10, %vm3736_vm8 }
0x1204   :  { %v3731_v27 = vmul.f32 %v5359_v22, %v3730_v0 }
0x1206   :  { %v3732_v21 = vmul.f32 0.5, %v3731_v27 }
0x1208   :  { %v3733_v7 = vsub.f32 1.5, %v3732_v21 }
0x120a   :  { %v3734_v50 = vmul.f32 %v5359_v22, %v3733_v7 }
0x120b   :  { %v6966_v11 = vpop.permute.xlu0 %4183 }
0x1213   :  { %v4186_v12 = vpop.permute.xlu0 %4185 }
0x1214   :  { %v4195_v59 = vsel %vm148_vm2, %v4186_v12, 0.0  ;;  %v3738_v12 = vsel %vm3737_vm9, %v5359_v22, %v3734_v50  ;;  %v3596_v50 = vsel %vm234_vm4, %v6961_v40, 0.0 }
0x121a   :  { %4196 = vadd.xlane.f32.xlu1 %v4195_v59 }
0x1233   :  { %3746 = vrot.lane.b32.xlu1 %v6868_v15, %s5452_s16 }
0x123a   :  { %v3699_v37 = vpop.xlane.xlu1 %3698 }
0x123b   :  { %v3706_v25 = vadd.f32 1e-12, %v3699_v37  ;;  %4002 = vrot.lane.b32.xlu1 %v6855_v29, %s5453_s17  ;;  %v3333_v28 = vpop.f32.mrf.mxu0  ;;  %v3741_v37 = vmul.f32 %v3738_v12, %v6723_v3 }
0x123c   :  { %v3342_v62 = vmul.f32 0.35355338, %v3333_v28  ;;  %v4198_v28 = vsel %vm148_vm2, %v4188_v56, 0.0 }
0x123d   :  { %5360 = vrsqrt.f32 %v3706_v25  ;;  %vm3715_vm11 = vweird.f32 %v3706_v25 }
0x123e   :  { %v6975_v33 = vsel %vm5616_vm5, -50000.0, %v3342_v62  ;;  %5362 = vrsqrt.f32 %v3707_v55 }
0x123f   :  { %v3348_v48 = vsel %vm234_vm4, %v6975_v33, -inf }
0x1240   :  { %3349 = vmax.xlane.f32.xlu2 %v3348_v48  ;;  %v3743_v48 = vpack.c.bf16 %v3741_v37, %v3741_v37 }
0x1242   :  { %v3963_v46 = vpop.xlane.xlu1 %3962 }
0x1243   :  { %4239 = vrot.lane.b32.xlu1 %v6855_v29, %s5457_s21  ;;  %v3335_v54 = vpop.f32.mrf.mxu0  ;;  %v5361_v39 = vpop.eup %5360 }
0x1244   :  { %v3343_v43 = vmul.f32 0.35355338, %v3335_v54  ;;  %v5363_v13 = vpop.eup %5362  ;;  %v3710_v52 = vmul.f32 %v5361_v39, %v3706_v25  ;;  %vm3716_vm12 = vweird.f32 %v5361_v39  ;;  %v6995_v54 = vsel %vm5632_vm3, -50000.0, %v3571_v18 }
0x1245   :  { %v3720_v34 = vmul.f32 %v5363_v13, %v3707_v55  ;;  %vm3726_vm14 = vweird.f32 %v5363_v13  ;;  %vm3717_vm1 = vmor %vm3715_vm11, %vm3716_vm12  ;;  %v3581_v25 = vsel %vm234_vm4, %v6995_v54, -inf }
0x1246   :  { %v6983_v49 = vsel %vm5620_vm6, -50000.0, %v3343_v43  ;;  %v3711_v32 = vmul.f32 %v5361_v39, %v3710_v52  ;;  %vm3727_vm0 = vmor %vm3725_vm15, %vm3726_vm14 }
0x1247   :  { %v3351_v4 = vsel %vm234_vm4, %v6983_v49, -inf  ;;  %v3721_v41 = vmul.f32 %v5363_v13, %v3720_v34  ;;  %v3593_v34 = vsel %vm234_vm4, %v6959_v42, 0.0 }
0x1248   :  { %3352 = vmax.xlane.f32.xlu0 %v3351_v4  ;;  %3956 = vadd.xlane.f32.xlu2 %v3955_v44  ;;  %v3712_v23 = vmul.f32 0.5, %v3711_v32  ;;  %v4192_v44 = vsel %vm148_vm2, %v6966_v11, 0.0  ;;  %v3966_v4 = vadd.f32 1e-12, %v3963_v46 }
0x1249   :  { %v3722_v53 = vmul.f32 0.5, %v3721_v41 }
0x124a   :  { %v3713_v59 = vsub.f32 1.5, %v3712_v23  ;;  %5364 = vrsqrt.f32 %v3966_v4  ;;  %vm3993_vm8 = vweird.f32 %v3966_v4 }
0x124b   :  { %v3338_v38 = vpop.f32.mrf.mxu0  ;;  %v3723_v47 = vsub.f32 1.5, %v3722_v53 }
0x124c   :  { %v3714_v62 = vmul.f32 %v5361_v39, %v3713_v59  ;;  %v3344_v21 = vmul.f32 0.35355338, %v3338_v38 }
0x124d   :  { %v3724_v0 = vmul.f32 %v5363_v13, %v3723_v47 }
0x124e   :  { %v3718_v22 = vsel %vm3717_vm1, %v5361_v39, %v3714_v62 }
0x124f   :  { %v3728_v30 = vsel %vm3727_vm0, %v5363_v13, %v3724_v0  ;;  %v3739_v56 = vmul.f32 %v3718_v22, %v6614_v16  ;;  %v7007_v13 = vsel %vm5632_vm3, -50000.0, %v3344_v21 }
0x1250   :  { %3959 = vadd.xlane.f32.xlu2 %v3958_v17  ;;  %v3740_v43 = vmul.f32 %v3728_v30, %v6715_v58  ;;  %v3354_v52 = vsel %vm234_vm4, %v7007_v13, -inf  ;;  %v5365_v7 = vpop.eup %5364 }
0x1251   :  { %v3988_v32 = vmul.f32 %v5365_v7, %v3966_v4  ;;  %vm3994_vm7 = vweird.f32 %v5365_v7 }
0x1252   :  { %v3742_v39 = vpack.c.bf16 %v3740_v43, %v3739_v56  ;;  %vm3995_vm10 = vmor %vm3993_vm8, %vm3994_vm7 }
0x1253   :  { %v3340_v60 = vpop.f32.mrf.mxu0  ;;  %v3989_v17 = vmul.f32 %v5365_v7, %v3988_v32 }
0x1255   :  { %v3990_v46 = vmul.f32 0.5, %v3989_v17 }
0x1257   :  { %v3991_v37 = vsub.f32 1.5, %v3990_v46 }
0x1258   :  { %4199 = vadd.xlane.f32.xlu2 %v4198_v28 }
0x1259   :  { %v3992_v62 = vmul.f32 %v5365_v7, %v3991_v37 }
0x125a   :  { %v3380_v63 = vpop.permute.xlu1 %3379 }
0x125b   :  { %v3389_v27 = vsel %vm277_vm13, %v3380_v63, 0 }
0x125c   :  { %3397 = vmatpush.bf16.msrb.mxu1 %v3389_v27  ;;  %3752 = vrot.lane.b32.xlu0 %v3743_v48, %s5452_s16  ;;  %v3996_v48 = vsel %vm3995_vm10, %v5365_v7, %v3992_v62 }
0x125d   :  { %v3999_v56 = vmul.f32 %v3996_v48, %v6723_v3 }
0x1260   :  { %3582 = vmax.xlane.f32.xlu2 %v3581_v25 }
0x1262   :  { %v3378_v55 = vpop.permute.xlu1 %3377 }
0x1263   :  { %3398 = vmatpush.bf16.msrb.mxu1 %v3378_v55 }
0x1264   :  { %3750 = vrot.lane.b32.xlu0 %v3742_v39, %s5452_s16 }
0x1268   :  { %4193 = vadd.xlane.f32.xlu2 %v4192_v44 }
0x1270   :  { %3355 = vmax.xlane.f32.xlu2 %v3354_v52 }
0x1288   :  { %3744 = vrot.lane.b32.xlu2 %v6855_v29, %s5452_s16 }
0x128d   :  { %v4197_v22 = vpop.xlane.xlu1 %4196 }
0x128e   :  { %v7025_v43 = vadd.f32 1e-12, %v4197_v22 }
0x12b1   :  { %3594 = vadd.xlane.f32.xlu2 %v3593_v34  ;;  %v4001_v34 = vpack.c.bf16 %v3999_v56, %v3999_v56 }
0x12b3   :  { %v3350_v11 = vpop.xlane.xlu2 %3349 }
0x12b4   :  { %v3357_v38 = vsub.f32 %v6975_v33, %v3350_v11 }
0x12b6   :  { %v3360_v41 = vmul.f32 1.442695, %v3357_v38 }
0x12b8   :  { %5366 = vpow2.f32 %v3360_v41 }
0x12b9   :  { %3597 = vadd.xlane.f32.xlu2 %v3596_v50 }
0x12bb   :  { %v3353_v23 = vpop.xlane.xlu0 %3352  ;;  %v3957_v53 = vpop.xlane.xlu2 %3956 }
0x12bc   :  { %v3358_v12 = vsub.f32 %v6983_v49, %v3353_v23  ;;  %v3964_v59 = vadd.f32 1e-12, %v3957_v53 }
0x12be   :  { %v5367_v42 = vpop.eup %5366  ;;  %v3362_v60 = vmul.f32 1.442695, %v3358_v12  ;;  %5368 = vrsqrt.f32 %v3964_v59  ;;  %vm3973_vm12 = vweird.f32 %v3964_v59 }
0x12bf   :  { %v3366_v47 = vsel %vm234_vm4, %v5367_v42, 0.0 }
0x12c0   :  { %5370 = vpow2.f32 %v3362_v60  ;;  %3367 = vadd.xlane.f32.xlu1 %v3366_v47 }
0x12c3   :  { %v3960_v33 = vpop.xlane.xlu2 %3959 }
0x12c4   :  { %v5369_v28 = vpop.eup %5368  ;;  %v3965_v40 = vadd.f32 1e-12, %v3960_v33 }
0x12c5   :  { %v3968_v18 = vmul.f32 %v5369_v28, %v3964_v59  ;;  %vm3974_vm9 = vweird.f32 %v5369_v28 }
0x12c6   :  { %v7020_v0 = vpop.eup %5370  ;;  %5372 = vrsqrt.f32 %v3965_v40  ;;  %vm3975_vm11 = vmor %vm3973_vm12, %vm3974_vm9  ;;  %vm3983_vm1 = vweird.f32 %v3965_v40  ;;  %vm4220_vm9 = vweird.f32 %v7025_v43 }
0x12c7   :  { %v3375_v49 = vpack.c.bf16 %v7020_v0, %v5367_v42  ;;  %v3969_v63 = vmul.f32 %v5369_v28, %v3968_v18 }
0x12c9   :  { %v3970_v27 = vmul.f32 0.5, %v3969_v63  ;;  %4990 = vmatmul.msk.bf16.vlgmr.msrb.gmra.mxu1 %vm234_vm4, %v3375_v49 }
0x12cb   :  { %v4200_v30 = vpop.xlane.xlu2 %4199  ;;  %v3971_v39 = vsub.f32 1.5, %v3970_v27 }
0x12cc   :  { %v5373_v25 = vpop.eup %5372  ;;  %v4203_v55 = vadd.f32 1e-12, %v4200_v30 }
0x12cd   :  { %v3978_v44 = vmul.f32 %v5373_v25, %v3965_v40  ;;  %v3972_v7 = vmul.f32 %v5369_v28, %v3971_v39  ;;  %vm3984_vm14 = vweird.f32 %v5373_v25 }
0x12ce   :  { %5374 = vrsqrt.f32 %v4203_v55  ;;  %v3753_v21 = vpop.permute.xlu0 %3752  ;;  %vm3985_vm15 = vmor %vm3983_vm1, %vm3984_vm14  ;;  %vm4230_vm7 = vweird.f32 %v4203_v55 }
0x12cf   :  { %v3979_v52 = vmul.f32 %v5373_v25, %v3978_v44  ;;  %v3764_v4 = vsel %vm148_vm2, %v3753_v21, 0  ;;  %5376 = vrsqrt.f32 %v7025_v43  ;;  %v3976_v50 = vsel %vm3975_vm11, %v5369_v28, %v3972_v7 }
0x12d0   :  { %3772 = vmatpush.bf16.xpose.msra.mxu1 %v3764_v4  ;;  %v3997_v59 = vmul.f32 %v3976_v50, %v6614_v16 }
0x12d1   :  { %v3980_v11 = vmul.f32 0.5, %v3979_v52  ;;  %4010 = vrot.lane.b32.xlu2 %v4001_v34, %s5453_s17 }
0x12d3   :  { %v3981_v32 = vsub.f32 1.5, %v3980_v11  ;;  %v3583_v38 = vpop.xlane.xlu2 %3582 }
0x12d4   :  { %v5375_v41 = vpop.eup %5374  ;;  %v3586_v17 = vsub.f32 %v6995_v54, %v3583_v38 }
0x12d5   :  { %v3982_v23 = vmul.f32 %v5373_v25, %v3981_v32  ;;  %v4225_v53 = vmul.f32 %v5375_v41, %v4203_v55  ;;  %v5377_v46 = vpop.eup %5376  ;;  %vm4231_vm0 = vweird.f32 %v5375_v41 }
0x12d6   :  { %v3591_v12 = vmul.f32 1.442695, %v3586_v17  ;;  %v3751_v42 = vpop.permute.xlu0 %3750  ;;  %v4215_v54 = vmul.f32 %v5377_v46, %v7025_v43  ;;  %vm4232_vm8 = vmor %vm4230_vm7, %vm4231_vm0  ;;  %vm4221_vm10 = vweird.f32 %v5377_v46 }
0x12d7   :  { %v3986_v60 = vsel %vm3985_vm15, %v5373_v25, %v3982_v23  ;;  %v4226_v47 = vmul.f32 %v5375_v41, %v4225_v53  ;;  %v3761_v37 = vsel %vm148_vm2, %v3751_v42, 0  ;;  %vm4222_vm14 = vmor %vm4220_vm9, %vm4221_vm10 }
0x12d8   :  { %v3998_v33 = vmul.f32 %v3986_v60, %v6715_v58  ;;  %5378 = vpow2.f32 %v3591_v12  ;;  %3773 = vmatpush.bf16.xpose.msra.mxu1 %v3761_v37  ;;  %v4216_v63 = vmul.f32 %v5377_v46, %v4215_v54  ;;  %v3369_v60 = vsel %vm234_vm4, %v7020_v0, 0.0 }
0x12d9   :  { %v4227_v28 = vmul.f32 0.5, %v4226_v47 }
0x12da   :  { %v4000_v62 = vpack.c.bf16 %v3998_v33, %v3997_v59  ;;  %v4217_v39 = vmul.f32 0.5, %v4216_v63 }
0x12db   :  { %v4228_v40 = vsub.f32 1.5, %v4227_v28  ;;  %v4194_v18 = vpop.xlane.xlu2 %4193 }
0x12dc   :  { %v4201_v49 = vadd.f32 1e-12, %v4194_v18  ;;  %4008 = vrot.lane.b32.xlu2 %v4000_v62, %s5453_s17  ;;  %v4218_v55 = vsub.f32 1.5, %v4217_v39  ;;  %v3629_v62 = vpop.f32.mrf.mxu0 }
0x12dd   :  { %v4229_v48 = vmul.f32 %v5375_v41, %v4228_v40 }
0x12de   :  { %v5379_v22 = vpop.eup %5378  ;;  %5380 = vrsqrt.f32 %v4201_v49  ;;  %v4219_v32 = vmul.f32 %v5377_v46, %v4218_v55  ;;  %vm4210_vm11 = vweird.f32 %v4201_v49 }
0x12df   :  { %v4233_v27 = vsel %vm4232_vm8, %v5375_v41, %v4229_v48  ;;  %v3599_v30 = vsel %vm234_vm4, %v5379_v22, 0.0  ;;  %v3603_v56 = vpack.c.bf16 %v5379_v22, %v5379_v22 }
0x12e0   :  { %3600 = vadd.xlane.f32.xlu0 %v3599_v30  ;;  %v4236_v25 = vmul.f32 %v4233_v27, %v6723_v3  ;;  %v4223_v41 = vsel %vm4222_vm14, %v5377_v46, %v4219_v32  ;;  %v3747_v46 = vpop.permute.xlu1 %3746 }
0x12e1   :  { %4998 = vmatmul.msk.bf16.gmra.mxu0 %vm234_vm4, %v3603_v56  ;;  %v4235_v53 = vmul.f32 %v4223_v41, %v6715_v58 }
0x12e2   :  { %v4238_v44 = vpack.c.bf16 %v4236_v25, %v4236_v25 }
0x12e3   :  { %v3356_v21 = vpop.xlane.xlu2 %3355 }
0x12e4   :  { %v5381_v52 = vpop.eup %5380  ;;  %v3359_v4 = vsub.f32 %v7007_v13, %v3356_v21  ;;  %4247 = vrot.lane.b32.xlu2 %v4238_v44, %s5457_s21 }
0x12e5   :  { %v4205_v34 = vmul.f32 %v5381_v52, %v4201_v49  ;;  %vm4211_vm12 = vweird.f32 %v5381_v52 }
0x12e6   :  { %v3364_v7 = vmul.f32 1.442695, %v3359_v4  ;;  %vm4212_vm1 = vmor %vm4210_vm11, %vm4211_vm12 }
0x12e7   :  { %v4206_v11 = vmul.f32 %v5381_v52, %v4205_v34  ;;  %v3631_v34 = vpop.f32.mrf.mxu0 }
0x12e8   :  { %5382 = vpow2.f32 %v3364_v7  ;;  %v4003_v41 = vpop.permute.xlu1 %4002 }
0x12e9   :  { %v4207_v38 = vmul.f32 0.5, %v4206_v11 }
0x12eb   :  { %v4208_v3 = vsub.f32 1.5, %v4207_v38  ;;  %v3745_v43 = vpop.permute.xlu2 %3744 }
0x12ed   :  { %v4209_v17 = vmul.f32 %v5381_v52, %v4208_v3 }
0x12ee   :  { %v5383_v50 = vpop.eup %5382 }
0x12ef   :  { %v4213_v13 = vsel %vm4212_vm1, %v5381_v52, %v4209_v17  ;;  %v3376_v23 = vpack.c.bf16 %v5383_v50, %v5383_v50  ;;  %v3372_v58 = vsel %vm234_vm4, %v5383_v50, 0.0 }
0x12f0   :  { %v4234_v12 = vmul.f32 %v4213_v13, %v6614_v16 }
0x12f1   :  { %4991 = vmatmul.msk.bf16.gmra.mxu1 %vm234_vm4, %v3376_v23 }
0x12f2   :  { %v4237_v42 = vpack.c.bf16 %v4235_v53, %v4234_v12 }
0x12f4   :  { %4004 = vrot.lane.b32.xlu0 %v6868_v15, %s5453_s17  ;;  %4245 = vrot.lane.b32.xlu2 %v4237_v42, %s5457_s21 }
0x12fc   :  { %4241 = vrot.lane.b32.xlu2 %v6868_v15, %s5457_s21 }
0x1301   :  { %4999 = vmatmul.msk.bf16.vlgmr.msra.gmra.mxu1 %vm148_vm2, %v3745_v43 }
0x1311   :  { %5000 = vmatmul.msk.bf16.gmra.mxu1 %vm148_vm2, %v3747_v46 }
0x131e   :  { %3373 = vadd.xlane.f32.xlu0 %v3372_v58 }
0x1324   :  { %v3595_v16 = vpop.xlane.xlu2 %3594 }
0x1325   :  { %5384 = vrcp.f32 %v3595_v16  ;;  %3370 = vadd.xlane.f32.xlu2 %v3369_v60  ;;  %v3649_v63 = vand.u32 2147483648, %v3595_v16  ;;  %vm3643_vm0 = vweird.f32 %v3595_v16  ;;  %v3647_v48 = vand.u32 2147483647, %v3595_v16 }
0x1327   :  { %v3650_v39 = vor.u32 1.1754944e-38, %v3649_v63  ;;  %vm3648_vm10 = vcmp.eq.f32.partialorder %v3647_v48, 8.507059e+37 }
0x132b   :  { %v5385_v47 = vpop.eup %5384 }
0x132c   :  { %v3639_v37 = vmul.f32 %v5385_v47, %v3595_v16  ;;  %v3598_v59 = vpop.xlane.xlu2 %3597  ;;  %vm3644_vm15 = vweird.f32 %v5385_v47 }
0x132d   :  { %5386 = vrcp.f32 %v3598_v59  ;;  %vm3645_vm7 = vmor %vm3643_vm0, %vm3644_vm15  ;;  %v3663_v27 = vand.u32 2147483648, %v3598_v59  ;;  %v3661_v25 = vand.u32 2147483647, %v3598_v59  ;;  %vm3657_vm9 = vweird.f32 %v3598_v59 }
0x132e   :  { %v3640_v33 = vsub.f32 1.0, %v3639_v37 }
0x132f   :  { %v3664_v52 = vor.u32 1.1754944e-38, %v3663_v27  ;;  %vm3662_vm14 = vcmp.eq.f32.partialorder %v3661_v25, 8.507059e+37 }
0x1330   :  { %v3641_v54 = vmul.f32 %v5385_v47, %v3640_v33 }
0x1332   :  { %3819 = vrot.lane.b32.xlu0 %v6855_v29, %s5455_s19  ;;  %v3642_v40 = vadd.f32 %v5385_v47, %v3641_v54 }
0x1333   :  { %v5387_v28 = vpop.eup %5386 }
0x1334   :  { %v3653_v18 = vmul.f32 %v5387_v28, %v3598_v59  ;;  %v4011_v49 = vpop.permute.xlu2 %4010  ;;  %v3646_v30 = vsel %vm3645_vm7, %v5385_v47, %v3642_v40  ;;  %vm3658_vm8 = vweird.f32 %v5387_v28 }
0x1335   :  { %v4022_v0 = vsel %vm148_vm2, %v4011_v49, 0  ;;  %v3651_v21 = vsel %vm3648_vm10, %v3650_v39, %v3646_v30  ;;  %vm3659_vm12 = vmor %vm3657_vm9, %vm3658_vm8 }
0x1336   :  { %v3654_v22 = vsub.f32 1.0, %v3653_v18  ;;  %4030 = vmatpush.bf16.xpose.msrb.mxu1 %v4022_v0  ;;  %v3680_v32 = vmul.f32 %v3651_v21, %v3629_v62  ;;  %v4240_v0 = vpop.permute.xlu1 %4239 }
0x1338   :  { %v3655_v56 = vmul.f32 %v5387_v28, %v3654_v22 }
0x133a   :  { %v3656_v44 = vadd.f32 %v5387_v28, %v3655_v56  ;;  %4079 = vrot.lane.b32.xlu0 %v6868_v15, %s5456_s20 }
0x133c   :  { %v3660_v4 = vsel %vm3659_vm12, %v5387_v28, %v3656_v44  ;;  %v4009_v55 = vpop.permute.xlu2 %4008 }
0x133d   :  { %v3665_v7 = vsel %vm3662_vm14, %v3664_v52, %v3660_v4  ;;  %v4019_v11 = vsel %vm148_vm2, %v4009_v55, 0  ;;  %v4992_v4 = vld [vmem:[%s7395_s4 + $0x3c] sm:$0xf] }
0x133e   :  { %v3681_v38 = vmul.f32 %v3665_v7, %v3631_v34  ;;  %4031 = vmatpush.bf16.xpose.msrb.mxu1 %v4019_v11  ;;  %v3368_v21 = vpop.xlane.xlu1 %3367  ;;  %v7095_v55 = vsel %vm277_vm13, %v4992_v4, 0 }
0x133f   :  { %3473 = vmatpush.bf16.msrb.mxu2 %v7095_v55  ;;  %vm3414_vm8 = vweird.f32 %v3368_v21 }
0x1340   :  { %v3683_v3 = vpack.c.bf16 %v3681_v38, %v3680_v32 }
0x1342   :  { %4077 = vrot.lane.b32.xlu0 %v6855_v29, %s5456_s20  ;;  %5005 = vmatmul.msk.bf16.vlgmr.msra.gmra.mxu0 %vm148_vm2, %v3683_v3 }
0x1344   :  { %v4248_v17 = vpop.permute.xlu2 %4247 }
0x1345   :  { %v4259_v50 = vsel %vm148_vm2, %v4248_v17, 0  ;;  %5007 = vmatmul.msk.bf16.vlgmr.msrb.gmra.mxu1 %vm148_vm2, %v4003_v41 }
0x1346   :  { %4267 = vmatpush.bf16.xpose.msrb.mxu0 %v4259_v50  ;;  %v7069_v42 = vpop.f32.mrf.mxu1 }
0x134a   :  { %4314 = vrot.lane.b32.xlu0 %v6855_v29, %s5458_s28 }
0x134e   :  { %v4246_v13 = vpop.permute.xlu2 %4245  ;;  %v7071_v54 = vpop.f32.mrf.mxu1 }
0x134f   :  { %v4256_v23 = vsel %vm148_vm2, %v4246_v13, 0 }
0x1350   :  { %4268 = vmatpush.bf16.xpose.msrb.mxu0 %v4256_v23 }
0x1353   :  { %v3601_v53 = vpop.xlane.xlu0 %3600 }
0x1354   :  { %5388 = vrcp.f32 %v3601_v53  ;;  %v3677_v16 = vand.u32 2147483648, %v3601_v53  ;;  %v3675_v47 = vand.u32 2147483647, %v3601_v53  ;;  %vm3671_vm1 = vweird.f32 %v3601_v53 }
0x1355   :  { %5390 = vrcp.f32 %v3368_v21 }
0x1356   :  { %v3678_v29 = vor.u32 1.1754944e-38, %v3677_v16  ;;  %vm3676_vm0 = vcmp.eq.f32.partialorder %v3675_v47, 8.507059e+37  ;;  %v4242_v39 = vpop.permute.xlu2 %4241 }
0x135a   :  { %v5389_v12 = vpop.eup %5388 }
0x135b   :  { %v3667_v43 = vmul.f32 %v5389_v12, %v3601_v53  ;;  %vm3672_vm11 = vweird.f32 %v5389_v12  ;;  %v5391_v32 = vpop.eup %5390 }
0x135c   :  { %vm3673_vm15 = vmor %vm3671_vm1, %vm3672_vm11  ;;  %v3410_v41 = vmul.f32 %v5391_v32, %v3368_v21  ;;  %vm3415_vm7 = vweird.f32 %v5391_v32 }
0x135d   :  { %v3668_v46 = vsub.f32 1.0, %v3667_v43  ;;  %vm3416_vm9 = vmor %vm3414_vm8, %vm3415_vm7 }
0x135e   :  { %v3634_v58 = vpop.f32.mrf.mxu0  ;;  %v3411_v13 = vsub.f32 1.0, %v3410_v41 }
0x135f   :  { %v3669_v60 = vmul.f32 %v5389_v12, %v3668_v46 }
0x1360   :  { %v3412_v53 = vmul.f32 %v5391_v32, %v3411_v13 }
0x1361   :  { %v3670_v37 = vadd.f32 %v5389_v12, %v3669_v60  ;;  %v3420_v60 = vand.u32 2147483648, %v3368_v21 }
0x1362   :  { %v3413_v46 = vadd.f32 %v5391_v32, %v3412_v53 }
0x1363   :  { %v3674_v59 = vsel %vm3673_vm15, %v5389_v12, %v3670_v37  ;;  %v3418_v37 = vand.u32 2147483647, %v3368_v21 }
0x1364   :  { %v3679_v33 = vsel %vm3676_vm0, %v3678_v29, %v3674_v59 }
0x1365   :  { %v3682_v28 = vmul.f32 %v3679_v33, %v3634_v58  ;;  %v3417_v33 = vsel %vm3416_vm9, %v5391_v32, %v3413_v46  ;;  %vm3419_vm11 = vcmp.eq.f32.partialorder %v3418_v37, 8.507059e+37 }
0x1366   :  { %v3636_v62 = vpop.f32.mrf.mxu0  ;;  %v4005_v40 = vpop.permute.xlu0 %4004 }
0x1367   :  { %v3684_v18 = vpack.c.bf16 %v3682_v28, %v3682_v28  ;;  %5008 = vmatmul.msk.bf16.gmra.mxu1 %vm148_vm2, %v4005_v40  ;;  %v3421_v40 = vor.u32 1.1754944e-38, %v3420_v60 }
0x1369   :  { %5006 = vmatmul.msk.bf16.gmra.mxu0 %vm148_vm2, %v3684_v18 }
0x136e   :  { %v7075_v49 = vpop.f32.mrf.mxu1 }
0x1376   :  { %v3407_v63 = vpop.f32.mrf.mxu1 }
0x1379   :  { %5013 = vmatmul.msk.bf16.vlgmr.msrb.gmra.mxu0 %vm148_vm2, %v4240_v0  ;;  %v3422_v0 = vsel %vm3419_vm11, %v3421_v40, %v3417_v33 }
0x137e   :  { %v3775_v48 = vpop.f32.mrf.mxu1 }
0x137f   :  { %v3784_v22 = vmul.f32 0.35355338, %v3775_v48 }
0x1381   :  { %v7080_v27 = vsel %vm5616_vm5, -50000.0, %v3784_v22  ;;  %v3451_v22 = vmul.f32 %v3422_v0, %v7069_v42 }
0x1382   :  { %v3790_v30 = vsel %vm234_vm4, %v7080_v27, -inf }
0x1383   :  { %3791 = vmax.xlane.f32.xlu1 %v3790_v30 }
0x1386   :  { %v3777_v56 = vpop.f32.mrf.mxu1 }
0x1387   :  { %v3785_v25 = vmul.f32 0.35355338, %v3777_v56 }
0x1389   :  { %v7086_v44 = vsel %vm5620_vm6, -50000.0, %v3785_v25  ;;  %5014 = vmatmul.msk.bf16.gmra.mxu0 %vm148_vm2, %v4242_v39 }
0x138a   :  { %v3793_v52 = vsel %vm234_vm4, %v7086_v44, -inf }
0x138b   :  { %3794 = vmax.xlane.f32.xlu2 %v3793_v52 }
0x138e   :  { %v3780_v34 = vpop.f32.mrf.mxu1 }
0x138f   :  { %v3786_v7 = vmul.f32 0.35355338, %v3780_v34 }
0x1391   :  { %v7100_v11 = vsel %vm5632_vm3, -50000.0, %v3786_v7  ;;  %v3374_v3 = vpop.xlane.xlu0 %3373 }
0x1392   :  { %v3796_v38 = vsel %vm234_vm4, %v7100_v11, -inf  ;;  %5392 = vrcp.f32 %v3374_v3  ;;  %v3448_v21 = vand.u32 2147483648, %v3374_v3  ;;  %vm3442_vm0 = vweird.f32 %v3374_v3 }
0x1393   :  { %3797 = vmax.xlane.f32.xlu2 %v3796_v38  ;;  %v3446_v52 = vand.u32 2147483647, %v3374_v3 }
0x1394   :  { %v3449_v34 = vor.u32 1.1754944e-38, %v3448_v21 }
0x1395   :  { %vm3447_vm8 = vcmp.eq.f32.partialorder %v3446_v52, 8.507059e+37 }
0x1396   :  { %v3782_v17 = vpop.f32.mrf.mxu1 }
0x1398   :  { %v3371_v50 = vpop.xlane.xlu2 %3370  ;;  %v5393_v23 = vpop.eup %5392 }
0x1399   :  { %5394 = vrcp.f32 %v3371_v50  ;;  %v3438_v58 = vmul.f32 %v5393_v23, %v3374_v3  ;;  %v3434_v47 = vand.u32 2147483648, %v3371_v50  ;;  %v3432_v59 = vand.u32 2147483647, %v3371_v50 }
0x139a   :  { %vm3428_vm12 = vweird.f32 %v3371_v50  ;;  %vm3443_vm15 = vweird.f32 %v5393_v23 }
0x139b   :  { %v3439_v28 = vsub.f32 1.0, %v3438_v58  ;;  %v3435_v18 = vor.u32 1.1754944e-38, %v3434_v47  ;;  %vm3433_vm1 = vcmp.eq.f32.partialorder %v3432_v59, 8.507059e+37  ;;  %vm3444_vm7 = vmor %vm3442_vm0, %vm3443_vm15 }
0x139c   :  { %3821 = vrot.lane.b32.xlu1 %v6868_v15, %s5455_s19 }
0x139d   :  { %v3440_v30 = vmul.f32 %v5393_v23, %v3439_v28 }
0x139f   :  { %v5395_v12 = vpop.eup %5394  ;;  %v3441_v39 = vadd.f32 %v5393_v23, %v3440_v30 }
0x13a0   :  { %v3424_v43 = vmul.f32 %v5395_v12, %v3371_v50  ;;  %vm3429_vm10 = vweird.f32 %v5395_v12 }
0x13a1   :  { %vm3430_vm14 = vmor %vm3428_vm12, %vm3429_vm10  ;;  %v3445_v4 = vsel %vm3444_vm7, %v5393_v23, %v3441_v39 }
0x13a2   :  { %v3425_v16 = vsub.f32 1.0, %v3424_v43  ;;  %v3450_v7 = vsel %vm3447_vm8, %v3449_v34, %v3445_v4 }
0x13a3   :  { %v3453_v32 = vmul.f32 %v3450_v7, %v7075_v49 }
0x13a4   :  { %v3426_v29 = vmul.f32 %v5395_v12, %v3425_v16 }
0x13a5   :  { %v3456_v38 = vpack.c.bf16 %v3453_v32, %v3453_v32 }
0x13a6   :  { %v3427_v62 = vadd.f32 %v5395_v12, %v3426_v29 }
0x13a8   :  { %v3431_v63 = vsel %vm3430_vm14, %v5395_v12, %v3427_v62 }
0x13a9   :  { %v3436_v48 = vsel %vm3433_vm1, %v3435_v18, %v3431_v63 }
0x13aa   :  { %v3452_v56 = vmul.f32 %v3436_v48, %v7071_v54 }
0x13ac   :  { %v3455_v25 = vpack.c.bf16 %v3452_v56, %v3451_v22 }
0x13ae   :  { %4993 = vmatmul.msk.bf16.vlgmr.msrb.gmra.mxu2 %vm148_vm2, %v3455_v25  ;;  %v3820_v25 = vpop.permute.xlu0 %3819 }
0x13b6   :  { %v4080_v34 = vpop.permute.xlu0 %4079 }
0x13be   :  { %4994 = vmatmul.msk.bf16.gmra.mxu2 %vm148_vm2, %v3456_v38 }
0x13bf   :  { %v7123_v23 = vpop.f32.mrf.mxu0 }
0x13c2   :  { %v4033_v42 = vpop.f32.mrf.mxu1 }
0x13c3   :  { %v4042_v54 = vmul.f32 0.35355338, %v4033_v42 }
0x13c5   :  { %v7113_v41 = vsel %vm5616_vm5, -50000.0, %v4042_v54 }
0x13c6   :  { %v4048_v17 = vsel %vm234_vm4, %v7113_v41, -inf }
0x13c7   :  { %4049 = vmax.xlane.f32.xlu2 %v4048_v17  ;;  %v7125_v53 = vpop.f32.mrf.mxu0  ;;  %v4089_v17 = vsel %vm277_vm13, %v4080_v34, 0 }
0x13ca   :  { %v4035_v3 = vpop.f32.mrf.mxu1 }
0x13cb   :  { %v4043_v50 = vmul.f32 0.35355338, %v4035_v3  ;;  %v4078_v3 = vpop.permute.xlu0 %4077 }
0x13cd   :  { %v7119_v13 = vsel %vm5620_vm6, -50000.0, %v4043_v50 }
0x13ce   :  { %v4051_v49 = vsel %vm234_vm4, %v7119_v13, -inf }
0x13cf   :  { %4052 = vmax.xlane.f32.xlu2 %v4051_v49  ;;  %v2997_v49 = vadd.f32 %v6946_v31, %v6886_v26 }
0x13e4   :  { %v4038_v12 = vpop.f32.mrf.mxu1 }
0x13e5   :  { %v4044_v43 = vmul.f32 0.35355338, %v4038_v12  ;;  %v3243_v12 = vadd.f32 %v6907_v6, %v2997_v49 }
0x13e6   :  { %v7127_v46 = vpop.f32.mrf.mxu0 }
0x13e7   :  { %v7131_v58 = vsel %vm5632_vm3, -50000.0, %v4044_v43 }
0x13e8   :  { %v4054_v16 = vsel %vm234_vm4, %v7131_v58, -inf }
0x13e9   :  { %4055 = vmax.xlane.f32.xlu0 %v4054_v16 }
0x13ec   :  { %v4040_v60 = vpop.f32.mrf.mxu1 }
0x13ee   :  { %v3944_v47 = vpop.f32.mrf.mxu0 }
0x13f6   :  { %v3792_v37 = vpop.xlane.xlu1 %3791  ;;  %v4270_v29 = vpop.f32.mrf.mxu0 }
0x13f7   :  { %v3799_v59 = vsub.f32 %v7080_v27, %v3792_v37  ;;  %v4279_v33 = vmul.f32 0.35355338, %v4270_v29 }
0x13f9   :  { %v3802_v28 = vmul.f32 1.442695, %v3799_v59  ;;  %v7138_v62 = vsel %vm5616_vm5, -50000.0, %v4279_v33  ;;  %vm7423_vm5 = vcmask 261120  }
0x13fa   :  { %v4285_v40 = vsel %vm234_vm4, %v7138_v62, -inf }
0x13fb   :  { %5396 = vpow2.f32 %v3802_v28  ;;  %4286 = vmax.xlane.f32.xlu1 %v4285_v40 }
0x13fe   :  { %v4272_v18 = vpop.f32.mrf.mxu0  ;;  %v3795_v63 = vpop.xlane.xlu2 %3794 }
0x13ff   :  { %v4280_v0 = vmul.f32 0.35355338, %v4272_v18  ;;  %v3800_v48 = vsub.f32 %v7086_v44, %v3795_v63 }
0x1401   :  { %v5397_v22 = vpop.eup %5396  ;;  %v7145_v27 = vsel %vm5620_vm6, -50000.0, %v4280_v0  ;;  %v3804_v30 = vmul.f32 1.442695, %v3800_v48  ;;  %v4315_v0 = vpop.permute.xlu0 %4314  ;;  %vm7424_vm6 = vmmov %vm7423_vm5 }
0x1402   :  { %v3808_v2 = vsel %vm234_vm4, %v5397_v22, 0.0  ;;  %v4288_v56 = vsel %vm234_vm4, %v7145_v27, -inf }
0x1403   :  { %5398 = vpow2.f32 %v3804_v30  ;;  %3809 = vadd.xlane.f32.xlu1 %v3808_v2  ;;  %4289 = vmax.xlane.f32.xlu2 %v4288_v56 }
0x1406   :  { %v4275_v39 = vpop.f32.mrf.mxu0  ;;  %v3798_v21 = vpop.xlane.xlu2 %3797 }
0x1407   :  { %v3801_v52 = vsub.f32 %v7100_v11, %v3798_v21  ;;  %v4281_v29 = vmul.f32 0.35355338, %v4275_v39 }
0x1409   :  { %v5399_v44 = vpop.eup %5398  ;;  %v3806_v4 = vmul.f32 1.442695, %v3801_v52 }
0x140a   :  { %v3811_v5 = vsel %vm234_vm4, %v5399_v44, 0.0  ;;  %v3817_v11 = vpack.c.bf16 %v5399_v44, %v5397_v22  ;;  %v2999_v22 = vadd.f32 %v6949_v36, %v6891_v61 }
0x140b   :  { %3812 = vadd.xlane.f32.xlu1 %v3811_v5  ;;  %5400 = vpow2.f32 %v3806_v4 }
0x140c   :  { %v3244_v2 = vadd.f32 %v6912_v45, %v2999_v22 }
0x140e   :  { %v3822_v7 = vpop.permute.xlu1 %3821  ;;  %v4277_v32 = vpop.f32.mrf.mxu0 }
0x140f   :  { %v3831_v38 = vsel %vm277_vm13, %v3822_v7, 0 }
0x1410   :  { %3839 = vmatpush.bf16.msra.mxu2 %v3831_v38 }
0x1411   :  { %v5401_v42 = vpop.eup %5400 }
0x1412   :  { %v3814_v54 = vsel %vm234_vm4, %v5401_v42, 0.0  ;;  %v3818_v50 = vpack.c.bf16 %v5401_v42, %v5401_v42 }
0x1413   :  { %3815 = vadd.xlane.f32.xlu1 %v3814_v54 }
0x1414   :  { %3840 = vmatpush.bf16.msra.mxu2 %v3820_v25  ;;  %v7186_v25 = vld [vmem:[%s7393_s1 + $0x1f] ss:$0 sm:$0xff] }
0x1417   :  { %5001 = vmatmul.msk.bf16.vlgmr.msra.gmra.mxu2 %vm234_vm4, %v3817_v11 }
0x1418   :  { %4097 = vmatpush.bf16.msrb.mxu2 %v4089_v17 }
0x141b   :  { %4316 = vrot.lane.b32.xlu2 %v6868_v15, %s5458_s28  ;;  %v7168_v15 = vsel %vm5632_vm3, -50000.0, %v4281_v29 }
0x141c   :  { %4098 = vmatpush.bf16.msrb.mxu2 %v4078_v3 }
0x1420   :  { %4406 = vmatpush.bf16.msra.mxu2 %v7095_v55  ;;  %v3002_v55 = vadd.f32 %v6953_v8, %v6897_v14 }
0x1422   :  { %v3245_v26 = vadd.f32 %v6917_v19, %v3002_v55 }
0x1427   :  { %5002 = vmatmul.msk.bf16.gmra.mxu2 %vm234_vm4, %v3818_v50 }
0x1431   :  { %v3475_v43 = vpop.f32.mrf.mxu2 }
0x1432   :  { %v3484_v16 = vadd.f32 %v3475_v43, %v3243_v12 }
0x1434   :  { %v4421_v17 = vadd.f32 %v7186_v25, %v3484_v16 }
0x1436   :  { %v7203_v50 = vadd.f32 %v4421_v17, %v6454_v35 }
0x1438   :  { %v4433_v49 = vsel %vm7424_vm6, %v7203_v50, 0.0 }
0x1439   :  { %v3477_v60 = vpop.f32.mrf.mxu2 }
0x143a   :  { %v4050_v47 = vpop.xlane.xlu2 %4049  ;;  %v3485_v56 = vadd.f32 %v3477_v60, %v3244_v2 }
0x143b   :  { %v4057_v37 = vsub.f32 %v7113_v41, %v4050_v47  ;;  %v4291_v41 = vsel %vm234_vm4, %v7168_v15, -inf }
0x143c   :  { %v4422_v21 = vadd.f32 %v7186_v25, %v3485_v56 }
0x143d   :  { %v4060_v59 = vmul.f32 1.442695, %v4057_v37 }
0x143e   :  { %v7192_v61 = vadd.f32 %v4422_v21, %v6457_v51 }
0x143f   :  { %5402 = vpow2.f32 %v4060_v59 }
0x1441   :  { %v3480_v31 = vpop.f32.mrf.mxu2 }
0x1442   :  { %v7171_v6 = vadd.f32 %v3480_v31, %v3245_v26  ;;  %v4053_v33 = vpop.xlane.xlu2 %4052 }
0x1443   :  { %v4058_v28 = vsub.f32 %v7119_v13, %v4053_v33 }
0x1444   :  { %4292 = vmax.xlane.f32.xlu2 %v4291_v41  ;;  %v4423_v17 = vadd.f32 %v7186_v25, %v7171_v6 }
0x1445   :  { %v5403_v14 = vpop.eup %5402  ;;  %v4062_v8 = vmul.f32 1.442695, %v4058_v28 }
0x1446   :  { %v4066_v40 = vsel %vm234_vm4, %v5403_v14, 0.0 }
0x1447   :  { %5404 = vpow2.f32 %v4062_v8  ;;  %4067 = vadd.xlane.f32.xlu0 %v4066_v40 }
0x1449   :  { %v3482_v57 = vpop.f32.mrf.mxu2 }
0x144d   :  { %v5405_v18 = vpop.eup %5404 }
0x144e   :  { %v4075_v63 = vpack.c.bf16 %v5405_v18, %v5403_v14  ;;  %v4069_v19 = vsel %vm234_vm4, %v5405_v18, 0.0 }
0x144f   :  { %4070 = vadd.xlane.f32.xlu1 %v4069_v19 }
0x1450   :  { %5009 = vmatmul.msk.bf16.vlgmr.msrb.gmra.mxu2 %vm234_vm4, %v4075_v63 }
0x145c   :  { %v4056_v13 = vpop.xlane.xlu0 %4055 }
0x145d   :  { %v4059_v48 = vsub.f32 %v7131_v58, %v4056_v13  ;;  %v4436_v58 = vsel %vm7423_vm5, %v7192_v61, 0.0 }
0x145f   :  { %v4064_v30 = vmul.f32 1.442695, %v4059_v48 }
0x1461   :  { %5406 = vpow2.f32 %v4064_v30 }
0x1467   :  { %v5407_v39 = vpop.eup %5406 }
0x1468   :  { %v4072_v52 = vsel %vm234_vm4, %v5407_v39, 0.0  ;;  %v4076_v44 = vpack.c.bf16 %v5407_v39, %v5407_v39 }
0x1469   :  { %4073 = vadd.xlane.f32.xlu2 %v4072_v52 }
0x146a   :  { %5010 = vmatmul.msk.bf16.gmra.mxu2 %vm234_vm4, %v4076_v44 }
0x146e   :  { %v4287_v36 = vpop.xlane.xlu1 %4286 }
0x146f   :  { %v4294_v45 = vsub.f32 %v7138_v62, %v4287_v36 }
0x1471   :  { %v4297_v4 = vmul.f32 1.442695, %v4294_v45  ;;  %4437 = vadd.xlane.f32.xlu2 %v4436_v58 }
0x1473   :  { %5408 = vpow2.f32 %v4297_v4 }
0x1476   :  { %v4290_v5 = vpop.xlane.xlu2 %4289  ;;  %v3810_v32 = vpop.xlane.xlu1 %3809 }
0x1477   :  { %v4295_v34 = vsub.f32 %v7145_v27, %v4290_v5  ;;  %vm3856_vm10 = vweird.f32 %v3810_v32  ;;  %v3862_v28 = vand.u32 2147483648, %v3810_v32  ;;  %v3860_v8 = vand.u32 2147483647, %v3810_v32 }
0x1479   :  { %v5409_v7 = vpop.eup %5408  ;;  %v4299_v38 = vmul.f32 1.442695, %v4295_v34  ;;  %v3863_v63 = vor.u32 1.1754944e-38, %v3862_v28  ;;  %vm3861_vm11 = vcmp.eq.f32.partialorder %v3860_v8, 8.507059e+37 }
0x147a   :  { %v4303_v42 = vsel %vm234_vm4, %v5409_v7, 0.0 }
0x147b   :  { %5410 = vpow2.f32 %v4299_v38  ;;  %4304 = vadd.xlane.f32.xlu0 %v4303_v42 }
0x147c   :  { %5412 = vrcp.f32 %v3810_v32 }
0x147e   :  { %v4317_v51 = vpop.permute.xlu2 %4316  ;;  %v3813_v3 = vpop.xlane.xlu1 %3812 }
0x147f   :  { %v4326_v54 = vsel %vm277_vm13, %v4317_v51, 0  ;;  %5414 = vrcp.f32 %v3813_v3  ;;  %v3876_v41 = vand.u32 2147483648, %v3813_v3  ;;  %vm3870_vm12 = vweird.f32 %v3813_v3 }
0x1480   :  { %4334 = vmatpush.bf16.msra.mxu1 %v4326_v54  ;;  %v3874_v40 = vand.u32 2147483647, %v3813_v3 }
0x1481   :  { %v5411_v62 = vpop.eup %5410  ;;  %v3877_v19 = vor.u32 1.1754944e-38, %v3876_v41 }
0x1482   :  { %v4306_v11 = vsel %vm234_vm4, %v5411_v62, 0.0  ;;  %v4312_v27 = vpack.c.bf16 %v5411_v62, %v5409_v7  ;;  %v5413_v12 = vpop.eup %5412  ;;  %vm3875_vm1 = vcmp.eq.f32.partialorder %v3874_v40, 8.507059e+37 }
0x1483   :  { %4307 = vadd.xlane.f32.xlu1 %v4306_v11  ;;  %v3852_v16 = vmul.f32 %v5413_v12, %v3810_v32  ;;  %vm3857_vm13 = vweird.f32 %v5413_v12 }
0x1484   :  { %4335 = vmatpush.bf16.msra.mxu1 %v4315_v0  ;;  %vm3858_vm9 = vmor %vm3856_vm10, %vm3857_vm13 }
0x1485   :  { %v5415_v43 = vpop.eup %5414  ;;  %v3853_v37 = vsub.f32 1.0, %v3852_v16 }
0x1486   :  { %v3866_v60 = vmul.f32 %v5415_v43, %v3813_v3  ;;  %v3816_v47 = vpop.xlane.xlu1 %3815  ;;  %vm3871_vm3 = vweird.f32 %v5415_v43 }
0x1487   :  { %5015 = vmatmul.msk.bf16.vlgmr.msra.gmra.mxu1 %vm234_vm4, %v4312_v27  ;;  %5416 = vrcp.f32 %v3816_v47  ;;  %v3854_v29 = vmul.f32 %v5413_v12, %v3853_v37  ;;  %vm3872_vm14 = vmor %vm3870_vm12, %vm3871_vm3  ;;  %v3890_v44 = vand.u32 2147483648, %v3816_v47  ;;  %vm3884_vm0 = vweird.f32 %v3816_v47 }
0x1488   :  { %v3867_v55 = vsub.f32 1.0, %v3866_v60  ;;  %v3888_v36 = vand.u32 2147483647, %v3816_v47 }
0x1489   :  { %v3855_v35 = vadd.f32 %v5413_v12, %v3854_v29  ;;  %v3891_v58 = vor.u32 1.1754944e-38, %v3890_v44 }
0x148a   :  { %v3868_v59 = vmul.f32 %v5415_v43, %v3867_v55  ;;  %vm3889_vm8 = vcmp.eq.f32.partialorder %v3888_v36, 8.507059e+37 }
0x148b   :  { %4434 = vadd.xlane.f32.xlu1 %v4433_v49  ;;  %v3859_v57 = vsel %vm3858_vm9, %v5413_v12, %v3855_v35  ;;  %v7216_v49 = vadd.f32 %v4423_v17, %v6475_v24 }
0x148c   :  { %v3869_v33 = vadd.f32 %v5415_v43, %v3868_v59  ;;  %v3864_v13 = vsel %vm3861_vm11, %v3863_v63, %v3859_v57 }
0x148d   :  { %v5417_v26 = vpop.eup %5416  ;;  %v4439_v16 = vsel %vm7423_vm5, %v7216_v49, 0.0 }
0x148e   :  { %v3880_v14 = vmul.f32 %v5417_v26, %v3816_v47  ;;  %v3873_v18 = vsel %vm3872_vm14, %v5415_v43, %v3869_v33  ;;  %vm3885_vm15 = vweird.f32 %v5417_v26 }
0x148f   :  { %v3878_v22 = vsel %vm3875_vm1, %v3877_v19, %v3873_v18  ;;  %vm3886_vm7 = vmor %vm3884_vm0, %vm3885_vm15 }
0x1490   :  { %v3881_v0 = vsub.f32 1.0, %v3880_v14 }
0x1492   :  { %v3882_v39 = vmul.f32 %v5417_v26, %v3881_v0 }
0x1494   :  { %v3883_v21 = vadd.f32 %v5417_v26, %v3882_v39 }
0x1496   :  { %v3887_v45 = vsel %vm3886_vm7, %v5417_v26, %v3883_v21 }
0x1497   :  { %v3892_v4 = vsel %vm3889_vm8, %v3891_v58, %v3887_v45 }
0x149a   :  { %v3842_v31 = vpop.f32.mrf.mxu2 }
0x149b   :  { %v3893_v30 = vmul.f32 %v3864_v13, %v3842_v31 }
0x14a2   :  { %v3844_v48 = vpop.f32.mrf.mxu2 }
0x14a3   :  { %v3894_v2 = vmul.f32 %v3878_v22, %v3844_v48 }
0x14a5   :  { %v3896_v56 = vpack.c.bf16 %v3894_v2, %v3893_v30 }
0x14a7   :  { %5003 = vmatmul.msk.bf16.vlgmr.msrb.gmra.mxu3 %vm148_vm2, %v3896_v56 }
0x14aa   :  { %v3847_v52 = vpop.f32.mrf.mxu2 }
0x14ab   :  { %v3895_v5 = vmul.f32 %v3892_v4, %v3847_v52 }
0x14ad   :  { %v3897_v7 = vpack.c.bf16 %v3895_v5, %v3895_v5 }
0x14b2   :  { %v3849_v34 = vpop.f32.mrf.mxu2 }
0x14b7   :  { %5004 = vmatmul.msk.bf16.gmra.mxu3 %vm148_vm2, %v3897_v7  ;;  %v4293_v32 = vpop.xlane.xlu2 %4292 }
0x14b8   :  { %v4296_v38 = vsub.f32 %v7168_v15, %v4293_v32 }
0x14ba   :  { %v4301_v42 = vmul.f32 1.442695, %v4296_v38  ;;  %v4068_v51 = vpop.xlane.xlu0 %4067 }
0x14bb   :  { %v4120_v26 = vand.u32 2147483648, %v4068_v51  ;;  %v4118_v31 = vand.u32 2147483647, %v4068_v51 }
0x14bc   :  { %5418 = vpow2.f32 %v4301_v42 }
0x14bd   :  { %5420 = vrcp.f32 %v4068_v51  ;;  %v4121_v41 = vor.u32 1.1754944e-38, %v4120_v26  ;;  %vm4119_vm12 = vcmp.eq.f32.partialorder %v4118_v31, 8.507059e+37 }
0x14c2   :  { %v5419_v54 = vpop.eup %5418  ;;  %v4071_v62 = vpop.xlane.xlu1 %4070 }
0x14c3   :  { %5422 = vrcp.f32 %v4071_v62  ;;  %v4309_v11 = vsel %vm234_vm4, %v5419_v54, 0.0  ;;  %v4313_v3 = vpack.c.bf16 %v5419_v54, %v5419_v54  ;;  %v5421_v27 = vpop.eup %5420  ;;  %v4134_v24 = vand.u32 2147483648, %v4071_v62 }
0x14c4   :  { %4310 = vadd.xlane.f32.xlu0 %v4309_v11  ;;  %v4110_v15 = vmul.f32 %v5421_v27, %v4068_v51  ;;  %vm4115_vm6 = vweird.f32 %v5421_v27  ;;  %vm4128_vm10 = vweird.f32 %v4071_v62  ;;  %v4132_v35 = vand.u32 2147483647, %v4071_v62 }
0x14c5   :  { %5016 = vmatmul.msk.bf16.gmra.mxu1 %vm234_vm4, %v4313_v3  ;;  %vm4114_vm4 = vweird.f32 %v4068_v51  ;;  %v4135_v14 = vor.u32 1.1754944e-38, %v4134_v24 }
0x14c6   :  { %v4111_v60 = vsub.f32 1.0, %v4110_v15  ;;  %vm4116_vm3 = vmor %vm4114_vm4, %vm4115_vm6  ;;  %vm4133_vm14 = vcmp.eq.f32.partialorder %v4132_v35, 8.507059e+37 }
0x14c8   :  { %v4112_v6 = vmul.f32 %v5421_v27, %v4111_v60 }
0x14c9   :  { %v5423_v12 = vpop.eup %5422 }
0x14ca   :  { %v4124_v43 = vmul.f32 %v5423_v12, %v4071_v62  ;;  %v4113_v29 = vadd.f32 %v5421_v27, %v4112_v6  ;;  %vm4129_vm13 = vweird.f32 %v5423_v12 }
0x14cb   :  { %vm4130_vm9 = vmor %vm4128_vm10, %vm4129_vm13 }
0x14cc   :  { %v4125_v47 = vsub.f32 1.0, %v4124_v43  ;;  %4440 = vadd.xlane.f32.xlu0 %v4439_v16  ;;  %v4117_v33 = vsel %vm4116_vm3, %v5421_v27, %v4113_v29 }
0x14cd   :  { %v4122_v8 = vsel %vm4119_vm12, %v4121_v41, %v4117_v33 }
0x14ce   :  { %v4126_v37 = vmul.f32 %v5423_v12, %v4125_v47 }
0x14d0   :  { %v4127_v59 = vadd.f32 %v5423_v12, %v4126_v37 }
0x14d2   :  { %v4131_v28 = vsel %vm4130_vm9, %v5423_v12, %v4127_v59 }
0x14d3   :  { %v4100_v55 = vpop.f32.mrf.mxu2  ;;  %v4136_v57 = vsel %vm4133_vm14, %v4135_v14, %v4131_v28 }
0x14d4   :  { %v4151_v18 = vmul.f32 %v4122_v8, %v4100_v55 }
0x14db   :  { %v4102_v40 = vpop.f32.mrf.mxu2 }
0x14dc   :  { %v4152_v63 = vmul.f32 %v4136_v57, %v4102_v40  ;;  %v4074_v19 = vpop.xlane.xlu2 %4073 }
0x14dd   :  { %5424 = vrcp.f32 %v4074_v19  ;;  %v4148_v30 = vand.u32 2147483648, %v4074_v19  ;;  %v4146_v56 = vand.u32 2147483647, %v4074_v19  ;;  %vm4142_vm1 = vweird.f32 %v4074_v19 }
0x14de   :  { %v4154_v0 = vpack.c.bf16 %v4152_v63, %v4151_v18 }
0x14df   :  { %v4149_v21 = vor.u32 1.1754944e-38, %v4148_v30  ;;  %vm4147_vm0 = vcmp.eq.f32.partialorder %v4146_v56, 8.507059e+37 }
0x14e0   :  { %5011 = vmatmul.msk.bf16.vlgmr.msra.gmra.mxu3 %vm148_vm2, %v4154_v0 }
0x14e3   :  { %v5425_v13 = vpop.eup %5424 }
0x14e4   :  { %v4138_v48 = vmul.f32 %v5425_v13, %v4074_v19  ;;  %vm4143_vm11 = vweird.f32 %v5425_v13 }
0x14e5   :  { %vm4144_vm15 = vmor %vm4142_vm1, %vm4143_vm11 }
0x14e6   :  { %v4139_v22 = vsub.f32 1.0, %v4138_v48 }
0x14e8   :  { %v4140_v2 = vmul.f32 %v5425_v13, %v4139_v22 }
0x14ea   :  { %v4141_v39 = vadd.f32 %v5425_v13, %v4140_v2 }
0x14ec   :  { %v4145_v52 = vsel %vm4144_vm15, %v5425_v13, %v4141_v39 }
0x14ed   :  { %v4105_v44 = vpop.f32.mrf.mxu2  ;;  %v4150_v36 = vsel %vm4147_vm0, %v4149_v21, %v4145_v52 }
0x14ee   :  { %v4153_v45 = vmul.f32 %v4150_v36, %v4105_v44  ;;  %v4305_v58 = vpop.xlane.xlu0 %4304 }
0x14ef   :  { %5426 = vrcp.f32 %v4305_v58  ;;  %vm4351_vm5 = vweird.f32 %v4305_v58  ;;  %v4357_v15 = vand.u32 2147483648, %v4305_v58  ;;  %v4355_v43 = vand.u32 2147483647, %v4305_v58 }
0x14f0   :  { %v4155_v4 = vpack.c.bf16 %v4153_v45, %v4153_v45 }
0x14f1   :  { %v4358_v6 = vor.u32 1.1754944e-38, %v4357_v15  ;;  %vm4356_vm3 = vcmp.eq.f32.partialorder %v4355_v43, 8.507059e+37 }
0x14f2   :  { %5012 = vmatmul.msk.bf16.gmra.mxu3 %vm148_vm2, %v4155_v4 }
0x14f5   :  { %v4107_v5 = vpop.f32.mrf.mxu2  ;;  %v5427_v34 = vpop.eup %5426 }
0x14f6   :  { %v4308_v7 = vpop.xlane.xlu1 %4307  ;;  %v4347_v32 = vmul.f32 %v5427_v34, %v4305_v58  ;;  %vm4352_vm7 = vweird.f32 %v5427_v34 }
0x14f7   :  { %5428 = vrcp.f32 %v4308_v7  ;;  %v4371_v12 = vand.u32 2147483648, %v4308_v7  ;;  %vm4353_vm6 = vmor %vm4351_vm5, %vm4352_vm7  ;;  %vm4365_vm13 = vweird.f32 %v4308_v7  ;;  %v4369_v16 = vand.u32 2147483647, %v4308_v7 }
0x14f8   :  { %v4348_v42 = vsub.f32 1.0, %v4347_v32 }
0x14f9   :  { %v4372_v37 = vor.u32 1.1754944e-38, %v4371_v12  ;;  %vm4370_vm10 = vcmp.eq.f32.partialorder %v4369_v16, 8.507059e+37 }
0x14fa   :  { %v4349_v62 = vmul.f32 %v5427_v34, %v4348_v42 }
0x14fc   :  { %v4350_v3 = vadd.f32 %v5427_v34, %v4349_v62 }
0x14fd   :  { %v5429_v38 = vpop.eup %5428 }
0x14fe   :  { %v4361_v51 = vmul.f32 %v5429_v38, %v4308_v7  ;;  %vm4366_vm8 = vweird.f32 %v5429_v38  ;;  %v4354_v60 = vsel %vm4353_vm6, %v5427_v34, %v4350_v3  ;;  %v4435_v34 = vpop.xlane.xlu1 %4434 }
0x14ff   :  { %vm4367_vm4 = vmor %vm4365_vm13, %vm4366_vm8  ;;  %v4359_v55 = vsel %vm4356_vm3, %v4358_v6, %v4354_v60 }
0x1500   :  { %v4362_v54 = vsub.f32 1.0, %v4361_v51 }
0x1502   :  { %v4363_v17 = vmul.f32 %v5429_v38, %v4362_v54 }
0x1504   :  { %v4337_v11 = vpop.f32.mrf.mxu1  ;;  %v4364_v27 = vadd.f32 %v5429_v38, %v4363_v17 }
0x1505   :  { %v4388_v26 = vmul.f32 %v4359_v55, %v4337_v11  ;;  %v4438_v11 = vpop.xlane.xlu2 %4437 }
0x1506   :  { %v4368_v47 = vsel %vm4367_vm4, %v5429_v38, %v4364_v27  ;;  %v4451_v38 = vmul.f32 %v4435_v34, %v6251_v9  ;;  %v4452_v27 = vmul.f32 %v4438_v11, %v6251_v9  ;;  %v7283_v34 = vld [vmem:[%s7393_s1 + $0x20] ss:$0 sm:$0xff] }
0x1507   :  { %v4373_v59 = vsel %vm4370_vm10, %v4372_v37, %v4368_v47 }
0x1508   :  { %v7231_v62 = vsub.f32 %v7203_v50, %v4451_v38 }
0x150a   :  { %v4463_v12 = vmul.f32 %v7231_v62, %v7231_v62 }
0x150c   :  { %v4339_v29 = vpop.f32.mrf.mxu1 }
0x150d   :  { %v4389_v24 = vmul.f32 %v4373_v59, %v4339_v29 }
0x150f   :  { %v4391_v31 = vpack.c.bf16 %v4389_v24, %v4388_v26 }
0x1511   :  { %5017 = vmatmul.msk.bf16.vlgmr.msra.gmra.mxu2 %vm148_vm2, %v4391_v31 }
0x152a   :  { %v3913_v35 = vpop.f32.mrf.mxu3 }
0x152b   :  { %v3938_v4 = vadd.f32 %v7123_v23, %v3913_v35 }
0x1532   :  { %v3915_v33 = vpop.f32.mrf.mxu3 }
0x1533   :  { %v3940_v51 = vadd.f32 %v7125_v53, %v3915_v33 }
0x1537   :  { %v4311_v28 = vpop.xlane.xlu0 %4310 }
0x1538   :  { %5430 = vrcp.f32 %v4311_v28  ;;  %v4385_v63 = vand.u32 2147483648, %v4311_v28  ;;  %v4383_v0 = vand.u32 2147483647, %v4311_v28  ;;  %vm4379_vm12 = vweird.f32 %v4311_v28 }
0x153a   :  { %v3918_v41 = vpop.f32.mrf.mxu3  ;;  %v4386_v48 = vor.u32 1.1754944e-38, %v4385_v63  ;;  %vm4384_vm11 = vcmp.eq.f32.partialorder %v4383_v0, 8.507059e+37 }
0x153b   :  { %v3943_v44 = vadd.f32 %v7127_v46, %v3918_v41 }
0x153e   :  { %v5431_v14 = vpop.eup %5430 }
0x153f   :  { %v4375_v8 = vmul.f32 %v5431_v14, %v4311_v28  ;;  %vm4380_vm9 = vweird.f32 %v5431_v14  ;;  %v4441_v47 = vpop.xlane.xlu0 %4440 }
0x1540   :  { %vm4381_vm14 = vmor %vm4379_vm12, %vm4380_vm9 }
0x1541   :  { %v4376_v40 = vsub.f32 1.0, %v4375_v8 }
0x1542   :  { %v3920_v57 = vpop.f32.mrf.mxu3  ;;  %v4342_v18 = vpop.f32.mrf.mxu1 }
0x1543   :  { %v4377_v19 = vmul.f32 %v5431_v14, %v4376_v40  ;;  %v5083_v40 = vld [vmem:[%s7394_s3 + $0x38] sm:$0xff] }
0x1544   :  { %4614 = vmatpush.bf16.msrb.mxu3 %v5083_v40 }
0x1545   :  { %v4378_v13 = vadd.f32 %v5431_v14, %v4377_v19  ;;  %v5082_v19 = vld [vmem:[%s7394_s3 + $0x30] sm:$0xff] }
0x1547   :  { %v4382_v22 = vsel %vm4381_vm14, %v5431_v14, %v4378_v13 }
0x1548   :  { %v4387_v30 = vsel %vm4384_vm11, %v4386_v48, %v4382_v22  ;;  %4615 = vmatpush.bf16.msrb.mxu3 %v5082_v19  ;;  %v5085_v19 = vld [vmem:[%s7395_s4 + $0x48] sm:$0xff] }
0x1549   :  { %v4390_v2 = vmul.f32 %v4387_v30, %v4342_v18 }
0x154a   :  { %v4344_v56 = vpop.f32.mrf.mxu1 }
0x154b   :  { %v4392_v39 = vpack.c.bf16 %v4390_v2, %v4390_v2 }
0x154d   :  { %5018 = vmatmul.msk.bf16.gmra.mxu2 %vm148_vm2, %v4392_v39  ;;  %vm7425_vm2 = vcmask 261120  }
0x154e   :  { %vm7426_vm1 = vmmov %vm7425_vm2 }
0x154f   :  { %v4469_v50 = vsel %vm7426_vm1, %v4463_v12, 0.0  ;;  %vm7427_vm15 = vmmov %vm7426_vm1 }
0x1550   :  { %vm7428_vm0 = vmmov %vm7426_vm1 }
0x1551   :  { %vm7429_vm7 = vmmov %vm7428_vm0 }
0x1552   :  { %vm7430_vm8 = vmmov %vm7428_vm0 }
0x1553   :  { %vm7431_vm5 = vmmov %vm7428_vm0 }
0x1554   :  { %vm7432_vm6 = vmmov %vm7428_vm0 }
0x1555   :  { %vm7433_vm14 = vmmov %vm7428_vm0 }
0x1556   :  { %vm7434_vm11 = vmmov %vm7428_vm0 }
0x1563   :  { %v4171_v21 = vpop.f32.mrf.mxu3 }
0x1564   :  { %v4180_v5 = vadd.f32 %v4171_v21, %v3938_v4 }
0x156b   :  { %v4173_v52 = vpop.f32.mrf.mxu3 }
0x156c   :  { %v4181_v46 = vadd.f32 %v4173_v52, %v3940_v51 }
0x1575   :  { %v4176_v36 = vpop.f32.mrf.mxu3 }
0x1576   :  { %v4182_v45 = vadd.f32 %v4176_v36, %v3943_v44 }
0x157d   :  { %v4178_v58 = vpop.f32.mrf.mxu3 }
0x1594   :  { %v4408_v7 = vpop.f32.mrf.mxu2 }
0x1595   :  { %v4417_v32 = vadd.f32 %v4408_v7, %v4180_v5 }
0x1597   :  { %v4424_v42 = vadd.f32 %v7186_v25, %v4417_v32 }
0x1599   :  { %v4430_v54 = vadd.f32 %v4424_v42, %v6478_v10  ;;  %v7240_v10 = vsub.f32 %v7192_v61, %v4452_v27  ;;  %v7289_v42 = vld [vmem:[%s7393_s1 + $0x21] ss:$0 sm:$0xff] }
0x159b   :  { %v4442_v17 = vsel %vm7425_vm2, %v4430_v54, 0.0  ;;  %v4464_v16 = vmul.f32 %v7240_v10, %v7240_v10 }
0x159c   :  { %4443 = vadd.xlane.f32.xlu1 %v4442_v17  ;;  %v4410_v23 = vpop.f32.mrf.mxu2 }
0x159d   :  { %v4418_v3 = vadd.f32 %v4410_v23, %v4181_v46  ;;  %v4472_v60 = vsel %vm7428_vm0, %v4464_v16, 0.0 }
0x159f   :  { %v4425_v15 = vadd.f32 %v7186_v25, %v4418_v3 }
0x15a1   :  { %v4431_v53 = vadd.f32 %v4425_v15, %v6670_v20  ;;  %v4453_v20 = vmul.f32 %v4441_v47, %v6251_v9 }
0x15a3   :  { %v4445_v43 = vsel %vm7427_vm15, %v4431_v53, 0.0  ;;  %v7253_v29 = vsub.f32 %v7216_v49, %v4453_v20 }
0x15a4   :  { %4470 = vadd.xlane.f32.xlu1 %v4469_v50  ;;  %4446 = vadd.xlane.f32.xlu2 %v4445_v43 }
0x15a5   :  { %v4465_v24 = vmul.f32 %v7253_v29, %v7253_v29 }
0x15a7   :  { %v4475_v31 = vsel %vm7430_vm8, %v4465_v24, 0.0 }
0x15ac   :  { %4473 = vadd.xlane.f32.xlu2 %v4472_v60 }
0x15d0   :  { %v4413_v6 = vpop.f32.mrf.mxu2 }
0x15d1   :  { %v4419_v37 = vadd.f32 %v4413_v6, %v4182_v45 }
0x15d3   :  { %v4426_v61 = vadd.f32 %v7186_v25, %v4419_v37 }
0x15d5   :  { %v7250_v55 = vadd.f32 %v4426_v61, %v6673_v1 }
0x15d7   :  { %v4448_v59 = vsel %vm7429_vm7, %v7250_v55, 0.0 }
0x15d8   :  { %v4415_v26 = vpop.f32.mrf.mxu2  ;;  %4449 = vadd.xlane.f32.xlu0 %v4448_v59 }
0x15e0   :  { %4476 = vadd.xlane.f32.xlu0 %v4475_v31 }
0x160f   :  { %v4444_v35 = vpop.xlane.xlu1 %4443 }
0x1610   :  { %v4454_v25 = vmul.f32 %v4444_v35, %v6251_v9 }
0x1612   :  { %v7261_v33 = vsub.f32 %v4430_v54, %v4454_v25 }
0x1614   :  { %v4466_v1 = vmul.f32 %v7261_v33, %v7261_v33 }
0x1616   :  { %v4478_v49 = vsel %vm7431_vm5, %v4466_v1, 0.0 }
0x1617   :  { %4479 = vadd.xlane.f32.xlu1 %v4478_v49  ;;  %v4471_v28 = vpop.xlane.xlu1 %4470  ;;  %v4447_v41 = vpop.xlane.xlu2 %4446 }
0x1618   :  { %v4487_v14 = vmul.f32 %v4471_v28, %v6251_v9  ;;  %v4455_v8 = vmul.f32 %v4447_v41, %v6251_v9 }
0x161a   :  { %v4493_v57 = vadd.f32 1e-05, %v4487_v14  ;;  %v7271_v18 = vsub.f32 %v4431_v53, %v4455_v8  ;;  %v5087_v8 = vld [vmem:[%s7395_s4 + $0x58] sm:$0xff] }
0x161b   :  { %4687 = vmatpush.bf16.msra.mxu0 %v5087_v8 }
0x161c   :  { %5432 = vrsqrt.f32 %v4493_v57  ;;  %v4467_v63 = vmul.f32 %v7271_v18, %v7271_v18  ;;  %vm4505_vm4 = vweird.f32 %v4493_v57 }
0x161e   :  { %v4481_v0 = vsel %vm7432_vm6, %v4467_v63, 0.0  ;;  %vm7435_vm6 = vcmask 523264  }
0x161f   :  { %4482 = vadd.xlane.f32.xlu2 %v4481_v0  ;;  %v4474_v13 = vpop.xlane.xlu2 %4473 }
0x1620   :  { %v4488_v48 = vmul.f32 %v4474_v13, %v6251_v9  ;;  %v5084_v13 = vld [vmem:[%s7395_s4 + $0x40] sm:$0xff] }
0x1622   :  { %v5433_v22 = vpop.eup %5432  ;;  %v4494_v30 = vadd.f32 1e-05, %v4488_v48 }
0x1623   :  { %v4500_v2 = vmul.f32 %v5433_v22, %v4493_v57  ;;  %vm4506_vm13 = vweird.f32 %v5433_v22  ;;  %v5086_v57 = vld [vmem:[%s7395_s4 + $0x50] sm:$0xff] }
0x1624   :  { %5434 = vrsqrt.f32 %v4494_v30  ;;  %vm4507_vm3 = vmor %vm4505_vm4, %vm4506_vm13  ;;  %vm4515_vm9 = vweird.f32 %v4494_v30  ;;  %4688 = vmatpush.bf16.msra.mxu0 %v5086_v57 }
0x1625   :  { %v4501_v56 = vmul.f32 %v5433_v22, %v4500_v2 }
0x1627   :  { %v4502_v39 = vmul.f32 0.5, %v4501_v56 }
0x1628   :  { %4689 = vmatpush.bf16.msra.mxu0 %v5085_v19 }
0x1629   :  { %v4503_v21 = vsub.f32 1.5, %v4502_v39  ;;  %v5111_v39 = vld [vmem:[%s7393_s1 + $0x22] ss:$0 sm:$0xff] }
0x162a   :  { %v5435_v52 = vpop.eup %5434 }
0x162b   :  { %v4504_v44 = vmul.f32 %v5433_v22, %v4503_v21  ;;  %v4510_v36 = vmul.f32 %v5435_v52, %v4494_v30  ;;  %vm4516_vm10 = vweird.f32 %v5435_v52 }
0x162c   :  { %vm4517_vm12 = vmor %vm4515_vm9, %vm4516_vm10  ;;  %4690 = vmatpush.bf16.msra.mxu0 %v5084_v13 }
0x162d   :  { %v4511_v45 = vmul.f32 %v5435_v52, %v4510_v36  ;;  %v4508_v58 = vsel %vm4507_vm3, %v5433_v22, %v4504_v44 }
0x162e   :  { %v4559_v7 = vmul.f32 %v4508_v58, %v7231_v62 }
0x162f   :  { %v4512_v4 = vmul.f32 0.5, %v4511_v45 }
0x1630   :  { %v4566_v51 = vmul.f32 %v7283_v34, %v4559_v7 }
0x1631   :  { %v4513_v5 = vsub.f32 1.5, %v4512_v4 }
0x1632   :  { %v4573_v17 = vadd.f32 %v7289_v42, %v4566_v51 }
0x1633   :  { %v4514_v32 = vmul.f32 %v5435_v52, %v4513_v5 }
0x1635   :  { %v4518_v38 = vsel %vm4517_vm12, %v5435_v52, %v4514_v32 }
0x1636   :  { %v4560_v54 = vmul.f32 %v4518_v38, %v7240_v10 }
0x1638   :  { %v4567_v46 = vmul.f32 %v7283_v34, %v4560_v54 }
0x163a   :  { %v4574_v11 = vadd.f32 %v7289_v42, %v4567_v46 }
0x163c   :  { %v4583_v62 = vpack.c.bf16 %v4574_v11, %v4573_v17 }
0x163e   :  { %5031 = vmatmul.msk.bf16.vlgmr.msrb.gmra.mxu3 %vm7433_vm14, %v4583_v62  ;;  %vm7436_vm14 = vmmov %vm7431_vm5 }
0x164b   :  { %v4450_v23 = vpop.xlane.xlu0 %4449 }
0x164c   :  { %v4456_v3 = vmul.f32 %v4450_v23, %v6251_v9 }
0x164e   :  { %v7299_v27 = vsub.f32 %v7250_v55, %v4456_v3 }
0x1650   :  { %v4468_v15 = vmul.f32 %v7299_v27, %v7299_v27 }
0x1652   :  { %v4484_v12 = vsel %vm7434_vm11, %v4468_v15, 0.0  ;;  %vm7437_vm11 = vmmov %vm7435_vm6 }
0x1653   :  { %4485 = vadd.xlane.f32.xlu0 %v4484_v12  ;;  %v4477_v53 = vpop.xlane.xlu0 %4476 }
0x1654   :  { %v4489_v10 = vmul.f32 %v4477_v53, %v6251_v9 }
0x1656   :  { %v4495_v50 = vadd.f32 1e-05, %v4489_v10 }
0x1658   :  { %5436 = vrsqrt.f32 %v4495_v50  ;;  %vm4525_vm1 = vweird.f32 %v4495_v50 }
0x165e   :  { %v5437_v43 = vpop.eup %5436 }
0x165f   :  { %v4520_v16 = vmul.f32 %v5437_v43, %v4495_v50  ;;  %vm4526_vm2 = vweird.f32 %v5437_v43 }
0x1660   :  { %vm4527_vm15 = vmor %vm4525_vm1, %vm4526_vm2 }
0x1661   :  { %v4521_v60 = vmul.f32 %v5437_v43, %v4520_v16  ;;  %vm7438_vm2 = vmmov %vm7435_vm6 }
0x1662   :  { %vm7439_vm1 = vmmov %vm7431_vm5 }
0x1663   :  { %v4522_v20 = vmul.f32 0.5, %v4521_v60 }
0x1665   :  { %v4523_v61 = vsub.f32 1.5, %v4522_v20 }
0x1667   :  { %v4524_v59 = vmul.f32 %v5437_v43, %v4523_v61 }
0x1669   :  { %v4528_v31 = vsel %vm4527_vm15, %v5437_v43, %v4524_v59  ;;  %vm7440_vm15 = vmmov %vm7439_vm1 }
0x166a   :  { %v4561_v1 = vmul.f32 %v4528_v31, %v7253_v29 }
0x166c   :  { %v4568_v14 = vmul.f32 %v7283_v34, %v4561_v1 }
0x166e   :  { %v7317_v29 = vadd.f32 %v7289_v42, %v4568_v14 }
0x168a   :  { %v4480_v47 = vpop.xlane.xlu1 %4479 }
0x168b   :  { %v4490_v6 = vmul.f32 %v4480_v47, %v6251_v9 }
0x168d   :  { %v4496_v37 = vadd.f32 1e-05, %v4490_v6 }
0x168f   :  { %5438 = vrsqrt.f32 %v4496_v37  ;;  %vm4535_vm7 = vweird.f32 %v4496_v37 }
0x1692   :  { %v4483_v0 = vpop.xlane.xlu2 %4482 }
0x1693   :  { %v4491_v48 = vmul.f32 %v4483_v0, %v6251_v9 }
0x1695   :  { %v5439_v55 = vpop.eup %5438  ;;  %v4497_v22 = vadd.f32 1e-05, %v4491_v48 }
0x1696   :  { %v4530_v26 = vmul.f32 %v5439_v55, %v4496_v37  ;;  %vm4536_vm0 = vweird.f32 %v5439_v55 }
0x1697   :  { %vm4537_vm8 = vmor %vm4535_vm7, %vm4536_vm0  ;;  %5440 = vrsqrt.f32 %v4497_v22  ;;  %vm4545_vm4 = vweird.f32 %v4497_v22 }
0x1698   :  { %v4531_v24 = vmul.f32 %v5439_v55, %v4530_v26  ;;  %vm7441_vm0 = vmmov %vm7439_vm1 }
0x1699   :  { %vm7442_vm7 = vmmov %vm7441_vm0 }
0x169a   :  { %v4532_v35 = vmul.f32 0.5, %v4531_v24 }
0x169c   :  { %v4533_v25 = vsub.f32 1.5, %v4532_v35 }
0x169d   :  { %v5441_v30 = vpop.eup %5440 }
0x169e   :  { %v4534_v49 = vmul.f32 %v5439_v55, %v4533_v25  ;;  %v4540_v56 = vmul.f32 %v5441_v30, %v4497_v22  ;;  %vm4546_vm13 = vweird.f32 %v5441_v30 }
0x169f   :  { %vm4547_vm3 = vmor %vm4545_vm4, %vm4546_vm13 }
0x16a0   :  { %v4538_v28 = vsel %vm4537_vm8, %v5439_v55, %v4534_v49  ;;  %v4541_v21 = vmul.f32 %v5441_v30, %v4540_v56  ;;  %v5112_v49 = vld [vmem:[%s7393_s1 + $0x23] ss:$0 sm:$0xff]  ;;  %vm7443_vm13 = vmmov %vm7441_vm0 }
0x16a1   :  { %v4562_v41 = vmul.f32 %v4538_v28, %v7261_v33 }
0x16a2   :  { %v4542_v4 = vmul.f32 0.5, %v4541_v21 }
0x16a3   :  { %v4569_v40 = vmul.f32 %v7283_v34, %v4562_v41 }
0x16a4   :  { %v4543_v38 = vsub.f32 1.5, %v4542_v4 }
0x16a5   :  { %v4576_v63 = vadd.f32 %v7289_v42, %v4569_v40 }
0x16a6   :  { %v4544_v46 = vmul.f32 %v5441_v30, %v4543_v38 }
0x16a7   :  { %v4584_v33 = vpack.c.bf16 %v4576_v63, %v7317_v29 }
0x16a8   :  { %v4548_v62 = vsel %vm4547_vm3, %v5441_v30, %v4544_v46 }
0x16a9   :  { %5032 = vmatmul.msk.bf16.gmra.mxu3 %vm7431_vm5, %v4584_v33  ;;  %v4563_v15 = vmul.f32 %v4548_v62, %v7271_v18 }
0x16ab   :  { %v4570_v50 = vmul.f32 %v7283_v34, %v4563_v15 }
0x16ad   :  { %v4577_v16 = vadd.f32 %v7289_v42, %v4570_v50 }
0x16c1   :  { %v4617_v2 = vpop.f32.mrf.mxu3 }
0x16c2   :  { %v4618_v36 = vadd.f32 %v5111_v39, %v4617_v2 }
0x16c4   :  { %v4632_v7 = vmax.f32 %v4618_v36, 0.0 }
0x16c6   :  { %v4486_v52 = vpop.xlane.xlu0 %4485 }
0x16c7   :  { %v4492_v44 = vmul.f32 %v4486_v52, %v6251_v9 }
0x16c9   :  { %v4498_v45 = vadd.f32 1e-05, %v4492_v44  ;;  %v4619_v58 = vpop.f32.mrf.mxu3 }
0x16ca   :  { %v4620_v5 = vadd.f32 %v5111_v39, %v4619_v58 }
0x16cb   :  { %5442 = vrsqrt.f32 %v4498_v45  ;;  %vm4555_vm9 = vweird.f32 %v4498_v45 }
0x16cc   :  { %v4633_v32 = vmax.f32 %v4620_v5, 0.0 }
0x16ce   :  { %v4646_v51 = vpack.c.bf16 %v4633_v32, %v4632_v7 }
0x16d0   :  { %5058 = vmatmul.msk.bf16.vlgmr.msra.gmra.mxu0 %vm7435_vm6, %v4646_v51  ;;  %v5113_v51 = vld [vmem:[%s7393_s1 + $0x24] ss:$0 sm:$0xff] }
0x16d1   :  { %v5443_v54 = vpop.eup %5442 }
0x16d2   :  { %v4550_v17 = vmul.f32 %v5443_v54, %v4498_v45  ;;  %vm4556_vm10 = vweird.f32 %v5443_v54 }
0x16d3   :  { %vm4557_vm12 = vmor %vm4555_vm9, %vm4556_vm10 }
0x16d4   :  { %v4551_v11 = vmul.f32 %v5443_v54, %v4550_v17  ;;  %v5114_v17 = vld [vmem:[%s7393_s1 + $0x25] ss:$0 sm:$0xff]  ;;  %vm7444_vm9 = vmmov %vm7441_vm0 }
0x16d6   :  { %v4552_v23 = vmul.f32 0.5, %v4551_v11 }
0x16d8   :  { %v4553_v3 = vsub.f32 1.5, %v4552_v23 }
0x16da   :  { %v4554_v12 = vmul.f32 %v5443_v54, %v4553_v3 }
0x16dc   :  { %v4558_v53 = vsel %vm4557_vm12, %v5443_v54, %v4554_v12  ;;  %vm7445_vm12 = vmmov %vm7441_vm0 }
0x16dd   :  { %v4564_v10 = vmul.f32 %v4558_v53, %v7299_v27 }
0x16df   :  { %v4571_v43 = vmul.f32 %v7283_v34, %v4564_v10 }
0x16e1   :  { %v4578_v60 = vadd.f32 %v7289_v42, %v4571_v43 }
0x16e3   :  { %v4585_v47 = vpack.c.bf16 %v4578_v60, %v4577_v16 }
0x16e5   :  { %5033 = vmatmul.msk.bf16.gmra.mxu3 %vm7436_vm14, %v4585_v47  ;;  %vm7446_vm14 = vmmov %vm7441_vm0 }
0x172c   :  { %v4622_v6 = vpop.f32.mrf.mxu3 }
0x172d   :  { %v4623_v37 = vadd.f32 %v5111_v39, %v4622_v6 }
0x172f   :  { %v4634_v61 = vmax.f32 %v4623_v37, 0.0 }
0x1734   :  { %v4624_v18 = vpop.f32.mrf.mxu3 }
0x1735   :  { %v4625_v20 = vadd.f32 %v5111_v39, %v4624_v18 }
0x1737   :  { %v4635_v55 = vmax.f32 %v4625_v20, 0.0 }
0x1739   :  { %v4647_v59 = vpack.c.bf16 %v4635_v55, %v4634_v61 }
0x173b   :  { %5059 = vmatmul.msk.bf16.gmra.mxu0 %vm7437_vm11, %v4647_v59 }
0x174d   :  { %v4692_v27 = vpop.f32.mrf.mxu0 }
0x1755   :  { %v4693_v26 = vpop.f32.mrf.mxu0 }
0x1768   :  { %v4627_v24 = vpop.f32.mrf.mxu3 }
0x1769   :  { %v4628_v34 = vadd.f32 %v5111_v39, %v4627_v24 }
0x176b   :  { %v4636_v25 = vmax.f32 %v4628_v34, 0.0 }
0x1770   :  { %v4629_v31 = vpop.f32.mrf.mxu3 }
0x1771   :  { %v4630_v35 = vadd.f32 %v5111_v39, %v4629_v31 }
0x1773   :  { %v4637_v42 = vmax.f32 %v4630_v35, 0.0 }
0x1775   :  { %v4648_v1 = vpack.c.bf16 %v4637_v42, %v4636_v25 }
0x1777   :  { %5060 = vmatmul.msk.bf16.gmra.mxu0 %vm7438_vm2, %v4648_v1 }
0x17b8   :  { %v4695_v28 = vpop.f32.mrf.mxu0 }
0x17b9   :  { %v4696_v41 = vadd.f32 %v5112_v49, %v4695_v28 }
0x17bb   :  { %v4703_v14 = vadd.f32 %v4696_v41, %v7317_v29  ;;  %v5089_v41 = vld [vmem:[%s7391_s2 + $0x10] sm:$0xff] }
0x17bc   :  { %4834 = vmatpush.bf16.msrb.mxu1 %v5089_v41 }
0x17bd   :  { %v4705_v8 = vsel %vm7439_vm1, %v4703_v14, 0.0 }
0x17be   :  { %4706 = vadd.xlane.f32.xlu1 %v4705_v8  ;;  %v5088_v8 = vld [vmem:[%s7391_s2 + $0x8] sm:$0xff] }
0x17c0   :  { %v4697_v40 = vpop.f32.mrf.mxu0  ;;  %4835 = vmatpush.bf16.msrb.mxu1 %v5088_v8 }
0x17f4   :  { %v4699_v57 = vpop.f32.mrf.mxu0 }
0x17fc   :  { %v4700_v63 = vpop.f32.mrf.mxu0 }
0x17fd   :  { %v4701_v33 = vadd.f32 %v5112_v49, %v4700_v63 }
0x17ff   :  { %v4704_v19 = vadd.f32 %v4701_v33, %v4578_v60 }
0x1801   :  { %v4708_v0 = vsel %vm7440_vm15, %v4704_v19, 0.0 }
0x1802   :  { %4709 = vadd.xlane.f32.xlu2 %v4708_v0 }
0x1831   :  { %v4707_v13 = vpop.xlane.xlu1 %4706 }
0x1832   :  { %v4711_v48 = vmul.f32 %v4707_v13, %v6251_v9 }
0x1834   :  { %v4713_v22 = vsub.f32 %v4703_v14, %v4711_v48 }
0x1836   :  { %v4715_v30 = vmul.f32 %v4713_v22, %v4713_v22 }
0x1838   :  { %v4717_v2 = vsel %vm7441_vm0, %v4715_v30, 0.0 }
0x1839   :  { %4718 = vadd.xlane.f32.xlu0 %v4717_v2 }
0x1875   :  { %v4710_v29 = vpop.xlane.xlu2 %4709 }
0x1876   :  { %v4712_v56 = vmul.f32 %v4710_v29, %v6251_v9 }
0x1878   :  { %v4714_v39 = vsub.f32 %v4704_v19, %v4712_v56 }
0x187a   :  { %v4716_v21 = vmul.f32 %v4714_v39, %v4714_v39 }
0x187c   :  { %v4720_v52 = vsel %vm7442_vm7, %v4716_v21, 0.0 }
0x187d   :  { %4721 = vadd.xlane.f32.xlu1 %v4720_v52 }
0x18ac   :  { %v4719_v44 = vpop.xlane.xlu0 %4718 }
0x18ad   :  { %v4723_v36 = vmul.f32 %v4719_v44, %v6251_v9  ;;  %v5116_v44 = vld [vmem:[%s7393_s1 + $0x27] ss:$0 sm:$0xff] }
0x18af   :  { %v4725_v45 = vadd.f32 1e-05, %v4723_v36 }
0x18b1   :  { %5444 = vrsqrt.f32 %v4725_v45  ;;  %vm4733_vm5 = vweird.f32 %v4725_v45 }
0x18b7   :  { %v5445_v58 = vpop.eup %5444 }
0x18b8   :  { %v4728_v4 = vmul.f32 %v5445_v58, %v4725_v45  ;;  %vm4734_vm8 = vweird.f32 %v5445_v58 }
0x18b9   :  { %vm4735_vm6 = vmor %vm4733_vm5, %vm4734_vm8  ;;  %vm4845_vm5 = vcmask 31744  }
0x18ba   :  { %v4729_v5 = vmul.f32 %v5445_v58, %v4728_v4  ;;  %vm7447_vm8 = vmmov %vm7444_vm9 }
0x18bc   :  { %v4730_v7 = vmul.f32 0.5, %v4729_v5 }
0x18be   :  { %v4731_v32 = vsub.f32 1.5, %v4730_v7 }
0x18c0   :  { %v4732_v38 = vmul.f32 %v5445_v58, %v4731_v32  ;;  %v5117_v32 = vld [vmem:[%s7393_s1 + $0x28] ss:$0 sm:$0xff] }
0x18c2   :  { %v4736_v54 = vsel %vm4735_vm6, %v5445_v58, %v4732_v38 }
0x18c3   :  { %v4747_v46 = vmul.f32 %v4736_v54, %v4713_v22 }
0x18c5   :  { %v4750_v11 = vmul.f32 %v5113_v51, %v4747_v46 }
0x18c7   :  { %v4753_v62 = vadd.f32 %v5114_v17, %v4750_v11 }
0x18c9   :  { %v4758_v23 = vsel %vm7443_vm13, %v4753_v62, 0.0 }
0x18ca   :  { %4759 = vadd.xlane.f32.xlu2 %v4758_v23 }
0x18f0   :  { %v4722_v3 = vpop.xlane.xlu1 %4721 }
0x18f1   :  { %v4724_v15 = vmul.f32 %v4722_v3, %v6251_v9 }
0x18f3   :  { %v4726_v12 = vadd.f32 1e-05, %v4724_v15 }
0x18f5   :  { %5446 = vrsqrt.f32 %v4726_v12  ;;  %vm4743_vm3 = vweird.f32 %v4726_v12 }
0x18fb   :  { %v5447_v53 = vpop.eup %5446 }
0x18fc   :  { %v4738_v10 = vmul.f32 %v5447_v53, %v4726_v12  ;;  %vm4744_vm4 = vweird.f32 %v5447_v53 }
0x18fd   :  { %vm4745_vm10 = vmor %vm4743_vm3, %vm4744_vm4 }
0x18fe   :  { %v4739_v50 = vmul.f32 %v5447_v53, %v4738_v10 }
0x1900   :  { %v4740_v43 = vmul.f32 0.5, %v4739_v50 }
0x1902   :  { %v4741_v16 = vsub.f32 1.5, %v4740_v43 }
0x1904   :  { %v4742_v60 = vmul.f32 %v5447_v53, %v4741_v16 }
0x1906   :  { %v4746_v47 = vsel %vm4745_vm10, %v5447_v53, %v4742_v60 }
0x1907   :  { %v4748_v6 = vmul.f32 %v4746_v47, %v4714_v39  ;;  %v5115_v39 = vld [vmem:[%s7393_s1 + $0x26] ss:$0 sm:$0xff] }
0x1909   :  { %v4751_v37 = vmul.f32 %v5113_v51, %v4748_v6 }
0x190b   :  { %v4754_v18 = vadd.f32 %v5114_v17, %v4751_v37 }
0x190d   :  { %v4761_v20 = vsel %vm7444_vm9, %v4754_v18, 0.0 }
0x190e   :  { %4762 = vadd.xlane.f32.xlu0 %v4761_v20 }
0x193d   :  { %v4760_v61 = vpop.xlane.xlu2 %4759 }
0x193e   :  { %v4764_v55 = vmul.f32 %v4760_v61, %v6251_v9 }
0x1940   :  { %v4766_v59 = vsub.f32 %v4753_v62, %v4764_v55 }
0x1942   :  { %v4768_v27 = vmul.f32 %v4766_v59, %v4766_v59 }
0x1944   :  { %v4770_v26 = vsel %vm7445_vm12, %v4768_v27, 0.0 }
0x1945   :  { %4771 = vadd.xlane.f32.xlu1 %v4770_v26 }
0x1981   :  { %v4763_v24 = vpop.xlane.xlu0 %4762 }
0x1982   :  { %v4765_v34 = vmul.f32 %v4763_v24, %v6251_v9 }
0x1984   :  { %v4767_v31 = vsub.f32 %v4754_v18, %v4765_v34 }
0x1986   :  { %v4769_v35 = vmul.f32 %v4767_v31, %v4767_v31 }
0x1988   :  { %v4773_v25 = vsel %vm7446_vm14, %v4769_v35, 0.0 }
0x1989   :  { %4774 = vadd.xlane.f32.xlu2 %v4773_v25 }
0x19b8   :  { %v4772_v42 = vpop.xlane.xlu1 %4771 }
0x19b9   :  { %v4776_v1 = vmul.f32 %v4772_v42, %v6251_v9 }
0x19bb   :  { %v4778_v49 = vadd.f32 1e-05, %v4776_v1 }
0x19bd   :  { %5448 = vrsqrt.f32 %v4778_v49  ;;  %vm4786_vm2 = vweird.f32 %v4778_v49 }
0x19c3   :  { %v5449_v28 = vpop.eup %5448 }
0x19c4   :  { %v4781_v14 = vmul.f32 %v5449_v28, %v4778_v49  ;;  %vm4787_vm11 = vweird.f32 %v5449_v28 }
0x19c5   :  { %vm4788_vm1 = vmor %vm4786_vm2, %vm4787_vm11 }
0x19c6   :  { %v4782_v40 = vmul.f32 %v5449_v28, %v4781_v14 }
0x19c8   :  { %v4783_v19 = vmul.f32 0.5, %v4782_v40 }
0x19ca   :  { %v4784_v0 = vsub.f32 1.5, %v4783_v19 }
0x19cc   :  { %v4785_v48 = vmul.f32 %v5449_v28, %v4784_v0 }
0x19ce   :  { %v4789_v2 = vsel %vm4788_vm1, %v5449_v28, %v4785_v48 }
0x19fc   :  { %v4775_v57 = vpop.xlane.xlu2 %4774 }
0x19fd   :  { %v4777_v63 = vmul.f32 %v4775_v57, %v6251_v9  ;;  %v4800_v9 = vmul.f32 %v4789_v2, %v4766_v59 }
0x19ff   :  { %v4779_v33 = vadd.f32 1e-05, %v4777_v63  ;;  %v4803_v36 = vmul.f32 %v5115_v39, %v4800_v9 }
0x1a01   :  { %5450 = vrsqrt.f32 %v4779_v33  ;;  %vm4796_vm0 = vweird.f32 %v4779_v33  ;;  %v4806_v4 = vadd.f32 %v5116_v44, %v4803_v36 }
0x1a07   :  { %v5451_v13 = vpop.eup %5450 }
0x1a08   :  { %v4791_v22 = vmul.f32 %v5451_v13, %v4779_v33  ;;  %vm4797_vm15 = vweird.f32 %v5451_v13 }
0x1a09   :  { %vm4798_vm7 = vmor %vm4796_vm0, %vm4797_vm15 }
0x1a0a   :  { %v4792_v30 = vmul.f32 %v5451_v13, %v4791_v22 }
0x1a0c   :  { %v4793_v29 = vmul.f32 0.5, %v4792_v30 }
0x1a0e   :  { %v4794_v56 = vsub.f32 1.5, %v4793_v29 }
0x1a10   :  { %v4795_v21 = vmul.f32 %v5451_v13, %v4794_v56 }
0x1a12   :  { %v4799_v52 = vsel %vm4798_vm7, %v5451_v13, %v4795_v21 }
0x1a13   :  { %v4801_v45 = vmul.f32 %v4799_v52, %v4767_v31 }
0x1a15   :  { %v4804_v58 = vmul.f32 %v5115_v39, %v4801_v45 }
0x1a17   :  { %v4807_v5 = vadd.f32 %v5116_v44, %v4804_v58 }
0x1a19   :  { %v4812_v7 = vpack.c.bf16 %v4807_v5, %v4806_v4 }
0x1a1b   :  { %5069 = vmatmul.msk.bf16.vlgmr.msrb.gmra.mxu1 %vm7447_vm8, %v4812_v7 }
0x1a98   :  { %v4837_v38 = vpop.f32.mrf.mxu1 }
0x1a99   :  { %v4843_v51 = vadd.f32 %v5117_v32, %v4837_v38 }
0x1a9b   :  { %4846 = vst.msk [vmem:[%s7396_s5] sm:$0xff] %vm4845_vm5, %v4843_v51 }
0x1aa0   :  { %v4839_v54 = vpop.f32.mrf.mxu1 }
0x1aa1   :  { %v4844_v46 = vadd.f32 %v5117_v32, %v4839_v54 }
0x1aa3   :  { %5070 = vst.msk [vmem:[%s7396_s5 + $0x8] sm:$0xff] %vm4845_vm5, %v4844_v46 }

</bundles_post_ra>
